<compile_context>
chip_gen: v6e
topology: v6e:2x2x1
jax: 0.10.0
libtpu: 0.0.40
codegen_flags: <defaults>
</compile_context>

<pallas_src>
import functools
import math

import jax
import jax.numpy as jnp
from jax.experimental import pallas as pl
from jax.experimental.pallas import tpu as pltpu


def _softplus(x):
    # stable softplus from exp/log only (safe Mosaic lowering)
    return jnp.maximum(x, 0.0) + jnp.log(1.0 + jnp.exp(-jnp.abs(x)))


def _mamba2like_kernel(x_ref,
                       wt_in, b_in,          # outer in_proj, packed [x | z]
                       wt_m_in,              # inner Mamba in_proj, packed [x | z]
                       conv_w_rev, conv_b,   # depthwise conv (taps pre-reversed), bias
                       s_cat,                # (R, K*R) fused causal shift matrix
                       wt_delta, b_dt,       # folded wt_x_dt @ wt_dt, dt bias
                       wt_bc,                # packed x_proj [B | C]
                       a_t,                  # (d_state, d_inner) = -exp(A_log).T (untiled)
                       e_big,                # (R*S, R)  row-repeat one-hot
                       q_mask,               # (R*S, S)  per-sublane state-index one-hot
                       sred,                 # (R, R*S)  block row-sum reduction
                       d_param,
                       wt_m_out, wt_out, b_out,
                       o_ref,
                       da_scr, bdu_scr, h_scr,
                       *, seq_len, n_seq, d_state, n_taps):
    f32 = jnp.float32
    R = x_ref.shape[0]                       # rows in this chunk, ordered (t, b)
    d_inner = wt_m_out.shape[0]
    G = n_seq * d_state                      # state rows advanced per time step

    x = x_ref[...].astype(f32)                                               # (R, D)

    # ---- outer in_proj (one matmul), split into x / z halves ------------------
    xz = jnp.dot(x, wt_in[...], preferred_element_type=f32) + b_in[...]      # (R, 2*d_inner)
    x_in = xz[:, :d_inner]
    z_in = xz[:, d_inner:]

    # ---- inner Mamba in_proj (one matmul, no bias) ----------------------------
    mm = jnp.dot(x_in, wt_m_in[...], preferred_element_type=f32)             # (R, 2*d_inner)
    xm = mm[:, :d_inner]
    zm = mm[:, d_inner:]

    # ---- depthwise causal conv1d + SiLU: ONE matmul vs constant shift matrix --
    cwr = conv_w_rev[...]                                                    # (K, d_inner)
    xw = jnp.concatenate([xm * cwr[j:j + 1, :] for j in range(n_taps)],
                         axis=0)                                             # (K*R, d_inner)
    acc = jnp.dot(s_cat[...], xw, preferred_element_type=f32) + conv_b[...]  # (R, d_inner)
    u = acc * jax.nn.sigmoid(acc)                                            # SiLU

    # ---- dt / B / C projections ------------------------------------------------
    delta = _softplus(
        jnp.dot(u, wt_delta[...], preferred_element_type=f32) + b_dt[...])   # (R, d_inner)
    du = delta * u                                                           # (R, d_inner)
    bc = jnp.dot(u, wt_bc[...], preferred_element_type=f32)                  # (R, 2*d_state)

    # ---- pre-expand everything the recurrence needs to (R*S, d_inner) ----------
    # rep_du[i = r*S + s] = [delta[r] | du[r]]  (MXU selection matmul, K = R)
    rep_du = jnp.dot(e_big[...], jnp.concatenate([delta, du], axis=1),
                     preferred_element_type=f32)                             # (R*S, 2*d_inner)
    rep_b = jnp.dot(e_big[...], bc[:, :d_state],
                    preferred_element_type=f32)                              # (R*S, S)
    a_til = jnp.dot(q_mask[...], a_t[...], preferred_element_type=f32)       # (R*S, d_inner)
    da_scr[...] = jnp.exp(rep_du[:, :d_inner] * a_til)                       # exp(delta*A)
    b_col = jnp.sum(rep_b * q_mask[...], axis=-1, keepdims=True)             # (R*S, 1)
    bdu_scr[...] = b_col * rep_du[:, d_inner:]                               # B * delta * u

    # ---- serial selective scan: all sequences of the chunk advance together ----
    # (at L=16 a full unroll is optimal; convert to lax.fori_loop if L is scaled)
    h = jnp.zeros((G, d_inner), f32)
    for t in range(seq_len):
        off = t * G
        h = da_scr[off:off + G, :] * h + bdu_scr[off:off + G, :]
        h_scr[off:off + G, :] = h

    # ---- C contraction: one MXU matmul over all stored states ------------------
    rep_c = jnp.dot(e_big[...], bc[:, d_state:], preferred_element_type=f32)
    c_col = jnp.sum(rep_c * q_mask[...], axis=-1, keepdims=True)             # (R*S, 1)
    y = jnp.dot(sred[...], c_col * h_scr[...], preferred_element_type=f32)   # (R, d_inner)

    # ---- skip connection + gates + output projections ---------------------------
    y = (y + u * d_param[...]) * (zm * jax.nn.sigmoid(zm))                   # D*u skip, SiLU(zm)
    y = jnp.dot(y, wt_m_out[...], preferred_element_type=f32)                # inner out_proj
    y = y * jax.nn.sigmoid(z_in)                                             # outer gate
    out = jnp.dot(y, wt_out[...], preferred_element_type=f32) + b_out[...]
    o_ref[...] = out.astype(o_ref.dtype)


def _default_chunks():
    """One grid step per TensorCore: 2 on v7x (2 TCs/chip), 1 on v5e/v6e."""
    try:
        kind = (jax.devices()[0].device_kind or "").lower()
    except Exception:
        return 1
    return 2 if "v7" in kind else 1


def simple_mamba2_like(x, params, *, chunks=None):
    """x: (B, L, D) float32 -> (B, L, D) float32."""
    B, L, D = x.shape
    if chunks is None:
        chunks = _default_chunks()
    if chunks < 1 or B % chunks != 0:
        chunks = 1
    n_seq = B // chunks
    R = n_seq * L

    d_inner = params["wt_m_out"].shape[0]
    d_state = params["wt_x_b"].shape[1]
    K = params["conv_w"].shape[0]
    f32 = jnp.float32

    # ---- pack / pre-fold weights (host side; logical parameters unchanged) -----
    wt_in = jnp.concatenate([params["wt_in_x"], params["wt_in_z"]], axis=1)      # (D, 2*d_inner)
    b_in = jnp.concatenate([params["b_in_x"], params["b_in_z"]], axis=1)         # (1, 2*d_inner)
    wt_m_in = jnp.concatenate([params["wt_m_in_x"], params["wt_m_in_z"]], axis=1)
    conv_w_rev = params["conv_w"][::-1]                                          # (K, d_inner)
    conv_b = params["conv_b"]
    wt_delta = jnp.dot(params["wt_x_dt"], params["wt_dt"],
                       precision=jax.lax.Precision.HIGHEST)                      # (d_inner, d_inner)
    b_dt = params["b_dt"]
    wt_bc = jnp.concatenate([params["wt_x_b"], params["wt_x_c"]], axis=1)        # (d_inner, 2*d_state)
    a_t = (-jnp.exp(params["a_log"])).T.astype(f32)                              # (d_state, d_inner)
    d_param = params["d_param"]
    wt_m_out = params["wt_m_out"]
    wt_out = params["wt_out"]
    b_out = params["b_out"]

    # ---- constant selection matrices (rows inside a chunk are ordered (t, b)) --
    r_idx = jnp.arange(R)
    diff = r_idx[:, None] - r_idx[None, :]
    # causal depthwise-conv shift: tap j reads the row j*n_seq above (same sequence,
    # earlier time); negative indices vanish automatically => causal zero padding.
    s_cat = jnp.concatenate([(diff == j * n_seq).astype(f32) for j in range(K)],
                            axis=1)                                              # (R, K*R)
    i_idx = jnp.arange(R * d_state)
    e_big = ((i_idx[:, None] // d_state) == r_idx[None, :]).astype(f32)          # (R*S, R)
    q_mask = ((i_idx[:, None] % d_state)
              == jnp.arange(d_state)[None, :]).astype(f32)                       # (R*S, S)
    sred = (r_idx[:, None] == (i_idx[None, :] // d_state)).astype(f32)           # (R, R*S)

    weights = (wt_in, b_in, wt_m_in, conv_w_rev, conv_b, s_cat,
               wt_delta, b_dt, wt_bc, a_t, e_big, q_mask, sred,
               d_param, wt_m_out, wt_out, b_out)

    def _full_block(arr):
        ndim = arr.ndim
        return pl.BlockSpec(arr.shape, lambda i, _n=ndim: (0,) * _n)

    in_specs = [pl.BlockSpec((R, D), lambda i: (i, 0))]
    in_specs += [_full_block(w) for w in weights]

    kernel = functools.partial(_mamba2like_kernel,
                               seq_len=L, n_seq=n_seq, d_state=d_state, n_taps=K)

    # rows ordered (chunk, t, seq-in-chunk) so the scan advances every sequence
    # of a chunk in lock-step.
    x_rows = x.reshape(chunks, n_seq, L, D).transpose(0, 2, 1, 3).reshape(chunks * R, D)

    out2d = pl.pallas_call(
        kernel,
        out_shape=jax.ShapeDtypeStruct((chunks * R, D), x.dtype),
        grid=(chunks,),
        in_specs=in_specs,
        out_specs=pl.BlockSpec((R, D), lambda i: (i, 0)),
        scratch_shapes=[
            pltpu.VMEM((R * d_state, d_inner), f32),   # exp(delta*A)
            pltpu.VMEM((R * d_state, d_inner), f32),   # B * delta * u
            pltpu.VMEM((R * d_state, d_inner), f32),   # stored states h_t
        ],
        compiler_params=pltpu.CompilerParams(dimension_semantics=("parallel",)),
    )(x_rows, *weights)

    return out2d.reshape(chunks, L, n_seq, D).transpose(0, 2, 1, 3).reshape(B, L, D)


def init_params(key, d_model=64, d_state=16, d_conv=4, expand=2,
                dt_min=0.001, dt_max=0.1, dtype=jnp.float32):
    d_inner = int(d_model * expand)            # 128
    # inner Mamba has d_model = d_inner, expand = 1 -> inner width == d_inner
    dt_rank = math.ceil(d_inner / 16)          # 8
    keys = jax.random.split(key, 20)

    def lin(k, fan_in, shape):                 # torch nn.Linear default: U(-1/sqrt(fan_in), ..)
        bound = 1.0 / math.sqrt(fan_in)
        return jax.random.uniform(k, shape, dtype, -bound, bound)

    p = {}
    # outer in_proj: Linear(d_model, 2*d_inner) — split into x/z halves, pre-transposed (in, out)
    p["wt_in_x"] = lin(keys[0], d_model, (d_model, d_inner))
    p["wt_in_z"] = lin(keys[1], d_model, (d_model, d_inner))
    p["b_in_x"] = lin(keys[2], d_model, (1, d_inner))
    p["b_in_z"] = lin(keys[3], d_model, (1, d_inner))
    # inner Mamba in_proj: Linear(d_inner, 2*d_inner, bias=False)
    p["wt_m_in_x"] = lin(keys[4], d_inner, (d_inner, d_inner))
    p["wt_m_in_z"] = lin(keys[5], d_inner, (d_inner, d_inner))
    # depthwise Conv1d(d_inner, d_inner, d_conv, groups=d_inner): weight (d_inner,1,K) -> (K,d_inner)
    p["conv_w"] = lin(keys[6], d_conv, (d_conv, d_inner))
    p["conv_b"] = lin(keys[7], d_conv, (1, d_inner))
    # x_proj: Linear(d_inner, dt_rank + 2*d_state, bias=False), split + transposed
    p["wt_x_dt"] = lin(keys[8], d_inner, (d_inner, dt_rank))
    p["wt_x_b"] = lin(keys[9], d_inner, (d_inner, d_state))
    p["wt_x_c"] = lin(keys[10], d_inner, (d_inner, d_state))
    # dt_proj: Linear(dt_rank, d_inner); Mamba "random" init for weight, inv-softplus bias
    std = dt_rank ** -0.5
    p["wt_dt"] = jax.random.uniform(keys[11], (dt_rank, d_inner), dtype, -std, std)
    u01 = jax.random.uniform(keys[12], (d_inner,), dtype)
    dt = jnp.exp(u01 * (math.log(dt_max) - math.log(dt_min)) + math.log(dt_min))
    dt = jnp.maximum(dt, 1e-4)
    p["b_dt"] = (dt + jnp.log(-jnp.expm1(-dt))).reshape(1, d_inner).astype(dtype)
    # A_log, D: Mamba deterministic init
    p["a_log"] = jnp.log(jnp.broadcast_to(
        jnp.arange(1, d_state + 1, dtype=dtype), (d_inner, d_state)))
    p["d_param"] = jnp.ones((1, d_inner), dtype)
    # inner Mamba out_proj: Linear(d_inner, d_inner, bias=False)
    p["wt_m_out"] = lin(keys[13], d_inner, (d_inner, d_inner))
    # outer out_proj: Linear(d_inner, d_model)
    p["wt_out"] = lin(keys[14], d_inner, (d_inner, d_model))
    p["b_out"] = lin(keys[15], d_inner, (1, d_model))
    return p


def _reference_single(xb, p):
    """Pure-JAX reference for one (L, D) sample."""
    x_in = xb @ p["wt_in_x"] + p["b_in_x"][0]
    z_in = xb @ p["wt_in_z"] + p["b_in_z"][0]
    xm = x_in @ p["wt_m_in_x"]
    zm = x_in @ p["wt_m_in_z"]
    L = xb.shape[0]
    K = p["conv_w"].shape[0]
    xpad = jnp.concatenate([jnp.zeros((K - 1, xm.shape[1]), xm.dtype), xm], axis=0)
    acc = jnp.broadcast_to(p["conv_b"][0], xm.shape)
    for k in range(K):
        acc = acc + xpad[k:k + L] * p["conv_w"][k]
    u = jax.nn.silu(acc)
    delta = jax.nn.softplus((u @ p["wt_x_dt"]) @ p["wt_dt"] + p["b_dt"][0])
    Bm = u @ p["wt_x_b"]
    Cm = u @ p["wt_x_c"]
    A = -jnp.exp(p["a_log"])

    def step(h, inp):
        d_t, b_t, c_t, u_t = inp
        h = jnp.exp(d_t[:, None] * A) * h + d_t[:, None] * b_t[None, :] * u_t[:, None]
        return h, jnp.sum(h * c_t[None, :], axis=-1)

    _, ys = jax.lax.scan(step, jnp.zeros_like(A), (delta, Bm, Cm, u))
    y = (ys + u * p["d_param"][0]) * jax.nn.silu(zm)
    y = y @ p["wt_m_out"]
    y = y * jax.nn.sigmoid(z_in)
    return y @ p["wt_out"] + p["b_out"][0]


if __name__ == "__main__":
    d_model, seq_len, batch_size = 64, 16, 4

    key = jax.random.PRNGKey(0)
    k_x, k_p = jax.random.split(key)
    x = jax.random.normal(k_x, (batch_size, seq_len, d_model), jnp.float32)
    params = init_params(k_p, d_model=d_model)

    out = jax.block_until_ready(simple_mamba2_like(x, params))
    assert out.shape == (batch_size, seq_len, d_model) and out.dtype == jnp.float32

    ref = jax.block_until_ready(jax.vmap(lambda xb: _reference_single(xb, params))(x))
    max_diff = float(jnp.max(jnp.abs(out - ref)))
    assert max_diff < 3e-2, f"mismatch vs reference: max abs diff {max_diff}"

    print("KERNEL_OK")
</pallas_src>

<mosaic_0001>
module attributes {stable_mosaic.version = 11 : i64} {
  func.func @_mamba2like_kernel(%arg0: i32, %arg1: memref<64x64xf32, #tpu.memory_space<vmem>>, %arg2: memref<64x256xf32, #tpu.memory_space<vmem>>, %arg3: memref<1x256xf32, #tpu.memory_space<vmem>>, %arg4: memref<128x256xf32, #tpu.memory_space<vmem>>, %arg5: memref<4x128xf32, #tpu.memory_space<vmem>>, %arg6: memref<1x128xf32, #tpu.memory_space<vmem>>, %arg7: memref<64x256xf32, #tpu.memory_space<vmem>>, %arg8: memref<128x128xf32, #tpu.memory_space<vmem>>, %arg9: memref<1x128xf32, #tpu.memory_space<vmem>>, %arg10: memref<128x32xf32, #tpu.memory_space<vmem>>, %arg11: memref<16x128xf32, #tpu.memory_space<vmem>>, %arg12: memref<1024x64xf32, #tpu.memory_space<vmem>>, %arg13: memref<1024x16xf32, #tpu.memory_space<vmem>>, %arg14: memref<64x1024xf32, #tpu.memory_space<vmem>>, %arg15: memref<1x128xf32, #tpu.memory_space<vmem>>, %arg16: memref<128x128xf32, #tpu.memory_space<vmem>>, %arg17: memref<128x64xf32, #tpu.memory_space<vmem>>, %arg18: memref<1x64xf32, #tpu.memory_space<vmem>>, %arg19: memref<64x64xf32, #tpu.memory_space<vmem>>, %arg20: memref<1024x128xf32, #tpu.memory_space<vmem>>, %arg21: memref<1024x128xf32, #tpu.memory_space<vmem>>, %arg22: memref<1024x128xf32, #tpu.memory_space<vmem>>) attributes {dimension_semantics = [#tpu.dimension_semantics<parallel>], iteration_bounds = array<i64: 1>, scalar_prefetch = 0 : i64, scratch_operands = 3 : i64, tpu.core_type = #tpu.core_type<tc>, window_params = [{transform_indices = @transform_0, window_bounds = array<i64: 64, 64>}, {pipeline_mode = #tpu.pipeline_mode<synchronous>, transform_indices = @transform_1, window_bounds = array<i64: 64, 256>}, {pipeline_mode = #tpu.pipeline_mode<synchronous>, transform_indices = @transform_2, window_bounds = array<i64: 1, 256>}, {pipeline_mode = #tpu.pipeline_mode<synchronous>, transform_indices = @transform_3, window_bounds = array<i64: 128, 256>}, {pipeline_mode = #tpu.pipeline_mode<synchronous>, transform_indices = @transform_4, window_bounds = array<i64: 4, 128>}, {pipeline_mode = #tpu.pipeline_mode<synchronous>, transform_indices = @transform_5, window_bounds = array<i64: 1, 128>}, {pipeline_mode = #tpu.pipeline_mode<synchronous>, transform_indices = @transform_6, window_bounds = array<i64: 64, 256>}, {pipeline_mode = #tpu.pipeline_mode<synchronous>, transform_indices = @transform_7, window_bounds = array<i64: 128, 128>}, {pipeline_mode = #tpu.pipeline_mode<synchronous>, transform_indices = @transform_8, window_bounds = array<i64: 1, 128>}, {pipeline_mode = #tpu.pipeline_mode<synchronous>, transform_indices = @transform_9, window_bounds = array<i64: 128, 32>}, {pipeline_mode = #tpu.pipeline_mode<synchronous>, transform_indices = @transform_10, window_bounds = array<i64: 16, 128>}, {pipeline_mode = #tpu.pipeline_mode<synchronous>, transform_indices = @transform_11, window_bounds = array<i64: 1024, 64>}, {pipeline_mode = #tpu.pipeline_mode<synchronous>, transform_indices = @transform_12, window_bounds = array<i64: 1024, 16>}, {pipeline_mode = #tpu.pipeline_mode<synchronous>, transform_indices = @transform_13, window_bounds = array<i64: 64, 1024>}, {pipeline_mode = #tpu.pipeline_mode<synchronous>, transform_indices = @transform_14, window_bounds = array<i64: 1, 128>}, {pipeline_mode = #tpu.pipeline_mode<synchronous>, transform_indices = @transform_15, window_bounds = array<i64: 128, 128>}, {pipeline_mode = #tpu.pipeline_mode<synchronous>, transform_indices = @transform_16, window_bounds = array<i64: 128, 64>}, {pipeline_mode = #tpu.pipeline_mode<synchronous>, transform_indices = @transform_17, window_bounds = array<i64: 1, 64>}, {transform_indices = @transform_18, window_bounds = array<i64: 64, 64>}]} {
    %c0 = arith.constant 0 : index
    %c0_0 = arith.constant 0 : index
    %0 = vector.load %arg1[%c0, %c0_0] : memref<64x64xf32, #tpu.memory_space<vmem>>, vector<64x64xf32>
    %c0_1 = arith.constant 0 : index
    %c0_2 = arith.constant 0 : index
    %1 = vector.load %arg2[%c0_1, %c0_2] : memref<64x256xf32, #tpu.memory_space<vmem>>, vector<64x256xf32>
    %cst = arith.constant dense<0.000000e+00> : vector<64x256xf32>
    %2 = tpu.matmul %0, %1, %cst {dimension_numbers = #tpu.dot_dimension_numbers<[1], [0], [0], [1], [0, 0, 1, 1], [], []>} : vector<64x64xf32>, vector<64x256xf32>, vector<64x256xf32> -> vector<64x256xf32>
    %c0_3 = arith.constant 0 : index
    %c0_4 = arith.constant 0 : index
    %3 = vector.load %arg3[%c0_3, %c0_4] : memref<1x256xf32, #tpu.memory_space<vmem>>, vector<1x256xf32>
    %4 = vector.broadcast %3 : vector<1x256xf32> to vector<64x256xf32>
    %5 = arith.addf %2, %4 : vector<64x256xf32>
    %6 = vector.extract_strided_slice %5 {offsets = [0, 0], sizes = [64, 128], strides = [1, 1]} : vector<64x256xf32> to vector<64x128xf32>
    %7 = vector.extract_strided_slice %5 {offsets = [0, 128], sizes = [64, 128], strides = [1, 1]} : vector<64x256xf32> to vector<64x128xf32>
    %c0_5 = arith.constant 0 : index
    %c0_6 = arith.constant 0 : index
    %8 = vector.load %arg4[%c0_5, %c0_6] : memref<128x256xf32, #tpu.memory_space<vmem>>, vector<128x256xf32>
    %cst_7 = arith.constant dense<0.000000e+00> : vector<64x256xf32>
    %9 = tpu.matmul %6, %8, %cst_7 {dimension_numbers = #tpu.dot_dimension_numbers<[1], [0], [0], [1], [0, 0, 1, 1], [], []>} : vector<64x128xf32>, vector<128x256xf32>, vector<64x256xf32> -> vector<64x256xf32>
    %10 = vector.extract_strided_slice %9 {offsets = [0, 0], sizes = [64, 128], strides = [1, 1]} : vector<64x256xf32> to vector<64x128xf32>
    %11 = vector.extract_strided_slice %9 {offsets = [0, 128], sizes = [64, 128], strides = [1, 1]} : vector<64x256xf32> to vector<64x128xf32>
    %c0_8 = arith.constant 0 : index
    %c0_9 = arith.constant 0 : index
    %12 = vector.load %arg5[%c0_8, %c0_9] : memref<4x128xf32, #tpu.memory_space<vmem>>, vector<4x128xf32>
    %13 = vector.extract_strided_slice %12 {offsets = [0, 0], sizes = [1, 128], strides = [1, 1]} : vector<4x128xf32> to vector<1x128xf32>
    %14 = vector.broadcast %13 : vector<1x128xf32> to vector<64x128xf32>
    %15 = arith.mulf %10, %14 : vector<64x128xf32>
    %16 = vector.extract_strided_slice %12 {offsets = [1, 0], sizes = [1, 128], strides = [1, 1]} : vector<4x128xf32> to vector<1x128xf32>
    %17 = vector.broadcast %16 : vector<1x128xf32> to vector<64x128xf32>
    %18 = arith.mulf %10, %17 : vector<64x128xf32>
    %19 = vector.extract_strided_slice %12 {offsets = [2, 0], sizes = [1, 128], strides = [1, 1]} : vector<4x128xf32> to vector<1x128xf32>
    %20 = vector.broadcast %19 : vector<1x128xf32> to vector<64x128xf32>
    %21 = arith.mulf %10, %20 : vector<64x128xf32>
    %22 = vector.extract_strided_slice %12 {offsets = [3, 0], sizes = [1, 128], strides = [1, 1]} : vector<4x128xf32> to vector<1x128xf32>
    %23 = vector.broadcast %22 : vector<1x128xf32> to vector<64x128xf32>
    %24 = arith.mulf %10, %23 : vector<64x128xf32>
    %25 = tpu.concatenate %15, %18, %21, %24 in 0 : vector<64x128xf32>, vector<64x128xf32>, vector<64x128xf32>, vector<64x128xf32> -> vector<256x128xf32>
    %c0_10 = arith.constant 0 : index
    %c0_11 = arith.constant 0 : index
    %26 = vector.load %arg7[%c0_10, %c0_11] : memref<64x256xf32, #tpu.memory_space<vmem>>, vector<64x256xf32>
    %cst_12 = arith.constant dense<0.000000e+00> : vector<64x128xf32>
    %27 = tpu.matmul %26, %25, %cst_12 {dimension_numbers = #tpu.dot_dimension_numbers<[1], [0], [0], [1], [0, 0, 1, 1], [], []>} : vector<64x256xf32>, vector<256x128xf32>, vector<64x128xf32> -> vector<64x128xf32>
    %c0_13 = arith.constant 0 : index
    %c0_14 = arith.constant 0 : index
    %28 = vector.load %arg6[%c0_13, %c0_14] : memref<1x128xf32, #tpu.memory_space<vmem>>, vector<1x128xf32>
    %29 = vector.broadcast %28 : vector<1x128xf32> to vector<64x128xf32>
    %30 = arith.addf %27, %29 : vector<64x128xf32>
    %31 = arith.negf %30 : vector<64x128xf32>
    %32 = math.exp %31 : vector<64x128xf32>
    %cst_15 = arith.constant 1.000000e+00 : f32
    %33 = vector.broadcast %cst_15 : f32 to vector<64x128xf32>
    %34 = arith.addf %33, %32 : vector<64x128xf32>
    %35 = arith.divf %33, %34 : vector<64x128xf32>
    %36 = arith.mulf %30, %35 : vector<64x128xf32>
    %c0_16 = arith.constant 0 : index
    %c0_17 = arith.constant 0 : index
    %37 = vector.load %arg8[%c0_16, %c0_17] : memref<128x128xf32, #tpu.memory_space<vmem>>, vector<128x128xf32>
    %cst_18 = arith.constant dense<0.000000e+00> : vector<64x128xf32>
    %38 = tpu.matmul %36, %37, %cst_18 {dimension_numbers = #tpu.dot_dimension_numbers<[1], [0], [0], [1], [0, 0, 1, 1], [], []>} : vector<64x128xf32>, vector<128x128xf32>, vector<64x128xf32> -> vector<64x128xf32>
    %c0_19 = arith.constant 0 : index
    %c0_20 = arith.constant 0 : index
    %39 = vector.load %arg9[%c0_19, %c0_20] : memref<1x128xf32, #tpu.memory_space<vmem>>, vector<1x128xf32>
    %40 = vector.broadcast %39 : vector<1x128xf32> to vector<64x128xf32>
    %41 = arith.addf %38, %40 : vector<64x128xf32>
    %cst_21 = arith.constant 0.000000e+00 : f32
    %42 = vector.broadcast %cst_21 : f32 to vector<64x128xf32>
    %43 = arith.maximumf %41, %42 : vector<64x128xf32>
    %44 = math.absf %41 : vector<64x128xf32>
    %cst_22 = arith.constant 0.000000e+00 : f32
    %45 = vector.broadcast %cst_22 : f32 to vector<64x128xf32>
    %46 = arith.subf %45, %44 : vector<64x128xf32>
    %47 = math.exp %46 : vector<64x128xf32>
    %cst_23 = arith.constant 1.000000e+00 : f32
    %48 = vector.broadcast %cst_23 : f32 to vector<64x128xf32>
    %49 = arith.addf %48, %47 : vector<64x128xf32>
    %50 = math.log %49 : vector<64x128xf32>
    %51 = arith.addf %43, %50 : vector<64x128xf32>
    %52 = arith.mulf %51, %36 : vector<64x128xf32>
    %c0_24 = arith.constant 0 : index
    %c0_25 = arith.constant 0 : index
    %53 = vector.load %arg10[%c0_24, %c0_25] : memref<128x32xf32, #tpu.memory_space<vmem>>, vector<128x32xf32>
    %cst_26 = arith.constant dense<0.000000e+00> : vector<64x32xf32>
    %54 = tpu.matmul %36, %53, %cst_26 {dimension_numbers = #tpu.dot_dimension_numbers<[1], [0], [0], [1], [0, 0, 1, 1], [], []>} : vector<64x128xf32>, vector<128x32xf32>, vector<64x32xf32> -> vector<64x32xf32>
    %c0_27 = arith.constant 0 : index
    %c0_28 = arith.constant 0 : index
    %55 = vector.load %arg12[%c0_27, %c0_28] : memref<1024x64xf32, #tpu.memory_space<vmem>>, vector<1024x64xf32>
    %56 = tpu.concatenate %51, %52 in 1 : vector<64x128xf32>, vector<64x128xf32> -> vector<64x256xf32>
    %cst_29 = arith.constant dense<0.000000e+00> : vector<1024x256xf32>
    %57 = tpu.matmul %55, %56, %cst_29 {dimension_numbers = #tpu.dot_dimension_numbers<[1], [0], [0], [1], [0, 0, 1, 1], [], []>} : vector<1024x64xf32>, vector<64x256xf32>, vector<1024x256xf32> -> vector<1024x256xf32>
    %c0_30 = arith.constant 0 : index
    %c0_31 = arith.constant 0 : index
    %58 = vector.load %arg12[%c0_30, %c0_31] : memref<1024x64xf32, #tpu.memory_space<vmem>>, vector<1024x64xf32>
    %59 = vector.extract_strided_slice %54 {offsets = [0, 0], sizes = [64, 16], strides = [1, 1]} : vector<64x32xf32> to vector<64x16xf32>
    %cst_32 = arith.constant dense<0.000000e+00> : vector<1024x16xf32>
    %60 = tpu.matmul %58, %59, %cst_32 {dimension_numbers = #tpu.dot_dimension_numbers<[1], [0], [0], [1], [0, 0, 1, 1], [], []>} : vector<1024x64xf32>, vector<64x16xf32>, vector<1024x16xf32> -> vector<1024x16xf32>
    %c0_33 = arith.constant 0 : index
    %c0_34 = arith.constant 0 : index
    %61 = vector.load %arg13[%c0_33, %c0_34] : memref<1024x16xf32, #tpu.memory_space<vmem>>, vector<1024x16xf32>
    %c0_35 = arith.constant 0 : index
    %c0_36 = arith.constant 0 : index
    %62 = vector.load %arg11[%c0_35, %c0_36] : memref<16x128xf32, #tpu.memory_space<vmem>>, vector<16x128xf32>
    %cst_37 = arith.constant dense<0.000000e+00> : vector<1024x128xf32>
    %63 = tpu.matmul %61, %62, %cst_37 {dimension_numbers = #tpu.dot_dimension_numbers<[1], [0], [0], [1], [0, 0, 1, 1], [], []>} : vector<1024x16xf32>, vector<16x128xf32>, vector<1024x128xf32> -> vector<1024x128xf32>
    %64 = vector.extract_strided_slice %57 {offsets = [0, 0], sizes = [1024, 128], strides = [1, 1]} : vector<1024x256xf32> to vector<1024x128xf32>
    %65 = arith.mulf %64, %63 : vector<1024x128xf32>
    %66 = math.exp %65 : vector<1024x128xf32>
    %c0_38 = arith.constant 0 : index
    %c0_39 = arith.constant 0 : index
    %67 = vector.load %arg20[%c0_38, %c0_39] : memref<1024x128xf32, #tpu.memory_space<vmem>>, vector<1024x128xf32>
    tpu.vector_store %arg20[%c0_38, %c0_39], %66 {strides = array<i32>} : memref<1024x128xf32, #tpu.memory_space<vmem>>, vector<1024x128xf32>,
    %c0_40 = arith.constant 0 : index
    %c0_41 = arith.constant 0 : index
    %68 = vector.load %arg13[%c0_40, %c0_41] : memref<1024x16xf32, #tpu.memory_space<vmem>>, vector<1024x16xf32>
    %69 = arith.mulf %60, %68 : vector<1024x16xf32>
    %cst_42 = arith.constant dense<0.000000e+00> : vector<1024xf32>
    %70 = vector.multi_reduction <add>, %69, %cst_42 [1] : vector<1024x16xf32> to vector<1024xf32>
    %71 = vector.shape_cast %70 : vector<1024xf32> to vector<1024x1xf32>
    %72 = vector.extract_strided_slice %57 {offsets = [0, 128], sizes = [1024, 128], strides = [1, 1]} : vector<1024x256xf32> to vector<1024x128xf32>
    %73 = vector.broadcast %71 : vector<1024x1xf32> to vector<1024x128xf32>
    %74 = arith.mulf %73, %72 : vector<1024x128xf32>
    %c0_43 = arith.constant 0 : index
    %c0_44 = arith.constant 0 : index
    %75 = vector.load %arg21[%c0_43, %c0_44] : memref<1024x128xf32, #tpu.memory_space<vmem>>, vector<1024x128xf32>
    tpu.vector_store %arg21[%c0_43, %c0_44], %74 {strides = array<i32>} : memref<1024x128xf32, #tpu.memory_space<vmem>>, vector<1024x128xf32>,
    %cst_45 = arith.constant 0.000000e+00 : f32
    %76 = vector.broadcast %cst_45 : f32 to vector<64x128xf32>
    %c0_46 = arith.constant 0 : index
    %c0_47 = arith.constant 0 : index
    %77 = vector.load %arg20[%c0_46, %c0_47] : memref<1024x128xf32, #tpu.memory_space<vmem>>, vector<64x128xf32>
    %78 = arith.mulf %77, %76 : vector<64x128xf32>
    %c0_48 = arith.constant 0 : index
    %c0_49 = arith.constant 0 : index
    %79 = vector.load %arg21[%c0_48, %c0_49] : memref<1024x128xf32, #tpu.memory_space<vmem>>, vector<64x128xf32>
    %80 = arith.addf %78, %79 : vector<64x128xf32>
    %c0_50 = arith.constant 0 : index
    %c0_51 = arith.constant 0 : index
    %81 = vector.load %arg22[%c0_50, %c0_51] : memref<1024x128xf32, #tpu.memory_space<vmem>>, vector<64x128xf32>
    tpu.vector_store %arg22[%c0_50, %c0_51], %80 {strides = array<i32>} : memref<1024x128xf32, #tpu.memory_space<vmem>>, vector<64x128xf32>,
    %c64 = arith.constant 64 : index
    %c0_52 = arith.constant 0 : index
    %82 = vector.load %arg20[%c64, %c0_52] : memref<1024x128xf32, #tpu.memory_space<vmem>>, vector<64x128xf32>
    %83 = arith.mulf %82, %80 : vector<64x128xf32>
    %c64_53 = arith.constant 64 : index
    %c0_54 = arith.constant 0 : index
    %84 = vector.load %arg21[%c64_53, %c0_54] : memref<1024x128xf32, #tpu.memory_space<vmem>>, vector<64x128xf32>
    %85 = arith.addf %83, %84 : vector<64x128xf32>
    %c64_55 = arith.constant 64 : index
    %c0_56 = arith.constant 0 : index
    %86 = vector.load %arg22[%c64_55, %c0_56] : memref<1024x128xf32, #tpu.memory_space<vmem>>, vector<64x128xf32>
    tpu.vector_store %arg22[%c64_55, %c0_56], %85 {strides = array<i32>} : memref<1024x128xf32, #tpu.memory_space<vmem>>, vector<64x128xf32>,
    %c128 = arith.constant 128 : index
    %c0_57 = arith.constant 0 : index
    %87 = vector.load %arg20[%c128, %c0_57] : memref<1024x128xf32, #tpu.memory_space<vmem>>, vector<64x128xf32>
    %88 = arith.mulf %87, %85 : vector<64x128xf32>
    %c128_58 = arith.constant 128 : index
    %c0_59 = arith.constant 0 : index
    %89 = vector.load %arg21[%c128_58, %c0_59] : memref<1024x128xf32, #tpu.memory_space<vmem>>, vector<64x128xf32>
    %90 = arith.addf %88, %89 : vector<64x128xf32>
    %c128_60 = arith.constant 128 : index
    %c0_61 = arith.constant 0 : index
    %91 = vector.load %arg22[%c128_60, %c0_61] : memref<1024x128xf32, #tpu.memory_space<vmem>>, vector<64x128xf32>
    tpu.vector_store %arg22[%c128_60, %c0_61], %90 {strides = array<i32>} : memref<1024x128xf32, #tpu.memory_space<vmem>>, vector<64x128xf32>,
    %c192 = arith.constant 192 : index
    %c0_62 = arith.constant 0 : index
    %92 = vector.load %arg20[%c192, %c0_62] : memref<1024x128xf32, #tpu.memory_space<vmem>>, vector<64x128xf32>
    %93 = arith.mulf %92, %90 : vector<64x128xf32>
    %c192_63 = arith.constant 192 : index
    %c0_64 = arith.constant 0 : index
    %94 = vector.load %arg21[%c192_63, %c0_64] : memref<1024x128xf32, #tpu.memory_space<vmem>>, vector<64x128xf32>
    %95 = arith.addf %93, %94 : vector<64x128xf32>
    %c192_65 = arith.constant 192 : index
    %c0_66 = arith.constant 0 : index
    %96 = vector.load %arg22[%c192_65, %c0_66] : memref<1024x128xf32, #tpu.memory_space<vmem>>, vector<64x128xf32>
    tpu.vector_store %arg22[%c192_65, %c0_66], %95 {strides = array<i32>} : memref<1024x128xf32, #tpu.memory_space<vmem>>, vector<64x128xf32>,
    %c256 = arith.constant 256 : index
    %c0_67 = arith.constant 0 : index
    %97 = vector.load %arg20[%c256, %c0_67] : memref<1024x128xf32, #tpu.memory_space<vmem>>, vector<64x128xf32>
    %98 = arith.mulf %97, %95 : vector<64x128xf32>
    %c256_68 = arith.constant 256 : index
    %c0_69 = arith.constant 0 : index
    %99 = vector.load %arg21[%c256_68, %c0_69] : memref<1024x128xf32, #tpu.memory_space<vmem>>, vector<64x128xf32>
    %100 = arith.addf %98, %99 : vector<64x128xf32>
    %c256_70 = arith.constant 256 : index
    %c0_71 = arith.constant 0 : index
    %101 = vector.load %arg22[%c256_70, %c0_71] : memref<1024x128xf32, #tpu.memory_space<vmem>>, vector<64x128xf32>
    tpu.vector_store %arg22[%c256_70, %c0_71], %100 {strides = array<i32>} : memref<1024x128xf32, #tpu.memory_space<vmem>>, vector<64x128xf32>,
    %c320 = arith.constant 320 : index
    %c0_72 = arith.constant 0 : index
    %102 = vector.load %arg20[%c320, %c0_72] : memref<1024x128xf32, #tpu.memory_space<vmem>>, vector<64x128xf32>
    %103 = arith.mulf %102, %100 : vector<64x128xf32>
    %c320_73 = arith.constant 320 : index
    %c0_74 = arith.constant 0 : index
    %104 = vector.load %arg21[%c320_73, %c0_74] : memref<1024x128xf32, #tpu.memory_space<vmem>>, vector<64x128xf32>
    %105 = arith.addf %103, %104 : vector<64x128xf32>
    %c320_75 = arith.constant 320 : index
    %c0_76 = arith.constant 0 : index
    %106 = vector.load %arg22[%c320_75, %c0_76] : memref<1024x128xf32, #tpu.memory_space<vmem>>, vector<64x128xf32>
    tpu.vector_store %arg22[%c320_75, %c0_76], %105 {strides = array<i32>} : memref<1024x128xf32, #tpu.memory_space<vmem>>, vector<64x128xf32>,
    %c384 = arith.constant 384 : index
    %c0_77 = arith.constant 0 : index
    %107 = vector.load %arg20[%c384, %c0_77] : memref<1024x128xf32, #tpu.memory_space<vmem>>, vector<64x128xf32>
    %108 = arith.mulf %107, %105 : vector<64x128xf32>
    %c384_78 = arith.constant 384 : index
    %c0_79 = arith.constant 0 : index
    %109 = vector.load %arg21[%c384_78, %c0_79] : memref<1024x128xf32, #tpu.memory_space<vmem>>, vector<64x128xf32>
    %110 = arith.addf %108, %109 : vector<64x128xf32>
    %c384_80 = arith.constant 384 : index
    %c0_81 = arith.constant 0 : index
    %111 = vector.load %arg22[%c384_80, %c0_81] : memref<1024x128xf32, #tpu.memory_space<vmem>>, vector<64x128xf32>
    tpu.vector_store %arg22[%c384_80, %c0_81], %110 {strides = array<i32>} : memref<1024x128xf32, #tpu.memory_space<vmem>>, vector<64x128xf32>,
    %c448 = arith.constant 448 : index
    %c0_82 = arith.constant 0 : index
    %112 = vector.load %arg20[%c448, %c0_82] : memref<1024x128xf32, #tpu.memory_space<vmem>>, vector<64x128xf32>
    %113 = arith.mulf %112, %110 : vector<64x128xf32>
    %c448_83 = arith.constant 448 : index
    %c0_84 = arith.constant 0 : index
    %114 = vector.load %arg21[%c448_83, %c0_84] : memref<1024x128xf32, #tpu.memory_space<vmem>>, vector<64x128xf32>
    %115 = arith.addf %113, %114 : vector<64x128xf32>
    %c448_85 = arith.constant 448 : index
    %c0_86 = arith.constant 0 : index
    %116 = vector.load %arg22[%c448_85, %c0_86] : memref<1024x128xf32, #tpu.memory_space<vmem>>, vector<64x128xf32>
    tpu.vector_store %arg22[%c448_85, %c0_86], %115 {strides = array<i32>} : memref<1024x128xf32, #tpu.memory_space<vmem>>, vector<64x128xf32>,
    %c512 = arith.constant 512 : index
    %c0_87 = arith.constant 0 : index
    %117 = vector.load %arg20[%c512, %c0_87] : memref<1024x128xf32, #tpu.memory_space<vmem>>, vector<64x128xf32>
    %118 = arith.mulf %117, %115 : vector<64x128xf32>
    %c512_88 = arith.constant 512 : index
    %c0_89 = arith.constant 0 : index
    %119 = vector.load %arg21[%c512_88, %c0_89] : memref<1024x128xf32, #tpu.memory_space<vmem>>, vector<64x128xf32>
    %120 = arith.addf %118, %119 : vector<64x128xf32>
    %c512_90 = arith.constant 512 : index
    %c0_91 = arith.constant 0 : index
    %121 = vector.load %arg22[%c512_90, %c0_91] : memref<1024x128xf32, #tpu.memory_space<vmem>>, vector<64x128xf32>
    tpu.vector_store %arg22[%c512_90, %c0_91], %120 {strides = array<i32>} : memref<1024x128xf32, #tpu.memory_space<vmem>>, vector<64x128xf32>,
    %c576 = arith.constant 576 : index
    %c0_92 = arith.constant 0 : index
    %122 = vector.load %arg20[%c576, %c0_92] : memref<1024x128xf32, #tpu.memory_space<vmem>>, vector<64x128xf32>
    %123 = arith.mulf %122, %120 : vector<64x128xf32>
    %c576_93 = arith.constant 576 : index
    %c0_94 = arith.constant 0 : index
    %124 = vector.load %arg21[%c576_93, %c0_94] : memref<1024x128xf32, #tpu.memory_space<vmem>>, vector<64x128xf32>
    %125 = arith.addf %123, %124 : vector<64x128xf32>
    %c576_95 = arith.constant 576 : index
    %c0_96 = arith.constant 0 : index
    %126 = vector.load %arg22[%c576_95, %c0_96] : memref<1024x128xf32, #tpu.memory_space<vmem>>, vector<64x128xf32>
    tpu.vector_store %arg22[%c576_95, %c0_96], %125 {strides = array<i32>} : memref<1024x128xf32, #tpu.memory_space<vmem>>, vector<64x128xf32>,
    %c640 = arith.constant 640 : index
    %c0_97 = arith.constant 0 : index
    %127 = vector.load %arg20[%c640, %c0_97] : memref<1024x128xf32, #tpu.memory_space<vmem>>, vector<64x128xf32>
    %128 = arith.mulf %127, %125 : vector<64x128xf32>
    %c640_98 = arith.constant 640 : index
    %c0_99 = arith.constant 0 : index
    %129 = vector.load %arg21[%c640_98, %c0_99] : memref<1024x128xf32, #tpu.memory_space<vmem>>, vector<64x128xf32>
    %130 = arith.addf %128, %129 : vector<64x128xf32>
    %c640_100 = arith.constant 640 : index
    %c0_101 = arith.constant 0 : index
    %131 = vector.load %arg22[%c640_100, %c0_101] : memref<1024x128xf32, #tpu.memory_space<vmem>>, vector<64x128xf32>
    tpu.vector_store %arg22[%c640_100, %c0_101], %130 {strides = array<i32>} : memref<1024x128xf32, #tpu.memory_space<vmem>>, vector<64x128xf32>,
    %c704 = arith.constant 704 : index
    %c0_102 = arith.constant 0 : index
    %132 = vector.load %arg20[%c704, %c0_102] : memref<1024x128xf32, #tpu.memory_space<vmem>>, vector<64x128xf32>
    %133 = arith.mulf %132, %130 : vector<64x128xf32>
    %c704_103 = arith.constant 704 : index
    %c0_104 = arith.constant 0 : index
    %134 = vector.load %arg21[%c704_103, %c0_104] : memref<1024x128xf32, #tpu.memory_space<vmem>>, vector<64x128xf32>
    %135 = arith.addf %133, %134 : vector<64x128xf32>
    %c704_105 = arith.constant 704 : index
    %c0_106 = arith.constant 0 : index
    %136 = vector.load %arg22[%c704_105, %c0_106] : memref<1024x128xf32, #tpu.memory_space<vmem>>, vector<64x128xf32>
    tpu.vector_store %arg22[%c704_105, %c0_106], %135 {strides = array<i32>} : memref<1024x128xf32, #tpu.memory_space<vmem>>, vector<64x128xf32>,
    %c768 = arith.constant 768 : index
    %c0_107 = arith.constant 0 : index
    %137 = vector.load %arg20[%c768, %c0_107] : memref<1024x128xf32, #tpu.memory_space<vmem>>, vector<64x128xf32>
    %138 = arith.mulf %137, %135 : vector<64x128xf32>
    %c768_108 = arith.constant 768 : index
    %c0_109 = arith.constant 0 : index
    %139 = vector.load %arg21[%c768_108, %c0_109] : memref<1024x128xf32, #tpu.memory_space<vmem>>, vector<64x128xf32>
    %140 = arith.addf %138, %139 : vector<64x128xf32>
    %c768_110 = arith.constant 768 : index
    %c0_111 = arith.constant 0 : index
    %141 = vector.load %arg22[%c768_110, %c0_111] : memref<1024x128xf32, #tpu.memory_space<vmem>>, vector<64x128xf32>
    tpu.vector_store %arg22[%c768_110, %c0_111], %140 {strides = array<i32>} : memref<1024x128xf32, #tpu.memory_space<vmem>>, vector<64x128xf32>,
    %c832 = arith.constant 832 : index
    %c0_112 = arith.constant 0 : index
    %142 = vector.load %arg20[%c832, %c0_112] : memref<1024x128xf32, #tpu.memory_space<vmem>>, vector<64x128xf32>
    %143 = arith.mulf %142, %140 : vector<64x128xf32>
    %c832_113 = arith.constant 832 : index
    %c0_114 = arith.constant 0 : index
    %144 = vector.load %arg21[%c832_113, %c0_114] : memref<1024x128xf32, #tpu.memory_space<vmem>>, vector<64x128xf32>
    %145 = arith.addf %143, %144 : vector<64x128xf32>
    %c832_115 = arith.constant 832 : index
    %c0_116 = arith.constant 0 : index
    %146 = vector.load %arg22[%c832_115, %c0_116] : memref<1024x128xf32, #tpu.memory_space<vmem>>, vector<64x128xf32>
    tpu.vector_store %arg22[%c832_115, %c0_116], %145 {strides = array<i32>} : memref<1024x128xf32, #tpu.memory_space<vmem>>, vector<64x128xf32>,
    %c896 = arith.constant 896 : index
    %c0_117 = arith.constant 0 : index
    %147 = vector.load %arg20[%c896, %c0_117] : memref<1024x128xf32, #tpu.memory_space<vmem>>, vector<64x128xf32>
    %148 = arith.mulf %147, %145 : vector<64x128xf32>
    %c896_118 = arith.constant 896 : index
    %c0_119 = arith.constant 0 : index
    %149 = vector.load %arg21[%c896_118, %c0_119] : memref<1024x128xf32, #tpu.memory_space<vmem>>, vector<64x128xf32>
    %150 = arith.addf %148, %149 : vector<64x128xf32>
    %c896_120 = arith.constant 896 : index
    %c0_121 = arith.constant 0 : index
    %151 = vector.load %arg22[%c896_120, %c0_121] : memref<1024x128xf32, #tpu.memory_space<vmem>>, vector<64x128xf32>
    tpu.vector_store %arg22[%c896_120, %c0_121], %150 {strides = array<i32>} : memref<1024x128xf32, #tpu.memory_space<vmem>>, vector<64x128xf32>,
    %c960 = arith.constant 960 : index
    %c0_122 = arith.constant 0 : index
    %152 = vector.load %arg20[%c960, %c0_122] : memref<1024x128xf32, #tpu.memory_space<vmem>>, vector<64x128xf32>
    %153 = arith.mulf %152, %150 : vector<64x128xf32>
    %c960_123 = arith.constant 960 : index
    %c0_124 = arith.constant 0 : index
    %154 = vector.load %arg21[%c960_123, %c0_124] : memref<1024x128xf32, #tpu.memory_space<vmem>>, vector<64x128xf32>
    %155 = arith.addf %153, %154 : vector<64x128xf32>
    %c960_125 = arith.constant 960 : index
    %c0_126 = arith.constant 0 : index
    %156 = vector.load %arg22[%c960_125, %c0_126] : memref<1024x128xf32, #tpu.memory_space<vmem>>, vector<64x128xf32>
    tpu.vector_store %arg22[%c960_125, %c0_126], %155 {strides = array<i32>} : memref<1024x128xf32, #tpu.memory_space<vmem>>, vector<64x128xf32>,
    %c0_127 = arith.constant 0 : index
    %c0_128 = arith.constant 0 : index
    %157 = vector.load %arg12[%c0_127, %c0_128] : memref<1024x64xf32, #tpu.memory_space<vmem>>, vector<1024x64xf32>
    %158 = vector.extract_strided_slice %54 {offsets = [0, 16], sizes = [64, 16], strides = [1, 1]} : vector<64x32xf32> to vector<64x16xf32>
    %cst_129 = arith.constant dense<0.000000e+00> : vector<1024x16xf32>
    %159 = tpu.matmul %157, %158, %cst_129 {dimension_numbers = #tpu.dot_dimension_numbers<[1], [0], [0], [1], [0, 0, 1, 1], [], []>} : vector<1024x64xf32>, vector<64x16xf32>, vector<1024x16xf32> -> vector<1024x16xf32>
    %c0_130 = arith.constant 0 : index
    %c0_131 = arith.constant 0 : index
    %160 = vector.load %arg13[%c0_130, %c0_131] : memref<1024x16xf32, #tpu.memory_space<vmem>>, vector<1024x16xf32>
    %161 = arith.mulf %159, %160 : vector<1024x16xf32>
    %cst_132 = arith.constant dense<0.000000e+00> : vector<1024xf32>
    %162 = vector.multi_reduction <add>, %161, %cst_132 [1] : vector<1024x16xf32> to vector<1024xf32>
    %163 = vector.shape_cast %162 : vector<1024xf32> to vector<1024x1xf32>
    %c0_133 = arith.constant 0 : index
    %c0_134 = arith.constant 0 : index
    %164 = vector.load %arg14[%c0_133, %c0_134] : memref<64x1024xf32, #tpu.memory_space<vmem>>, vector<64x1024xf32>
    %c0_135 = arith.constant 0 : index
    %c0_136 = arith.constant 0 : index
    %165 = vector.load %arg22[%c0_135, %c0_136] : memref<1024x128xf32, #tpu.memory_space<vmem>>, vector<1024x128xf32>
    %166 = vector.broadcast %163 : vector<1024x1xf32> to vector<1024x128xf32>
    %167 = arith.mulf %166, %165 : vector<1024x128xf32>
    %cst_137 = arith.constant dense<0.000000e+00> : vector<64x128xf32>
    %168 = tpu.matmul %164, %167, %cst_137 {dimension_numbers = #tpu.dot_dimension_numbers<[1], [0], [0], [1], [0, 0, 1, 1], [], []>} : vector<64x1024xf32>, vector<1024x128xf32>, vector<64x128xf32> -> vector<64x128xf32>
    %c0_138 = arith.constant 0 : index
    %c0_139 = arith.constant 0 : index
    %169 = vector.load %arg15[%c0_138, %c0_139] : memref<1x128xf32, #tpu.memory_space<vmem>>, vector<1x128xf32>
    %170 = vector.broadcast %169 : vector<1x128xf32> to vector<64x128xf32>
    %171 = arith.mulf %36, %170 : vector<64x128xf32>
    %172 = arith.addf %168, %171 : vector<64x128xf32>
    %173 = arith.negf %11 : vector<64x128xf32>
    %174 = math.exp %173 : vector<64x128xf32>
    %cst_140 = arith.constant 1.000000e+00 : f32
    %175 = vector.broadcast %cst_140 : f32 to vector<64x128xf32>
    %176 = arith.addf %175, %174 : vector<64x128xf32>
    %177 = arith.divf %175, %176 : vector<64x128xf32>
    %178 = arith.mulf %11, %177 : vector<64x128xf32>
    %179 = arith.mulf %172, %178 : vector<64x128xf32>
    %c0_141 = arith.constant 0 : index
    %c0_142 = arith.constant 0 : index
    %180 = vector.load %arg16[%c0_141, %c0_142] : memref<128x128xf32, #tpu.memory_space<vmem>>, vector<128x128xf32>
    %cst_143 = arith.constant dense<0.000000e+00> : vector<64x128xf32>
    %181 = tpu.matmul %179, %180, %cst_143 {dimension_numbers = #tpu.dot_dimension_numbers<[1], [0], [0], [1], [0, 0, 1, 1], [], []>} : vector<64x128xf32>, vector<128x128xf32>, vector<64x128xf32> -> vector<64x128xf32>
    %182 = arith.negf %7 : vector<64x128xf32>
    %183 = math.exp %182 : vector<64x128xf32>
    %cst_144 = arith.constant 1.000000e+00 : f32
    %184 = vector.broadcast %cst_144 : f32 to vector<64x128xf32>
    %185 = arith.addf %184, %183 : vector<64x128xf32>
    %186 = arith.divf %184, %185 : vector<64x128xf32>
    %187 = arith.mulf %181, %186 : vector<64x128xf32>
    %c0_145 = arith.constant 0 : index
    %c0_146 = arith.constant 0 : index
    %188 = vector.load %arg17[%c0_145, %c0_146] : memref<128x64xf32, #tpu.memory_space<vmem>>, vector<128x64xf32>
    %cst_147 = arith.constant dense<0.000000e+00> : vector<64x64xf32>
    %189 = tpu.matmul %187, %188, %cst_147 {dimension_numbers = #tpu.dot_dimension_numbers<[1], [0], [0], [1], [0, 0, 1, 1], [], []>} : vector<64x128xf32>, vector<128x64xf32>, vector<64x64xf32> -> vector<64x64xf32>
    %c0_148 = arith.constant 0 : index
    %c0_149 = arith.constant 0 : index
    %190 = vector.load %arg18[%c0_148, %c0_149] : memref<1x64xf32, #tpu.memory_space<vmem>>, vector<1x64xf32>
    %191 = vector.broadcast %190 : vector<1x64xf32> to vector<64x64xf32>
    %192 = arith.addf %189, %191 : vector<64x64xf32>
    %c0_150 = arith.constant 0 : index
    %c0_151 = arith.constant 0 : index
    %193 = vector.load %arg19[%c0_150, %c0_151] : memref<64x64xf32, #tpu.memory_space<vmem>>, vector<64x64xf32>
    tpu.vector_store %arg19[%c0_150, %c0_151], %192 {strides = array<i32>} : memref<64x64xf32, #tpu.memory_space<vmem>>, vector<64x64xf32>,
    return
  }
  func.func @transform_0(%arg0: i32) -> (i32, i32) {
    %c0_i32 = arith.constant 0 : i32
    %c0_i32_0 = arith.constant 0 : i32
    return %arg0, %c0_i32 : i32, i32
  }
  func.func @transform_1(%arg0: i32) -> (i32, i32) {
    %c0_i32 = arith.constant 0 : i32
    %c0_i32_0 = arith.constant 0 : i32
    %c0_i32_1 = arith.constant 0 : i32
    return %c0_i32, %c0_i32_0 : i32, i32
  }
  func.func @transform_2(%arg0: i32) -> (i32, i32) {
    %c0_i32 = arith.constant 0 : i32
    %c0_i32_0 = arith.constant 0 : i32
    %c0_i32_1 = arith.constant 0 : i32
    return %c0_i32, %c0_i32_0 : i32, i32
  }
  func.func @transform_3(%arg0: i32) -> (i32, i32) {
    %c0_i32 = arith.constant 0 : i32
    %c0_i32_0 = arith.constant 0 : i32
    %c0_i32_1 = arith.constant 0 : i32
    return %c0_i32, %c0_i32_0 : i32, i32
  }
  func.func @transform_4(%arg0: i32) -> (i32, i32) {
    %c0_i32 = arith.constant 0 : i32
    %c0_i32_0 = arith.constant 0 : i32
    %c0_i32_1 = arith.constant 0 : i32
    return %c0_i32, %c0_i32_0 : i32, i32
  }
  func.func @transform_5(%arg0: i32) -> (i32, i32) {
    %c0_i32 = arith.constant 0 : i32
    %c0_i32_0 = arith.constant 0 : i32
    %c0_i32_1 = arith.constant 0 : i32
    return %c0_i32, %c0_i32_0 : i32, i32
  }
  func.func @transform_6(%arg0: i32) -> (i32, i32) {
    %c0_i32 = arith.constant 0 : i32
    %c0_i32_0 = arith.constant 0 : i32
    %c0_i32_1 = arith.constant 0 : i32
    return %c0_i32, %c0_i32_0 : i32, i32
  }
  func.func @transform_7(%arg0: i32) -> (i32, i32) {
    %c0_i32 = arith.constant 0 : i32
    %c0_i32_0 = arith.constant 0 : i32
    %c0_i32_1 = arith.constant 0 : i32
    return %c0_i32, %c0_i32_0 : i32, i32
  }
  func.func @transform_8(%arg0: i32) -> (i32, i32) {
    %c0_i32 = arith.constant 0 : i32
    %c0_i32_0 = arith.constant 0 : i32
    %c0_i32_1 = arith.constant 0 : i32
    return %c0_i32, %c0_i32_0 : i32, i32
  }
  func.func @transform_9(%arg0: i32) -> (i32, i32) {
    %c0_i32 = arith.constant 0 : i32
    %c0_i32_0 = arith.constant 0 : i32
    %c0_i32_1 = arith.constant 0 : i32
    return %c0_i32, %c0_i32_0 : i32, i32
  }
  func.func @transform_10(%arg0: i32) -> (i32, i32) {
    %c0_i32 = arith.constant 0 : i32
    %c0_i32_0 = arith.constant 0 : i32
    %c0_i32_1 = arith.constant 0 : i32
    return %c0_i32, %c0_i32_0 : i32, i32
  }
  func.func @transform_11(%arg0: i32) -> (i32, i32) {
    %c0_i32 = arith.constant 0 : i32
    %c0_i32_0 = arith.constant 0 : i32
    %c0_i32_1 = arith.constant 0 : i32
    return %c0_i32, %c0_i32_0 : i32, i32
  }
  func.func @transform_12(%arg0: i32) -> (i32, i32) {
    %c0_i32 = arith.constant 0 : i32
    %c0_i32_0 = arith.constant 0 : i32
    %c0_i32_1 = arith.constant 0 : i32
    return %c0_i32, %c0_i32_0 : i32, i32
  }
  func.func @transform_13(%arg0: i32) -> (i32, i32) {
    %c0_i32 = arith.constant 0 : i32
    %c0_i32_0 = arith.constant 0 : i32
    %c0_i32_1 = arith.constant 0 : i32
    return %c0_i32, %c0_i32_0 : i32, i32
  }
  func.func @transform_14(%arg0: i32) -> (i32, i32) {
    %c0_i32 = arith.constant 0 : i32
    %c0_i32_0 = arith.constant 0 : i32
    %c0_i32_1 = arith.constant 0 : i32
    return %c0_i32, %c0_i32_0 : i32, i32
  }
  func.func @transform_15(%arg0: i32) -> (i32, i32) {
    %c0_i32 = arith.constant 0 : i32
    %c0_i32_0 = arith.constant 0 : i32
    %c0_i32_1 = arith.constant 0 : i32
    return %c0_i32, %c0_i32_0 : i32, i32
  }
  func.func @transform_16(%arg0: i32) -> (i32, i32) {
    %c0_i32 = arith.constant 0 : i32
    %c0_i32_0 = arith.constant 0 : i32
    %c0_i32_1 = arith.constant 0 : i32
    return %c0_i32, %c0_i32_0 : i32, i32
  }
  func.func @transform_17(%arg0: i32) -> (i32, i32) {
    %c0_i32 = arith.constant 0 : i32
    %c0_i32_0 = arith.constant 0 : i32
    %c0_i32_1 = arith.constant 0 : i32
    return %c0_i32, %c0_i32_0 : i32, i32
  }
  func.func @transform_18(%arg0: i32) -> (i32, i32) {
    %c0_i32 = arith.constant 0 : i32
    %c0_i32_0 = arith.constant 0 : i32
    return %arg0, %c0_i32 : i32, i32
  }
}

</mosaic_0001>

<bundles_post_ra>
// kernel: tpu_custom_call.1
= control target key start
LH: loop header
LB: loop body
LE: loop exit
PB: predicated region body
PF: predicated region fallthrough
CT: control target
= control target key end

     0   :  { %s18137_s0 = inlined_call_operand.vmem [shape: f32[64,64], index: 0, kind: input, shape index: {}]   ;;  %s18138_s1 = inlined_call_operand.vmem [shape: f32[64,256], index: 1, kind: input, shape index: {}]   ;;  %s18139_s2 = inlined_call_operand.vmem [shape: f32[1,256], index: 2, kind: input, shape index: {}]   ;;  %s18140_s3 = inlined_call_operand.vmem [shape: f32[128,256], index: 3, kind: input, shape index: {}]   ;;  %s18141_s4 = inlined_call_operand.vmem [shape: f32[4,128], index: 4, kind: input, shape index: {}]   ;;  %s18142_s5 = inlined_call_operand.vmem [shape: f32[1,128], index: 5, kind: input, shape index: {}]   ;;  %s18143_s6 = inlined_call_operand.vmem [shape: f32[64,256], index: 6, kind: input, shape index: {}]   ;;  %s18144_s7 = inlined_call_operand.vmem [shape: f32[128,128], index: 7, kind: input, shape index: {}]   ;;  %s18145_s8 = inlined_call_operand.vmem [shape: f32[1,128], index: 8, kind: input, shape index: {}]   ;;  %s18146_s9 = inlined_call_operand.vmem [shape: f32[128,32], index: 9, kind: input, shape index: {}]   ;;  %s18147_s10 = inlined_call_operand.vmem [shape: f32[16,128], index: 10, kind: input, shape index: {}]   ;;  %s18148_s11 = inlined_call_operand.vmem [shape: f32[1024,64], index: 11, kind: input, shape index: {}]   ;;  %s18149_s12 = inlined_call_operand.vmem [shape: f32[1024,16], index: 12, kind: input, shape index: {}]   ;;  %s18150_s13 = inlined_call_operand.vmem [shape: f32[64,1024], index: 13, kind: input, shape index: {}]   ;;  %s18151_s14 = inlined_call_operand.vmem [shape: f32[1,128], index: 14, kind: input, shape index: {}]   ;;  %s18152_s15 = inlined_call_operand.vmem [shape: f32[128,128], index: 15, kind: input, shape index: {}]   ;;  %s18153_s16 = inlined_call_operand.vmem [shape: f32[128,64], index: 16, kind: input, shape index: {}]   ;;  %s18154_s17 = inlined_call_operand.vmem [shape: f32[1,64], index: 17, kind: input, shape index: {}]   ;;  %s18155_s18 = inlined_call_operand.hbm [shape: f32[64,64], index: 18, kind: output, shape index: {}]  }
   0x1   :  { %18293 = sst [smem:[#allocation155_spill]] %s18137_s0 }
   0x2   :  { %18294 = sst [smem:[#allocation156_spill]] %s18138_s1 }
   0x3   :  { %18295 = sst [smem:[#allocation157_spill]] %s18139_s2 }
   0x4   :  { %s18296_s29 = sld [smem:[#allocation156_spill]]  ;;  %v18161_v4 = vmov 0.0   ;;  %vm96_vm0 = vcmask 523264   ;;  %v265_v18 = vld [vmem:[%s18140_s3 + $0xf8] sm:$0xff]  ;;  %v264_v19 = vld [vmem:[%s18140_s3 + $0xf0] sm:$0xff]  ;;  %v263_v20 = vld [vmem:[%s18140_s3 + $0xe8] sm:$0xff] }
   0x5   :  { %185 = vmatprep.mubr.f32.mxu0 %v18161_v4  ;;  %s18297_s20 = sld [smem:[#allocation155_spill]]  ;;  %v262_v21 = vld [vmem:[%s18140_s3 + $0xe0] sm:$0xff]  ;;  %v261_v23 = vld [vmem:[%s18140_s3 + $0xd8] sm:$0xff] }
   0xa   :  { %v83_v0 = vld [vmem:[%s18296_s29 + $0x78] sm:$0xff]  ;;  %v82_v1 = vld [vmem:[%s18296_s29 + $0x70] sm:$0xff]  ;;  %v81_v2 = vld [vmem:[%s18296_s29 + $0x68] sm:$0xff] }
   0xb   :  { %137 = vmatprep.subr.mxu0 %v83_v0  ;;  %v80_v3 = vld [vmem:[%s18296_s29 + $0x60] sm:$0xff]  ;;  %v79_v5 = vld [vmem:[%s18296_s29 + $0x58] sm:$0xff]  ;;  %v78_v6 = vld [vmem:[%s18296_s29 + $0x50] sm:$0xff] }
   0xc   :  { %138 = vmatpush1.msra.mxu0 %v82_v1  ;;  %v77_v7 = vld [vmem:[%s18296_s29 + $0x48] sm:$0xff]  ;;  %v76_v8 = vld [vmem:[%s18296_s29 + $0x40] sm:$0xff]  ;;  %v75_v9 = vld [vmem:[%s18296_s29 + $0x38] sm:$0xff] }
   0xd   :  { %139 = vmatprep.subr.mxu0 %v81_v2  ;;  %v74_v10 = vld [vmem:[%s18296_s29 + $0x30] sm:$0xff]  ;;  %v73_v11 = vld [vmem:[%s18296_s29 + $0x28] sm:$0xff]  ;;  %v72_v12 = vld [vmem:[%s18296_s29 + $0x20] sm:$0xff] }
   0xe   :  { %140 = vmatpush1.msra.mxu0 %v80_v3  ;;  %v71_v13 = vld [vmem:[%s18296_s29 + $0x18] sm:$0xff]  ;;  %v70_v14 = vld [vmem:[%s18296_s29 + $0x10] sm:$0xff]  ;;  %v69_v15 = vld [vmem:[%s18296_s29 + $0x8] sm:$0xff] }
   0xf   :  { %141 = vmatprep.subr.mxu0 %v79_v5  ;;  %v68_v16 = vld [vmem:[%s18296_s29] sm:$0xff]  ;;  %v61_v22 = vld [vmem:[%s18297_s20 + $0x8] sm:$0xff] }
  0x10   :  { %142 = vmatpush1.msra.mxu0 %v78_v6  ;;  %v60_v17 = vld [vmem:[%s18297_s20] sm:$0xff] }
  0x11   :  { %143 = vmatprep.subr.mxu0 %v77_v7 }
  0x12   :  { %144 = vmatpush1.msra.mxu0 %v76_v8 }
  0x13   :  { %145 = vmatprep.subr.mxu0 %v75_v9 }
  0x14   :  { %146 = vmatpush1.msra.mxu0 %v74_v10 }
  0x15   :  { %147 = vmatprep.subr.mxu0 %v73_v11 }
  0x16   :  { %148 = vmatpush1.msra.mxu0 %v72_v12 }
  0x17   :  { %149 = vmatprep.subr.mxu0 %v71_v13 }
  0x18   :  { %150 = vmatpush1.msra.mxu0 %v70_v14 }
  0x19   :  { %151 = vmatprep.subr.mxu0 %v69_v15 }
  0x1a   :  { %152 = vmatpush1.msra.mxu0 %v68_v16 }
  0x1b   :  { %9296 = vmatmul.mubr.msk.f32.vlgmr.msra.gmra.mxu0 %vm96_vm0, %v60_v17  ;;  %266 = vmatprep.subr.mxu0 %v265_v18 }
  0x1c   :  { %191 = vmatprep.mubr.f32.mxu0 %v18161_v4  ;;  %267 = vmatpush1.msra.mxu0 %v264_v19 }
  0x1d   :  { %23 = vsyncpa [#allocation6], 0  ;;  %268 = vmatprep.subr.mxu0 %v263_v20  ;;  %v260_v24 = vld [vmem:[%s18140_s3 + $0xd0] sm:$0xff]  ;;  %v259_v25 = vld [vmem:[%s18140_s3 + $0xc8] sm:$0xff]  ;;  %v86_v57 = vlaneseq  ;;  %s18299_s28 = sld [smem:[#allocation157_spill]]  ;;  %s11889_s30 = smov 112  }
  0x1e   :  { %269 = vmatpush1.msra.mxu0 %v262_v21  ;;  %v258_v26 = vld [vmem:[%s18140_s3 + $0xc0] sm:$0xff]  ;;  %v62_v27 = vld [vmem:[%s18297_s20 + $0x10] sm:$0xff]  ;;  %v257_v28 = vld [vmem:[%s18140_s3 + $0xb8] sm:$0xff]  ;;  %vm3121_vm1 = vcmask 130048  }
  0x1f   :  { %9297 = vmatmul.mubr.msk.f32.gmra.mxu0 %vm96_vm0, %v61_v22  ;;  %270 = vmatprep.subr.mxu0 %v261_v23  ;;  %v256_v29 = vld [vmem:[%s18140_s3 + $0xb0] sm:$0xff]  ;;  %v255_v30 = vld [vmem:[%s18140_s3 + $0xa8] sm:$0xff]  ;;  %v254_v31 = vld [vmem:[%s18140_s3 + $0xa0] sm:$0xff]  ;;  %v12173_v58 = vshrl.u32 %v86_v57, 7 }
  0x20   :  { %197 = vmatprep.mubr.f32.mxu0 %v18161_v4  ;;  %271 = vmatpush1.msra.mxu0 %v260_v24  ;;  %v63_v32 = vld [vmem:[%s18297_s20 + $0x18] sm:$0xff]  ;;  %v252_v34 = vld [vmem:[%s18140_s3 + $0x90] sm:$0xff]  ;;  %v251_v35 = vld [vmem:[%s18140_s3 + $0x88] sm:$0xff] }
  0x21   :  { %272 = vmatprep.subr.mxu0 %v259_v25  ;;  %v253_v33 = vld [vmem:[%s18140_s3 + $0x98] sm:$0xff]  ;;  %v250_v36 = vld [vmem:[%s18140_s3 + $0x80] sm:$0xff]  ;;  %v248_v39 = vld [vmem:[%s18140_s3 + $0x70] sm:$0xff]  ;;  %18298 = vst [vmem:[#allocation8_spill] sm:$0xff] %v12173_v58  ;;  %v88_v59 = vsub.s32 0, %v12173_v58 }
  0x22   :  { %273 = vmatpush1.msra.mxu0 %v258_v26  ;;  %v64_v37 = vld [vmem:[%s18297_s20 + $0x20] sm:$0xff]  ;;  %v249_v38 = vld [vmem:[%s18140_s3 + $0x78] sm:$0xff]  ;;  %v247_v40 = vld [vmem:[%s18140_s3 + $0x68] sm:$0xff] }
  0x23   :  { %9298 = vmatmul.mubr.msk.f32.gmra.mxu0 %vm96_vm0, %v62_v27  ;;  %274 = vmatprep.subr.mxu0 %v257_v28  ;;  %v246_v41 = vld [vmem:[%s18140_s3 + $0x60] sm:$0xff]  ;;  %v65_v42 = vld [vmem:[%s18297_s20 + $0x28] sm:$0xff]  ;;  %v245_v43 = vld [vmem:[%s18140_s3 + $0x58] sm:$0xff] }
  0x24   :  { %203 = vmatprep.mubr.f32.mxu0 %v18161_v4  ;;  %275 = vmatpush1.msra.mxu0 %v256_v29  ;;  %v244_v44 = vld [vmem:[%s18140_s3 + $0x50] sm:$0xff]  ;;  %v243_v45 = vld [vmem:[%s18140_s3 + $0x48] sm:$0xff]  ;;  %v242_v46 = vld [vmem:[%s18140_s3 + $0x40] sm:$0xff] }
  0x25   :  { %276 = vmatprep.subr.mxu0 %v255_v30  ;;  %v66_v47 = vld [vmem:[%s18297_s20 + $0x30] sm:$0xff]  ;;  %v241_v48 = vld [vmem:[%s18140_s3 + $0x38] sm:$0xff]  ;;  %v239_v50 = vld [vmem:[%s18140_s3 + $0x28] sm:$0xff] }
  0x26   :  { %277 = vmatpush1.msra.mxu0 %v254_v31  ;;  %v240_v49 = vld [vmem:[%s18140_s3 + $0x30] sm:$0xff]  ;;  %v238_v51 = vld [vmem:[%s18140_s3 + $0x20] sm:$0xff]  ;;  %v67_v52 = vld [vmem:[%s18297_s20 + $0x38] sm:$0xff] }
  0x27   :  { %9299 = vmatmul.mubr.msk.f32.gmra.mxu0 %vm96_vm0, %v63_v32  ;;  %278 = vmatprep.subr.mxu0 %v253_v33  ;;  %v237_v53 = vld [vmem:[%s18140_s3 + $0x18] sm:$0xff]  ;;  %v236_v54 = vld [vmem:[%s18140_s3 + $0x10] sm:$0xff]  ;;  %v235_v55 = vld [vmem:[%s18140_s3 + $0x8] sm:$0xff] }
  0x28   :  { %209 = vmatprep.mubr.f32.mxu0 %v18161_v4  ;;  %279 = vmatpush1.msra.mxu0 %v252_v34  ;;  %v234_v56 = vld [vmem:[%s18140_s3] sm:$0xff]  ;;  %v429_v22 = vld [vmem:[%s18143_s6 + $0x8] sm:$0xff] }
  0x29   :  { %280 = vmatprep.subr.mxu0 %v251_v35  ;;  %v84_v60 = vld [vmem:[%s18299_s28] sm:$0x3] }
  0x2a   :  { %281 = vmatpush1.msra.mxu0 %v250_v36  ;;  %v89_v61 = vrot.slane %v84_v60, %v88_v59  ;;  %v418_v36 = vsub.s32 3, %v12173_v58 }
  0x2b   :  { %9300 = vmatmul.mubr.msk.f32.gmra.mxu0 %vm96_vm0, %v64_v37  ;;  %282 = vmatprep.subr.mxu0 %v249_v38  ;;  %v379_v37 = vld [vmem:[%s18141_s4] sm:$0xf] }
  0x2c   :  { %215 = vmatprep.mubr.f32.mxu0 %v18161_v4  ;;  %283 = vmatpush1.msra.mxu0 %v248_v39  ;;  %v18159_v39 = vsub.s32 1, %v12173_v58 }
  0x2d   :  { %284 = vmatprep.subr.mxu0 %v247_v40 }
  0x2e   :  { %285 = vmatpush1.msra.mxu0 %v246_v41  ;;  %v395_v41 = vrot.slane %v379_v37, %v18159_v39 }
  0x2f   :  { %9301 = vmatmul.mubr.msk.f32.gmra.mxu0 %vm96_vm0, %v65_v42  ;;  %286 = vmatprep.subr.mxu0 %v245_v43  ;;  %v419_v42 = vrot.slane %v379_v37, %v418_v36  ;;  %v435_v36 = vld [vmem:[%s18143_s6 + $0x38] sm:$0xff] }
  0x30   :  { %221 = vmatprep.mubr.f32.mxu0 %v18161_v4  ;;  %287 = vmatpush1.msra.mxu0 %v244_v44 }
  0x31   :  { %288 = vmatprep.subr.mxu0 %v243_v45 }
  0x32   :  { %289 = vmatpush1.msra.mxu0 %v242_v46 }
  0x33   :  { %9302 = vmatmul.mubr.msk.f32.gmra.mxu0 %vm96_vm0, %v66_v47  ;;  %290 = vmatprep.subr.mxu0 %v241_v48 }
  0x34   :  { %227 = vmatprep.mubr.f32.mxu0 %v18161_v4  ;;  %291 = vmatpush1.msra.mxu0 %v240_v49 }
  0x35   :  { %292 = vmatprep.subr.mxu0 %v239_v50 }
  0x36   :  { %293 = vmatpush1.msra.mxu0 %v238_v51 }
  0x37   :  { %9303 = vmatmul.mubr.msk.f32.gmra.mxu0 %vm96_vm0, %v67_v52  ;;  %294 = vmatprep.subr.mxu0 %v237_v53 }
  0x38   :  { %330 = vmatprep.mubr.f32.mxu0 %v18161_v4  ;;  %295 = vmatpush1.msra.mxu0 %v236_v54 }
  0x39   :  { %296 = vmatprep.subr.mxu0 %v235_v55  ;;  %v406_v55 = vsub.s32 2, %v12173_v58  ;;  %v3119_v58 = vld [vmem:[%s18147_s10] sm:$0xff] }
  0x3a   :  { %297 = vmatpush1.msra.mxu0 %v234_v56 }
  0xdb   :  { %v187_v62 = vpop.f32.mrf.mxu0 }
  0xdc   :  { %v188_v63 = vadd.f32 %v187_v62, %v89_v61  ;;  %v407_v62 = vrot.slane %v379_v37, %v406_v55  ;;  %v832_v55 = vld [vmem:[%s18146_s9 + $0x60] sm:$0xff] }
  0xdd   :  { %v12181_v0 = vpop.f32.mrf.mxu0 }
  0xde   :  { %18300 = vst [vmem:[#allocation9_spill] sm:$0xff] %v12181_v0  ;;  %331 = vmatmul.mubr.f32.vlgmr.msra.gmra.mxu0 %v188_v63  ;;  %v383_v63 = vrot.slane %v379_v37, %v88_v59  ;;  %v434_v37 = vld [vmem:[%s18143_s6 + $0x30] sm:$0xff] }
  0xdf   :  { %v193_v1 = vpop.f32.mrf.mxu0  ;;  %336 = vmatprep.mubr.f32.mxu0 %v18161_v4 }
  0xe0   :  { %v194_v2 = vadd.f32 %v193_v1, %v89_v61 }
  0xe1   :  { %v12184_v3 = vpop.f32.mrf.mxu0 }
  0xe2   :  { %18301 = vst [vmem:[#allocation10_spill] sm:$0xff] %v12184_v3  ;;  %337 = vmatmul.mubr.f32.gmra.mxu0 %v194_v2 }
  0xe3   :  { %v199_v5 = vpop.f32.mrf.mxu0  ;;  %342 = vmatprep.mubr.f32.mxu0 %v18161_v4 }
  0xe4   :  { %v200_v6 = vadd.f32 %v199_v5, %v89_v61 }
  0xe5   :  { %v12187_v7 = vpop.f32.mrf.mxu0 }
  0xe6   :  { %18302 = vst [vmem:[#allocation11_spill] sm:$0xff] %v12187_v7  ;;  %343 = vmatmul.mubr.f32.gmra.mxu0 %v200_v6 }
  0xe7   :  { %v205_v8 = vpop.f32.mrf.mxu0  ;;  %348 = vmatprep.mubr.f32.mxu0 %v18161_v4 }
  0xe8   :  { %v206_v9 = vadd.f32 %v205_v8, %v89_v61 }
  0xe9   :  { %v12190_v10 = vpop.f32.mrf.mxu0 }
  0xea   :  { %18303 = vst [vmem:[#allocation12_spill] sm:$0xff] %v12190_v10  ;;  %349 = vmatmul.mubr.f32.gmra.mxu0 %v206_v9 }
  0xeb   :  { %v211_v11 = vpop.f32.mrf.mxu0  ;;  %354 = vmatprep.mubr.f32.mxu0 %v18161_v4 }
  0xec   :  { %v212_v12 = vadd.f32 %v211_v11, %v89_v61 }
  0xed   :  { %v12193_v13 = vpop.f32.mrf.mxu0 }
  0xee   :  { %18304 = vst [vmem:[#allocation13_spill] sm:$0xff] %v12193_v13  ;;  %355 = vmatmul.mubr.f32.gmra.mxu0 %v212_v12  ;;  %v12924_v13 = vld [vmem:[%s18148_s11 + $0x1a8] sm:$0xff] }
  0xef   :  { %v217_v14 = vpop.f32.mrf.mxu0  ;;  %360 = vmatprep.mubr.f32.mxu0 %v18161_v4 }
  0xf0   :  { %v218_v15 = vadd.f32 %v217_v14, %v89_v61 }
  0xf1   :  { %v12196_v16 = vpop.f32.mrf.mxu0 }
  0xf2   :  { %18305 = vst [vmem:[#allocation14_spill] sm:$0xff] %v12196_v16  ;;  %361 = vmatmul.mubr.f32.gmra.mxu0 %v218_v15  ;;  %v12907_v16 = vld [vmem:[%s18148_s11 + $0x198] sm:$0xff] }
  0xf3   :  { %v223_v17 = vpop.f32.mrf.mxu0  ;;  %366 = vmatprep.mubr.f32.mxu0 %v18161_v4 }
  0xf4   :  { %v224_v18 = vadd.f32 %v223_v17, %v89_v61 }
  0xf5   :  { %v12199_v19 = vpop.f32.mrf.mxu0 }
  0xf6   :  { %18306 = vst [vmem:[#allocation15_spill] sm:$0xff] %v12199_v19  ;;  %367 = vmatmul.mubr.f32.gmra.mxu0 %v224_v18 }
  0xf7   :  { %v229_v20 = vpop.f32.mrf.mxu0  ;;  %372 = vmatprep.mubr.f32.mxu0 %v18161_v4 }
  0xf8   :  { %v230_v21 = vadd.f32 %v229_v20, %v89_v61 }
  0xf9   :  { %v12205_v23 = vpop.f32.mrf.mxu0 }
  0xfa   :  { %373 = vmatmul.mubr.f32.gmra.mxu0 %v230_v21  ;;  %18307 = vst [vmem:[#allocation16_spill] sm:$0xff] %v12205_v23  ;;  %v12895_v23 = vld [vmem:[%s18148_s11 + $0x190] sm:$0xff] }
  0xfb   :  { %515 = vmatprep.mubr.f32.mxu0 %v429_v22 }
 0x19e   :  { %v12207_v24 = vpop.f32.mrf.mxu0 }
 0x19f   :  { %v420_v61 = vmul.f32 %v419_v42, %v12207_v24  ;;  %v396_v1 = vmul.f32 %v395_v41, %v12207_v24  ;;  %v408_v22 = vmul.f32 %v407_v62, %v12207_v24 }
 0x1a0   :  { %v12209_v25 = vpop.f32.mrf.mxu0 }
 0x1a1   :  { %18308 = vst [vmem:[#allocation17_spill] sm:$0xff] %v12209_v25 }
 0x1a2   :  { %v12211_v26 = vpop.f32.mrf.mxu0 }
 0x1a3   :  { %v421_v57 = vmul.f32 %v419_v42, %v12211_v26  ;;  %v397_v60 = vmul.f32 %v395_v41, %v12211_v26  ;;  %v409_v20 = vmul.f32 %v407_v62, %v12211_v26  ;;  %v385_v21 = vmul.f32 %v383_v63, %v12211_v26  ;;  %v430_v26 = vld [vmem:[%s18143_s6 + $0x10] sm:$0xff] }
 0x1a4   :  { %v12213_v27 = vpop.f32.mrf.mxu0 }
 0x1a5   :  { %18309 = vst [vmem:[#allocation18_spill] sm:$0xff] %v12213_v27 }
 0x1a6   :  { %v12215_v28 = vpop.f32.mrf.mxu0 }
 0x1a7   :  { %v422_v54 = vmul.f32 %v419_v42, %v12215_v28  ;;  %v398_v56 = vmul.f32 %v395_v41, %v12215_v28  ;;  %v410_v17 = vmul.f32 %v407_v62, %v12215_v28  ;;  %v386_v18 = vmul.f32 %v383_v63, %v12215_v28  ;;  %v431_v28 = vld [vmem:[%s18143_s6 + $0x18] sm:$0xff] }
 0x1a8   :  { %v12217_v29 = vpop.f32.mrf.mxu0 }
 0x1a9   :  { %18310 = vst [vmem:[#allocation19_spill] sm:$0xff] %v12217_v29 }
 0x1aa   :  { %v12219_v30 = vpop.f32.mrf.mxu0 }
 0x1ab   :  { %v423_v52 = vmul.f32 %v419_v42, %v12219_v30  ;;  %v399_v53 = vmul.f32 %v395_v41, %v12219_v30  ;;  %v411_v59 = vmul.f32 %v407_v62, %v12219_v30  ;;  %v387_v15 = vmul.f32 %v383_v63, %v12219_v30  ;;  %v428_v30 = vld [vmem:[%s18143_s6] sm:$0xff] }
 0x1ac   :  { %v12221_v31 = vpop.f32.mrf.mxu0 }
 0x1ad   :  { %18311 = vst [vmem:[#allocation20_spill] sm:$0xff] %v12221_v31  ;;  %v13596_v31 = vld [vmem:[%s18149_s12 + $0xf8] sm:$0xff] }
 0x1ae   :  { %v356_v32 = vpop.f32.mrf.mxu0 }
 0x1af   :  { %v424_v50 = vmul.f32 %v419_v42, %v356_v32  ;;  %v400_v51 = vmul.f32 %v395_v41, %v356_v32  ;;  %v412_v12 = vmul.f32 %v407_v62, %v356_v32  ;;  %v388_v14 = vmul.f32 %v383_v63, %v356_v32 }
 0x1b0   :  { %v12223_v33 = vpop.f32.mrf.mxu0  ;;  %v384_v32 = vmul.f32 %v383_v63, %v12207_v24  ;;  %v433_v24 = vld [vmem:[%s18143_s6 + $0x28] sm:$0xff] }
 0x1b1   :  { %18312 = vst [vmem:[#allocation21_spill] sm:$0xff] %v12223_v33 }
 0x1b2   :  { %v362_v34 = vpop.f32.mrf.mxu0 }
 0x1b3   :  { %v425_v48 = vmul.f32 %v419_v42, %v362_v34  ;;  %v401_v49 = vmul.f32 %v395_v41, %v362_v34  ;;  %v413_v9 = vmul.f32 %v407_v62, %v362_v34  ;;  %v389_v11 = vmul.f32 %v383_v63, %v362_v34  ;;  %v432_v34 = vld [vmem:[%s18143_s6 + $0x20] sm:$0xff] }
 0x1b4   :  { %v12225_v35 = vpop.f32.mrf.mxu0 }
 0x1b5   :  { %18313 = vst [vmem:[#allocation22_spill] sm:$0xff] %v12225_v35 }
 0x1b6   :  { %v368_v38 = vpop.f32.mrf.mxu0 }
 0x1b7   :  { %v426_v46 = vmul.f32 %v419_v42, %v368_v38  ;;  %v402_v47 = vmul.f32 %v395_v41, %v368_v38  ;;  %v414_v6 = vmul.f32 %v407_v62, %v368_v38  ;;  %v390_v8 = vmul.f32 %v383_v63, %v368_v38  ;;  %v437_v38 = vld [vmem:[%s18143_s6 + $0x48] sm:$0xff] }
 0x1b8   :  { %v12232_v40 = vpop.f32.mrf.mxu0 }
 0x1b9   :  { %18314 = vst [vmem:[#allocation23_spill] sm:$0xff] %v12232_v40  ;;  %v13575_v40 = vld [vmem:[%s18149_s12 + $0xe0] sm:$0xff] }
 0x1ba   :  { %v374_v43 = vpop.f32.mrf.mxu0 }
 0x1bb   :  { %v403_v44 = vmul.f32 %v395_v41, %v374_v43  ;;  %v427_v45 = vmul.f32 %v419_v42, %v374_v43  ;;  %v415_v2 = vmul.f32 %v407_v62, %v374_v43  ;;  %v391_v5 = vmul.f32 %v383_v63, %v374_v43  ;;  %v436_v41 = vld [vmem:[%s18143_s6 + $0x40] sm:$0xff]  ;;  %v439_v42 = vld [vmem:[%s18143_s6 + $0x58] sm:$0xff]  ;;  %v438_v43 = vld [vmem:[%s18143_s6 + $0x50] sm:$0xff] }
 0x1bc   :  { %v621_v62 = vld [vmem:[%s18144_s7 + $0x48] sm:$0xff] }
 0x1bd   :  { %9844 = vmatprep.subr.mxu0 %v427_v45  ;;  %v440_v45 = vld [vmem:[%s18143_s6 + $0x60] sm:$0xff]  ;;  %v829_v63 = vld [vmem:[%s18146_s9 + $0x48] sm:$0xff] }
 0x1be   :  { %9845 = vmatpush3.msra.mxu0 %v403_v44  ;;  %v441_v44 = vld [vmem:[%s18143_s6 + $0x68] sm:$0xff] }
 0x1bf   :  { %9846 = vmatprep.subr.mxu0 %v426_v46  ;;  %v443_v46 = vld [vmem:[%s18143_s6 + $0x78] sm:$0xff] }
 0x1c0   :  { %9847 = vmatpush3.msra.mxu0 %v402_v47  ;;  %v442_v47 = vld [vmem:[%s18143_s6 + $0x70] sm:$0xff] }
 0x1c1   :  { %9848 = vmatprep.subr.mxu0 %v425_v48  ;;  %v627_v48 = vld [vmem:[%s18144_s7 + $0x78] sm:$0xff] }
 0x1c2   :  { %9849 = vmatpush3.msra.mxu0 %v401_v49  ;;  %v835_v49 = vld [vmem:[%s18146_s9 + $0x78] sm:$0xff]  ;;  %10622 = vmatprep.subr.mxu1 %v627_v48 }
 0x1c3   :  { %9850 = vmatprep.subr.mxu0 %v424_v50  ;;  %10623 = vmatpush3.msra.mxu1 %v627_v48  ;;  %v626_v50 = vld [vmem:[%s18144_s7 + $0x70] sm:$0xff] }
 0x1c4   :  { %9851 = vmatpush3.msra.mxu0 %v400_v51  ;;  %v834_v51 = vld [vmem:[%s18146_s9 + $0x70] sm:$0xff]  ;;  %10624 = vmatprep.subr.mxu1 %v626_v50 }
 0x1c5   :  { %9852 = vmatprep.subr.mxu0 %v423_v52  ;;  %10625 = vmatpush3.msra.mxu1 %v626_v50  ;;  %v625_v52 = vld [vmem:[%s18144_s7 + $0x68] sm:$0xff] }
 0x1c6   :  { %9853 = vmatpush3.msra.mxu0 %v399_v53  ;;  %v833_v53 = vld [vmem:[%s18146_s9 + $0x68] sm:$0xff]  ;;  %10626 = vmatprep.subr.mxu1 %v625_v52 }
 0x1c7   :  { %9854 = vmatprep.subr.mxu0 %v422_v54  ;;  %10627 = vmatpush3.msra.mxu1 %v625_v52  ;;  %v624_v54 = vld [vmem:[%s18144_s7 + $0x60] sm:$0xff] }
 0x1c8   :  { %9855 = vmatpush3.msra.mxu0 %v398_v56  ;;  %10628 = vmatprep.subr.mxu1 %v624_v54  ;;  %v623_v56 = vld [vmem:[%s18144_s7 + $0x58] sm:$0xff] }
 0x1c9   :  { %9856 = vmatprep.subr.mxu0 %v421_v57  ;;  %10629 = vmatpush3.msra.mxu1 %v624_v54  ;;  %v831_v57 = vld [vmem:[%s18146_s9 + $0x58] sm:$0xff] }
 0x1ca   :  { %9857 = vmatpush3.msra.mxu0 %v397_v60  ;;  %10630 = vmatprep.subr.mxu1 %v623_v56  ;;  %v622_v60 = vld [vmem:[%s18144_s7 + $0x50] sm:$0xff] }
 0x1cb   :  { %9858 = vmatprep.subr.mxu0 %v420_v61  ;;  %10631 = vmatpush3.msra.mxu1 %v623_v56  ;;  %v830_v61 = vld [vmem:[%s18146_s9 + $0x50] sm:$0xff] }
 0x1cc   :  { %9859 = vmatpush3.msra.mxu0 %v396_v1  ;;  %10632 = vmatprep.subr.mxu1 %v622_v60  ;;  %v620_v1 = vld [vmem:[%s18144_s7 + $0x40] sm:$0xff] }
 0x1cd   :  { %9860 = vmatprep.subr.mxu0 %v415_v2  ;;  %10633 = vmatpush3.msra.mxu1 %v622_v60  ;;  %v828_v2 = vld [vmem:[%s18146_s9 + $0x40] sm:$0xff] }
 0x1ce   :  { %9861 = vmatpush3.msra.mxu0 %v391_v5  ;;  %10634 = vmatprep.subr.mxu1 %v621_v62  ;;  %v619_v5 = vld [vmem:[%s18144_s7 + $0x38] sm:$0xff] }
 0x1cf   :  { %9862 = vmatprep.subr.mxu0 %v414_v6  ;;  %10635 = vmatpush3.msra.mxu1 %v621_v62  ;;  %v827_v6 = vld [vmem:[%s18146_s9 + $0x38] sm:$0xff] }
 0x1d0   :  { %9863 = vmatpush3.msra.mxu0 %v390_v8  ;;  %10636 = vmatprep.subr.mxu1 %v620_v1  ;;  %v618_v8 = vld [vmem:[%s18144_s7 + $0x30] sm:$0xff] }
 0x1d1   :  { %9864 = vmatprep.subr.mxu0 %v413_v9  ;;  %10637 = vmatpush3.msra.mxu1 %v620_v1  ;;  %v826_v9 = vld [vmem:[%s18146_s9 + $0x30] sm:$0xff] }
 0x1d2   :  { %9865 = vmatpush3.msra.mxu0 %v389_v11  ;;  %10638 = vmatprep.subr.mxu1 %v619_v5  ;;  %v617_v11 = vld [vmem:[%s18144_s7 + $0x28] sm:$0xff] }
 0x1d3   :  { %9866 = vmatprep.subr.mxu0 %v412_v12  ;;  %10639 = vmatpush3.msra.mxu1 %v619_v5  ;;  %v825_v12 = vld [vmem:[%s18146_s9 + $0x28] sm:$0xff] }
 0x1d4   :  { %9867 = vmatpush3.msra.mxu0 %v388_v14  ;;  %10640 = vmatprep.subr.mxu1 %v618_v8  ;;  %v616_v14 = vld [vmem:[%s18144_s7 + $0x20] sm:$0xff] }
 0x1d5   :  { %9868 = vmatprep.subr.mxu0 %v411_v59  ;;  %10641 = vmatpush3.msra.mxu1 %v618_v8  ;;  %v824_v59 = vld [vmem:[%s18146_s9 + $0x20] sm:$0xff] }
 0x1d6   :  { %9869 = vmatpush3.msra.mxu0 %v387_v15  ;;  %10642 = vmatprep.subr.mxu1 %v617_v11  ;;  %v615_v15 = vld [vmem:[%s18144_s7 + $0x18] sm:$0xff] }
 0x1d7   :  { %9870 = vmatprep.subr.mxu0 %v410_v17  ;;  %10643 = vmatpush3.msra.mxu1 %v617_v11  ;;  %v823_v17 = vld [vmem:[%s18146_s9 + $0x18] sm:$0xff] }
 0x1d8   :  { %9871 = vmatpush3.msra.mxu0 %v386_v18  ;;  %10644 = vmatprep.subr.mxu1 %v616_v14  ;;  %v614_v18 = vld [vmem:[%s18144_s7 + $0x10] sm:$0xff] }
 0x1d9   :  { %9872 = vmatprep.subr.mxu0 %v409_v20  ;;  %10645 = vmatpush3.msra.mxu1 %v616_v14  ;;  %v822_v20 = vld [vmem:[%s18146_s9 + $0x10] sm:$0xff] }
 0x1da   :  { %9873 = vmatpush3.msra.mxu0 %v385_v21  ;;  %10646 = vmatprep.subr.mxu1 %v615_v15  ;;  %v613_v21 = vld [vmem:[%s18144_s7 + $0x8] sm:$0xff] }
 0x1db   :  { %9874 = vmatprep.subr.mxu0 %v408_v22  ;;  %10647 = vmatpush3.msra.mxu1 %v615_v15  ;;  %v821_v22 = vld [vmem:[%s18146_s9 + $0x8] sm:$0xff] }
 0x1dc   :  { %9875 = vmatpush3.msra.mxu0 %v384_v32  ;;  %10648 = vmatprep.subr.mxu1 %v614_v18  ;;  %v612_v32 = vld [vmem:[%s18144_s7] sm:$0xff] }
 0x1dd   :  { %516 = vmatmul.mubr.f32.vlgmr.msra.gmra.mxu0 %v428_v30  ;;  %10666 = vmatprep.subr.mxu0 %v835_v49  ;;  %v820_v30 = vld [vmem:[%s18146_s9] sm:$0xff] }
 0x1de   :  { %520 = vmatprep.mubr.f32.mxu0 %v431_v28  ;;  %10667 = vmatpush3.msra.mxu0 %v835_v49  ;;  %v12396_v28 = vpop.f32.mrf.mxu0 }
 0x1df   :  { %10668 = vmatprep.subr.mxu0 %v834_v51  ;;  %10649 = vmatpush3.msra.mxu1 %v614_v18  ;;  %18315 = vst [vmem:[#allocation24_spill] sm:$0xff] %v12396_v28 }
 0x1e0   :  { %10669 = vmatpush3.msra.mxu0 %v834_v51  ;;  %10650 = vmatprep.subr.mxu1 %v613_v21 }
 0x1e1   :  { %521 = vmatmul.mubr.f32.gmra.mxu0 %v430_v26  ;;  %10670 = vmatprep.subr.mxu0 %v833_v53 }
 0x1e2   :  { %525 = vmatprep.mubr.f32.mxu0 %v433_v24  ;;  %10671 = vmatpush3.msra.mxu0 %v833_v53  ;;  %v9304_v24 = vld [vmem:[%s18142_s5] ss:$0 sm:$0xff] }
 0x1e3   :  { %10672 = vmatprep.subr.mxu0 %v832_v55  ;;  %10651 = vmatpush3.msra.mxu1 %v613_v21 }
 0x1e4   :  { %10673 = vmatpush3.msra.mxu0 %v832_v55  ;;  %10652 = vmatprep.subr.mxu1 %v612_v32 }
 0x1e5   :  { %526 = vmatmul.mubr.f32.gmra.mxu0 %v432_v34  ;;  %10674 = vmatprep.subr.mxu0 %v831_v57 }
 0x1e6   :  { %530 = vmatprep.mubr.f32.mxu0 %v435_v36  ;;  %10675 = vmatpush3.msra.mxu0 %v831_v57 }
 0x1e7   :  { %10676 = vmatprep.subr.mxu0 %v830_v61  ;;  %10653 = vmatpush3.msra.mxu1 %v612_v32 }
 0x1e8   :  { %10677 = vmatpush3.msra.mxu0 %v830_v61 }
 0x1e9   :  { %531 = vmatmul.mubr.f32.gmra.mxu0 %v434_v37  ;;  %10678 = vmatprep.subr.mxu0 %v829_v63 }
 0x1ea   :  { %535 = vmatprep.mubr.f32.mxu0 %v437_v38  ;;  %10679 = vmatpush3.msra.mxu0 %v829_v63 }
 0x1eb   :  { %10680 = vmatprep.subr.mxu0 %v828_v2 }
 0x1ec   :  { %10681 = vmatpush3.msra.mxu0 %v828_v2 }
 0x1ed   :  { %536 = vmatmul.mubr.f32.gmra.mxu0 %v436_v41  ;;  %10682 = vmatprep.subr.mxu0 %v827_v6 }
 0x1ee   :  { %540 = vmatprep.mubr.f32.mxu0 %v439_v42  ;;  %10683 = vmatpush3.msra.mxu0 %v827_v6 }
 0x1ef   :  { %10684 = vmatprep.subr.mxu0 %v826_v9 }
 0x1f0   :  { %10685 = vmatpush3.msra.mxu0 %v826_v9 }
 0x1f1   :  { %541 = vmatmul.mubr.f32.gmra.mxu0 %v438_v43  ;;  %10686 = vmatprep.subr.mxu0 %v825_v12 }
 0x1f2   :  { %545 = vmatprep.mubr.f32.mxu0 %v441_v44  ;;  %10687 = vmatpush3.msra.mxu0 %v825_v12 }
 0x1f3   :  { %10688 = vmatprep.subr.mxu0 %v824_v59 }
 0x1f4   :  { %10689 = vmatpush3.msra.mxu0 %v824_v59 }
 0x1f5   :  { %546 = vmatmul.mubr.f32.gmra.mxu0 %v440_v45  ;;  %10690 = vmatprep.subr.mxu0 %v823_v17 }
 0x1f6   :  { %550 = vmatprep.mubr.f32.mxu0 %v443_v46  ;;  %10691 = vmatpush3.msra.mxu0 %v823_v17 }
 0x1f7   :  { %10692 = vmatprep.subr.mxu0 %v822_v20 }
 0x1f8   :  { %10693 = vmatpush3.msra.mxu0 %v822_v20 }
 0x1f9   :  { %551 = vmatmul.mubr.f32.gmra.mxu0 %v442_v47  ;;  %10694 = vmatprep.subr.mxu0 %v821_v22 }
 0x1fa   :  { %10695 = vmatpush3.msra.mxu0 %v821_v22 }
 0x1fb   :  { %10696 = vmatprep.subr.mxu0 %v820_v30 }
 0x1fc   :  { %10697 = vmatpush3.msra.mxu0 %v820_v30 }
 0x29d   :  { %v9876_v26 = vpop.f32.mrf.mxu0 }
 0x29f   :  { %v9877_v34 = vpop.f32.mrf.mxu0 }
 0x2a0   :  { %v9878_v36 = vadd.f32 %v9877_v34, %v9876_v26 }
 0x2a1   :  { %v9879_v37 = vpop.f32.mrf.mxu0 }
 0x2a2   :  { %v518_v38 = vadd.f32 %v9878_v36, %v9304_v24 }
 0x2a3   :  { %v9880_v41 = vpop.f32.mrf.mxu0 }
 0x2a4   :  { %v9305_v42 = vmul.f32 -1.442695, %v518_v38  ;;  %v9881_v43 = vadd.f32 %v9880_v41, %v9879_v37 }
 0x2a5   :  { %v9882_v44 = vpop.f32.mrf.mxu0 }
 0x2a6   :  { %11415 = vpow2.f32 %v9305_v42  ;;  %v523_v45 = vadd.f32 %v9881_v43, %v9304_v24 }
 0x2a7   :  { %v9883_v46 = vpop.f32.mrf.mxu0 }
 0x2a8   :  { %v9306_v47 = vmul.f32 -1.442695, %v523_v45  ;;  %v9884_v48 = vadd.f32 %v9883_v46, %v9882_v44 }
 0x2a9   :  { %v9885_v49 = vpop.f32.mrf.mxu0 }
 0x2aa   :  { %11417 = vpow2.f32 %v9306_v47  ;;  %v528_v50 = vadd.f32 %v9884_v48, %v9304_v24 }
 0x2ab   :  { %v9886_v51 = vpop.f32.mrf.mxu0 }
 0x2ac   :  { %v9307_v52 = vmul.f32 -1.442695, %v528_v50  ;;  %v9887_v53 = vadd.f32 %v9886_v51, %v9885_v49 }
 0x2ad   :  { %v9888_v54 = vpop.f32.mrf.mxu0 }
 0x2ae   :  { %11419 = vpow2.f32 %v9307_v52  ;;  %v533_v55 = vadd.f32 %v9887_v53, %v9304_v24 }
 0x2af   :  { %v9889_v56 = vpop.f32.mrf.mxu0 }
 0x2b0   :  { %v9308_v57 = vmul.f32 -1.442695, %v533_v55  ;;  %v9890_v60 = vadd.f32 %v9889_v56, %v9888_v54 }
 0x2b1   :  { %v9891_v61 = vpop.f32.mrf.mxu0 }
 0x2b2   :  { %11421 = vpow2.f32 %v9308_v57  ;;  %v538_v62 = vadd.f32 %v9890_v60, %v9304_v24 }
 0x2b3   :  { %v11416_v63 = vpop.eup %11415  ;;  %v9892_v1 = vpop.f32.mrf.mxu0 }
 0x2b4   :  { %v580_v2 = vadd.f32 1.0, %v11416_v63  ;;  %v9309_v5 = vmul.f32 -1.442695, %v538_v62  ;;  %v9893_v6 = vadd.f32 %v9892_v1, %v9891_v61 }
 0x2b5   :  { %v9894_v8 = vpop.f32.mrf.mxu0 }
 0x2b6   :  { %11423 = vrcp.f32 %v580_v2  ;;  %v543_v9 = vadd.f32 %v9893_v6, %v9304_v24  ;;  %v12437_v2 = vld [vmem:[%s18148_s11] sm:$0xff] }
 0x2b7   :  { %v11418_v11 = vpop.eup %11417  ;;  %11425 = vpow2.f32 %v9309_v5  ;;  %v9895_v12 = vpop.f32.mrf.mxu0 }
 0x2b8   :  { %v581_v14 = vadd.f32 1.0, %v11418_v11  ;;  %v9310_v59 = vmul.f32 -1.442695, %v543_v9  ;;  %v9896_v15 = vadd.f32 %v9895_v12, %v9894_v8 }
 0x2b9   :  { %v9897_v17 = vpop.f32.mrf.mxu0 }
 0x2ba   :  { %11427 = vrcp.f32 %v581_v14  ;;  %v548_v18 = vadd.f32 %v9896_v15, %v9304_v24  ;;  %v9313_v14 = vld [vmem:[%s18145_s8] ss:$0 sm:$0xff] }
 0x2bb   :  { %v11420_v20 = vpop.eup %11419  ;;  %11429 = vpow2.f32 %v9310_v59  ;;  %v9898_v21 = vpop.f32.mrf.mxu0 }
 0x2bc   :  { %v582_v22 = vadd.f32 1.0, %v11420_v20  ;;  %v9311_v32 = vmul.f32 -1.442695, %v548_v18  ;;  %v9899_v30 = vadd.f32 %v9898_v21, %v9897_v17 }
 0x2be   :  { %11431 = vrcp.f32 %v582_v22  ;;  %v553_v26 = vadd.f32 %v9899_v30, %v9304_v24 }
 0x2bf   :  { %v11422_v34 = vpop.eup %11421  ;;  %11433 = vpow2.f32 %v9311_v32 }
 0x2c0   :  { %v583_v36 = vadd.f32 1.0, %v11422_v34  ;;  %v9312_v37 = vmul.f32 -1.442695, %v553_v26 }
 0x2c2   :  { %11435 = vrcp.f32 %v583_v36 }
 0x2c3   :  { %v11424_v41 = vpop.eup %11423  ;;  %11437 = vpow2.f32 %v9312_v37 }
 0x2c4   :  { %v11426_v42 = vpop.eup %11425  ;;  %v12401_v43 = vmul.f32 %v11424_v41, %v518_v38 }
 0x2c5   :  { %v584_v44 = vadd.f32 1.0, %v11426_v42 }
 0x2c6   :  { %18316 = vst [vmem:[#allocation25_spill] sm:$0xff] %v12401_v43  ;;  %10654 = vmatprep.mubr.f32.mxu1 %v12401_v43  ;;  %10698 = vmatprep.mubr.f32.mxu0 %v12401_v43 }
 0x2c7   :  { %v11428_v46 = vpop.eup %11427  ;;  %11439 = vrcp.f32 %v584_v44 }
 0x2c8   :  { %v11430_v47 = vpop.eup %11429  ;;  %v12405_v48 = vmul.f32 %v11428_v46, %v523_v45 }
 0x2c9   :  { %v585_v24 = vadd.f32 1.0, %v11430_v47 }
 0x2ca   :  { %18317 = vst [vmem:[#allocation26_spill] sm:$0xff] %v12405_v48  ;;  %10655 = vmatmul.mubr.f32.vlgmr.msra.gmra.mxu1 %v12405_v48  ;;  %10699 = vmatmul.mubr.f32.vlgmr.msra.gmra.mxu0 %v12405_v48 }
 0x2cb   :  { %v11432_v49 = vpop.eup %11431  ;;  %11441 = vrcp.f32 %v585_v24 }
 0x2cc   :  { %v11434_v51 = vpop.eup %11433  ;;  %v12409_v38 = vmul.f32 %v11432_v49, %v528_v50 }
 0x2cd   :  { %v586_v52 = vadd.f32 1.0, %v11434_v51 }
 0x2ce   :  { %18318 = vst [vmem:[#allocation27_spill] sm:$0xff] %v12409_v38  ;;  %10657 = vmatprep.mubr.f32.mxu1 %v12409_v38  ;;  %10701 = vmatprep.mubr.f32.mxu0 %v12409_v38 }
 0x2cf   :  { %v11436_v53 = vpop.eup %11435  ;;  %11443 = vrcp.f32 %v586_v52 }
 0x2d0   :  { %v11438_v54 = vpop.eup %11437  ;;  %v12413_v45 = vmul.f32 %v11436_v53, %v533_v55 }
 0x2d1   :  { %v587_v56 = vadd.f32 1.0, %v11438_v54 }
 0x2d2   :  { %18319 = vst [vmem:[#allocation28_spill] sm:$0xff] %v12413_v45  ;;  %10658 = vmatmul.mubr.f32.gmra.mxu1 %v12413_v45  ;;  %10702 = vmatmul.mubr.f32.gmra.mxu0 %v12413_v45 }
 0x2d3   :  { %11445 = vrcp.f32 %v587_v56 }
 0x2d4   :  { %v11440_v57 = vpop.eup %11439 }
 0x2d5   :  { %v12417_v60 = vmul.f32 %v11440_v57, %v538_v62 }
 0x2d7   :  { %18320 = vst [vmem:[#allocation29_spill] sm:$0xff] %v12417_v60  ;;  %10660 = vmatprep.mubr.f32.mxu1 %v12417_v60  ;;  %10704 = vmatprep.mubr.f32.mxu0 %v12417_v60 }
 0x2d8   :  { %v11442_v50 = vpop.eup %11441 }
 0x2d9   :  { %v12421_v61 = vmul.f32 %v11442_v50, %v543_v9 }
 0x2db   :  { %18321 = vst [vmem:[#allocation30_spill] sm:$0xff] %v12421_v61  ;;  %10661 = vmatmul.mubr.f32.gmra.mxu1 %v12421_v61  ;;  %10705 = vmatmul.mubr.f32.gmra.mxu0 %v12421_v61 }
 0x2dc   :  { %v11444_v55 = vpop.eup %11443 }
 0x2dd   :  { %v12425_v63 = vmul.f32 %v11444_v55, %v548_v18 }
 0x2df   :  { %18322 = vst [vmem:[#allocation31_spill] sm:$0xff] %v12425_v63  ;;  %10663 = vmatprep.mubr.f32.mxu1 %v12425_v63  ;;  %10707 = vmatprep.mubr.f32.mxu0 %v12425_v63 }
 0x2e0   :  { %v11446_v62 = vpop.eup %11445 }
 0x2e1   :  { %v12429_v1 = vmul.f32 %v11446_v62, %v553_v26 }
 0x2e3   :  { %18323 = vst [vmem:[#allocation32_spill] sm:$0xff] %v12429_v1  ;;  %10664 = vmatmul.mubr.f32.gmra.mxu1 %v12429_v1  ;;  %10708 = vmatmul.mubr.f32.gmra.mxu0 %v12429_v1 }
 0x2e4   :  { %1517 = vmatprep.mubr.f32.mxu1 %v18161_v4  ;;  %10726 = vmatprep.mubr.msk.f32.mxu0 %vm96_vm0, %v12437_v2 }
 0x38a   :  { %v10656_v5 = vpop.f32.mrf.mxu1  ;;  %v12441_v6 = vpop.f32.mrf.mxu0 }
 0x38b   :  { %v12459_v32 = vadd.f32 %v10656_v5, %v9313_v14 }
 0x38c   :  { %v701_v8 = vpop.f32.mrf.mxu1  ;;  %v12443_v9 = vpop.f32.mrf.mxu0 }
 0x38d   :  { %v12466_v42 = vadd.f32 %v9313_v14, %v701_v8  ;;  %v749_v47 = vand.u32 2147483647, %v12459_v32 }
 0x38f   :  { %v748_v56 = vand.u32 2147483647, %v12466_v42  ;;  %v757_v55 = vsub.f32 0.0, %v749_v47 }
 0x392   :  { %v10659_v11 = vpop.f32.mrf.mxu1  ;;  %v12445_v12 = vpop.f32.mrf.mxu0 }
 0x393   :  { %v12450_v15 = vadd.f32 %v10659_v11, %v9313_v14 }
 0x394   :  { %v711_v59 = vpop.f32.mrf.mxu1  ;;  %v12452_v17 = vpop.f32.mrf.mxu0 }
 0x395   :  { %v12454_v18 = vadd.f32 %v9313_v14, %v711_v59  ;;  %v751_v30 = vand.u32 2147483647, %v12450_v15 }
 0x397   :  { %v750_v37 = vand.u32 2147483647, %v12454_v18  ;;  %v759_v24 = vsub.f32 0.0, %v751_v30  ;;  %v756_v30 = vsub.f32 0.0, %v748_v56 }
 0x399   :  { %v758_v52 = vsub.f32 0.0, %v750_v37  ;;  %v770_v62 = vmul.f32 1.442695, %v759_v24  ;;  %v766_v37 = vmul.f32 1.442695, %v757_v55  ;;  %v12527_v55 = vld [vmem:[%s18148_s11 + $0x28] sm:$0xff] }
 0x39b   :  { %v10662_v20 = vpop.f32.mrf.mxu1  ;;  %v10706_v21 = vpop.f32.mrf.mxu0 }
 0x39c   :  { %v12456_v22 = vadd.f32 %v10662_v20, %v9313_v14  ;;  %6405 = vrot.lane.b32.xlu1 %v10706_v21, %s11889_s30  ;;  %v768_v20 = vmul.f32 1.442695, %v758_v52  ;;  %v12518_v52 = vld [vmem:[%s18148_s11 + $0x20] sm:$0xff] }
 0x39d   :  { %v721_v26 = vpop.f32.mrf.mxu1  ;;  %v922_v41 = vpop.f32.mrf.mxu0 }
 0x39e   :  { %v753_v34 = vand.u32 2147483647, %v12456_v22  ;;  %v12463_v36 = vadd.f32 %v9313_v14, %v721_v26 }
 0x3a0   :  { %v761_v44 = vsub.f32 0.0, %v753_v34  ;;  %v752_v46 = vand.u32 2147483647, %v12463_v36  ;;  %6403 = vrot.lane.b32.xlu1 %v922_v41, %s11889_s30 }
 0x3a2   :  { %v774_v49 = vmul.f32 1.442695, %v761_v44  ;;  %v760_v51 = vsub.f32 0.0, %v752_v46  ;;  %v764_v46 = vmul.f32 1.442695, %v756_v30 }
 0x3a3   :  { %v10665_v53 = vpop.f32.mrf.mxu1  ;;  %v10709_v54 = vpop.f32.mrf.mxu0 }
 0x3a4   :  { %v772_v57 = vmul.f32 1.442695, %v760_v51  ;;  %v12472_v50 = vadd.f32 %v10665_v53, %v9313_v14  ;;  %6399 = vrot.lane.b32.xlu1 %v12452_v17, %s11889_s30  ;;  %6409 = vrot.lane.b32.xlu0 %v10709_v54, %s11889_s30  ;;  %11447 = vpow2.f32 %v774_v49  ;;  %v12513_v49 = vld [vmem:[%s18148_s11 + $0x18] sm:$0xff] }
 0x3a5   :  { %10710 = vmatprep.subr.mxu0 %v10709_v54  ;;  %v731_v5 = vpop.f32.mrf.mxu1  ;;  %v932_v8 = vpop.f32.mrf.mxu0 }
 0x3a6   :  { %v755_v11 = vand.u32 2147483647, %v12472_v50  ;;  %v12478_v59 = vadd.f32 %v9313_v14, %v731_v5  ;;  %10711 = vmatpush3.msra.mxu0 %v10709_v54  ;;  %11449 = vpow2.f32 %v772_v57  ;;  %v12532_v5 = vld [vmem:[%s18148_s11 + $0x30] sm:$0xff] }
 0x3a7   :  { %10712 = vmatprep.subr.mxu0 %v932_v8  ;;  %11451 = vpow2.f32 %v770_v62 }
 0x3a8   :  { %v763_v26 = vsub.f32 0.0, %v755_v11  ;;  %v754_v34 = vand.u32 2147483647, %v12478_v59  ;;  %10713 = vmatpush3.msra.mxu0 %v932_v8  ;;  %6395 = vrot.lane.b32.xlu1 %v12443_v9, %s11889_s30  ;;  %11453 = vpow2.f32 %v768_v20 }
 0x3a9   :  { %6407 = vrot.lane.b32.xlu0 %v932_v8, %s11889_s30  ;;  %10714 = vmatprep.subr.mxu0 %v10706_v21 }
 0x3aa   :  { %v778_v44 = vmul.f32 1.442695, %v763_v26  ;;  %v762_v14 = vsub.f32 0.0, %v754_v34  ;;  %10715 = vmatpush3.msra.mxu0 %v10706_v21  ;;  %v12497_v21 = vld [vmem:[%s18148_s11 + $0x8] sm:$0xff]  ;;  %v12541_v26 = vld [vmem:[%s18148_s11 + $0x38] sm:$0xff]  ;;  %v12546_v34 = vld [vmem:[%s18148_s11 + $0x40] sm:$0xff] }
 0x3ab   :  { %10716 = vmatprep.subr.mxu0 %v922_v41 }
 0x3ac   :  { %11455 = vpow2.f32 %v778_v44  ;;  %v776_v47 = vmul.f32 1.442695, %v762_v14  ;;  %10717 = vmatpush3.msra.mxu0 %v922_v41  ;;  %v12555_v44 = vld [vmem:[%s18148_s11 + $0x48] sm:$0xff]  ;;  %v12560_v14 = vld [vmem:[%s18148_s11 + $0x50] sm:$0xff] }
 0x3ad   :  { %11457 = vpow2.f32 %v766_v37  ;;  %6401 = vrot.lane.b32.xlu0 %v12445_v12, %s11889_s30  ;;  %10718 = vmatprep.subr.mxu0 %v12445_v12 }
 0x3ae   :  { %11459 = vpow2.f32 %v776_v47  ;;  %10719 = vmatpush3.msra.mxu0 %v12445_v12  ;;  %v12503_v12 = vld [vmem:[%s18148_s11 + $0x10] sm:$0xff] }
 0x3af   :  { %10720 = vmatprep.subr.mxu0 %v12452_v17  ;;  %11461 = vpow2.f32 %v764_v46  ;;  %v12569_v46 = vld [vmem:[%s18148_s11 + $0x58] sm:$0xff] }
 0x3b0   :  { %10721 = vmatpush3.msra.mxu0 %v12452_v17 }
 0x3b1   :  { %6397 = vrot.lane.b32.xlu0 %v12441_v6, %s11889_s30  ;;  %10722 = vmatprep.subr.mxu0 %v12441_v6  ;;  %v11448_v41 = vpop.eup %11447 }
 0x3b2   :  { %10723 = vmatpush3.msra.mxu0 %v12441_v6  ;;  %v785_v24 = vadd.f32 1.0, %v11448_v41  ;;  %v12574_v41 = vld [vmem:[%s18148_s11 + $0x60] sm:$0xff] }
 0x3b3   :  { %10724 = vmatprep.subr.mxu0 %v12443_v9  ;;  %v11450_v17 = vpop.eup %11449 }
 0x3b4   :  { %10725 = vmatpush3.msra.mxu0 %v12443_v9  ;;  %v11452_v6 = vpop.eup %11451  ;;  %v784_v51 = vadd.f32 1.0, %v11450_v17  ;;  %11463 = vlog2.f32 %v785_v24 }
 0x3b5   :  { %10727 = vmatmul.mubr.msk.f32.vlgmr.msra.gmra.mxu0 %vm96_vm0, %v12497_v21  ;;  %v11454_v9 = vpop.eup %11453  ;;  %v783_v54 = vadd.f32 1.0, %v11452_v6 }
 0x3b6   :  { %10729 = vmatprep.mubr.msk.f32.mxu0 %vm96_vm0, %v12503_v12  ;;  %11465 = vlog2.f32 %v784_v51  ;;  %v782_v8 = vadd.f32 1.0, %v11454_v9  ;;  %v747_v9 = vmax.f32 %v12472_v50, 0.0  ;;  %v746_v50 = vmax.f32 %v12478_v59, 0.0 }
 0x3b9   :  { %v11456_v53 = vpop.eup %11455  ;;  %10730 = vmatmul.mubr.msk.f32.gmra.mxu0 %vm96_vm0, %v12513_v49 }
 0x3ba   :  { %v11458_v56 = vpop.eup %11457  ;;  %v787_v57 = vadd.f32 1.0, %v11456_v53  ;;  %10732 = vmatprep.mubr.msk.f32.mxu0 %vm96_vm0, %v12518_v52 }
 0x3bb   :  { %v11460_v62 = vpop.eup %11459  ;;  %v781_v30 = vadd.f32 1.0, %v11458_v56 }
 0x3bc   :  { %11467 = vlog2.f32 %v787_v57  ;;  %v786_v11 = vadd.f32 1.0, %v11460_v62  ;;  %v11462_v20 = vpop.eup %11461  ;;  %v745_v57 = vmax.f32 %v12456_v22, 0.0  ;;  %v12590_v62 = vld [vmem:[%s18148_s11 + $0x70] sm:$0xff] }
 0x3bd   :  { %11469 = vlog2.f32 %v783_v54  ;;  %10733 = vmatmul.mubr.msk.f32.gmra.mxu0 %vm96_vm0, %v12527_v55  ;;  %v780_v37 = vadd.f32 1.0, %v11462_v20  ;;  %v12584_v54 = vld [vmem:[%s18148_s11 + $0x68] sm:$0xff] }
 0x3be   :  { %11471 = vlog2.f32 %v786_v11  ;;  %10735 = vmatprep.mubr.msk.f32.mxu0 %vm96_vm0, %v12532_v5 }
 0x3bf   :  { %11473 = vlog2.f32 %v782_v8 }
 0x3c0   :  { %11475 = vlog2.f32 %v781_v30 }
 0x3c1   :  { %10736 = vmatmul.mubr.msk.f32.gmra.mxu0 %vm96_vm0, %v12541_v26  ;;  %11477 = vlog2.f32 %v780_v37  ;;  %v11464_v47 = vpop.eup %11463  ;;  %v744_v37 = vmax.f32 %v12463_v36, 0.0  ;;  %v12607_v36 = vld [vmem:[%s18148_s11 + $0x80] sm:$0xff] }
 0x3c2   :  { %10738 = vmatprep.mubr.msk.f32.mxu0 %vm96_vm0, %v12546_v34  ;;  %v799_v51 = vmul.f32 0.6931472, %v11464_v47 }
 0x3c3   :  { %v11466_v17 = vpop.eup %11465 }
 0x3c4   :  { %v797_v8 = vmul.f32 0.6931472, %v11466_v17  ;;  %v12602_v17 = vld [vmem:[%s18148_s11 + $0x78] sm:$0xff] }
 0x3c5   :  { %10739 = vmatmul.mubr.msk.f32.gmra.mxu0 %vm96_vm0, %v12555_v44 }
 0x3c6   :  { %10741 = vmatprep.mubr.msk.f32.mxu0 %vm96_vm0, %v12560_v14 }
 0x3c9   :  { %v11468_v6 = vpop.eup %11467  ;;  %10742 = vmatmul.mubr.msk.f32.gmra.mxu0 %vm96_vm0, %v12569_v46 }
 0x3ca   :  { %v11470_v24 = vpop.eup %11469  ;;  %v803_v53 = vmul.f32 0.6931472, %v11468_v6  ;;  %10744 = vmatprep.mubr.msk.f32.mxu0 %vm96_vm0, %v12574_v41  ;;  %v809_v6 = vadd.f32 %v799_v51, %v745_v57 }
 0x3cb   :  { %v11472_v56 = vpop.eup %11471  ;;  %v795_v47 = vmul.f32 0.6931472, %v11470_v24  ;;  %v743_v24 = vmax.f32 %v12450_v15, 0.0 }
 0x3cc   :  { %v811_v11 = vadd.f32 %v803_v53, %v747_v9  ;;  %v801_v20 = vmul.f32 0.6931472, %v11472_v56  ;;  %v11474_v30 = vpop.eup %11473  ;;  %v808_v9 = vadd.f32 %v797_v8, %v744_v37  ;;  %v817_v15 = vmul.f32 %v809_v6, %v12421_v61  ;;  %v12620_v8 = vld [vmem:[%s18148_s11 + $0x88] sm:$0xff] }
 0x3cd   :  { %10745 = vmatmul.mubr.msk.f32.gmra.mxu0 %vm96_vm0, %v12584_v54  ;;  %v11476_v59 = vpop.eup %11475  ;;  %v793_v51 = vmul.f32 0.6931472, %v11474_v30  ;;  %v741_v30 = vmax.f32 %v12459_v32, 0.0  ;;  %v12638_v32 = vld [vmem:[%s18148_s11 + $0x98] sm:$0xff] }
 0x3ce   :  { %v810_v39 = vadd.f32 %v801_v20, %v746_v50  ;;  %10747 = vmatprep.mubr.msk.f32.mxu0 %vm96_vm0, %v12590_v62  ;;  %v819_v22 = vmul.f32 %v811_v11, %v12429_v1  ;;  %v11478_v56 = vpop.eup %11477  ;;  %v791_v57 = vmul.f32 0.6931472, %v11476_v59  ;;  %v807_v50 = vadd.f32 %v795_v47, %v743_v24  ;;  %v12643_v24 = vld [vmem:[%s18148_s11 + $0xa0] sm:$0xff] }
 0x3cf   :  { %v742_v20 = vmax.f32 %v12454_v18, 0.0  ;;  %v789_v18 = vmul.f32 0.6931472, %v11478_v56  ;;  %v816_v47 = vmul.f32 %v808_v9, %v12417_v60  ;;  %v740_v59 = vmax.f32 %v12466_v42, 0.0 }
 0x3d0   :  { %1469 = vmatprep.subr.mxu1 %v819_v22  ;;  %v818_v53 = vmul.f32 %v810_v39, %v12425_v63  ;;  %v805_v22 = vadd.f32 %v791_v57, %v741_v30  ;;  %v12669_v57 = vld [vmem:[%s18148_s11 + $0xb8] sm:$0xff]  ;;  %v12708_v30 = vld [vmem:[%s18148_s11 + $0xe0] sm:$0xff]  ;;  %v18324_v1 = vmov 0.0  }
 0x3d1   :  { %10748 = vmatmul.mubr.msk.f32.gmra.mxu0 %vm96_vm0, %v12602_v17  ;;  %1470 = vmatpush1.msra.mxu1 %v811_v11  ;;  %v12625_v11 = vld [vmem:[%s18148_s11 + $0x90] sm:$0xff]  ;;  %v806_v37 = vadd.f32 %v793_v51, %v742_v20  ;;  %v12686_v20 = vld [vmem:[%s18148_s11 + $0xc8] sm:$0xff] }
 0x3d2   :  { %1471 = vmatprep.subr.mxu1 %v818_v53  ;;  %10750 = vmatprep.mubr.msk.f32.mxu0 %vm96_vm0, %v12607_v36  ;;  %v813_v51 = vmul.f32 %v805_v22, %v12405_v48  ;;  %v12659_v53 = vld [vmem:[%s18148_s11 + $0xb0] sm:$0xff] }
 0x3d3   :  { %1472 = vmatpush1.msra.mxu1 %v810_v39  ;;  %v815_v39 = vmul.f32 %v807_v50, %v12413_v45  ;;  %v814_v42 = vmul.f32 %v806_v37, %v12409_v38 }
 0x3d4   :  { %1473 = vmatprep.subr.mxu1 %v817_v15  ;;  %v12691_v15 = vld [vmem:[%s18148_s11 + $0xd0] sm:$0xff] }
 0x3d5   :  { %10751 = vmatmul.mubr.msk.f32.gmra.mxu0 %vm96_vm0, %v12620_v8  ;;  %1474 = vmatpush1.msra.mxu1 %v809_v6  ;;  %v804_v6 = vadd.f32 %v789_v18, %v740_v59  ;;  %v12725_v18 = vld [vmem:[%s18148_s11 + $0xf0] sm:$0xff] }
 0x3d6   :  { %1475 = vmatprep.subr.mxu1 %v816_v47  ;;  %10753 = vmatprep.mubr.msk.f32.mxu0 %vm96_vm0, %v12625_v11  ;;  %v12759_v47 = vld [vmem:[%s18148_s11 + $0x110] sm:$0xff] }
 0x3d7   :  { %1476 = vmatpush1.msra.mxu1 %v808_v9  ;;  %v12654_v9 = vld [vmem:[%s18148_s11 + $0xa8] sm:$0xff]  ;;  %v812_v56 = vmul.f32 %v804_v6, %v12401_v43  ;;  %v12793_v59 = vld [vmem:[%s18148_s11 + $0x130] sm:$0xff] }
 0x3d8   :  { %1477 = vmatprep.subr.mxu1 %v815_v39  ;;  %v12810_v39 = vld [vmem:[%s18148_s11 + $0x140] sm:$0xff] }
 0x3d9   :  { %10754 = vmatmul.mubr.msk.f32.gmra.mxu0 %vm96_vm0, %v12638_v32  ;;  %1478 = vmatpush1.msra.mxu1 %v807_v50  ;;  %v12674_v50 = vld [vmem:[%s18148_s11 + $0xc0] sm:$0xff] }
 0x3da   :  { %1479 = vmatprep.subr.mxu1 %v814_v42  ;;  %10756 = vmatprep.mubr.msk.f32.mxu0 %vm96_vm0, %v12643_v24  ;;  %v12844_v42 = vld [vmem:[%s18148_s11 + $0x160] sm:$0xff] }
 0x3db   :  { %1480 = vmatpush1.msra.mxu1 %v806_v37  ;;  %v12742_v37 = vld [vmem:[%s18148_s11 + $0x100] sm:$0xff] }
 0x3dc   :  { %1481 = vmatprep.subr.mxu1 %v813_v51  ;;  %v12861_v51 = vld [vmem:[%s18148_s11 + $0x170] sm:$0xff] }
 0x3dd   :  { %10757 = vmatmul.mubr.msk.f32.gmra.mxu0 %vm96_vm0, %v12654_v9  ;;  %1482 = vmatpush1.msra.mxu1 %v805_v22  ;;  %v12776_v22 = vld [vmem:[%s18148_s11 + $0x120] sm:$0xff] }
 0x3de   :  { %1483 = vmatprep.subr.mxu1 %v812_v56  ;;  %10759 = vmatprep.mubr.msk.f32.mxu0 %vm96_vm0, %v12659_v53  ;;  %v12878_v56 = vld [vmem:[%s18148_s11 + $0x180] sm:$0xff] }
 0x3df   :  { %1484 = vmatpush1.msra.mxu1 %v804_v6  ;;  %v12827_v6 = vld [vmem:[%s18148_s11 + $0x150] sm:$0xff] }
 0x3e0   :  { %9314 = vmatmul.mubr.msk.f32.vlgmr.msra.gmra.mxu1 %vm96_vm0, %v12437_v2  ;;  %v12703_v2 = vld [vmem:[%s18148_s11 + $0xd8] sm:$0xff] }
 0x3e1   :  { %10760 = vmatmul.mubr.msk.f32.gmra.mxu0 %vm96_vm0, %v12669_v57  ;;  %1523 = vmatprep.mubr.f32.mxu1 %v18161_v4 }
 0x3e2   :  { %10762 = vmatprep.mubr.msk.f32.mxu0 %vm96_vm0, %v12674_v50 }
 0x3e4   :  { %9315 = vmatmul.mubr.msk.f32.gmra.mxu1 %vm96_vm0, %v12497_v21  ;;  %v12720_v21 = vld [vmem:[%s18148_s11 + $0xe8] sm:$0xff] }
 0x3e5   :  { %10763 = vmatmul.mubr.msk.f32.gmra.mxu0 %vm96_vm0, %v12686_v20  ;;  %1529 = vmatprep.mubr.f32.mxu1 %v18161_v4 }
 0x3e6   :  { %10765 = vmatprep.mubr.msk.f32.mxu0 %vm96_vm0, %v12691_v15 }
 0x3e8   :  { %9316 = vmatmul.mubr.msk.f32.gmra.mxu1 %vm96_vm0, %v12503_v12  ;;  %v12737_v12 = vld [vmem:[%s18148_s11 + $0xf8] sm:$0xff] }
 0x3e9   :  { %10766 = vmatmul.mubr.msk.f32.gmra.mxu0 %vm96_vm0, %v12703_v2  ;;  %1535 = vmatprep.mubr.f32.mxu1 %v18161_v4 }
 0x3ea   :  { %10768 = vmatprep.mubr.msk.f32.mxu0 %vm96_vm0, %v12708_v30 }
 0x3ec   :  { %9317 = vmatmul.mubr.msk.f32.gmra.mxu1 %vm96_vm0, %v12513_v49  ;;  %v12754_v49 = vld [vmem:[%s18148_s11 + $0x108] sm:$0xff] }
 0x3ed   :  { %10769 = vmatmul.mubr.msk.f32.gmra.mxu0 %vm96_vm0, %v12720_v21  ;;  %1541 = vmatprep.mubr.f32.mxu1 %v18161_v4 }
 0x3ee   :  { %10771 = vmatprep.mubr.msk.f32.mxu0 %vm96_vm0, %v12725_v18 }
 0x3f0   :  { %9318 = vmatmul.mubr.msk.f32.gmra.mxu1 %vm96_vm0, %v12518_v52  ;;  %v12771_v52 = vld [vmem:[%s18148_s11 + $0x118] sm:$0xff] }
 0x3f1   :  { %10772 = vmatmul.mubr.msk.f32.gmra.mxu0 %vm96_vm0, %v12737_v12  ;;  %1547 = vmatprep.mubr.f32.mxu1 %v18161_v4 }
 0x3f2   :  { %10774 = vmatprep.mubr.msk.f32.mxu0 %vm96_vm0, %v12742_v37 }
 0x3f4   :  { %9319 = vmatmul.mubr.msk.f32.gmra.mxu1 %vm96_vm0, %v12527_v55  ;;  %v12788_v55 = vld [vmem:[%s18148_s11 + $0x128] sm:$0xff] }
 0x3f5   :  { %10775 = vmatmul.mubr.msk.f32.gmra.mxu0 %vm96_vm0, %v12754_v49  ;;  %1553 = vmatprep.mubr.f32.mxu1 %v18161_v4 }
 0x3f6   :  { %10777 = vmatprep.mubr.msk.f32.mxu0 %vm96_vm0, %v12759_v47 }
 0x3f8   :  { %9320 = vmatmul.mubr.msk.f32.gmra.mxu1 %vm96_vm0, %v12532_v5  ;;  %v12805_v5 = vld [vmem:[%s18148_s11 + $0x138] sm:$0xff] }
 0x3f9   :  { %10778 = vmatmul.mubr.msk.f32.gmra.mxu0 %vm96_vm0, %v12771_v52  ;;  %1559 = vmatprep.mubr.f32.mxu1 %v18161_v4 }
 0x3fa   :  { %10780 = vmatprep.mubr.msk.f32.mxu0 %vm96_vm0, %v12776_v22 }
 0x3fc   :  { %9321 = vmatmul.mubr.msk.f32.gmra.mxu1 %vm96_vm0, %v12541_v26  ;;  %v12822_v26 = vld [vmem:[%s18148_s11 + $0x148] sm:$0xff] }
 0x3fd   :  { %10781 = vmatmul.mubr.msk.f32.gmra.mxu0 %vm96_vm0, %v12788_v55  ;;  %1565 = vmatprep.mubr.f32.mxu1 %v18161_v4 }
 0x3fe   :  { %10783 = vmatprep.mubr.msk.f32.mxu0 %vm96_vm0, %v12793_v59 }
 0x400   :  { %9322 = vmatmul.mubr.msk.f32.gmra.mxu1 %vm96_vm0, %v12546_v34  ;;  %v12839_v34 = vld [vmem:[%s18148_s11 + $0x158] sm:$0xff] }
 0x401   :  { %10784 = vmatmul.mubr.msk.f32.gmra.mxu0 %vm96_vm0, %v12805_v5  ;;  %1571 = vmatprep.mubr.f32.mxu1 %v18161_v4 }
 0x402   :  { %10786 = vmatprep.mubr.msk.f32.mxu0 %vm96_vm0, %v12810_v39 }
 0x404   :  { %9323 = vmatmul.mubr.msk.f32.gmra.mxu1 %vm96_vm0, %v12555_v44  ;;  %v12856_v44 = vld [vmem:[%s18148_s11 + $0x168] sm:$0xff] }
 0x405   :  { %10787 = vmatmul.mubr.msk.f32.gmra.mxu0 %vm96_vm0, %v12822_v26  ;;  %1577 = vmatprep.mubr.f32.mxu1 %v18161_v4 }
 0x406   :  { %10789 = vmatprep.mubr.msk.f32.mxu0 %vm96_vm0, %v12827_v6 }
 0x408   :  { %9324 = vmatmul.mubr.msk.f32.gmra.mxu1 %vm96_vm0, %v12560_v14  ;;  %v12873_v14 = vld [vmem:[%s18148_s11 + $0x178] sm:$0xff] }
 0x409   :  { %10790 = vmatmul.mubr.msk.f32.gmra.mxu0 %vm96_vm0, %v12839_v34  ;;  %1583 = vmatprep.mubr.f32.mxu1 %v18161_v4 }
 0x40a   :  { %10792 = vmatprep.mubr.msk.f32.mxu0 %vm96_vm0, %v12844_v42 }
 0x40c   :  { %9325 = vmatmul.mubr.msk.f32.gmra.mxu1 %vm96_vm0, %v12569_v46  ;;  %v12890_v46 = vld [vmem:[%s18148_s11 + $0x188] sm:$0xff] }
 0x40d   :  { %10793 = vmatmul.mubr.msk.f32.gmra.mxu0 %vm96_vm0, %v12856_v44  ;;  %1589 = vmatprep.mubr.f32.mxu1 %v18161_v4 }
 0x40e   :  { %10795 = vmatprep.mubr.msk.f32.mxu0 %vm96_vm0, %v12861_v51 }
 0x410   :  { %9326 = vmatmul.mubr.msk.f32.gmra.mxu1 %vm96_vm0, %v12574_v41  ;;  %v6406_v41 = vpop.permute.xlu1 %6405 }
 0x411   :  { %10796 = vmatmul.mubr.msk.f32.gmra.mxu0 %vm96_vm0, %v12873_v14  ;;  %1595 = vmatprep.mubr.f32.mxu1 %v18161_v4 }
 0x412   :  { %10798 = vmatprep.mubr.msk.f32.mxu0 %vm96_vm0, %v12878_v56 }
 0x414   :  { %9327 = vmatmul.mubr.msk.f32.gmra.mxu1 %vm96_vm0, %v12584_v54  ;;  %v12912_v54 = vld [vmem:[%s18148_s11 + $0x1a0] sm:$0xff]  ;;  %v6404_v10 = vpop.permute.xlu1 %6403 }
 0x415   :  { %10799 = vmatmul.mubr.msk.f32.gmra.mxu0 %vm96_vm0, %v12890_v46  ;;  %1601 = vmatprep.mubr.f32.mxu1 %v18161_v4 }
 0x416   :  { %v6410_v19 = vpop.permute.xlu0 %6409  ;;  %10801 = vmatprep.mubr.msk.f32.mxu0 %vm96_vm0, %v12895_v23 }
 0x417   :  { %11114 = vmatprep.subr.mxu1 %v6410_v19 }
 0x418   :  { %9328 = vmatmul.mubr.msk.f32.gmra.mxu1 %vm96_vm0, %v12590_v62  ;;  %v12939_v62 = vld [vmem:[%s18148_s11 + $0x1b8] sm:$0xff] }
 0x419   :  { %10802 = vmatmul.mubr.msk.f32.gmra.mxu0 %vm96_vm0, %v12907_v16  ;;  %11115 = vmatpush3.msra.mxu1 %v6410_v19  ;;  %v12931_v19 = vld [vmem:[%s18148_s11 + $0x1b0] sm:$0xff] }
 0x41a   :  { %1607 = vmatprep.mubr.f32.mxu1 %v18161_v4  ;;  %10804 = vmatprep.mubr.msk.f32.mxu0 %vm96_vm0, %v12912_v54 }
 0x41b   :  { %v6408_v7 = vpop.permute.xlu0 %6407 }
 0x41c   :  { %11116 = vmatprep.subr.mxu1 %v6408_v7  ;;  %9329 = vmatmul.mubr.msk.f32.gmra.mxu1 %vm96_vm0, %v12602_v17  ;;  %v6400_v17 = vpop.permute.xlu1 %6399 }
 0x41d   :  { %10805 = vmatmul.mubr.msk.f32.gmra.mxu0 %vm96_vm0, %v12924_v13  ;;  %11117 = vmatpush3.msra.mxu1 %v6408_v7  ;;  %v12948_v7 = vld [vmem:[%s18148_s11 + $0x1c0] sm:$0xff] }
 0x41e   :  { %11118 = vmatprep.subr.mxu1 %v6406_v41  ;;  %1613 = vmatprep.mubr.f32.mxu1 %v18161_v4 }
 0x41f   :  { %v6402_v3 = vpop.permute.xlu0 %6401  ;;  %11119 = vmatpush3.msra.mxu1 %v6406_v41  ;;  %10807 = vmatprep.mubr.msk.f32.mxu0 %vm96_vm0, %v12931_v19  ;;  %v12956_v41 = vld [vmem:[%s18148_s11 + $0x1c8] sm:$0xff] }
 0x420   :  { %11120 = vmatprep.subr.mxu1 %v6404_v10  ;;  %9330 = vmatmul.mubr.msk.f32.gmra.mxu1 %vm96_vm0, %v12607_v36  ;;  %v6396_v0 = vpop.permute.xlu1 %6395 }
 0x421   :  { %10808 = vmatmul.mubr.msk.f32.gmra.mxu0 %vm96_vm0, %v12939_v62  ;;  %11121 = vmatpush3.msra.mxu1 %v6404_v10  ;;  %v12965_v10 = vld [vmem:[%s18148_s11 + $0x1d0] sm:$0xff] }
 0x422   :  { %11122 = vmatprep.subr.mxu1 %v6402_v3  ;;  %1619 = vmatprep.mubr.f32.mxu1 %v18161_v4 }
 0x423   :  { %11123 = vmatpush3.msra.mxu1 %v6402_v3  ;;  %10810 = vmatprep.mubr.msk.f32.mxu0 %vm96_vm0, %v12948_v7  ;;  %v6398_v36 = vpop.permute.xlu0 %6397  ;;  %v12973_v3 = vld [vmem:[%s18148_s11 + $0x1d8] sm:$0xff] }
 0x424   :  { %11124 = vmatprep.subr.mxu1 %v6400_v17  ;;  %9331 = vmatmul.mubr.msk.f32.gmra.mxu1 %vm96_vm0, %v12620_v8  ;;  %v12980_v8 = vld [vmem:[%s18148_s11 + $0x1e0] sm:$0xff] }
 0x425   :  { %10811 = vmatmul.mubr.msk.f32.gmra.mxu0 %vm96_vm0, %v12956_v41  ;;  %11125 = vmatpush3.msra.mxu1 %v6400_v17  ;;  %v12992_v17 = vld [vmem:[%s18148_s11 + $0x1e8] sm:$0xff] }
 0x426   :  { %11126 = vmatprep.subr.mxu1 %v6398_v36  ;;  %1625 = vmatprep.mubr.f32.mxu1 %v18161_v4 }
 0x427   :  { %11127 = vmatpush3.msra.mxu1 %v6398_v36  ;;  %10813 = vmatprep.mubr.msk.f32.mxu0 %vm96_vm0, %v12965_v10  ;;  %v1003_v36 = vld [vmem:[%s18148_s11 + $0x1f0] sm:$0xff] }
 0x428   :  { %11128 = vmatprep.subr.mxu1 %v6396_v0  ;;  %9332 = vmatmul.mubr.msk.f32.gmra.mxu1 %vm96_vm0, %v12625_v11  ;;  %v1005_v11 = vld [vmem:[%s18148_s11 + $0x200] sm:$0xff] }
 0x429   :  { %10814 = vmatmul.mubr.msk.f32.gmra.mxu0 %vm96_vm0, %v12973_v3  ;;  %11129 = vmatpush3.msra.mxu1 %v6396_v0  ;;  %v1004_v0 = vld [vmem:[%s18148_s11 + $0x1f8] sm:$0xff] }
 0x42a   :  { %1631 = vmatprep.mubr.f32.mxu1 %v18161_v4  ;;  %10816 = vmatprep.mubr.msk.f32.mxu0 %vm96_vm0, %v12980_v8 }
 0x42c   :  { %9333 = vmatmul.mubr.msk.f32.gmra.mxu1 %vm96_vm0, %v12638_v32  ;;  %v3120_v32 = vld [vmem:[%s18147_s10 + $0x8] sm:$0xff] }
 0x42d   :  { %10817 = vmatmul.mubr.msk.f32.gmra.mxu0 %vm96_vm0, %v12992_v17  ;;  %1637 = vmatprep.mubr.f32.mxu1 %v18161_v4 }
 0x42e   :  { %10819 = vmatprep.mubr.msk.f32.mxu0 %vm96_vm0, %v1003_v36  ;;  %v1006_v36 = vld [vmem:[%s18148_s11 + $0x208] sm:$0xff]  ;;  %10918 = vmatprep.subr.mxu0 %v3120_v32 }
 0x42f   :  { %10919 = vmatpush3.msra.mxu0 %v3120_v32  ;;  %v1013_v32 = vld [vmem:[%s18148_s11 + $0x240] sm:$0xff] }
 0x430   :  { %9334 = vmatmul.mubr.msk.f32.gmra.mxu1 %vm96_vm0, %v12643_v24  ;;  %v1007_v24 = vld [vmem:[%s18148_s11 + $0x210] sm:$0xff]  ;;  %10920 = vmatprep.subr.mxu0 %v3119_v58 }
 0x431   :  { %10820 = vmatmul.mubr.msk.f32.gmra.mxu0 %vm96_vm0, %v1004_v0  ;;  %1643 = vmatprep.mubr.f32.mxu1 %v18161_v4  ;;  %v1008_v0 = vld [vmem:[%s18148_s11 + $0x218] sm:$0xff] }
 0x432   :  { %10822 = vmatprep.mubr.msk.f32.mxu0 %vm96_vm0, %v1005_v11  ;;  %10921 = vmatpush3.msra.mxu0 %v3119_v58  ;;  %v1009_v11 = vld [vmem:[%s18148_s11 + $0x220] sm:$0xff]  ;;  %v1011_v58 = vld [vmem:[%s18148_s11 + $0x230] sm:$0xff] }
 0x434   :  { %9335 = vmatmul.mubr.msk.f32.gmra.mxu1 %vm96_vm0, %v12654_v9  ;;  %v1010_v9 = vld [vmem:[%s18148_s11 + $0x228] sm:$0xff] }
 0x435   :  { %10823 = vmatmul.mubr.msk.f32.gmra.mxu0 %vm96_vm0, %v1006_v36  ;;  %1649 = vmatprep.mubr.f32.mxu1 %v18161_v4  ;;  %v1015_v36 = vld [vmem:[%s18148_s11 + $0x250] sm:$0xff] }
 0x436   :  { %10825 = vmatprep.mubr.msk.f32.mxu0 %vm96_vm0, %v1007_v24  ;;  %v1017_v24 = vld [vmem:[%s18148_s11 + $0x260] sm:$0xff] }
 0x438   :  { %9336 = vmatmul.mubr.msk.f32.gmra.mxu1 %vm96_vm0, %v12659_v53  ;;  %v1012_v53 = vld [vmem:[%s18148_s11 + $0x238] sm:$0xff] }
 0x439   :  { %10826 = vmatmul.mubr.msk.f32.gmra.mxu0 %vm96_vm0, %v1008_v0  ;;  %1655 = vmatprep.mubr.f32.mxu1 %v18161_v4  ;;  %v1019_v0 = vld [vmem:[%s18148_s11 + $0x270] sm:$0xff] }
 0x43a   :  { %10828 = vmatprep.mubr.msk.f32.mxu0 %vm96_vm0, %v1009_v11  ;;  %v1021_v11 = vld [vmem:[%s18148_s11 + $0x280] sm:$0xff] }
 0x43c   :  { %9337 = vmatmul.mubr.msk.f32.gmra.mxu1 %vm96_vm0, %v12669_v57  ;;  %v1014_v57 = vld [vmem:[%s18148_s11 + $0x248] sm:$0xff] }
 0x43d   :  { %10829 = vmatmul.mubr.msk.f32.gmra.mxu0 %vm96_vm0, %v1010_v9  ;;  %1661 = vmatprep.mubr.f32.mxu1 %v18161_v4  ;;  %v1023_v9 = vld [vmem:[%s18148_s11 + $0x290] sm:$0xff] }
 0x43e   :  { %10831 = vmatprep.mubr.msk.f32.mxu0 %vm96_vm0, %v1011_v58  ;;  %v1025_v58 = vld [vmem:[%s18148_s11 + $0x2a0] sm:$0xff] }
 0x440   :  { %9338 = vmatmul.mubr.msk.f32.gmra.mxu1 %vm96_vm0, %v12674_v50  ;;  %v1016_v50 = vld [vmem:[%s18148_s11 + $0x258] sm:$0xff] }
 0x441   :  { %10832 = vmatmul.mubr.msk.f32.gmra.mxu0 %vm96_vm0, %v1012_v53  ;;  %1667 = vmatprep.mubr.f32.mxu1 %v18161_v4  ;;  %v1027_v53 = vld [vmem:[%s18148_s11 + $0x2b0] sm:$0xff] }
 0x442   :  { %10834 = vmatprep.mubr.msk.f32.mxu0 %vm96_vm0, %v1013_v32  ;;  %v1029_v32 = vld [vmem:[%s18148_s11 + $0x2c0] sm:$0xff] }
 0x444   :  { %9339 = vmatmul.mubr.msk.f32.gmra.mxu1 %vm96_vm0, %v12686_v20  ;;  %v1018_v20 = vld [vmem:[%s18148_s11 + $0x268] sm:$0xff] }
 0x445   :  { %10835 = vmatmul.mubr.msk.f32.gmra.mxu0 %vm96_vm0, %v1014_v57  ;;  %1673 = vmatprep.mubr.f32.mxu1 %v18161_v4  ;;  %v1031_v57 = vld [vmem:[%s18148_s11 + $0x2d0] sm:$0xff] }
 0x446   :  { %10837 = vmatprep.mubr.msk.f32.mxu0 %vm96_vm0, %v1015_v36  ;;  %v1033_v36 = vld [vmem:[%s18148_s11 + $0x2e0] sm:$0xff] }
 0x448   :  { %9340 = vmatmul.mubr.msk.f32.gmra.mxu1 %vm96_vm0, %v12691_v15  ;;  %v1020_v15 = vld [vmem:[%s18148_s11 + $0x278] sm:$0xff] }
 0x449   :  { %10838 = vmatmul.mubr.msk.f32.gmra.mxu0 %vm96_vm0, %v1016_v50  ;;  %1679 = vmatprep.mubr.f32.mxu1 %v18161_v4  ;;  %v1035_v50 = vld [vmem:[%s18148_s11 + $0x2f0] sm:$0xff] }
 0x44a   :  { %10840 = vmatprep.mubr.msk.f32.mxu0 %vm96_vm0, %v1017_v24  ;;  %v1037_v24 = vld [vmem:[%s18148_s11 + $0x300] sm:$0xff] }
 0x44c   :  { %9341 = vmatmul.mubr.msk.f32.gmra.mxu1 %vm96_vm0, %v12703_v2  ;;  %v1022_v2 = vld [vmem:[%s18148_s11 + $0x288] sm:$0xff] }
 0x44d   :  { %10841 = vmatmul.mubr.msk.f32.gmra.mxu0 %vm96_vm0, %v1018_v20  ;;  %1685 = vmatprep.mubr.f32.mxu1 %v18161_v4  ;;  %v13202_v20 = vld [vmem:[%s18149_s12 + $0x8] sm:$0xff] }
 0x44e   :  { %10843 = vmatprep.mubr.msk.f32.mxu0 %vm96_vm0, %v1019_v0  ;;  %v1039_v0 = vld [vmem:[%s18148_s11 + $0x310] sm:$0xff] }
 0x450   :  { %9342 = vmatmul.mubr.msk.f32.gmra.mxu1 %vm96_vm0, %v12708_v30  ;;  %v1024_v30 = vld [vmem:[%s18148_s11 + $0x298] sm:$0xff] }
 0x451   :  { %10844 = vmatmul.mubr.msk.f32.gmra.mxu0 %vm96_vm0, %v1020_v15  ;;  %1691 = vmatprep.mubr.f32.mxu1 %v18161_v4  ;;  %v13213_v15 = vld [vmem:[%s18149_s12] sm:$0xff] }
 0x452   :  { %10846 = vmatprep.mubr.msk.f32.mxu0 %vm96_vm0, %v1021_v11 }
 0x454   :  { %9343 = vmatmul.mubr.msk.f32.gmra.mxu1 %vm96_vm0, %v12720_v21  ;;  %v1026_v21 = vld [vmem:[%s18148_s11 + $0x2a8] sm:$0xff] }
 0x455   :  { %10847 = vmatmul.mubr.msk.f32.gmra.mxu0 %vm96_vm0, %v1022_v2  ;;  %1697 = vmatprep.mubr.f32.mxu1 %v18161_v4  ;;  %v1040_v2 = vld [vmem:[%s18148_s11 + $0x318] sm:$0xff] }
 0x456   :  { %10849 = vmatprep.mubr.msk.f32.mxu0 %vm96_vm0, %v1023_v9  ;;  %v13224_v9 = vld [vmem:[%s18149_s12 + $0x18] sm:$0xff] }
 0x458   :  { %9344 = vmatmul.mubr.msk.f32.gmra.mxu1 %vm96_vm0, %v12725_v18  ;;  %v1028_v18 = vld [vmem:[%s18148_s11 + $0x2b8] sm:$0xff] }
 0x459   :  { %10850 = vmatmul.mubr.msk.f32.gmra.mxu0 %vm96_vm0, %v1024_v30  ;;  %1703 = vmatprep.mubr.f32.mxu1 %v18161_v4  ;;  %v1041_v30 = vld [vmem:[%s18148_s11 + $0x320] sm:$0xff] }
 0x45a   :  { %10852 = vmatprep.mubr.msk.f32.mxu0 %vm96_vm0, %v1025_v58 }
 0x45c   :  { %9345 = vmatmul.mubr.msk.f32.gmra.mxu1 %vm96_vm0, %v12737_v12  ;;  %v1030_v12 = vld [vmem:[%s18148_s11 + $0x2c8] sm:$0xff] }
 0x45d   :  { %10853 = vmatmul.mubr.msk.f32.gmra.mxu0 %vm96_vm0, %v1026_v21  ;;  %1709 = vmatprep.mubr.f32.mxu1 %v18161_v4 }
 0x45e   :  { %10855 = vmatprep.mubr.msk.f32.mxu0 %vm96_vm0, %v1027_v53 }
 0x460   :  { %9346 = vmatmul.mubr.msk.f32.gmra.mxu1 %vm96_vm0, %v12742_v37  ;;  %v1032_v37 = vld [vmem:[%s18148_s11 + $0x2d8] sm:$0xff] }
 0x461   :  { %10856 = vmatmul.mubr.msk.f32.gmra.mxu0 %vm96_vm0, %v1028_v18  ;;  %1715 = vmatprep.mubr.f32.mxu1 %v18161_v4  ;;  %v13237_v18 = vld [vmem:[%s18149_s12 + $0x10] sm:$0xff] }
 0x462   :  { %10858 = vmatprep.mubr.msk.f32.mxu0 %vm96_vm0, %v1029_v32 }
 0x464   :  { %9347 = vmatmul.mubr.msk.f32.gmra.mxu1 %vm96_vm0, %v12754_v49  ;;  %v1034_v49 = vld [vmem:[%s18148_s11 + $0x2e8] sm:$0xff] }
 0x465   :  { %10859 = vmatmul.mubr.msk.f32.gmra.mxu0 %vm96_vm0, %v1030_v12  ;;  %1721 = vmatprep.mubr.f32.mxu1 %v18161_v4  ;;  %v1042_v12 = vld [vmem:[%s18148_s11 + $0x328] sm:$0xff] }
 0x466   :  { %10861 = vmatprep.mubr.msk.f32.mxu0 %vm96_vm0, %v1031_v57 }
 0x468   :  { %9348 = vmatmul.mubr.msk.f32.gmra.mxu1 %vm96_vm0, %v12759_v47  ;;  %v1036_v47 = vld [vmem:[%s18148_s11 + $0x2f8] sm:$0xff] }
 0x469   :  { %10862 = vmatmul.mubr.msk.f32.gmra.mxu0 %vm96_vm0, %v1032_v37  ;;  %1727 = vmatprep.mubr.f32.mxu1 %v18161_v4  ;;  %v13249_v37 = vld [vmem:[%s18149_s12 + $0x28] sm:$0xff] }
 0x46a   :  { %10864 = vmatprep.mubr.msk.f32.mxu0 %vm96_vm0, %v1033_v36  ;;  %v1043_v36 = vld [vmem:[%s18148_s11 + $0x330] sm:$0xff] }
 0x46c   :  { %9349 = vmatmul.mubr.msk.f32.gmra.mxu1 %vm96_vm0, %v12771_v52  ;;  %v1038_v52 = vld [vmem:[%s18148_s11 + $0x308] sm:$0xff] }
 0x46d   :  { %10865 = vmatmul.mubr.msk.f32.gmra.mxu0 %vm96_vm0, %v1034_v49  ;;  %1733 = vmatprep.mubr.f32.mxu1 %v18161_v4 }
 0x46e   :  { %10867 = vmatprep.mubr.msk.f32.mxu0 %vm96_vm0, %v1035_v50 }
 0x470   :  { %9350 = vmatmul.mubr.msk.f32.gmra.mxu1 %vm96_vm0, %v12776_v22 }
 0x471   :  { %10868 = vmatmul.mubr.msk.f32.gmra.mxu0 %vm96_vm0, %v1036_v47  ;;  %1739 = vmatprep.mubr.f32.mxu1 %v18161_v4  ;;  %v13261_v47 = vld [vmem:[%s18149_s12 + $0x20] sm:$0xff] }
 0x472   :  { %10870 = vmatprep.mubr.msk.f32.mxu0 %vm96_vm0, %v1037_v24 }
 0x474   :  { %9351 = vmatmul.mubr.msk.f32.gmra.mxu1 %vm96_vm0, %v12788_v55 }
 0x475   :  { %v10728_v22 = vpop.f32.mrf.mxu0  ;;  %10871 = vmatmul.mubr.msk.f32.gmra.mxu0 %vm96_vm0, %v1038_v52  ;;  %1745 = vmatprep.mubr.f32.mxu1 %v18161_v4 }
 0x476   :  { %v4852_v11 = vmul.f32 %v10728_v22, %v13202_v20  ;;  %10873 = vmatprep.mubr.msk.f32.mxu0 %vm96_vm0, %v1039_v0 }
 0x477   :  { %v2352_v55 = vpop.f32.mrf.mxu0 }
 0x478   :  { %v4851_v58 = vmul.f32 %v13213_v15, %v2352_v55  ;;  %v4982_v21 = vsel %vm3121_vm1, %v4852_v11, 0.0  ;;  %9352 = vmatmul.mubr.msk.f32.gmra.mxu1 %vm96_vm0, %v12793_v59  ;;  %v13274_v11 = vld [vmem:[%s18149_s12 + $0x38] sm:$0xff] }
 0x479   :  { %10874 = vmatmul.mubr.msk.f32.gmra.mxu0 %vm96_vm0, %v1040_v2  ;;  %4983 = vadd.xlane.f32.xlu1 %v4982_v21  ;;  %v10731_v53 = vpop.f32.mrf.mxu0  ;;  %v1045_v2 = vld [vmem:[%s18148_s11 + $0x340] sm:$0xff]  ;;  %v13287_v21 = vld [vmem:[%s18149_s12 + $0x30] sm:$0xff] }
 0x47a   :  { %v4854_v32 = vmul.f32 %v10731_v53, %v13224_v9  ;;  %1751 = vmatprep.mubr.f32.mxu1 %v18161_v4  ;;  %10876 = vmatprep.mubr.msk.f32.mxu0 %vm96_vm0, %v1041_v30  ;;  %v4979_v59 = vsel %vm3121_vm1, %v4851_v58, 0.0 }
 0x47b   :  { %v2362_v57 = vpop.f32.mrf.mxu0 }
 0x47c   :  { %v4853_v49 = vmul.f32 %v13237_v18, %v2362_v57  ;;  %9353 = vmatmul.mubr.msk.f32.gmra.mxu1 %vm96_vm0, %v12805_v5  ;;  %v1044_v5 = vld [vmem:[%s18148_s11 + $0x338] sm:$0xff]  ;;  %v4988_v0 = vsel %vm3121_vm1, %v4854_v32, 0.0  ;;  %v1047_v57 = vld [vmem:[%s18148_s11 + $0x350] sm:$0xff] }
 0x47d   :  { %10877 = vmatmul.mubr.msk.f32.gmra.mxu0 %vm96_vm0, %v1042_v12  ;;  %4980 = vadd.xlane.f32.xlu1 %v4979_v59  ;;  %v10734_v50 = vpop.f32.mrf.mxu0  ;;  %v13299_v59 = vld [vmem:[%s18149_s12 + $0x48] sm:$0xff] }
 0x47e   :  { %v4856_v24 = vmul.f32 %v10734_v50, %v13249_v37  ;;  %v4985_v52 = vsel %vm3121_vm1, %v4853_v49, 0.0  ;;  %1757 = vmatprep.mubr.f32.mxu1 %v18161_v4  ;;  %10879 = vmatprep.mubr.msk.f32.mxu0 %vm96_vm0, %v1043_v36 }
 0x47f   :  { %4986 = vadd.xlane.f32.xlu0 %v4985_v52  ;;  %v2372_v22 = vpop.f32.mrf.mxu0 }
 0x480   :  { %v4855_v55 = vmul.f32 %v13261_v47, %v2372_v22  ;;  %9354 = vmatmul.mubr.msk.f32.gmra.mxu1 %vm96_vm0, %v12810_v39  ;;  %v4994_v30 = vsel %vm3121_vm1, %v4856_v24, 0.0  ;;  %v1046_v39 = vld [vmem:[%s18148_s11 + $0x348] sm:$0xff]  ;;  %v13312_v24 = vld [vmem:[%s18149_s12 + $0x40] sm:$0xff]  ;;  %v13324_v22 = vld [vmem:[%s18149_s12 + $0x58] sm:$0xff] }
 0x481   :  { %10880 = vmatmul.mubr.msk.f32.gmra.mxu0 %vm96_vm0, %v1044_v5  ;;  %4989 = vadd.xlane.f32.xlu1 %v4988_v0  ;;  %v10737_v58 = vpop.f32.mrf.mxu0 }
 0x482   :  { %v4858_v53 = vmul.f32 %v10737_v58, %v13274_v11  ;;  %1763 = vmatprep.mubr.f32.mxu1 %v18161_v4  ;;  %10882 = vmatprep.mubr.msk.f32.mxu0 %vm96_vm0, %v1045_v2  ;;  %v4991_v32 = vsel %vm3121_vm1, %v4855_v55, 0.0  ;;  %v1049_v2 = vld [vmem:[%s18148_s11 + $0x360] sm:$0xff]  ;;  %v13336_v58 = vld [vmem:[%s18149_s12 + $0x50] sm:$0xff] }
 0x483   :  { %4995 = vadd.xlane.f32.xlu0 %v4994_v30  ;;  %v2382_v12 = vpop.f32.mrf.mxu0 }
 0x484   :  { %v4857_v36 = vmul.f32 %v13287_v21, %v2382_v12  ;;  %9355 = vmatmul.mubr.msk.f32.gmra.mxu1 %vm96_vm0, %v12822_v26  ;;  %v5000_v49 = vsel %vm3121_vm1, %v4858_v53, 0.0  ;;  %v1048_v26 = vld [vmem:[%s18148_s11 + $0x358] sm:$0xff] }
 0x485   :  { %10883 = vmatmul.mubr.msk.f32.gmra.mxu0 %vm96_vm0, %v1046_v39  ;;  %4992 = vadd.xlane.f32.xlu1 %v4991_v32  ;;  %v10740_v50 = vpop.f32.mrf.mxu0 }
 0x486   :  { %v4860_v52 = vmul.f32 %v10740_v50, %v13299_v59  ;;  %1769 = vmatprep.mubr.f32.mxu1 %v18161_v4  ;;  %10885 = vmatprep.mubr.msk.f32.mxu0 %vm96_vm0, %v1047_v57  ;;  %v4997_v5 = vsel %vm3121_vm1, %v4857_v36, 0.0  ;;  %v1051_v57 = vld [vmem:[%s18148_s11 + $0x370] sm:$0xff] }
 0x487   :  { %5001 = vadd.xlane.f32.xlu0 %v5000_v49  ;;  %v2392_v0 = vpop.f32.mrf.mxu0 }
 0x488   :  { %v4859_v55 = vmul.f32 %v13312_v24, %v2392_v0  ;;  %9356 = vmatmul.mubr.msk.f32.gmra.mxu1 %vm96_vm0, %v12827_v6  ;;  %v1050_v6 = vld [vmem:[%s18148_s11 + $0x368] sm:$0xff]  ;;  %v5006_v32 = vsel %vm3121_vm1, %v4860_v52, 0.0  ;;  %v1053_v0 = vld [vmem:[%s18148_s11 + $0x380] sm:$0xff] }
 0x489   :  { %10886 = vmatmul.mubr.msk.f32.gmra.mxu0 %vm96_vm0, %v1048_v26  ;;  %4998 = vadd.xlane.f32.xlu1 %v4997_v5  ;;  %v10743_v30 = vpop.f32.mrf.mxu0  ;;  %v13357_v52 = vld [vmem:[%s18149_s12 + $0x68] sm:$0xff]  ;;  %v13362_v26 = vld [vmem:[%s18149_s12 + $0x60] sm:$0xff] }
 0x48a   :  { %v4862_v53 = vmul.f32 %v10743_v30, %v13324_v22  ;;  %v5003_v39 = vsel %vm3121_vm1, %v4859_v55, 0.0  ;;  %1775 = vmatprep.mubr.f32.mxu1 %v18161_v4  ;;  %10888 = vmatprep.mubr.msk.f32.mxu0 %vm96_vm0, %v1049_v2 }
 0x48b   :  { %5004 = vadd.xlane.f32.xlu0 %v5003_v39  ;;  %v2402_v12 = vpop.f32.mrf.mxu0  ;;  %v13380_v39 = vld [vmem:[%s18149_s12 + $0x78] sm:$0xff] }
 0x48c   :  { %v4861_v36 = vmul.f32 %v13336_v58, %v2402_v12  ;;  %9357 = vmatmul.mubr.msk.f32.gmra.mxu1 %vm96_vm0, %v12839_v34  ;;  %v5012_v49 = vsel %vm3121_vm1, %v4862_v53, 0.0  ;;  %v1052_v34 = vld [vmem:[%s18148_s11 + $0x378] sm:$0xff]  ;;  %v13392_v12 = vld [vmem:[%s18149_s12 + $0x88] sm:$0xff] }
 0x48d   :  { %10889 = vmatmul.mubr.msk.f32.gmra.mxu0 %vm96_vm0, %v1050_v6  ;;  %5007 = vadd.xlane.f32.xlu1 %v5006_v32  ;;  %v10746_v50 = vpop.f32.mrf.mxu0 }
 0x48e   :  { %1781 = vmatprep.mubr.f32.mxu1 %v18161_v4  ;;  %10891 = vmatprep.mubr.msk.f32.mxu0 %vm96_vm0, %v1051_v57  ;;  %v4864_v2 = vmul.f32 %v10746_v50, %v13357_v52  ;;  %v5009_v30 = vsel %vm3121_vm1, %v4861_v36, 0.0  ;;  %v1055_v57 = vld [vmem:[%s18148_s11 + $0x390] sm:$0xff] }
 0x48f   :  { %5013 = vadd.xlane.f32.xlu0 %v5012_v49  ;;  %v2412_v5 = vpop.f32.mrf.mxu0  ;;  %v13404_v50 = vld [vmem:[%s18149_s12 + $0x70] sm:$0xff] }
 0x490   :  { %v4863_v55 = vmul.f32 %v13362_v26, %v2412_v5  ;;  %9358 = vmatmul.mubr.msk.f32.gmra.mxu1 %vm96_vm0, %v12844_v42  ;;  %v1054_v42 = vld [vmem:[%s18148_s11 + $0x388] sm:$0xff]  ;;  %v5018_v49 = vsel %vm3121_vm1, %v4864_v2, 0.0  ;;  %v13410_v5 = vld [vmem:[%s18149_s12 + $0x80] sm:$0xff] }
 0x491   :  { %v10749_v53 = vpop.f32.mrf.mxu0  ;;  %10892 = vmatmul.mubr.msk.f32.gmra.mxu0 %vm96_vm0, %v1052_v34  ;;  %1787 = vmatprep.mubr.f32.mxu1 %v18161_v4 }
 0x492   :  { %v5015_v6 = vsel %vm3121_vm1, %v4863_v55, 0.0  ;;  %10894 = vmatprep.mubr.msk.f32.mxu0 %vm96_vm0, %v1053_v0  ;;  %v4866_v36 = vmul.f32 %v10749_v53, %v13380_v39  ;;  %v1057_v55 = vld [vmem:[%s18148_s11 + $0x3a0] sm:$0xff] }
 0x493   :  { %5010 = vadd.xlane.f32.xlu0 %v5009_v30  ;;  %5016 = vadd.xlane.f32.xlu1 %v5015_v6  ;;  %v2422_v32 = vpop.f32.mrf.mxu0 }
 0x494   :  { %9359 = vmatmul.mubr.msk.f32.gmra.mxu1 %vm96_vm0, %v12856_v44  ;;  %v1056_v44 = vld [vmem:[%s18148_s11 + $0x398] sm:$0xff]  ;;  %v4865_v30 = vmul.f32 %v13404_v50, %v2422_v32  ;;  %v13436_v32 = vld [vmem:[%s18149_s12 + $0x90] sm:$0xff] }
 0x495   :  { %v10752_v34 = vpop.f32.mrf.mxu0  ;;  %10895 = vmatmul.mubr.msk.f32.gmra.mxu0 %vm96_vm0, %v1054_v42  ;;  %1793 = vmatprep.mubr.f32.mxu1 %v18161_v4  ;;  %v5024_v42 = vsel %vm3121_vm1, %v4866_v36, 0.0 }
 0x496   :  { %v4868_v0 = vmul.f32 %v10752_v34, %v13392_v12  ;;  %10897 = vmatprep.mubr.msk.f32.mxu0 %vm96_vm0, %v1055_v57 }
 0x497   :  { %5019 = vadd.xlane.f32.xlu0 %v5018_v49  ;;  %v2432_v2 = vpop.f32.mrf.mxu0  ;;  %v13431_v49 = vld [vmem:[%s18149_s12 + $0x98] sm:$0xff] }
 0x498   :  { %v4867_v53 = vmul.f32 %v13410_v5, %v2432_v2  ;;  %v5030_v6 = vsel %vm3121_vm1, %v4868_v0, 0.0  ;;  %9360 = vmatmul.mubr.msk.f32.gmra.mxu1 %vm96_vm0, %v12861_v51  ;;  %v1058_v51 = vld [vmem:[%s18148_s11 + $0x3a8] sm:$0xff] }
 0x499   :  { %10898 = vmatmul.mubr.msk.f32.gmra.mxu0 %vm96_vm0, %v1056_v44  ;;  %5031 = vadd.xlane.f32.xlu1 %v5030_v6  ;;  %v10755_v57 = vpop.f32.mrf.mxu0  ;;  %v13447_v0 = vld [vmem:[%s18149_s12 + $0xa8] sm:$0xff]  ;;  %v1059_v44 = vld [vmem:[%s18148_s11 + $0x3b0] sm:$0xff] }
 0x49a   :  { %1799 = vmatprep.mubr.f32.mxu1 %v18161_v4  ;;  %10900 = vmatprep.mubr.msk.f32.mxu0 %vm96_vm0, %v1057_v55  ;;  %v5027_v36 = vsel %vm3121_vm1, %v4867_v53, 0.0  ;;  %v4870_v2 = vmul.f32 %v10755_v57, %v13431_v49  ;;  %v5021_v53 = vsel %vm3121_vm1, %v4865_v30, 0.0  ;;  %v1060_v57 = vld [vmem:[%s18148_s11 + $0x3b8] sm:$0xff]  ;;  %v13468_v30 = vld [vmem:[%s18149_s12 + $0xa0] sm:$0xff] }
 0x49b   :  { %5025 = vadd.xlane.f32.xlu0 %v5024_v42  ;;  %v2442_v34 = vpop.f32.mrf.mxu0 }
 0x49c   :  { %v4869_v55 = vmul.f32 %v13436_v32, %v2442_v34  ;;  %9361 = vmatmul.mubr.msk.f32.gmra.mxu1 %vm96_vm0, %v12873_v14 }
 0x49d   :  { %10901 = vmatmul.mubr.msk.f32.gmra.mxu0 %vm96_vm0, %v1058_v51  ;;  %5028 = vadd.xlane.f32.xlu1 %v5027_v36  ;;  %v10758_v6 = vpop.f32.mrf.mxu0  ;;  %v1061_v51 = vld [vmem:[%s18148_s11 + $0x3c0] sm:$0xff] }
 0x49e   :  { %v4872_v42 = vmul.f32 %v10758_v6, %v13447_v0  ;;  %1805 = vmatprep.mubr.f32.mxu1 %v18161_v4  ;;  %10903 = vmatprep.mubr.msk.f32.mxu0 %vm96_vm0, %v1059_v44  ;;  %v5033_v34 = vsel %vm3121_vm1, %v4869_v55, 0.0  ;;  %v5036_v44 = vsel %vm3121_vm1, %v4870_v2, 0.0 }
 0x49f   :  { %5022 = vadd.xlane.f32.xlu0 %v5021_v53  ;;  %v2452_v14 = vpop.f32.mrf.mxu0  ;;  %v13482_v53 = vld [vmem:[%s18149_s12 + $0xb0] sm:$0xff] }
 0x4a0   :  { %v13473_v36 = vpop.f32.mrf.mxu1  ;;  %9362 = vmatmul.mubr.msk.f32.gmra.mxu1 %vm96_vm0, %v12878_v56  ;;  %v4871_v6 = vmul.f32 %v13468_v30, %v2452_v14  ;;  %v1062_v56 = vld [vmem:[%s18148_s11 + $0x3c8] sm:$0xff]  ;;  %v5042_v2 = vsel %vm3121_vm1, %v4872_v42, 0.0  ;;  %v1063_v14 = vld [vmem:[%s18148_s11 + $0x3d0] sm:$0xff] }
 0x4a1   :  { %10904 = vmatmul.mubr.msk.f32.gmra.mxu0 %vm96_vm0, %v1060_v57  ;;  %5034 = vadd.xlane.f32.xlu1 %v5033_v34  ;;  %v10761_v55 = vpop.f32.mrf.mxu0  ;;  %v13496_v57 = vld [vmem:[%s18149_s12 + $0xb8] sm:$0xff] }
 0x4a2   :  { %v13485_v4 = vpop.f32.mrf.mxu1  ;;  %1811 = vmatprep.mubr.f32.mxu1 %v18324_v1  ;;  %10906 = vmatprep.mubr.msk.f32.mxu0 %vm96_vm0, %v1061_v51  ;;  %v4874_v61 = vmul.f32 %v10761_v55, %v13496_v57 }
 0x4a3   :  { %5037 = vadd.xlane.f32.xlu0 %v5036_v44  ;;  %v2462_v34 = vpop.f32.mrf.mxu0  ;;  %v13510_v44 = vld [vmem:[%s18149_s12 + $0xc0] sm:$0xff] }
 0x4a4   :  { %v4873_v63 = vmul.f32 %v13482_v53, %v2462_v34  ;;  %v13502_v51 = vpop.f32.mrf.mxu1  ;;  %9363 = vmatmul.mubr.msk.f32.gmra.mxu1 %vm96_vm0, %v12890_v46  ;;  %v1064_v46 = vld [vmem:[%s18148_s11 + $0x3d8] sm:$0xff]  ;;  %v1065_v34 = vld [vmem:[%s18148_s11 + $0x3e0] sm:$0xff] }
 0x4a5   :  { %10907 = vmatmul.mubr.msk.f32.gmra.mxu0 %vm96_vm0, %v1062_v56  ;;  %5043 = vadd.xlane.f32.xlu1 %v5042_v2  ;;  %v10764_v42 = vpop.f32.mrf.mxu0  ;;  %v5039_v56 = vsel %vm3121_vm1, %v4871_v6, 0.0  ;;  %v13525_v2 = vld [vmem:[%s18149_s12 + $0xc8] sm:$0xff]  ;;  %v13544_v6 = vld [vmem:[%s18149_s12 + $0xd0] sm:$0xff] }
 0x4a6   :  { %v5045_v60 = vsel %vm3121_vm1, %v4873_v63, 0.0  ;;  %v13514_v45 = vpop.f32.mrf.mxu1  ;;  %1817 = vmatprep.mubr.f32.mxu1 %v18324_v1  ;;  %10909 = vmatprep.mubr.msk.f32.mxu0 %vm96_vm0, %v1063_v14  ;;  %v13530_v63 = vld [vmem:[%s18149_s12 + $0xd8] sm:$0xff]  ;;  %v4876_v48 = vmul.f32 %v10764_v42, %v13525_v2  ;;  %v13560_v42 = vld [vmem:[%s18149_s12 + $0xe8] sm:$0xff] }
 0x4a7   :  { %5046 = vadd.xlane.f32.xlu0 %v5045_v60  ;;  %v2472_v55 = vpop.f32.mrf.mxu0 }
 0x4a8   :  { %v4875_v14 = vmul.f32 %v13510_v44, %v2472_v55  ;;  %v13536_v38 = vpop.f32.mrf.mxu1  ;;  %9364 = vmatmul.mubr.msk.f32.gmra.mxu1 %vm96_vm0, %v12895_v23  ;;  %v1066_v23 = vld [vmem:[%s18148_s11 + $0x3e8] sm:$0xff] }
 0x4a9   :  { %10910 = vmatmul.mubr.msk.f32.gmra.mxu0 %vm96_vm0, %v1064_v46  ;;  %5040 = vadd.xlane.f32.xlu1 %v5039_v56  ;;  %v10767_v60 = vpop.f32.mrf.mxu0  ;;  %v5048_v46 = vsel %vm3121_vm1, %v4874_v61, 0.0 }
 0x4aa   :  { %v4878_v43 = vmul.f32 %v10767_v60, %v13530_v63  ;;  %v5051_v55 = vsel %vm3121_vm1, %v4875_v14, 0.0  ;;  %v13549_v28 = vpop.f32.mrf.mxu1  ;;  %1823 = vmatprep.mubr.f32.mxu1 %v18324_v1  ;;  %10912 = vmatprep.mubr.msk.f32.mxu0 %vm96_vm0, %v1065_v34  ;;  %v1067_v14 = vld [vmem:[%s18148_s11 + $0x3f0] sm:$0xff] }
 0x4ab   :  { %18325 = vst [vmem:[#allocation33_spill] sm:$0xff] %v13549_v28  ;;  %5052 = vadd.xlane.f32.xlu0 %v5051_v55  ;;  %v2482_v56 = vpop.f32.mrf.mxu0  ;;  %v11808_v28 = vld [vmem:[%s18148_s11 + $0x238] sm:$0xff] }
 0x4ac   :  { %v4877_v60 = vmul.f32 %v13544_v6, %v2482_v56  ;;  %v13566_v34 = vpop.f32.mrf.mxu1  ;;  %9365 = vmatmul.mubr.msk.f32.gmra.mxu1 %vm96_vm0, %v12907_v16  ;;  %v5060_v61 = vsel %vm3121_vm1, %v4878_v43, 0.0  ;;  %v1068_v16 = vld [vmem:[%s18148_s11 + $0x3f8] sm:$0xff]  ;;  %v5054_v43 = vsel %vm3121_vm1, %v4876_v48, 0.0 }
 0x4ad   :  { %10913 = vmatmul.mubr.msk.f32.gmra.mxu0 %vm96_vm0, %v1066_v23  ;;  %5049 = vadd.xlane.f32.xlu1 %v5048_v46  ;;  %v10770_v55 = vpop.f32.mrf.mxu0 }
 0x4ae   :  { %v4880_v35 = vmul.f32 %v10770_v55, %v13560_v42  ;;  %v13578_v33 = vpop.f32.mrf.mxu1  ;;  %1829 = vmatprep.mubr.f32.mxu1 %v18324_v1  ;;  %10915 = vmatprep.mubr.msk.f32.mxu0 %vm96_vm0, %v1067_v14  ;;  %v5057_v55 = vsel %vm3121_vm1, %v4877_v60, 0.0 }
 0x4af   :  { %18326 = vst [vmem:[#allocation34_spill] sm:$0xff] %v13578_v33  ;;  %5061 = vadd.xlane.f32.xlu0 %v5060_v61  ;;  %v2492_v23 = vpop.f32.mrf.mxu0  ;;  %v13607_v61 = vld [vmem:[%s18149_s12 + $0x108] sm:$0xff] }
 0x4b0   :  { %v4879_v46 = vmul.f32 %v13575_v40, %v2492_v23  ;;  %v13587_v56 = vpop.f32.mrf.mxu1  ;;  %9366 = vmatmul.mubr.msk.f32.gmra.mxu1 %vm96_vm0, %v12912_v54  ;;  %v5066_v54 = vsel %vm3121_vm1, %v4880_v35, 0.0  ;;  %v13618_v35 = vld [vmem:[%s18149_s12 + $0xf0] sm:$0xff] }
 0x4b1   :  { %10916 = vmatmul.mubr.msk.f32.gmra.mxu0 %vm96_vm0, %v1068_v16  ;;  %5055 = vadd.xlane.f32.xlu1 %v5054_v43  ;;  %v10773_v14 = vpop.f32.mrf.mxu0 }
 0x4b2   :  { %v13598_v48 = vpop.f32.mrf.mxu1  ;;  %1835 = vmatprep.mubr.f32.mxu1 %v18324_v1  ;;  %10922 = vmatprep.mubr.msk.f32.mxu0 %vm3121_vm1, %v13213_v15  ;;  %v4882_v16 = vmul.f32 %v10773_v14, %v13596_v31  ;;  %v5063_v23 = vsel %vm3121_vm1, %v4879_v46, 0.0 }
 0x4b3   :  { %18327 = vst [vmem:[#allocation35_spill] sm:$0xff] %v13598_v48  ;;  %5058 = vadd.xlane.f32.xlu0 %v5057_v55  ;;  %v2502_v60 = vpop.f32.mrf.mxu0  ;;  %v13625_v55 = vld [vmem:[%s18149_s12 + $0x100] sm:$0xff] }
 0x4b4   :  { %v13610_v43 = vpop.f32.mrf.mxu1  ;;  %9367 = vmatmul.mubr.msk.f32.gmra.mxu1 %vm96_vm0, %v12924_v13 }
 0x4b5   :  { %10923 = vmatmul.mubr.msk.f32.vlgmr.msra.gmra.mxu0 %vm3121_vm1, %v13202_v20  ;;  %5067 = vadd.xlane.f32.xlu1 %v5066_v54  ;;  %v10776_v15 = vpop.f32.mrf.mxu0  ;;  %v13636_v20 = vld [vmem:[%s18149_s12 + $0x118] sm:$0xff]  ;;  %v4881_v54 = vmul.f32 %v13618_v35, %v2502_v60  ;;  %v13651_v60 = vld [vmem:[%s18149_s12 + $0x110] sm:$0xff] }
 0x4b6   :  { %v4884_v14 = vmul.f32 %v10776_v15, %v13607_v61  ;;  %v13628_v13 = vpop.f32.mrf.mxu1  ;;  %1841 = vmatprep.mubr.f32.mxu1 %v18324_v1  ;;  %10925 = vmatprep.mubr.msk.f32.mxu0 %vm3121_vm1, %v13237_v18  ;;  %v5072_v18 = vsel %vm3121_vm1, %v4882_v16, 0.0  ;;  %v13663_v16 = vld [vmem:[%s18149_s12 + $0x128] sm:$0xff] }
 0x4b7   :  { %18328 = vst [vmem:[#allocation36_spill] sm:$0xff] %v13628_v13  ;;  %5064 = vadd.xlane.f32.xlu0 %v5063_v23  ;;  %v2512_v46 = vpop.f32.mrf.mxu0  ;;  %v11805_v13 = vld [vmem:[%s18148_s11 + $0x220] sm:$0xff] }
 0x4b8   :  { %v4883_v29 = vmul.f32 %v13625_v55, %v2512_v46  ;;  %v5078_v15 = vsel %vm3121_vm1, %v4884_v14, 0.0  ;;  %v13641_v27 = vpop.f32.mrf.mxu1  ;;  %9368 = vmatmul.mubr.msk.f32.gmra.mxu1 %vm96_vm0, %v12931_v19 }
 0x4b9   :  { %10926 = vmatmul.mubr.msk.f32.gmra.mxu0 %vm3121_vm1, %v13224_v9  ;;  %5079 = vadd.xlane.f32.xlu1 %v5078_v15  ;;  %v10779_v23 = vpop.f32.mrf.mxu0 }
 0x4ba   :  { %v4886_v46 = vmul.f32 %v10779_v23, %v13636_v20  ;;  %v13654_v14 = vpop.f32.mrf.mxu1  ;;  %1847 = vmatprep.mubr.f32.mxu1 %v18324_v1  ;;  %10928 = vmatprep.mubr.msk.f32.mxu0 %vm3121_vm1, %v13261_v47  ;;  %v5075_v19 = vsel %vm3121_vm1, %v4883_v29, 0.0  ;;  %v5069_v23 = vsel %vm3121_vm1, %v4881_v54, 0.0  ;;  %v13683_v54 = vld [vmem:[%s18149_s12 + $0x120] sm:$0xff] }
 0x4bb   :  { %18329 = vst [vmem:[#allocation37_spill] sm:$0xff] %v13654_v14  ;;  %5073 = vadd.xlane.f32.xlu0 %v5072_v18  ;;  %v2522_v9 = vpop.f32.mrf.mxu0 }
 0x4bc   :  { %v4885_v15 = vmul.f32 %v13651_v60, %v2522_v9  ;;  %v13666_v25 = vpop.f32.mrf.mxu1  ;;  %9369 = vmatmul.mubr.msk.f32.gmra.mxu1 %vm96_vm0, %v12939_v62  ;;  %v5084_v9 = vsel %vm3121_vm1, %v4886_v46, 0.0  ;;  %v13695_v46 = vld [vmem:[%s18149_s12 + $0x130] sm:$0xff] }
 0x4bd   :  { %10929 = vmatmul.mubr.msk.f32.gmra.mxu0 %vm3121_vm1, %v13249_v37  ;;  %5076 = vadd.xlane.f32.xlu1 %v5075_v19  ;;  %v10782_v29 = vpop.f32.mrf.mxu0 }
 0x4be   :  { %v4888_v47 = vmul.f32 %v10782_v29, %v13663_v16  ;;  %v13674_v18 = vpop.f32.mrf.mxu1  ;;  %1853 = vmatprep.mubr.f32.mxu1 %v18324_v1  ;;  %10931 = vmatprep.mubr.msk.f32.mxu0 %vm3121_vm1, %v13287_v21  ;;  %v5081_v19 = vsel %vm3121_vm1, %v4885_v15, 0.0 }
 0x4bf   :  { %18330 = vst [vmem:[#allocation38_spill] sm:$0xff] %v13674_v18  ;;  %5070 = vadd.xlane.f32.xlu0 %v5069_v23  ;;  %v2532_v62 = vpop.f32.mrf.mxu0 }
 0x4c0   :  { %v13685_v37 = vpop.f32.mrf.mxu1  ;;  %9370 = vmatmul.mubr.msk.f32.gmra.mxu1 %vm96_vm0, %v12948_v7  ;;  %v4887_v23 = vmul.f32 %v13683_v54, %v2532_v62  ;;  %v5090_v7 = vsel %vm3121_vm1, %v4888_v47, 0.0  ;;  %v13719_v47 = vld [vmem:[%s18149_s12 + $0x140] sm:$0xff] }
 0x4c1   :  { %10932 = vmatmul.mubr.msk.f32.gmra.mxu0 %vm3121_vm1, %v13274_v11  ;;  %5085 = vadd.xlane.f32.xlu1 %v5084_v9  ;;  %v10785_v21 = vpop.f32.mrf.mxu0  ;;  %v13707_v11 = vld [vmem:[%s18149_s12 + $0x138] sm:$0xff] }
 0x4c2   :  { %v13698_v29 = vpop.f32.mrf.mxu1  ;;  %1859 = vmatprep.mubr.f32.mxu1 %v18324_v1  ;;  %10934 = vmatprep.mubr.msk.f32.mxu0 %vm3121_vm1, %v13312_v24  ;;  %v4890_v62 = vmul.f32 %v10785_v21, %v13707_v11  ;;  %v13737_v21 = vld [vmem:[%s18149_s12 + $0x158] sm:$0xff] }
 0x4c3   :  { %18331 = vst [vmem:[#allocation39_spill] sm:$0xff] %v13698_v29  ;;  %5082 = vadd.xlane.f32.xlu0 %v5081_v19  ;;  %v2542_v15 = vpop.f32.mrf.mxu0 }
 0x4c4   :  { %v4889_v9 = vmul.f32 %v13695_v46, %v2542_v15  ;;  %v13710_v14 = vpop.f32.mrf.mxu1  ;;  %9371 = vmatmul.mubr.msk.f32.gmra.mxu1 %vm96_vm0, %v12956_v41  ;;  %v5087_v41 = vsel %vm3121_vm1, %v4887_v23, 0.0  ;;  %v13749_v23 = vld [vmem:[%s18149_s12 + $0x150] sm:$0xff] }
 0x4c5   :  { %10935 = vmatmul.mubr.msk.f32.gmra.mxu0 %vm3121_vm1, %v13299_v59  ;;  %5091 = vadd.xlane.f32.xlu1 %v5090_v7  ;;  %v10788_v24 = vpop.f32.mrf.mxu0  ;;  %v13732_v59 = vld [vmem:[%s18149_s12 + $0x148] sm:$0xff] }
 0x4c6   :  { %v5093_v19 = vsel %vm3121_vm1, %v4889_v9, 0.0  ;;  %v13723_v15 = vpop.f32.mrf.mxu1  ;;  %1865 = vmatprep.mubr.f32.mxu1 %v18324_v1  ;;  %10937 = vmatprep.mubr.msk.f32.mxu0 %vm3121_vm1, %v13336_v58 }
 0x4c7   :  { %18332 = vst [vmem:[#allocation40_spill] sm:$0xff] %v13723_v15  ;;  %5094 = vadd.xlane.f32.xlu0 %v5093_v19  ;;  %v2552_v7 = vpop.f32.mrf.mxu0  ;;  %v4892_v19 = vmul.f32 %v10788_v24, %v13732_v59 }
 0x4c8   :  { %v4891_v9 = vmul.f32 %v13719_v47, %v2552_v7  ;;  %v13740_v29 = vpop.f32.mrf.mxu1  ;;  %9372 = vmatmul.mubr.msk.f32.gmra.mxu1 %vm96_vm0, %v12965_v10  ;;  %v5096_v10 = vsel %vm3121_vm1, %v4890_v62, 0.0  ;;  %v13776_v62 = vld [vmem:[%s18149_s12 + $0x160] sm:$0xff] }
 0x4c9   :  { %18333 = vst [vmem:[#allocation41_spill] sm:$0xff] %v13740_v29  ;;  %10938 = vmatmul.mubr.msk.f32.gmra.mxu0 %vm3121_vm1, %v13324_v22  ;;  %5088 = vadd.xlane.f32.xlu1 %v5087_v41  ;;  %v10791_v58 = vpop.f32.mrf.mxu0 }
 0x4ca   :  { %v4894_v15 = vmul.f32 %v10791_v58, %v13737_v21  ;;  %v5099_v7 = vsel %vm3121_vm1, %v4891_v9, 0.0  ;;  %v13754_v18 = vpop.f32.mrf.mxu1  ;;  %1871 = vmatprep.mubr.f32.mxu1 %v18324_v1  ;;  %10940 = vmatprep.mubr.msk.f32.mxu0 %vm3121_vm1, %v13362_v26  ;;  %v13771_v26 = vld [vmem:[%s18149_s12 + $0x168] sm:$0xff] }
 0x4cb   :  { %18334 = vst [vmem:[#allocation42_spill] sm:$0xff] %v13754_v18  ;;  %5100 = vadd.xlane.f32.xlu0 %v5099_v7  ;;  %v2562_v22 = vpop.f32.mrf.mxu0 }
 0x4cc   :  { %v4893_v41 = vmul.f32 %v13749_v23, %v2562_v22  ;;  %v13761_v48 = vpop.f32.mrf.mxu1  ;;  %9373 = vmatmul.mubr.msk.f32.gmra.mxu1 %vm96_vm0, %v12973_v3  ;;  %v5108_v24 = vsel %vm3121_vm1, %v4894_v15, 0.0  ;;  %v5102_v3 = vsel %vm3121_vm1, %v4892_v19, 0.0  ;;  %v13796_v19 = vld [vmem:[%s18149_s12 + $0x178] sm:$0xff] }
 0x4cd   :  { %10941 = vmatmul.mubr.msk.f32.gmra.mxu0 %vm3121_vm1, %v13357_v52  ;;  %5097 = vadd.xlane.f32.xlu1 %v5096_v10  ;;  %v10794_v9 = vpop.f32.mrf.mxu0 }
 0x4ce   :  { %v13778_v58 = vpop.f32.mrf.mxu1  ;;  %1877 = vmatprep.mubr.f32.mxu1 %v18324_v1  ;;  %10943 = vmatprep.mubr.msk.f32.mxu0 %vm3121_vm1, %v13404_v50  ;;  %v4896_v15 = vmul.f32 %v10794_v9, %v13771_v26  ;;  %v5105_v22 = vsel %vm3121_vm1, %v4893_v41, 0.0 }
 0x4cf   :  { %18335 = vst [vmem:[#allocation43_spill] sm:$0xff] %v13778_v58  ;;  %5109 = vadd.xlane.f32.xlu0 %v5108_v24  ;;  %v2572_v52 = vpop.f32.mrf.mxu0 }
 0x4d0   :  { %v4895_v7 = vmul.f32 %v13776_v62, %v2572_v52  ;;  %v13786_v10 = vpop.f32.mrf.mxu1  ;;  %9374 = vmatmul.mubr.msk.f32.gmra.mxu1 %vm96_vm0, %v12980_v8  ;;  %v5114_v52 = vsel %vm3121_vm1, %v4896_v15, 0.0 }
 0x4d1   :  { %18336 = vst [vmem:[#allocation44_spill] sm:$0xff] %v13786_v10  ;;  %10944 = vmatmul.mubr.msk.f32.gmra.mxu0 %vm3121_vm1, %v13380_v39  ;;  %5103 = vadd.xlane.f32.xlu1 %v5102_v3  ;;  %v10797_v50 = vpop.f32.mrf.mxu0  ;;  %v13807_v39 = vld [vmem:[%s18149_s12 + $0x188] sm:$0xff] }
 0x4d2   :  { %v13798_v24 = vpop.f32.mrf.mxu1  ;;  %1883 = vmatprep.mubr.f32.mxu1 %v18324_v1  ;;  %10946 = vmatprep.mubr.msk.f32.mxu0 %vm3121_vm1, %v13410_v5  ;;  %v5111_v8 = vsel %vm3121_vm1, %v4895_v7, 0.0  ;;  %v4898_v9 = vmul.f32 %v10797_v50, %v13796_v19  ;;  %v13818_v5 = vld [vmem:[%s18149_s12 + $0x170] sm:$0xff] }
 0x4d3   :  { %18337 = vst [vmem:[#allocation45_spill] sm:$0xff] %v13798_v24  ;;  %5106 = vadd.xlane.f32.xlu0 %v5105_v22  ;;  %v2582_v41 = vpop.f32.mrf.mxu0  ;;  %v13825_v22 = vld [vmem:[%s18149_s12 + $0x180] sm:$0xff] }
 0x4d4   :  { %v13810_v3 = vpop.f32.mrf.mxu1  ;;  %9375 = vmatmul.mubr.msk.f32.gmra.mxu1 %vm96_vm0, %v12992_v17 }
 0x4d5   :  { %18338 = vst [vmem:[#allocation46_spill] sm:$0xff] %v13810_v3  ;;  %10947 = vmatmul.mubr.msk.f32.gmra.mxu0 %vm3121_vm1, %v13392_v12  ;;  %5112 = vadd.xlane.f32.xlu1 %v5111_v8  ;;  %v10800_v7 = vpop.f32.mrf.mxu0  ;;  %v4897_v12 = vmul.f32 %v13818_v5, %v2582_v41  ;;  %v13848_v41 = vld [vmem:[%s18149_s12 + $0x198] sm:$0xff] }
 0x4d6   :  { %v4900_v50 = vmul.f32 %v10800_v7, %v13807_v39  ;;  %v13828_v17 = vpop.f32.mrf.mxu1  ;;  %1889 = vmatprep.mubr.f32.mxu1 %v18324_v1  ;;  %10949 = vmatprep.mubr.msk.f32.mxu0 %vm3121_vm1, %v13436_v32  ;;  %v11799_v7 = vld [vmem:[%s18148_s11 + $0x1f0] sm:$0xff] }
 0x4d7   :  { %18339 = vst [vmem:[#allocation47_spill] sm:$0xff] %v13828_v17  ;;  %5115 = vadd.xlane.f32.xlu0 %v5114_v52  ;;  %v2592_v15 = vpop.f32.mrf.mxu0  ;;  %v5120_v17 = vsel %vm3121_vm1, %v4898_v9, 0.0  ;;  %v13853_v52 = vld [vmem:[%s18149_s12 + $0x190] sm:$0xff]  ;;  %v13864_v9 = vld [vmem:[%s18149_s12 + $0x1a8] sm:$0xff] }
 0x4d8   :  { %v4899_v8 = vmul.f32 %v13825_v22, %v2592_v15  ;;  %v5126_v24 = vsel %vm3121_vm1, %v4900_v50, 0.0  ;;  %v13836_v18 = vpop.f32.mrf.mxu1  ;;  %9376 = vmatmul.mubr.msk.f32.gmra.mxu1 %vm96_vm0, %v11799_v7 }
 0x4d9   :  { %18340 = vst [vmem:[#allocation48_spill] sm:$0xff] %v13836_v18  ;;  %10950 = vmatmul.mubr.msk.f32.gmra.mxu0 %vm3121_vm1, %v13431_v49  ;;  %5127 = vadd.xlane.f32.xlu1 %v5126_v24  ;;  %v10803_v32 = vpop.f32.mrf.mxu0 }
 0x4da   :  { %v13855_v50 = vpop.f32.mrf.mxu1  ;;  %1895 = vmatprep.mubr.f32.mxu1 %v18324_v1  ;;  %10952 = vmatprep.mubr.msk.f32.mxu0 %vm3121_vm1, %v13468_v30  ;;  %v5123_v49 = vsel %vm3121_vm1, %v4899_v8, 0.0  ;;  %v4902_v15 = vmul.f32 %v10803_v32, %v13848_v41  ;;  %v5117_v30 = vsel %vm3121_vm1, %v4897_v12, 0.0  ;;  %v13887_v12 = vld [vmem:[%s18149_s12 + $0x1a0] sm:$0xff] }
 0x4db   :  { %18341 = vst [vmem:[#allocation49_spill] sm:$0xff] %v13855_v50  ;;  %5121 = vadd.xlane.f32.xlu0 %v5120_v17  ;;  %v2602_v24 = vpop.f32.mrf.mxu0  ;;  %v11800_v50 = vld [vmem:[%s18148_s11 + $0x1f8] sm:$0xff] }
 0x4dc   :  { %v4901_v7 = vmul.f32 %v13853_v52, %v2602_v24  ;;  %v13868_v58 = vpop.f32.mrf.mxu1  ;;  %9377 = vmatmul.mubr.msk.f32.gmra.mxu1 %vm96_vm0, %v11800_v50 }
 0x4dd   :  { %18342 = vst [vmem:[#allocation50_spill] sm:$0xff] %v13868_v58  ;;  %10953 = vmatmul.mubr.msk.f32.gmra.mxu0 %vm3121_vm1, %v13447_v0  ;;  %5124 = vadd.xlane.f32.xlu1 %v5123_v49  ;;  %v10806_v17 = vpop.f32.mrf.mxu0  ;;  %v11801_v49 = vld [vmem:[%s18148_s11 + $0x200] sm:$0xff] }
 0x4de   :  { %v4904_v8 = vmul.f32 %v10806_v17, %v13864_v9  ;;  %v13878_v32 = vpop.f32.mrf.mxu1  ;;  %1901 = vmatprep.mubr.f32.mxu1 %v18324_v1  ;;  %10955 = vmatprep.mubr.msk.f32.mxu0 %vm3121_vm1, %v13482_v53  ;;  %v5129_v24 = vsel %vm3121_vm1, %v4901_v7, 0.0  ;;  %v5132_v17 = vsel %vm3121_vm1, %v4902_v15, 0.0  ;;  %v13901_v7 = vld [vmem:[%s18149_s12 + $0x1b0] sm:$0xff] }
 0x4df   :  { %18343 = vst [vmem:[#allocation51_spill] sm:$0xff] %v13878_v32  ;;  %5118 = vadd.xlane.f32.xlu0 %v5117_v30  ;;  %v2612_v50 = vpop.f32.mrf.mxu0 }
 0x4e0   :  { %v13889_v0 = vpop.f32.mrf.mxu1  ;;  %9378 = vmatmul.mubr.msk.f32.gmra.mxu1 %vm96_vm0, %v11801_v49  ;;  %v4903_v30 = vmul.f32 %v13887_v12, %v2612_v50  ;;  %v5138_v15 = vsel %vm3121_vm1, %v4904_v8, 0.0  ;;  %v11802_v50 = vld [vmem:[%s18148_s11 + $0x208] sm:$0xff]  ;;  %v13927_v8 = vld [vmem:[%s18149_s12 + $0x1c0] sm:$0xff] }
 0x4e1   :  { %18344 = vst [vmem:[#allocation52_spill] sm:$0xff] %v13889_v0  ;;  %v10809_v53 = vpop.f32.mrf.mxu0  ;;  %10956 = vmatmul.mubr.msk.f32.gmra.mxu0 %vm3121_vm1, %v13496_v57  ;;  %5130 = vadd.xlane.f32.xlu1 %v5129_v24  ;;  %v13913_v57 = vld [vmem:[%s18149_s12 + $0x1b8] sm:$0xff] }
 0x4e2   :  { %v13904_v32 = vpop.f32.mrf.mxu1  ;;  %1907 = vmatprep.mubr.f32.mxu1 %v18324_v1  ;;  %10958 = vmatprep.mubr.msk.f32.mxu0 %vm3121_vm1, %v13510_v44 }
 0x4e3   :  { %18345 = vst [vmem:[#allocation53_spill] sm:$0xff] %v13904_v32  ;;  %v2622_v49 = vpop.f32.mrf.mxu0  ;;  %5133 = vadd.xlane.f32.xlu0 %v5132_v17  ;;  %v4906_v32 = vmul.f32 %v10809_v53, %v13913_v57  ;;  %v11803_v53 = vld [vmem:[%s18148_s11 + $0x210] sm:$0xff] }
 0x4e4   :  { %v4905_v24 = vmul.f32 %v13901_v7, %v2622_v49  ;;  %v13916_v0 = vpop.f32.mrf.mxu1  ;;  %9379 = vmatmul.mubr.msk.f32.gmra.mxu1 %vm96_vm0, %v11802_v50  ;;  %v5135_v49 = vsel %vm3121_vm1, %v4903_v30, 0.0 }
 0x4e5   :  { %18346 = vst [vmem:[#allocation54_spill] sm:$0xff] %v13916_v0  ;;  %v10812_v44 = vpop.f32.mrf.mxu0  ;;  %10959 = vmatmul.mubr.msk.f32.gmra.mxu0 %vm3121_vm1, %v13525_v2  ;;  %5139 = vadd.xlane.f32.xlu1 %v5138_v15  ;;  %v13940_v15 = vld [vmem:[%s18149_s12 + $0x1d8] sm:$0xff]  ;;  %v13945_v0 = vld [vmem:[%s18149_s12 + $0x1c8] sm:$0xff] }
 0x4e6   :  { %v13929_v17 = vpop.f32.mrf.mxu1  ;;  %1913 = vmatprep.mubr.f32.mxu1 %v18324_v1  ;;  %10961 = vmatprep.mubr.msk.f32.mxu0 %vm3121_vm1, %v13544_v6  ;;  %v5141_v50 = vsel %vm3121_vm1, %v4905_v24, 0.0  ;;  %v13959_v24 = vld [vmem:[%s18149_s12 + $0x1d0] sm:$0xff] }
 0x4e7   :  { %v2632_v2 = vpop.f32.mrf.mxu0  ;;  %5142 = vadd.xlane.f32.xlu0 %v5141_v50 }
 0x4e8   :  { %v4907_v6 = vmul.f32 %v13927_v8, %v2632_v2  ;;  %v13948_v18 = vpop.f32.mrf.mxu1  ;;  %9380 = vmatmul.mubr.msk.f32.gmra.mxu1 %vm96_vm0, %v11803_v53 }
 0x4e9   :  { %18347 = vst [vmem:[#allocation55_spill] sm:$0xff] %v13948_v18  ;;  %v10815_v30 = vpop.f32.mrf.mxu0  ;;  %10962 = vmatmul.mubr.msk.f32.gmra.mxu0 %vm3121_vm1, %v13530_v63  ;;  %5136 = vadd.xlane.f32.xlu1 %v5135_v49  ;;  %v4908_v18 = vmul.f32 %v10812_v44, %v13945_v0  ;;  %v5144_v49 = vsel %vm3121_vm1, %v4906_v32, 0.0  ;;  %v13988_v32 = vld [vmem:[%s18149_s12 + $0x1e0] sm:$0xff] }
 0x4ea   :  { %v4910_v50 = vmul.f32 %v10815_v30, %v13940_v15  ;;  %v13962_v2 = vpop.f32.mrf.mxu1  ;;  %1919 = vmatprep.mubr.f32.mxu1 %v18324_v1  ;;  %10964 = vmatprep.mubr.msk.f32.mxu0 %vm3121_vm1, %v13575_v40  ;;  %v5147_v53 = vsel %vm3121_vm1, %v4907_v6, 0.0  ;;  %v11804_v30 = vld [vmem:[%s18148_s11 + $0x218] sm:$0xff]  ;;  %v13980_v40 = vld [vmem:[%s18149_s12 + $0x1e8] sm:$0xff] }
 0x4eb   :  { %v2642_v63 = vpop.f32.mrf.mxu0  ;;  %5148 = vadd.xlane.f32.xlu0 %v5147_v53 }
 0x4ec   :  { %v4909_v58 = vmul.f32 %v13959_v24, %v2642_v63  ;;  %v13971_v10 = vpop.f32.mrf.mxu1  ;;  %9381 = vmatmul.mubr.msk.f32.gmra.mxu1 %vm96_vm0, %v11804_v30  ;;  %v5156_v44 = vsel %vm3121_vm1, %v4910_v50, 0.0  ;;  %v5150_v30 = vsel %vm3121_vm1, %v4908_v18, 0.0 }
 0x4ed   :  { %18348 = vst [vmem:[#allocation56_spill] sm:$0xff] %v13971_v10  ;;  %v10818_v6 = vpop.f32.mrf.mxu0  ;;  %10965 = vmatmul.mubr.msk.f32.gmra.mxu0 %vm3121_vm1, %v13560_v42  ;;  %1925 = vmatprep.mubr.f32.mxu1 %v18324_v1 }
 0x4ee   :  { %v13991_v53 = vpop.f32.mrf.mxu1  ;;  %10967 = vmatprep.mubr.msk.f32.mxu0 %vm3121_vm1, %v13618_v35  ;;  %5145 = vadd.xlane.f32.xlu1 %v5144_v49  ;;  %v4912_v63 = vmul.f32 %v10818_v6, %v13980_v40  ;;  %v14008_v49 = vld [vmem:[%s18149_s12 + $0x1f8] sm:$0xff] }
 0x4ef   :  { %18349 = vst [vmem:[#allocation57_spill] sm:$0xff] %v13991_v53  ;;  %v2652_v50 = vpop.f32.mrf.mxu0  ;;  %5157 = vadd.xlane.f32.xlu0 %v5156_v44  ;;  %v5153_v53 = vsel %vm3121_vm1, %v4909_v58, 0.0  ;;  %v14020_v58 = vld [vmem:[%s18149_s12 + $0x208] sm:$0xff] }
 0x4f0   :  { %v4911_v42 = vmul.f32 %v13988_v32, %v2652_v50  ;;  %v13998_v10 = vpop.f32.mrf.mxu1  ;;  %9382 = vmatmul.mubr.msk.f32.gmra.mxu1 %vm96_vm0, %v11805_v13  ;;  %v5162_v44 = vsel %vm3121_vm1, %v4912_v63, 0.0  ;;  %v11806_v50 = vld [vmem:[%s18148_s11 + $0x228] sm:$0xff]  ;;  %v14041_v63 = vld [vmem:[%s18149_s12 + $0x200] sm:$0xff] }
 0x4f1   :  { %18350 = vst [vmem:[#allocation58_spill] sm:$0xff] %v13998_v10  ;;  %v10821_v35 = vpop.f32.mrf.mxu0  ;;  %10968 = vmatmul.mubr.msk.f32.gmra.mxu0 %vm3121_vm1, %v13596_v31  ;;  %1931 = vmatprep.mubr.f32.mxu1 %v18324_v1 }
 0x4f2   :  { %v14013_v18 = vpop.f32.mrf.mxu1  ;;  %10970 = vmatprep.mubr.msk.f32.mxu0 %vm3121_vm1, %v13625_v55  ;;  %5151 = vadd.xlane.f32.xlu1 %v5150_v30  ;;  %v4914_v6 = vmul.f32 %v10821_v35, %v14008_v49  ;;  %v5159_v55 = vsel %vm3121_vm1, %v4911_v42, 0.0  ;;  %v14034_v30 = vld [vmem:[%s18149_s12 + $0x1f0] sm:$0xff] }
 0x4f3   :  { %18351 = vst [vmem:[#allocation59_spill] sm:$0xff] %v14013_v18  ;;  %v2662_v13 = vpop.f32.mrf.mxu0  ;;  %5154 = vadd.xlane.f32.xlu0 %v5153_v53 }
 0x4f4   :  { %v14024_v31 = vpop.f32.mrf.mxu1  ;;  %9383 = vmatmul.mubr.msk.f32.gmra.mxu1 %vm96_vm0, %v11806_v50  ;;  %v4913_v18 = vmul.f32 %v14034_v30, %v2662_v13 }
 0x4f5   :  { %18352 = vst [vmem:[#allocation60_spill] sm:$0xff] %v14024_v31  ;;  %v10824_v53 = vpop.f32.mrf.mxu0  ;;  %10971 = vmatmul.mubr.msk.f32.gmra.mxu0 %vm3121_vm1, %v13607_v61  ;;  %1937 = vmatprep.mubr.f32.mxu1 %v18324_v1  ;;  %v11807_v31 = vld [vmem:[%s18148_s11 + $0x230] sm:$0xff] }
 0x4f6   :  { %v4916_v35 = vmul.f32 %v10824_v53, %v14020_v58  ;;  %v14045_v50 = vpop.f32.mrf.mxu1  ;;  %10973 = vmatprep.mubr.msk.f32.mxu0 %vm3121_vm1, %v13651_v60  ;;  %5163 = vadd.xlane.f32.xlu1 %v5162_v44  ;;  %v14060_v53 = vld [vmem:[%s18149_s12 + $0x218] sm:$0xff]  ;;  %v5168_v60 = vsel %vm3121_vm1, %v4914_v6, 0.0 }
 0x4f7   :  { %v2672_v42 = vpop.f32.mrf.mxu0  ;;  %5160 = vadd.xlane.f32.xlu0 %v5159_v55  ;;  %v14069_v55 = vld [vmem:[%s18149_s12 + $0x210] sm:$0xff] }
 0x4f8   :  { %v4915_v61 = vmul.f32 %v14041_v63, %v2672_v42  ;;  %v14051_v10 = vpop.f32.mrf.mxu1  ;;  %9384 = vmatmul.mubr.msk.f32.gmra.mxu1 %vm96_vm0, %v11807_v31  ;;  %v5174_v44 = vsel %vm3121_vm1, %v4916_v35, 0.0 }
 0x4f9   :  { %18353 = vst [vmem:[#allocation61_spill] sm:$0xff] %v14051_v10  ;;  %v10827_v13 = vpop.f32.mrf.mxu0  ;;  %10974 = vmatmul.mubr.msk.f32.gmra.mxu0 %vm3121_vm1, %v13636_v20  ;;  %1943 = vmatprep.mubr.f32.mxu1 %v18324_v1 }
 0x4fa   :  { %v14072_v31 = vpop.f32.mrf.mxu1  ;;  %10976 = vmatprep.mubr.msk.f32.mxu0 %vm3121_vm1, %v13683_v54  ;;  %5175 = vadd.xlane.f32.xlu1 %v5174_v44  ;;  %v4918_v6 = vmul.f32 %v10827_v13, %v14060_v53  ;;  %v5171_v42 = vsel %vm3121_vm1, %v4915_v61, 0.0  ;;  %v14088_v54 = vld [vmem:[%s18149_s12 + $0x228] sm:$0xff]  ;;  %v5165_v44 = vsel %vm3121_vm1, %v4913_v18, 0.0  ;;  %v14103_v18 = vld [vmem:[%s18149_s12 + $0x220] sm:$0xff] }
 0x4fb   :  { %18354 = vst [vmem:[#allocation62_spill] sm:$0xff] %v14072_v31  ;;  %v2682_v35 = vpop.f32.mrf.mxu0  ;;  %5169 = vadd.xlane.f32.xlu0 %v5168_v60  ;;  %v11809_v31 = vld [vmem:[%s18148_s11 + $0x240] sm:$0xff] }
 0x4fc   :  { %v4917_v20 = vmul.f32 %v14069_v55, %v2682_v35  ;;  %v14079_v10 = vpop.f32.mrf.mxu1  ;;  %9385 = vmatmul.mubr.msk.f32.gmra.mxu1 %vm96_vm0, %v11808_v28  ;;  %v5180_v35 = vsel %vm3121_vm1, %v4918_v6, 0.0  ;;  %v14117_v6 = vld [vmem:[%s18149_s12 + $0x230] sm:$0xff] }
 0x4fd   :  { %18355 = vst [vmem:[#allocation63_spill] sm:$0xff] %v14079_v10  ;;  %v10830_v60 = vpop.f32.mrf.mxu0  ;;  %10977 = vmatmul.mubr.msk.f32.gmra.mxu0 %vm3121_vm1, %v13663_v16  ;;  %1949 = vmatprep.mubr.f32.mxu1 %v18324_v1 }
 0x4fe   :  { %v14094_v61 = vpop.f32.mrf.mxu1  ;;  %10979 = vmatprep.mubr.msk.f32.mxu0 %vm3121_vm1, %v13695_v46  ;;  %5172 = vadd.xlane.f32.xlu1 %v5171_v42  ;;  %v4920_v28 = vmul.f32 %v10830_v60, %v14088_v54  ;;  %v5177_v46 = vsel %vm3121_vm1, %v4917_v20, 0.0 }
 0x4ff   :  { %18356 = vst [vmem:[#allocation64_spill] sm:$0xff] %v14094_v61  ;;  %v2692_v13 = vpop.f32.mrf.mxu0  ;;  %5166 = vadd.xlane.f32.xlu0 %v5165_v44  ;;  %v14131_v61 = vld [vmem:[%s18149_s12 + $0x238] sm:$0xff] }
 0x500   :  { %v14105_v16 = vpop.f32.mrf.mxu1  ;;  %9386 = vmatmul.mubr.msk.f32.gmra.mxu1 %vm96_vm0, %v11809_v31  ;;  %v4919_v31 = vmul.f32 %v14103_v18, %v2692_v13 }
 0x501   :  { %18357 = vst [vmem:[#allocation65_spill] sm:$0xff] %v14105_v16  ;;  %v10833_v42 = vpop.f32.mrf.mxu0  ;;  %10980 = vmatmul.mubr.msk.f32.gmra.mxu0 %vm3121_vm1, %v13707_v11  ;;  %1955 = vmatprep.mubr.f32.mxu1 %v18324_v1  ;;  %v5186_v11 = vsel %vm3121_vm1, %v4920_v28, 0.0  ;;  %v14145_v28 = vld [vmem:[%s18149_s12 + $0x240] sm:$0xff] }
 0x502   :  { %v14120_v44 = vpop.xlane.xlu1 %4983  ;;  %v14122_v60 = vpop.f32.mrf.mxu1  ;;  %10982 = vmatprep.mubr.msk.f32.mxu0 %vm3121_vm1, %v13719_v47  ;;  %5181 = vadd.xlane.f32.xlu1 %v5180_v35  ;;  %v11810_v47 = vld [vmem:[%s18148_s11 + $0x248] sm:$0xff] }
 0x503   :  { %18358 = vst [vmem:[#allocation66_spill] sm:$0xff] %v14122_v60  ;;  %v2702_v20 = vpop.f32.mrf.mxu0  ;;  %5178 = vadd.xlane.f32.xlu0 %v5177_v46  ;;  %v14159_v60 = vld [vmem:[%s18149_s12 + $0x258] sm:$0xff] }
 0x504   :  { %v4921_v16 = vmul.f32 %v14117_v6, %v2702_v20  ;;  %v14134_v10 = vpop.f32.mrf.mxu1  ;;  %9387 = vmatmul.mubr.msk.f32.gmra.mxu1 %vm96_vm0, %v11810_v47  ;;  %v4922_v47 = vmul.f32 %v10833_v42, %v14131_v61 }
 0x505   :  { %18359 = vst [vmem:[#allocation67_spill] sm:$0xff] %v14134_v10  ;;  %v10836_v13 = vpop.f32.mrf.mxu0  ;;  %10983 = vmatmul.mubr.msk.f32.gmra.mxu0 %vm3121_vm1, %v13732_v59  ;;  %1961 = vmatprep.mubr.f32.mxu1 %v18324_v1  ;;  %v5183_v10 = vsel %vm3121_vm1, %v4919_v31, 0.0  ;;  %v14179_v31 = vld [vmem:[%s18149_s12 + $0x250] sm:$0xff] }
 0x506   :  { %v14148_v35 = vpop.xlane.xlu1 %4980  ;;  %v14150_v46 = vpop.f32.mrf.mxu1  ;;  %10985 = vmatprep.mubr.msk.f32.mxu0 %vm3121_vm1, %v13749_v23  ;;  %5187 = vadd.xlane.f32.xlu1 %v5186_v11  ;;  %v5189_v20 = vsel %vm3121_vm1, %v4921_v16, 0.0  ;;  %v11811_v16 = vld [vmem:[%s18148_s11 + $0x250] sm:$0xff]  ;;  %v5192_v33 = vsel %vm3121_vm1, %v4922_v47, 0.0 }
 0x507   :  { %18360 = vst [vmem:[#allocation68_spill] sm:$0xff] %v14148_v35  ;;  %18361 = vst [vmem:[#allocation69_spill] sm:$0xff] %v14150_v46  ;;  %v2712_v59 = vpop.f32.mrf.mxu0  ;;  %5190 = vadd.xlane.f32.xlu0 %v5189_v20  ;;  %v14165_v46 = vld [vmem:[%s18149_s12 + $0x248] sm:$0xff] }
 0x508   :  { %v4923_v23 = vmul.f32 %v14145_v28, %v2712_v59  ;;  %v14168_v11 = vpop.f32.mrf.mxu1  ;;  %9388 = vmatmul.mubr.msk.f32.gmra.mxu1 %vm96_vm0, %v11811_v16 }
 0x509   :  { %18362 = vst [vmem:[#allocation70_spill] sm:$0xff] %v14168_v11  ;;  %v10839_v42 = vpop.f32.mrf.mxu0  ;;  %10986 = vmatmul.mubr.msk.f32.gmra.mxu0 %vm3121_vm1, %v13737_v21  ;;  %1967 = vmatprep.mubr.f32.mxu1 %v18324_v1  ;;  %v4924_v21 = vmul.f32 %v10836_v13, %v14165_v46  ;;  %v14203_v13 = vld [vmem:[%s18149_s12 + $0x268] sm:$0xff] }
 0x50a   :  { %v4926_v20 = vmul.f32 %v10839_v42, %v14159_v60  ;;  %v14183_v59 = vpop.xlane.xlu1 %4989  ;;  %v14185_v11 = vpop.f32.mrf.mxu1  ;;  %10988 = vmatprep.mubr.msk.f32.mxu0 %vm3121_vm1, %v13776_v62  ;;  %5184 = vadd.xlane.f32.xlu1 %v5183_v10  ;;  %v5195_v16 = vsel %vm3121_vm1, %v4923_v23, 0.0  ;;  %v11812_v42 = vld [vmem:[%s18148_s11 + $0x258] sm:$0xff] }
 0x50b   :  { %18363 = vst [vmem:[#allocation71_spill] sm:$0xff] %v14185_v11  ;;  %v2722_v3 = vpop.f32.mrf.mxu0  ;;  %5196 = vadd.xlane.f32.xlu0 %v5195_v16  ;;  %v5198_v16 = vsel %vm3121_vm1, %v4924_v21, 0.0 }
 0x50c   :  { %v4925_v29 = vmul.f32 %v14179_v31, %v2722_v3  ;;  %v14193_v35 = vpop.f32.mrf.mxu1  ;;  %9389 = vmatmul.mubr.msk.f32.gmra.mxu1 %vm96_vm0, %v11812_v42  ;;  %v5204_v62 = vsel %vm3121_vm1, %v4926_v20, 0.0  ;;  %v14210_v3 = vld [vmem:[%s18149_s12 + $0x260] sm:$0xff] }
 0x50d   :  { %18364 = vst [vmem:[#allocation72_spill] sm:$0xff] %v14193_v35  ;;  %v10842_v10 = vpop.f32.mrf.mxu0  ;;  %10989 = vmatmul.mubr.msk.f32.gmra.mxu0 %vm3121_vm1, %v13771_v26  ;;  %1973 = vmatprep.mubr.f32.mxu1 %v18324_v1  ;;  %v11813_v35 = vld [vmem:[%s18148_s11 + $0x260] sm:$0xff] }
 0x50e   :  { %v14213_v47 = vpop.xlane.xlu1 %4992  ;;  %v14215_v23 = vpop.f32.mrf.mxu1  ;;  %10991 = vmatprep.mubr.msk.f32.mxu0 %vm3121_vm1, %v13818_v5  ;;  %5193 = vadd.xlane.f32.xlu1 %v5192_v33  ;;  %v4928_v26 = vmul.f32 %v10842_v10, %v14203_v13  ;;  %v14232_v33 = vld [vmem:[%s18149_s12 + $0x278] sm:$0xff] }
 0x50f   :  { %18365 = vst [vmem:[#allocation73_spill] sm:$0xff] %v14215_v23  ;;  %v2732_v20 = vpop.f32.mrf.mxu0  ;;  %5205 = vadd.xlane.f32.xlu0 %v5204_v62  ;;  %v5201_v23 = vsel %vm3121_vm1, %v4925_v29, 0.0  ;;  %v14244_v29 = vld [vmem:[%s18149_s12 + $0x288] sm:$0xff] }
 0x510   :  { %v4927_v42 = vmul.f32 %v14210_v3, %v2732_v20  ;;  %v14222_v11 = vpop.f32.mrf.mxu1  ;;  %9390 = vmatmul.mubr.msk.f32.gmra.mxu1 %vm96_vm0, %v11813_v35 }
 0x511   :  { %18366 = vst [vmem:[#allocation74_spill] sm:$0xff] %v14222_v11  ;;  %v10845_v5 = vpop.f32.mrf.mxu0  ;;  %10992 = vmatmul.mubr.msk.f32.gmra.mxu0 %vm3121_vm1, %v13796_v19  ;;  %1979 = vmatprep.mubr.f32.mxu1 %v18324_v1 }
 0x512   :  { %v14237_v21 = vpop.f32.mrf.mxu1  ;;  %10994 = vmatprep.mubr.msk.f32.mxu0 %vm3121_vm1, %v13825_v22  ;;  %5199 = vadd.xlane.f32.xlu1 %v5198_v16  ;;  %v5207_v62 = vsel %vm3121_vm1, %v4927_v42, 0.0  ;;  %v4930_v10 = vmul.f32 %v10845_v5, %v14232_v33  ;;  %v14248_v19 = vpop.xlane.xlu1 %4998  ;;  %v11814_v22 = vld [vmem:[%s18148_s11 + $0x268] sm:$0xff]  ;;  %v5210_v16 = vsel %vm3121_vm1, %v4928_v26, 0.0 }
 0x513   :  { %18367 = vst [vmem:[#allocation75_spill] sm:$0xff] %v14237_v21  ;;  %v2742_v35 = vpop.f32.mrf.mxu0  ;;  %5202 = vadd.xlane.f32.xlu0 %v5201_v23  ;;  %18368 = vst [vmem:[#allocation76_spill] sm:$0xff] %v14248_v19  ;;  %v14260_v23 = vld [vmem:[%s18149_s12 + $0x270] sm:$0xff] }
 0x514   :  { %v14250_v20 = vpop.f32.mrf.mxu1  ;;  %9391 = vmatmul.mubr.msk.f32.gmra.mxu1 %vm96_vm0, %v11814_v22  ;;  %v14273_v22 = vld [vmem:[%s18149_s12 + $0x280] sm:$0xff]  ;;  %v4929_v11 = vmul.f32 %v14260_v23, %v2742_v35 }
 0x515   :  { %18369 = vst [vmem:[#allocation77_spill] sm:$0xff] %v14250_v20  ;;  %v10848_v42 = vpop.f32.mrf.mxu0  ;;  %10995 = vmatmul.mubr.msk.f32.gmra.mxu0 %vm3121_vm1, %v13807_v39  ;;  %1985 = vmatprep.mubr.f32.mxu1 %v18324_v1 }
 0x516   :  { %v4932_v5 = vmul.f32 %v10848_v42, %v14244_v29  ;;  %v14266_v21 = vpop.f32.mrf.mxu1  ;;  %10997 = vmatprep.mubr.msk.f32.mxu0 %vm3121_vm1, %v13853_v52  ;;  %5208 = vadd.xlane.f32.xlu1 %v5207_v62  ;;  %v11815_v42 = vld [vmem:[%s18148_s11 + $0x270] sm:$0xff]  ;;  %v5216_v52 = vsel %vm3121_vm1, %v4930_v10, 0.0  ;;  %v14288_v35 = vpop.xlane.xlu1 %5007  ;;  %v14297_v10 = vld [vmem:[%s18149_s12 + $0x298] sm:$0xff] }
 0x517   :  { %18370 = vst [vmem:[#allocation78_spill] sm:$0xff] %v14266_v21  ;;  %v2752_v26 = vpop.f32.mrf.mxu0  ;;  %5211 = vadd.xlane.f32.xlu0 %v5210_v16  ;;  %18372 = vst [vmem:[#allocation80_spill] sm:$0xff] %v14288_v35 }
 0x518   :  { %v4931_v39 = vmul.f32 %v14273_v22, %v2752_v26  ;;  %v14277_v20 = vpop.f32.mrf.mxu1  ;;  %9392 = vmatmul.mubr.msk.f32.gmra.mxu1 %vm96_vm0, %v11815_v42  ;;  %v5222_v62 = vsel %vm3121_vm1, %v4932_v5, 0.0 }
 0x519   :  { %18371 = vst [vmem:[#allocation79_spill] sm:$0xff] %v14277_v20  ;;  %v10851_v21 = vpop.f32.mrf.mxu0  ;;  %10998 = vmatmul.mubr.msk.f32.gmra.mxu0 %vm3121_vm1, %v13848_v41  ;;  %1991 = vmatprep.mubr.f32.mxu1 %v18324_v1  ;;  %v14302_v41 = vld [vmem:[%s18149_s12 + $0x290] sm:$0xff] }
 0x51a   :  { %v14290_v16 = vpop.f32.mrf.mxu1  ;;  %11000 = vmatprep.mubr.msk.f32.mxu0 %vm3121_vm1, %v13887_v12  ;;  %5223 = vadd.xlane.f32.xlu1 %v5222_v62  ;;  %v5219_v26 = vsel %vm3121_vm1, %v4931_v39, 0.0  ;;  %v4934_v42 = vmul.f32 %v10851_v21, %v14297_v10  ;;  %v11816_v12 = vld [vmem:[%s18148_s11 + $0x278] sm:$0xff]  ;;  %v5213_v62 = vsel %vm3121_vm1, %v4929_v11, 0.0  ;;  %v14322_v21 = vld [vmem:[%s18149_s12 + $0x2a8] sm:$0xff] }
 0x51b   :  { %18373 = vst [vmem:[#allocation81_spill] sm:$0xff] %v14290_v16  ;;  %v2762_v5 = vpop.f32.mrf.mxu0  ;;  %5217 = vadd.xlane.f32.xlu0 %v5216_v52 }
 0x51c   :  { %v4933_v16 = vmul.f32 %v14302_v41, %v2762_v5  ;;  %9393 = vmatmul.mubr.msk.f32.gmra.mxu1 %vm96_vm0, %v11816_v12  ;;  %v14312_v20 = vpop.f32.mrf.mxu1  ;;  %v14317_v39 = vpop.xlane.xlu1 %5016  ;;  %v11817_v12 = vld [vmem:[%s18148_s11 + $0x280] sm:$0xff] }
 0x51d   :  { %18374 = vst [vmem:[#allocation82_spill] sm:$0xff] %v14312_v20  ;;  %v10854_v35 = vpop.f32.mrf.mxu0  ;;  %11001 = vmatmul.mubr.msk.f32.gmra.mxu0 %vm3121_vm1, %v13864_v9  ;;  %1997 = vmatprep.mubr.f32.mxu1 %v18324_v1  ;;  %18375 = vst [vmem:[#allocation83_spill] sm:$0xff] %v14317_v39  ;;  %v5228_v20 = vsel %vm3121_vm1, %v4934_v42, 0.0 }
 0x51e   :  { %11003 = vmatprep.mubr.msk.f32.mxu0 %vm3121_vm1, %v13901_v7  ;;  %5220 = vadd.xlane.f32.xlu1 %v5219_v26  ;;  %v4936_v11 = vmul.f32 %v10854_v35, %v14322_v21  ;;  %v14327_v52 = vpop.f32.mrf.mxu1  ;;  %v5225_v9 = vsel %vm3121_vm1, %v4933_v16, 0.0  ;;  %v14343_v35 = vld [vmem:[%s18149_s12 + $0x2a0] sm:$0xff] }
 0x51f   :  { %18376 = vst [vmem:[#allocation84_spill] sm:$0xff] %v14327_v52  ;;  %v2772_v5 = vpop.f32.mrf.mxu0  ;;  %5214 = vadd.xlane.f32.xlu0 %v5213_v62 }
 0x520   :  { %9394 = vmatmul.mubr.msk.f32.gmra.mxu1 %vm96_vm0, %v11817_v12  ;;  %v14335_v39 = vpop.f32.mrf.mxu1  ;;  %v4935_v26 = vmul.f32 %v14343_v35, %v2772_v5  ;;  %v14356_v12 = vld [vmem:[%s18149_s12 + $0x2b0] sm:$0xff]  ;;  %v5234_v52 = vsel %vm3121_vm1, %v4936_v11, 0.0 }
 0x521   :  { %18377 = vst [vmem:[#allocation85_spill] sm:$0xff] %v14335_v39  ;;  %v10857_v7 = vpop.f32.mrf.mxu0  ;;  %11004 = vmatmul.mubr.msk.f32.gmra.mxu0 %vm3121_vm1, %v13913_v57  ;;  %2003 = vmatprep.mubr.f32.mxu1 %v18324_v1 }
 0x522   :  { %v5032_v16 = vpop.xlane.xlu1 %5031  ;;  %11006 = vmatprep.mubr.msk.f32.mxu0 %vm3121_vm1, %v13927_v8  ;;  %5226 = vadd.xlane.f32.xlu1 %v5225_v9  ;;  %v14351_v62 = vpop.f32.mrf.mxu1  ;;  %v11818_v8 = vld [vmem:[%s18148_s11 + $0x288] sm:$0xff] }
 0x523   :  { %v14349_v42 = vmul.f32 %v5032_v16, %v13929_v17  ;;  %18379 = vst [vmem:[#allocation87_spill] sm:$0xff] %v14351_v62  ;;  %v2782_v57 = vpop.f32.mrf.mxu0  ;;  %5229 = vadd.xlane.f32.xlu0 %v5228_v20  ;;  %v14372_v20 = vld [vmem:[%s18149_s12 + $0x2b8] sm:$0xff]  ;;  %v5231_v62 = vsel %vm3121_vm1, %v4935_v26, 0.0  ;;  %v14406_v26 = vld [vmem:[%s18149_s12 + $0x2c8] sm:$0xff] }
 0x524   :  { %v4937_v39 = vmul.f32 %v14356_v12, %v2782_v57  ;;  %9395 = vmatmul.mubr.msk.f32.gmra.mxu1 %vm96_vm0, %v11818_v8  ;;  %v14364_v17 = vpop.f32.mrf.mxu1  ;;  %v4938_v16 = vmul.f32 %v10857_v7, %v14372_v20  ;;  %v14385_v8 = vld [vmem:[%s18149_s12 + $0x2c0] sm:$0xff]  ;;  %v14398_v7 = vld [vmem:[%s18149_s12 + $0x2d8] sm:$0xff] }
 0x525   :  { %18378 = vst [vmem:[#allocation86_spill] sm:$0xff] %v14349_v42  ;;  %18380 = vst [vmem:[#allocation88_spill] sm:$0xff] %v14364_v17  ;;  %v10860_v5 = vpop.f32.mrf.mxu0  ;;  %11007 = vmatmul.mubr.msk.f32.gmra.mxu0 %vm3121_vm1, %v13945_v0  ;;  %2009 = vmatprep.mubr.f32.mxu1 %v18324_v1 }
 0x526   :  { %v14374_v11 = vpop.xlane.xlu1 %5028  ;;  %11009 = vmatprep.mubr.msk.f32.mxu0 %vm3121_vm1, %v13959_v24  ;;  %5235 = vadd.xlane.f32.xlu1 %v5234_v52  ;;  %v5237_v9 = vsel %vm3121_vm1, %v4937_v39, 0.0  ;;  %v14380_v57 = vpop.f32.mrf.mxu1  ;;  %v11819_v24 = vld [vmem:[%s18148_s11 + $0x290] sm:$0xff] }
 0x527   :  { %18381 = vst [vmem:[#allocation89_spill] sm:$0xff] %v14374_v11  ;;  %18382 = vst [vmem:[#allocation90_spill] sm:$0xff] %v14380_v57  ;;  %v2792_v0 = vpop.f32.mrf.mxu0  ;;  %5238 = vadd.xlane.f32.xlu0 %v5237_v9  ;;  %v4940_v57 = vmul.f32 %v10860_v5, %v14406_v26  ;;  %v14421_v11 = vld [vmem:[%s18149_s12 + $0x2d0] sm:$0xff] }
 0x528   :  { %v4939_v17 = vmul.f32 %v14385_v8, %v2792_v0  ;;  %9396 = vmatmul.mubr.msk.f32.gmra.mxu1 %vm96_vm0, %v11819_v24  ;;  %v14393_v39 = vpop.f32.mrf.mxu1 }
 0x529   :  { %18383 = vst [vmem:[#allocation91_spill] sm:$0xff] %v14393_v39  ;;  %v10863_v52 = vpop.f32.mrf.mxu0  ;;  %11010 = vmatmul.mubr.msk.f32.gmra.mxu0 %vm3121_vm1, %v13940_v15  ;;  %2015 = vmatprep.mubr.f32.mxu1 %v18324_v1 }
 0x52a   :  { %v4942_v9 = vmul.f32 %v10863_v52, %v14398_v7  ;;  %v5035_v0 = vpop.xlane.xlu1 %5034  ;;  %11012 = vmatprep.mubr.msk.f32.mxu0 %vm3121_vm1, %v13988_v32  ;;  %5232 = vadd.xlane.f32.xlu1 %v5231_v62  ;;  %v5243_v24 = vsel %vm3121_vm1, %v4939_v17, 0.0  ;;  %v14416_v39 = vpop.f32.mrf.mxu1  ;;  %v5240_v52 = vsel %vm3121_vm1, %v4938_v16, 0.0  ;;  %v11820_v62 = vld [vmem:[%s18148_s11 + $0x298] sm:$0xff] }
 0x52b   :  { %v14414_v15 = vmul.f32 %v5035_v0, %v13962_v2  ;;  %18385 = vst [vmem:[#allocation93_spill] sm:$0xff] %v14416_v39  ;;  %v2802_v42 = vpop.f32.mrf.mxu0  ;;  %5244 = vadd.xlane.f32.xlu0 %v5243_v24  ;;  %v5246_v39 = vsel %vm3121_vm1, %v4940_v57, 0.0  ;;  %v14470_v57 = vld [vmem:[%s18149_s12 + $0x2f8] sm:$0xff] }
 0x52c   :  { %v4941_v32 = vmul.f32 %v14421_v11, %v2802_v42  ;;  %9397 = vmatmul.mubr.msk.f32.gmra.mxu1 %vm96_vm0, %v11820_v62  ;;  %v5252_v2 = vsel %vm3121_vm1, %v4942_v9, 0.0  ;;  %v14430_v17 = vpop.f32.mrf.mxu1  ;;  %v14438_v42 = vld [vmem:[%s18149_s12 + $0x2e8] sm:$0xff]  ;;  %v14451_v62 = vld [vmem:[%s18149_s12 + $0x2e0] sm:$0xff] }
 0x52d   :  { %18384 = vst [vmem:[#allocation92_spill] sm:$0xff] %v14414_v15  ;;  %18386 = vst [vmem:[#allocation94_spill] sm:$0xff] %v14430_v17  ;;  %v10866_v5 = vpop.f32.mrf.mxu0  ;;  %11013 = vmatmul.mubr.msk.f32.gmra.mxu0 %vm3121_vm1, %v13980_v40  ;;  %2021 = vmatprep.mubr.f32.mxu1 %v18324_v1 }
 0x52e   :  { %v5044_v16 = vpop.xlane.xlu1 %5043  ;;  %11015 = vmatprep.mubr.msk.f32.mxu0 %vm3121_vm1, %v14034_v30  ;;  %5241 = vadd.xlane.f32.xlu1 %v5240_v52  ;;  %v4944_v9 = vmul.f32 %v10866_v5, %v14438_v42  ;;  %v14446_v24 = vpop.f32.mrf.mxu1  ;;  %v11821_v30 = vld [vmem:[%s18148_s11 + $0x2a0] sm:$0xff] }
 0x52f   :  { %v14444_v0 = vmul.f32 %v5044_v16, %v14045_v50  ;;  %18388 = vst [vmem:[#allocation96_spill] sm:$0xff] %v14446_v24  ;;  %v2812_v40 = vpop.f32.mrf.mxu0  ;;  %5253 = vadd.xlane.f32.xlu0 %v5252_v2  ;;  %v5249_v50 = vsel %vm3121_vm1, %v4941_v32, 0.0 }
 0x530   :  { %v4943_v17 = vmul.f32 %v14451_v62, %v2812_v40  ;;  %9398 = vmatmul.mubr.msk.f32.gmra.mxu1 %vm96_vm0, %v11821_v30  ;;  %v14460_v52 = vpop.f32.mrf.mxu1  ;;  %v5258_v16 = vsel %vm3121_vm1, %v4944_v9, 0.0  ;;  %v14475_v40 = vpop.xlane.xlu0 %4986 }
 0x531   :  { %18387 = vst [vmem:[#allocation95_spill] sm:$0xff] %v14444_v0  ;;  %18389 = vst [vmem:[#allocation97_spill] sm:$0xff] %v14460_v52  ;;  %v10869_v5 = vpop.f32.mrf.mxu0  ;;  %11016 = vmatmul.mubr.msk.f32.gmra.mxu0 %vm3121_vm1, %v14008_v49  ;;  %2027 = vmatprep.mubr.f32.mxu1 %v18324_v1 }
 0x532   :  { %11018 = vmatprep.mubr.msk.f32.mxu0 %vm3121_vm1, %v14041_v63  ;;  %5247 = vadd.xlane.f32.xlu1 %v5246_v39  ;;  %v14472_v2 = vpop.f32.mrf.mxu1  ;;  %v4946_v49 = vmul.f32 %v10869_v5, %v14470_v57  ;;  %v11822_v63 = vld [vmem:[%s18148_s11 + $0x2a8] sm:$0xff]  ;;  %v5255_v39 = vsel %vm3121_vm1, %v4943_v17, 0.0  ;;  %v14499_v17 = vld [vmem:[%s18149_s12 + $0x2f0] sm:$0xff] }
 0x533   :  { %18390 = vst [vmem:[#allocation98_spill] sm:$0xff] %v14472_v2  ;;  %v2822_v32 = vpop.f32.mrf.mxu0  ;;  %5250 = vadd.xlane.f32.xlu0 %v5249_v50  ;;  %v14488_v50 = vld [vmem:[%s18149_s12 + $0x308] sm:$0xff] }
 0x534   :  { %9399 = vmatmul.mubr.msk.f32.gmra.mxu1 %vm96_vm0, %v11822_v63  ;;  %v14483_v30 = vpop.f32.mrf.mxu1 }
 0x535   :  { %18391 = vst [vmem:[#allocation99_spill] sm:$0xff] %v14483_v30  ;;  %v10872_v24 = vpop.f32.mrf.mxu0  ;;  %11019 = vmatmul.mubr.msk.f32.gmra.mxu0 %vm3121_vm1, %v14020_v58  ;;  %2033 = vmatprep.mubr.f32.mxu1 %v18324_v1  ;;  %v14506_v58 = vld [vmem:[%s18149_s12 + $0x300] sm:$0xff] }
 0x536   :  { %v4948_v9 = vmul.f32 %v10872_v24, %v14488_v50  ;;  %11021 = vmatprep.mubr.msk.f32.mxu0 %vm3121_vm1, %v14069_v55  ;;  %5259 = vadd.xlane.f32.xlu1 %v5258_v16  ;;  %v14501_v5 = vpop.f32.mrf.mxu1  ;;  %v4945_v24 = vmul.f32 %v14499_v17, %v2822_v32  ;;  %v11823_v55 = vld [vmem:[%s18148_s11 + $0x2b0] sm:$0xff]  ;;  %v5264_v16 = vsel %vm3121_vm1, %v4946_v49, 0.0  ;;  %v14521_v32 = vpop.xlane.xlu0 %4995 }
 0x537   :  { %18392 = vst [vmem:[#allocation100_spill] sm:$0xff] %v14501_v5  ;;  %v2832_v63 = vpop.f32.mrf.mxu0  ;;  %5256 = vadd.xlane.f32.xlu0 %v5255_v39  ;;  %v14526_v39 = vld [vmem:[%s18149_s12 + $0x318] sm:$0xff] }
 0x538   :  { %v4947_v2 = vmul.f32 %v14506_v58, %v2832_v63  ;;  %9400 = vmatmul.mubr.msk.f32.gmra.mxu1 %vm96_vm0, %v11823_v55  ;;  %v5270_v5 = vsel %vm3121_vm1, %v4948_v9, 0.0  ;;  %v14516_v52 = vpop.f32.mrf.mxu1 }
 0x539   :  { %18393 = vst [vmem:[#allocation101_spill] sm:$0xff] %v14516_v52  ;;  %v10875_v30 = vpop.f32.mrf.mxu0  ;;  %11022 = vmatmul.mubr.msk.f32.gmra.mxu0 %vm3121_vm1, %v14060_v53  ;;  %2039 = vmatprep.mubr.f32.mxu1 %v18324_v1  ;;  %v14536_v53 = vld [vmem:[%s18149_s12 + $0x310] sm:$0xff] }
 0x53a   :  { %11024 = vmatprep.mubr.msk.f32.mxu0 %vm3121_vm1, %v14103_v18  ;;  %5271 = vadd.xlane.f32.xlu1 %v5270_v5  ;;  %v4950_v49 = vmul.f32 %v10875_v30, %v14526_v39  ;;  %v14531_v9 = vpop.f32.mrf.mxu1  ;;  %v5267_v55 = vsel %vm3121_vm1, %v4947_v2, 0.0  ;;  %v11824_v18 = vld [vmem:[%s18148_s11 + $0x2b8] sm:$0xff]  ;;  %v5261_v30 = vsel %vm3121_vm1, %v4945_v24, 0.0  ;;  %v14553_v2 = vld [vmem:[%s18149_s12 + $0x328] sm:$0xff] }
 0x53b   :  { %18394 = vst [vmem:[#allocation102_spill] sm:$0xff] %v14531_v9  ;;  %v2842_v63 = vpop.f32.mrf.mxu0  ;;  %5265 = vadd.xlane.f32.xlu0 %v5264_v16 }
 0x53c   :  { %v4949_v52 = vmul.f32 %v14536_v53, %v2842_v63  ;;  %9401 = vmatmul.mubr.msk.f32.gmra.mxu1 %vm96_vm0, %v11824_v18  ;;  %v14545_v5 = vpop.f32.mrf.mxu1  ;;  %v5276_v18 = vsel %vm3121_vm1, %v4950_v49, 0.0  ;;  %v14576_v49 = vld [vmem:[%s18149_s12 + $0x320] sm:$0xff] }
 0x53d   :  { %18395 = vst [vmem:[#allocation103_spill] sm:$0xff] %v14545_v5  ;;  %v10878_v9 = vpop.f32.mrf.mxu0  ;;  %11025 = vmatmul.mubr.msk.f32.gmra.mxu0 %vm3121_vm1, %v14088_v54  ;;  %2045 = vmatprep.mubr.f32.mxu1 %v18324_v1  ;;  %v14561_v54 = vpop.xlane.xlu0 %5001  ;;  %v11825_v5 = vld [vmem:[%s18148_s11 + $0x2c0] sm:$0xff] }
 0x53e   :  { %11027 = vmatprep.mubr.msk.f32.mxu0 %vm3121_vm1, %v14117_v6  ;;  %5268 = vadd.xlane.f32.xlu1 %v5267_v55  ;;  %v4952_v16 = vmul.f32 %v10878_v9, %v14553_v2  ;;  %v14558_v24 = vpop.f32.mrf.mxu1  ;;  %v5273_v0 = vsel %vm3121_vm1, %v4949_v52, 0.0 }
 0x53f   :  { %18396 = vst [vmem:[#allocation104_spill] sm:$0xff] %v14558_v24  ;;  %v2852_v63 = vpop.f32.mrf.mxu0  ;;  %5262 = vadd.xlane.f32.xlu0 %v5261_v30 }
 0x540   :  { %9402 = vmatmul.mubr.msk.f32.gmra.mxu1 %vm96_vm0, %v11825_v5  ;;  %v14568_v6 = vpop.f32.mrf.mxu1  ;;  %v4951_v9 = vmul.f32 %v14576_v49, %v2852_v63  ;;  %v5282_v5 = vsel %vm3121_vm1, %v4952_v16, 0.0 }
 0x541   :  { %18397 = vst [vmem:[#allocation105_spill] sm:$0xff] %v14568_v6  ;;  %v10881_v55 = vpop.f32.mrf.mxu0  ;;  %11028 = vmatmul.mubr.msk.f32.gmra.mxu0 %vm3121_vm1, %v14131_v61  ;;  %2051 = vmatprep.mubr.f32.mxu1 %v18324_v1  ;;  %v14586_v61 = vld [vmem:[%s18149_s12 + $0x330] sm:$0xff]  ;;  %v14615_v6 = vld [vmem:[%s18149_s12 + $0x340] sm:$0xff] }
 0x542   :  { %11030 = vmatprep.mubr.msk.f32.mxu0 %vm3121_vm1, %v14145_v28  ;;  %5277 = vadd.xlane.f32.xlu1 %v5276_v18  ;;  %v14581_v52 = vpop.f32.mrf.mxu1  ;;  %v11826_v28 = vld [vmem:[%s18148_s11 + $0x2c8] sm:$0xff] }
 0x543   :  { %18398 = vst [vmem:[#allocation106_spill] sm:$0xff] %v14581_v52  ;;  %v2862_v30 = vpop.f32.mrf.mxu0  ;;  %5274 = vadd.xlane.f32.xlu0 %v5273_v0  ;;  %v14599_v52 = vpop.xlane.xlu0 %5004  ;;  %v14604_v0 = vld [vmem:[%s18149_s12 + $0x338] sm:$0xff] }
 0x544   :  { %v4953_v24 = vmul.f32 %v14586_v61, %v2862_v30  ;;  %9403 = vmatmul.mubr.msk.f32.gmra.mxu1 %vm96_vm0, %v11826_v28  ;;  %v14594_v63 = vpop.f32.mrf.mxu1  ;;  %18400 = vst [vmem:[#allocation108_spill] sm:$0xff] %v14599_v52  ;;  %v4954_v30 = vmul.f32 %v10881_v55, %v14604_v0 }
 0x545   :  { %18399 = vst [vmem:[#allocation107_spill] sm:$0xff] %v14594_v63  ;;  %v10884_v18 = vpop.f32.mrf.mxu0  ;;  %11031 = vmatmul.mubr.msk.f32.gmra.mxu0 %vm3121_vm1, %v14165_v46  ;;  %2057 = vmatprep.mubr.f32.mxu1 %v18324_v1  ;;  %v5279_v63 = vsel %vm3121_vm1, %v4951_v9, 0.0  ;;  %v14636_v9 = vld [vmem:[%s18149_s12 + $0x348] sm:$0xff] }
 0x546   :  { %11033 = vmatprep.mubr.msk.f32.mxu0 %vm3121_vm1, %v14179_v31  ;;  %5283 = vadd.xlane.f32.xlu1 %v5282_v5  ;;  %v5285_v16 = vsel %vm3121_vm1, %v4953_v24, 0.0  ;;  %v14610_v28 = vpop.f32.mrf.mxu1  ;;  %v11827_v31 = vld [vmem:[%s18148_s11 + $0x2d0] sm:$0xff]  ;;  %v14628_v5 = vld [vmem:[%s18149_s12 + $0x358] sm:$0xff]  ;;  %v5288_v52 = vsel %vm3121_vm1, %v4954_v30, 0.0  ;;  %v14669_v30 = vld [vmem:[%s18149_s12 + $0x368] sm:$0xff] }
 0x547   :  { %18401 = vst [vmem:[#allocation109_spill] sm:$0xff] %v14610_v28  ;;  %v2872_v46 = vpop.f32.mrf.mxu0  ;;  %5286 = vadd.xlane.f32.xlu0 %v5285_v16 }
 0x548   :  { %v4955_v15 = vmul.f32 %v14615_v6, %v2872_v46  ;;  %9404 = vmatmul.mubr.msk.f32.gmra.mxu1 %vm96_vm0, %v11827_v31  ;;  %v14623_v24 = vpop.f32.mrf.mxu1  ;;  %v4956_v31 = vmul.f32 %v10884_v18, %v14636_v9 }
 0x549   :  { %18402 = vst [vmem:[#allocation110_spill] sm:$0xff] %v14623_v24  ;;  %v10887_v55 = vpop.f32.mrf.mxu0  ;;  %11034 = vmatmul.mubr.msk.f32.gmra.mxu0 %vm3121_vm1, %v14159_v60  ;;  %2063 = vmatprep.mubr.f32.mxu1 %v18324_v1  ;;  %v14648_v24 = vld [vmem:[%s18149_s12 + $0x350] sm:$0xff] }
 0x54a   :  { %v4958_v16 = vmul.f32 %v10887_v55, %v14628_v5  ;;  %11036 = vmatprep.mubr.msk.f32.mxu0 %vm3121_vm1, %v14210_v3  ;;  %5280 = vadd.xlane.f32.xlu1 %v5279_v63  ;;  %v5291_v46 = vsel %vm3121_vm1, %v4955_v15, 0.0  ;;  %v14643_v28 = vpop.f32.mrf.mxu1  ;;  %v14651_v55 = vpop.xlane.xlu0 %5013  ;;  %v11828_v15 = vld [vmem:[%s18148_s11 + $0x2d8] sm:$0xff] }
 0x54b   :  { %18403 = vst [vmem:[#allocation111_spill] sm:$0xff] %v14643_v28  ;;  %v2882_v60 = vpop.f32.mrf.mxu0  ;;  %5292 = vadd.xlane.f32.xlu0 %v5291_v46  ;;  %18404 = vst [vmem:[#allocation112_spill] sm:$0xff] %v14651_v55 }
 0x54c   :  { %v4957_v3 = vmul.f32 %v14648_v24, %v2882_v60  ;;  %9405 = vmatmul.mubr.msk.f32.gmra.mxu1 %vm96_vm0, %v11828_v15  ;;  %v5300_v63 = vsel %vm3121_vm1, %v4958_v16, 0.0  ;;  %v14659_v18 = vpop.f32.mrf.mxu1  ;;  %v14676_v60 = vld [vmem:[%s18149_s12 + $0x360] sm:$0xff] }
 0x54d   :  { %18405 = vst [vmem:[#allocation113_spill] sm:$0xff] %v14659_v18  ;;  %v10890_v28 = vpop.f32.mrf.mxu0  ;;  %11037 = vmatmul.mubr.msk.f32.gmra.mxu0 %vm3121_vm1, %v14203_v13  ;;  %2069 = vmatprep.mubr.f32.mxu1 %v18324_v1  ;;  %v5294_v13 = vsel %vm3121_vm1, %v4956_v31, 0.0 }
 0x54e   :  { %11039 = vmatprep.mubr.msk.f32.mxu0 %vm3121_vm1, %v14260_v23  ;;  %5289 = vadd.xlane.f32.xlu1 %v5288_v52  ;;  %v14671_v46 = vpop.f32.mrf.mxu1  ;;  %v4960_v15 = vmul.f32 %v10890_v28, %v14669_v30  ;;  %v11829_v52 = vld [vmem:[%s18148_s11 + $0x2e0] sm:$0xff]  ;;  %v14691_v31 = vpop.xlane.xlu0 %5010  ;;  %v14698_v28 = vld [vmem:[%s18149_s12 + $0x378] sm:$0xff] }
 0x54f   :  { %18406 = vst [vmem:[#allocation114_spill] sm:$0xff] %v14671_v46  ;;  %v2892_v16 = vpop.f32.mrf.mxu0  ;;  %5301 = vadd.xlane.f32.xlu0 %v5300_v63  ;;  %v5297_v46 = vsel %vm3121_vm1, %v4957_v3, 0.0  ;;  %18408 = vst [vmem:[#allocation116_spill] sm:$0xff] %v14691_v31 }
 0x550   :  { %v4959_v23 = vmul.f32 %v14676_v60, %v2892_v16  ;;  %9406 = vmatmul.mubr.msk.f32.gmra.mxu1 %vm96_vm0, %v11829_v52  ;;  %v14686_v18 = vpop.f32.mrf.mxu1  ;;  %v11830_v52 = vld [vmem:[%s18148_s11 + $0x2e8] sm:$0xff] }
 0x551   :  { %18407 = vst [vmem:[#allocation115_spill] sm:$0xff] %v14686_v18  ;;  %v10893_v55 = vpop.f32.mrf.mxu0  ;;  %11040 = vmatmul.mubr.msk.f32.gmra.mxu0 %vm3121_vm1, %v14232_v33  ;;  %2075 = vmatprep.mubr.f32.mxu1 %v18324_v1 }
 0x552   :  { %11042 = vmatprep.mubr.msk.f32.mxu0 %vm3121_vm1, %v14273_v22  ;;  %5295 = vadd.xlane.f32.xlu1 %v5294_v13  ;;  %v14700_v3 = vpop.f32.mrf.mxu1  ;;  %v5303_v16 = vsel %vm3121_vm1, %v4959_v23, 0.0  ;;  %v4962_v33 = vmul.f32 %v10893_v55, %v14698_v28  ;;  %v5306_v22 = vsel %vm3121_vm1, %v4960_v15, 0.0 }
 0x553   :  { %18409 = vst [vmem:[#allocation117_spill] sm:$0xff] %v14700_v3  ;;  %v2902_v63 = vpop.f32.mrf.mxu0  ;;  %5298 = vadd.xlane.f32.xlu0 %v5297_v46  ;;  %v14714_v3 = vld [vmem:[%s18149_s12 + $0x388] sm:$0xff]  ;;  %v14725_v46 = vld [vmem:[%s18149_s12 + $0x370] sm:$0xff] }
 0x554   :  { %9407 = vmatmul.mubr.msk.f32.gmra.mxu1 %vm96_vm0, %v11830_v52  ;;  %v14709_v13 = vpop.f32.mrf.mxu1  ;;  %v14734_v52 = vpop.xlane.xlu0 %5019 }
 0x555   :  { %18410 = vst [vmem:[#allocation118_spill] sm:$0xff] %v14709_v13  ;;  %v10896_v18 = vpop.f32.mrf.mxu0  ;;  %11043 = vmatmul.mubr.msk.f32.gmra.mxu0 %vm3121_vm1, %v14244_v29  ;;  %2081 = vmatprep.mubr.f32.mxu1 %v18324_v1  ;;  %v14732_v29 = vld [vmem:[%s18149_s12 + $0x380] sm:$0xff] }
 0x556   :  { %v4964_v55 = vmul.f32 %v10896_v18, %v14714_v3  ;;  %11045 = vmatprep.mubr.msk.f32.mxu0 %vm3121_vm1, %v14302_v41  ;;  %5304 = vadd.xlane.f32.xlu1 %v5303_v16  ;;  %v14727_v15 = vpop.f32.mrf.mxu1  ;;  %v4961_v18 = vmul.f32 %v14725_v46, %v2902_v63  ;;  %v11831_v16 = vld [vmem:[%s18148_s11 + $0x2f0] sm:$0xff] }
 0x557   :  { %18411 = vst [vmem:[#allocation119_spill] sm:$0xff] %v14727_v15  ;;  %v2912_v23 = vpop.f32.mrf.mxu0  ;;  %5307 = vadd.xlane.f32.xlu0 %v5306_v22  ;;  %v5312_v15 = vsel %vm3121_vm1, %v4962_v33, 0.0 }
 0x558   :  { %v4963_v41 = vmul.f32 %v14732_v29, %v2912_v23  ;;  %9408 = vmatmul.mubr.msk.f32.gmra.mxu1 %vm96_vm0, %v11831_v16  ;;  %v5318_v13 = vsel %vm3121_vm1, %v4964_v55, 0.0  ;;  %v14744_v31 = vpop.f32.mrf.mxu1  ;;  %v11832_v55 = vld [vmem:[%s18148_s11 + $0x2f8] sm:$0xff]  ;;  %v14762_v23 = vld [vmem:[%s18149_s12 + $0x390] sm:$0xff] }
 0x559   :  { %18412 = vst [vmem:[#allocation120_spill] sm:$0xff] %v14744_v31  ;;  %v10899_v19 = vpop.f32.mrf.mxu0  ;;  %11046 = vmatmul.mubr.msk.f32.gmra.mxu0 %vm3121_vm1, %v14297_v10  ;;  %2087 = vmatprep.mubr.f32.mxu1 %v18324_v1  ;;  %v5309_v10 = vsel %vm3121_vm1, %v4961_v18, 0.0 }
 0x55a   :  { %11048 = vmatprep.mubr.msk.f32.mxu0 %vm3121_vm1, %v14343_v35  ;;  %5319 = vadd.xlane.f32.xlu1 %v5318_v13  ;;  %v14751_v63 = vpop.f32.mrf.mxu1  ;;  %v5315_v33 = vsel %vm3121_vm1, %v4963_v41, 0.0 }
 0x55b   :  { %18413 = vst [vmem:[#allocation121_spill] sm:$0xff] %v14751_v63  ;;  %v2922_v22 = vpop.f32.mrf.mxu0  ;;  %5313 = vadd.xlane.f32.xlu0 %v5312_v15  ;;  %v14769_v15 = vpop.xlane.xlu0 %5025 }
 0x55c   :  { %9409 = vmatmul.mubr.msk.f32.gmra.mxu1 %vm96_vm0, %v11832_v55  ;;  %v14764_v35 = vpop.f32.mrf.mxu1  ;;  %v4965_v41 = vmul.f32 %v14762_v23, %v2922_v22  ;;  %v11833_v55 = vld [vmem:[%s18148_s11 + $0x300] sm:$0xff] }
 0x55d   :  { %18414 = vst [vmem:[#allocation122_spill] sm:$0xff] %v14764_v35  ;;  %v10902_v13 = vpop.f32.mrf.mxu0  ;;  %11049 = vmatmul.mubr.msk.f32.gmra.mxu0 %vm3121_vm1, %v14322_v21  ;;  %2093 = vmatprep.mubr.f32.mxu1 %v18324_v1  ;;  %v14783_v21 = vld [vmem:[%s18149_s12 + $0x398] sm:$0xff] }
 0x55e   :  { %11051 = vmatprep.mubr.msk.f32.mxu0 %vm3121_vm1, %v14356_v12  ;;  %5316 = vadd.xlane.f32.xlu1 %v5315_v33  ;;  %v14774_v18 = vpop.f32.mrf.mxu1  ;;  %v14788_v12 = vld [vmem:[%s18149_s12 + $0x3a8] sm:$0xff]  ;;  %v5321_v63 = vsel %vm3121_vm1, %v4965_v41, 0.0 }
 0x55f   :  { %18415 = vst [vmem:[#allocation123_spill] sm:$0xff] %v14774_v18  ;;  %v2932_v16 = vpop.f32.mrf.mxu0  ;;  %5310 = vadd.xlane.f32.xlu0 %v5309_v10  ;;  %v4966_v10 = vmul.f32 %v10899_v19, %v14783_v21  ;;  %v14809_v19 = vld [vmem:[%s18149_s12 + $0x3a0] sm:$0xff] }
 0x560   :  { %9410 = vmatmul.mubr.msk.f32.gmra.mxu1 %vm96_vm0, %v11833_v55  ;;  %v14790_v22 = vpop.f32.mrf.mxu1  ;;  %v4968_v55 = vmul.f32 %v10902_v13, %v14788_v12  ;;  %v4967_v13 = vmul.f32 %v14809_v19, %v2932_v16 }
 0x561   :  { %18416 = vst [vmem:[#allocation124_spill] sm:$0xff] %v14790_v22  ;;  %v10905_v33 = vpop.f32.mrf.mxu0  ;;  %11052 = vmatmul.mubr.msk.f32.gmra.mxu0 %vm3121_vm1, %v14372_v20  ;;  %2099 = vmatprep.mubr.f32.mxu1 %v18324_v1  ;;  %v11834_v22 = vld [vmem:[%s18148_s11 + $0x308] sm:$0xff]  ;;  %v5324_v41 = vsel %vm3121_vm1, %v4966_v10, 0.0 }
 0x562   :  { %11054 = vmatprep.mubr.msk.f32.mxu0 %vm3121_vm1, %v14385_v8  ;;  %v14800_v18 = vpop.f32.mrf.mxu1  ;;  %5322 = vadd.xlane.f32.xlu1 %v5321_v63  ;;  %v14818_v63 = vpop.xlane.xlu0 %5022 }
 0x563   :  { %18417 = vst [vmem:[#allocation125_spill] sm:$0xff] %v14800_v18  ;;  %v2942_v31 = vpop.f32.mrf.mxu0  ;;  %5325 = vadd.xlane.f32.xlu0 %v5324_v41  ;;  %v11836_v41 = vld [vmem:[%s18148_s11 + $0x318] sm:$0xff] }
 0x564   :  { %9411 = vmatmul.mubr.msk.f32.gmra.mxu1 %vm96_vm0, %v11834_v22  ;;  %v14811_v20 = vpop.f32.mrf.mxu1  ;;  %v5330_v22 = vsel %vm3121_vm1, %v4968_v55, 0.0 }
 0x565   :  { %18418 = vst [vmem:[#allocation126_spill] sm:$0xff] %v14811_v20  ;;  %v14813_v8 = vpop.f32.mrf.mxu0  ;;  %11055 = vmatmul.mubr.msk.f32.gmra.mxu0 %vm3121_vm1, %v14406_v26  ;;  %2105 = vmatprep.mubr.f32.mxu1 %v18324_v1  ;;  %v11835_v26 = vld [vmem:[%s18148_s11 + $0x310] sm:$0xff] }
 0x566   :  { %11057 = vmatprep.mubr.msk.f32.mxu0 %vm3121_vm1, %v14421_v11  ;;  %v14825_v18 = vpop.f32.mrf.mxu1  ;;  %5331 = vadd.xlane.f32.xlu1 %v5330_v22  ;;  %v5327_v11 = vsel %vm3121_vm1, %v4967_v13, 0.0  ;;  %v14861_v13 = vpop.xlane.xlu0 %5037 }
 0x567   :  { %18419 = vst [vmem:[#allocation127_spill] sm:$0xff] %v14825_v18  ;;  %v2952_v20 = vpop.f32.mrf.mxu0  ;;  %18423 = vst [vmem:[#allocation131_spill] sm:$0xff] %v14861_v13 }
 0x568   :  { %9412 = vmatmul.mubr.msk.f32.gmra.mxu1 %vm96_vm0, %v11835_v26  ;;  %v14831_v35 = vpop.f32.mrf.mxu1 }
 0x569   :  { %18420 = vst [vmem:[#allocation128_spill] sm:$0xff] %v14831_v35  ;;  %v14833_v16 = vpop.f32.mrf.mxu0  ;;  %11058 = vmatmul.mubr.msk.f32.gmra.mxu0 %vm3121_vm1, %v14398_v7  ;;  %2111 = vmatprep.mubr.f32.mxu1 %v18324_v1  ;;  %v14852_v7 = vld [vmem:[%s18149_s12 + $0x3b0] sm:$0xff] }
 0x56a   :  { %11060 = vmatprep.mubr.msk.f32.mxu0 %vm3121_vm1, %v14451_v62  ;;  %v14841_v10 = vpop.f32.mrf.mxu1  ;;  %5328 = vadd.xlane.f32.xlu1 %v5327_v11  ;;  %v4969_v26 = vmul.f32 %v14852_v7, %v2942_v31 }
 0x56b   :  { %18421 = vst [vmem:[#allocation129_spill] sm:$0xff] %v14841_v10  ;;  %v14843_v55 = vpop.f32.mrf.mxu0  ;;  %v11837_v10 = vld [vmem:[%s18148_s11 + $0x320] sm:$0xff] }
 0x56c   :  { %9413 = vmatmul.mubr.msk.f32.gmra.mxu1 %vm96_vm0, %v11836_v41  ;;  %v14854_v22 = vpop.f32.mrf.mxu1 }
 0x56d   :  { %18422 = vst [vmem:[#allocation130_spill] sm:$0xff] %v14854_v22  ;;  %v14856_v62 = vpop.f32.mrf.mxu0  ;;  %11061 = vmatmul.mubr.msk.f32.gmra.mxu0 %vm3121_vm1, %v14438_v42  ;;  %2117 = vmatprep.mubr.f32.mxu1 %v18324_v1  ;;  %v14877_v42 = vld [vmem:[%s18149_s12 + $0x3b8] sm:$0xff] }
 0x56e   :  { %11063 = vmatprep.mubr.msk.f32.mxu0 %vm3121_vm1, %v14499_v17  ;;  %v14866_v11 = vpop.f32.mrf.mxu1  ;;  %v4970_v17 = vmul.f32 %v10905_v33, %v14877_v42  ;;  %v14903_v33 = vld [vmem:[%s18149_s12 + $0x3c0] sm:$0xff] }
 0x56f   :  { %18424 = vst [vmem:[#allocation132_spill] sm:$0xff] %v14866_v11  ;;  %v14868_v41 = vpop.f32.mrf.mxu0 }
 0x570   :  { %9414 = vmatmul.mubr.msk.f32.gmra.mxu1 %vm96_vm0, %v11837_v10  ;;  %v14879_v18 = vpop.f32.mrf.mxu1  ;;  %v5333_v10 = vsel %vm3121_vm1, %v4969_v26, 0.0 }
 0x571   :  { %18425 = vst [vmem:[#allocation133_spill] sm:$0xff] %v14879_v18  ;;  %v14881_v31 = vpop.f32.mrf.mxu0  ;;  %11064 = vmatmul.mubr.msk.f32.gmra.mxu0 %vm3121_vm1, %v14470_v57  ;;  %2123 = vmatprep.mubr.f32.mxu1 %v18324_v1  ;;  %v14894_v18 = vpop.xlane.xlu0 %5046  ;;  %v11838_v57 = vld [vmem:[%s18148_s11 + $0x328] sm:$0xff] }
 0x572   :  { %11066 = vmatprep.mubr.msk.f32.mxu0 %vm3121_vm1, %v14506_v58  ;;  %v14890_v11 = vpop.f32.mrf.mxu1  ;;  %5334 = vadd.xlane.f32.xlu0 %v5333_v10  ;;  %18427 = vst [vmem:[#allocation135_spill] sm:$0xff] %v14894_v18  ;;  %v14910_v10 = vpop.xlane.xlu1 %5040 }
 0x573   :  { %18426 = vst [vmem:[#allocation134_spill] sm:$0xff] %v14890_v11  ;;  %v14892_v35 = vpop.f32.mrf.mxu0  ;;  %18429 = vst [vmem:[#allocation137_spill] sm:$0xff] %v14910_v10  ;;  %v4971_v11 = vmul.f32 %v14903_v33, %v2952_v20 }
 0x574   :  { %9415 = vmatmul.mubr.msk.f32.gmra.mxu1 %vm96_vm0, %v11838_v57  ;;  %v14905_v58 = vpop.f32.mrf.mxu1  ;;  %v5336_v57 = vsel %vm3121_vm1, %v4970_v17, 0.0 }
 0x575   :  { %18428 = vst [vmem:[#allocation136_spill] sm:$0xff] %v14905_v58  ;;  %v10924_v26 = vpop.f32.mrf.mxu0  ;;  %11067 = vmatmul.mubr.msk.f32.gmra.mxu0 %vm3121_vm1, %v14488_v50  ;;  %2129 = vmatprep.mubr.f32.mxu1 %v18324_v1  ;;  %v14922_v50 = vld [vmem:[%s18149_s12 + $0x3c8] sm:$0xff] }
 0x576   :  { %v4212_v22 = vmul.f32 %v10924_v26, %v13502_v51  ;;  %11069 = vmatprep.mubr.msk.f32.mxu0 %vm3121_vm1, %v14536_v53  ;;  %v14917_v18 = vpop.f32.mrf.mxu1  ;;  %5337 = vadd.xlane.f32.xlu1 %v5336_v57  ;;  %v11839_v51 = vld [vmem:[%s18148_s11 + $0x330] sm:$0xff]  ;;  %v4972_v53 = vmul.f32 %v14813_v8, %v14922_v50  ;;  %v5339_v8 = vsel %vm3121_vm1, %v4971_v11, 0.0 }
 0x577   :  { %18430 = vst [vmem:[#allocation138_spill] sm:$0xff] %v14917_v18  ;;  %v3572_v58 = vpop.f32.mrf.mxu0  ;;  %5340 = vadd.xlane.f32.xlu0 %v5339_v8  ;;  %v14954_v18 = vld [vmem:[%s18149_s12 + $0x3d0] sm:$0xff] }
 0x578   :  { %v4341_v13 = vmul.f32 1.442695, %v4212_v22  ;;  %v4211_v10 = vmul.f32 %v3572_v58, %v13473_v36  ;;  %9416 = vmatmul.mubr.msk.f32.gmra.mxu1 %vm96_vm0, %v11839_v51  ;;  %v14931_v20 = vpop.f32.mrf.mxu1  ;;  %v14936_v22 = vpop.xlane.xlu0 %5052  ;;  %v14941_v36 = vld [vmem:[%s18149_s12 + $0x3d8] sm:$0xff] }
 0x579   :  { %v10927_v17 = vpop.f32.mrf.mxu0  ;;  %11070 = vmatmul.mubr.msk.f32.gmra.mxu0 %vm3121_vm1, %v14526_v39  ;;  %2135 = vmatprep.mubr.f32.mxu1 %v18324_v1  ;;  %v4974_v39 = vmul.f32 %v14833_v16, %v14941_v36  ;;  %v4973_v16 = vmul.f32 %v14954_v18, %v14843_v55 }
 0x57a   :  { %11479 = vpow2.f32 %v4341_v13  ;;  %v4339_v58 = vmul.f32 1.442695, %v4211_v10  ;;  %v4214_v26 = vmul.f32 %v10927_v17, %v13566_v34  ;;  %11072 = vmatprep.mubr.msk.f32.mxu0 %vm3121_vm1, %v14576_v49  ;;  %v14949_v57 = vpop.f32.mrf.mxu1  ;;  %v11840_v49 = vld [vmem:[%s18148_s11 + $0x338] sm:$0xff]  ;;  %v14968_v17 = vpop.xlane.xlu1 %5049 }
 0x57b   :  { %18431 = vst [vmem:[#allocation139_spill] sm:$0xff] %v14949_v57  ;;  %v3582_v51 = vpop.f32.mrf.mxu0 }
 0x57c   :  { %11481 = vpow2.f32 %v4339_v58  ;;  %v4345_v13 = vmul.f32 1.442695, %v4214_v26  ;;  %v4213_v34 = vmul.f32 %v3582_v51, %v13536_v38  ;;  %9417 = vmatmul.mubr.msk.f32.gmra.mxu1 %vm96_vm0, %v11840_v49  ;;  %v14963_v11 = vpop.f32.mrf.mxu1  ;;  %v5342_v26 = vsel %vm3121_vm1, %v4972_v53, 0.0 }
 0x57d   :  { %v10930_v10 = vpop.f32.mrf.mxu0  ;;  %11073 = vmatmul.mubr.msk.f32.gmra.mxu0 %vm3121_vm1, %v14553_v2  ;;  %2141 = vmatprep.mubr.f32.mxu1 %v18324_v1  ;;  %v5348_v51 = vsel %vm3121_vm1, %v4974_v39, 0.0  ;;  %v14977_v2 = vpop.xlane.xlu0 %5061 }
 0x57e   :  { %11483 = vpow2.f32 %v4345_v13  ;;  %v4343_v38 = vmul.f32 1.442695, %v4213_v34  ;;  %v4216_v58 = vmul.f32 %v10930_v10, %v13610_v43  ;;  %11075 = vmatprep.mubr.msk.f32.mxu0 %vm3121_vm1, %v14586_v61  ;;  %v14974_v55 = vpop.f32.mrf.mxu1  ;;  %5343 = vadd.xlane.f32.xlu1 %v5342_v26  ;;  %v11841_v43 = vld [vmem:[%s18148_s11 + $0x340] sm:$0xff] }
 0x57f   :  { %v3592_v8 = vpop.f32.mrf.mxu0  ;;  %5349 = vadd.xlane.f32.xlu0 %v5348_v51 }
 0x580   :  { %11485 = vpow2.f32 %v4343_v38  ;;  %v4349_v49 = vmul.f32 1.442695, %v4216_v58  ;;  %v4215_v13 = vmul.f32 %v3592_v8, %v13587_v56  ;;  %9418 = vmatmul.mubr.msk.f32.gmra.mxu1 %vm96_vm0, %v11841_v43  ;;  %v14984_v61 = vpop.f32.mrf.mxu1  ;;  %v5345_v56 = vsel %vm3121_vm1, %v4973_v16, 0.0 }
 0x581   :  { %v10933_v53 = vpop.f32.mrf.mxu0  ;;  %11076 = vmatmul.mubr.msk.f32.gmra.mxu0 %vm3121_vm1, %v14604_v0  ;;  %2147 = vmatprep.mubr.f32.mxu1 %v18324_v1  ;;  %v11842_v0 = vld [vmem:[%s18148_s11 + $0x348] sm:$0xff]  ;;  %v15012_v8 = vpop.xlane.xlu0 %5058 }
 0x582   :  { %11487 = vpow2.f32 %v4349_v49  ;;  %v4347_v39 = vmul.f32 1.442695, %v4215_v13  ;;  %v4218_v34 = vmul.f32 %v10933_v53, %v13666_v25  ;;  %11078 = vmatprep.mubr.msk.f32.mxu0 %vm3121_vm1, %v14615_v6  ;;  %v14993_v10 = vpop.f32.mrf.mxu1  ;;  %v15003_v25 = vld [vmem:[%s18149_s12 + $0x3e0] sm:$0xff] }
 0x583   :  { %18432 = vst [vmem:[#allocation140_spill] sm:$0xff] %v14993_v10  ;;  %v3602_v38 = vpop.f32.mrf.mxu0  ;;  %5346 = vadd.xlane.f32.xlu0 %v5345_v56  ;;  %v4975_v51 = vmul.f32 %v15003_v25, %v14868_v41 }
 0x584   :  { %11489 = vpow2.f32 %v4347_v39  ;;  %v4353_v58 = vmul.f32 1.442695, %v4218_v34  ;;  %v4217_v26 = vmul.f32 %v3602_v38, %v13641_v27  ;;  %9419 = vmatmul.mubr.msk.f32.gmra.mxu1 %vm96_vm0, %v11842_v0  ;;  %v15005_v6 = vpop.f32.mrf.mxu1  ;;  %v15010_v27 = vpop.xlane.xlu1 %5055  ;;  %v5364_v39 = vmul.f32 %v14120_v44, %v13514_v45  ;;  %v15026_v34 = vld [vmem:[%s18149_s12 + $0x3e8] sm:$0xff] }
 0x585   :  { %v10936_v16 = vpop.f32.mrf.mxu0  ;;  %11079 = vmatmul.mubr.msk.f32.gmra.mxu0 %vm3121_vm1, %v14636_v9  ;;  %2153 = vmatprep.mubr.f32.mxu1 %v18324_v1  ;;  %v4976_v38 = vmul.f32 %v14856_v62, %v15026_v34 }
 0x586   :  { %11491 = vpow2.f32 %v4353_v58  ;;  %v4351_v49 = vmul.f32 1.442695, %v4217_v26  ;;  %v4220_v13 = vmul.f32 %v10936_v16, %v13710_v14  ;;  %11081 = vmatprep.mubr.msk.f32.mxu0 %vm3121_vm1, %v14648_v24  ;;  %v15019_v53 = vpop.f32.mrf.mxu1  ;;  %v11843_v14 = vld [vmem:[%s18148_s11 + $0x350] sm:$0xff]  ;;  %v15043_v26 = vld [vmem:[%s18149_s12 + $0x3f8] sm:$0xff] }
 0x587   :  { %v11480_v43 = vpop.eup %11479  ;;  %18433 = vst [vmem:[#allocation141_spill] sm:$0xff] %v15019_v53  ;;  %v3612_v9 = vpop.f32.mrf.mxu0  ;;  %v18452_v53 = vld [vmem:[#allocation48_spill] sm:$0xff] }
 0x588   :  { %v5628_v41 = vmul.f32 0.0, %v11480_v43  ;;  %11493 = vpow2.f32 %v4351_v49  ;;  %v4357_v56 = vmul.f32 1.442695, %v4220_v13  ;;  %9420 = vmatmul.mubr.msk.f32.gmra.mxu1 %vm96_vm0, %v11843_v14  ;;  %v4219_v45 = vmul.f32 %v3612_v9, %v13685_v37  ;;  %v15035_v44 = vpop.f32.mrf.mxu1  ;;  %v15057_v14 = vpop.xlane.xlu1 %5067 }
 0x589   :  { %v11482_v24 = vpop.eup %11481  ;;  %v10939_v58 = vpop.f32.mrf.mxu0  ;;  %11082 = vmatmul.mubr.msk.f32.gmra.mxu0 %vm3121_vm1, %v14628_v5  ;;  %2159 = vmatprep.mubr.f32.mxu1 %v18324_v1  ;;  %v5351_v37 = vsel %vm3121_vm1, %v4975_v51, 0.0  ;;  %v18435_v5 = vld [vmem:[#allocation68_spill] sm:$0xff]  ;;  %v4978_v13 = vmul.f32 %v14881_v31, %v15043_v26  ;;  %v15064_v51 = vld [vmem:[%s18149_s12 + $0x3f0] sm:$0xff]  ;;  %v11844_v31 = vld [vmem:[%s18148_s11 + $0x358] sm:$0xff] }
 0x58a   :  { %11495 = vpow2.f32 %v4357_v56  ;;  %v4222_v0 = vmul.f32 %v10939_v58, %v13761_v48  ;;  %11084 = vmatprep.mubr.msk.f32.mxu0 %vm3121_vm1, %v14676_v60  ;;  %v15049_v62 = vadd.f32 %v5628_v41, %v5364_v39  ;;  %v5363_v49 = vmul.f32 %v18435_v5, %v13485_v4  ;;  %v15055_v9 = vpop.f32.mrf.mxu1  ;;  %5352 = vadd.xlane.f32.xlu0 %v5351_v37  ;;  %v15059_v60 = vpop.xlane.xlu0 %5064  ;;  %v18437_v41 = vld [vmem:[#allocation41_spill] sm:$0xff] }
 0x58b   :  { %v11484_v16 = vpop.eup %11483  ;;  %v4355_v43 = vmul.f32 1.442695, %v4219_v45  ;;  %18436 = vst [vmem:[#allocation68_spill] sm:$0xff] %v15055_v9  ;;  %v3622_v56 = vpop.f32.mrf.mxu0  ;;  %v5627_v48 = vmul.f32 0.0, %v11482_v24  ;;  %v18438_v45 = vld [vmem:[#allocation34_spill] sm:$0xff]  ;;  %v4977_v5 = vmul.f32 %v15064_v51, %v14892_v35 }
 0x58c   :  { %18434 = vst [vmem:[#allocation142_spill] sm:$0xff] %v15049_v62  ;;  %v5630_v39 = vmul.f32 0.0, %v11484_v16  ;;  %v4361_v4 = vmul.f32 1.442695, %v4222_v0  ;;  %v4221_v58 = vmul.f32 %v3622_v56, %v18437_v41  ;;  %9421 = vmatmul.mubr.msk.f32.gmra.mxu1 %vm96_vm0, %v11844_v31  ;;  %v5366_v37 = vmul.f32 %v14183_v59, %v18438_v45  ;;  %v15075_v9 = vpop.f32.mrf.mxu1  ;;  %v18440_v41 = vld [vmem:[#allocation46_spill] sm:$0xff] }
 0x58d   :  { %v11486_v24 = vpop.eup %11485  ;;  %11497 = vpow2.f32 %v4355_v43  ;;  %v10942_v16 = vpop.f32.mrf.mxu0  ;;  %11085 = vmatmul.mubr.msk.f32.gmra.mxu0 %vm3121_vm1, %v14669_v30  ;;  %2165 = vmatprep.mubr.f32.mxu1 %v18324_v1  ;;  %v15080_v0 = vadd.f32 %v5627_v48, %v5363_v49  ;;  %v5354_v59 = vsel %vm3121_vm1, %v4976_v38, 0.0  ;;  %v18441_v43 = vld [vmem:[#allocation33_spill] sm:$0xff]  ;;  %v5360_v49 = vsel %vm3121_vm1, %v4978_v13, 0.0  ;;  %v11845_v38 = vld [vmem:[%s18148_s11 + $0x360] sm:$0xff] }
 0x58e   :  { %11499 = vpow2.f32 %v4361_v4  ;;  %v4359_v56 = vmul.f32 1.442695, %v4221_v58  ;;  %v4224_v31 = vmul.f32 %v10942_v16, %v18440_v41  ;;  %11087 = vmatprep.mubr.msk.f32.mxu0 %vm3121_vm1, %v14725_v46  ;;  %v5365_v45 = vmul.f32 %v14475_v40, %v18441_v43  ;;  %v15088_v10 = vpop.f32.mrf.mxu1  ;;  %5355 = vadd.xlane.f32.xlu1 %v5354_v59  ;;  %v18444_v58 = vld [vmem:[#allocation36_spill] sm:$0xff] }
 0x58f   :  { %18439 = vst [vmem:[#allocation41_spill] sm:$0xff] %v15080_v0  ;;  %v11488_v35 = vpop.eup %11487  ;;  %18442 = vst [vmem:[#allocation34_spill] sm:$0xff] %v15088_v10  ;;  %v3632_v30 = vpop.f32.mrf.mxu0  ;;  %v15091_v48 = vadd.f32 %v5630_v39, %v5366_v37  ;;  %v5629_v4 = vmul.f32 0.0, %v11486_v24  ;;  %v5368_v16 = vmul.f32 %v14521_v32, %v18444_v58  ;;  %5361 = vadd.xlane.f32.xlu0 %v5360_v49  ;;  %v18445_v59 = vld [vmem:[#allocation44_spill] sm:$0xff]  ;;  %v18449_v58 = vld [vmem:[#allocation35_spill] sm:$0xff] }
 0x590   :  { %v5632_v41 = vmul.f32 0.0, %v11488_v35  ;;  %11501 = vpow2.f32 %v4359_v56  ;;  %v4365_v46 = vmul.f32 1.442695, %v4224_v31  ;;  %9422 = vmatmul.mubr.msk.f32.gmra.mxu1 %vm96_vm0, %v11845_v38  ;;  %v4223_v43 = vmul.f32 %v3632_v30, %v18445_v59  ;;  %v15100_v13 = vpop.f32.mrf.mxu1  ;;  %v15107_v24 = vpop.xlane.xlu1 %5079  ;;  %v18447_v56 = vld [vmem:[#allocation50_spill] sm:$0xff] }
 0x591   :  { %18443 = vst [vmem:[#allocation46_spill] sm:$0xff] %v15091_v48  ;;  %v11490_v40 = vpop.eup %11489  ;;  %v10945_v39 = vpop.f32.mrf.mxu0  ;;  %2171 = vmatprep.mubr.f32.mxu1 %v18324_v1  ;;  %11088 = vmatmul.mubr.msk.f32.gmra.mxu0 %vm3121_vm1, %v14698_v28  ;;  %v15105_v32 = vadd.f32 %v5629_v4, %v5365_v45  ;;  %v5357_v35 = vsel %vm3121_vm1, %v4977_v5, 0.0  ;;  %v5367_v28 = vmul.f32 %v14213_v47, %v18449_v58  ;;  %v18451_v10 = vld [vmem:[#allocation38_spill] sm:$0xff]  ;;  %v11846_v5 = vld [vmem:[%s18148_s11 + $0x368] sm:$0xff] }
 0x592   :  { %v15109_v37 = vpop.xlane.xlu0 %5073  ;;  %11503 = vpow2.f32 %v4365_v46  ;;  %v4226_v31 = vmul.f32 %v10945_v39, %v18447_v56  ;;  %11090 = vmatprep.mubr.msk.f32.mxu0 %vm3121_vm1, %v14732_v29  ;;  %v15115_v30 = vadd.f32 %v5632_v41, %v5368_v16  ;;  %v4363_v45 = vmul.f32 1.442695, %v4223_v43  ;;  %v15119_v4 = vpop.f32.mrf.mxu1 }
 0x593   :  { %18446 = vst [vmem:[#allocation33_spill] sm:$0xff] %v15105_v32  ;;  %v11492_v49 = vpop.eup %11491  ;;  %18450 = vst [vmem:[#allocation44_spill] sm:$0xff] %v15119_v4  ;;  %v3642_v38 = vpop.f32.mrf.mxu0  ;;  %v5631_v59 = vmul.f32 0.0, %v11490_v40  ;;  %v5370_v46 = vmul.f32 %v14561_v54, %v18451_v10  ;;  %5358 = vadd.xlane.f32.xlu0 %v5357_v35  ;;  %v18456_v35 = vld [vmem:[#allocation37_spill] sm:$0xff] }
 0x594   :  { %18448 = vst [vmem:[#allocation36_spill] sm:$0xff] %v15115_v30  ;;  %v5634_v39 = vmul.f32 0.0, %v11492_v49  ;;  %v4369_v56 = vmul.f32 1.442695, %v4226_v31  ;;  %v4225_v29 = vmul.f32 %v3642_v38, %v18452_v53  ;;  %9423 = vmatmul.mubr.msk.f32.gmra.mxu1 %vm96_vm0, %v11846_v5  ;;  %11505 = vpow2.f32 %v4363_v45  ;;  %v15128_v16 = vpop.f32.mrf.mxu1  ;;  %v18454_v53 = vld [vmem:[#allocation54_spill] sm:$0xff]  ;;  %v18457_v49 = vld [vmem:[#allocation76_spill] sm:$0xff] }
 0x595   :  { %v11494_v47 = vpop.eup %11493  ;;  %v10948_v41 = vpop.f32.mrf.mxu0  ;;  %2177 = vmatprep.mubr.f32.mxu1 %v18324_v1  ;;  %11091 = vmatmul.mubr.msk.f32.gmra.mxu0 %vm3121_vm1, %v14714_v3  ;;  %v15133_v54 = vadd.f32 %v5631_v59, %v5367_v28  ;;  %v5369_v58 = vmul.f32 %v18457_v49, %v18456_v35 }
 0x596   :  { %11507 = vpow2.f32 %v4369_v56  ;;  %v4367_v10 = vmul.f32 1.442695, %v4225_v29  ;;  %v4228_v40 = vmul.f32 %v10948_v41, %v18454_v53  ;;  %11093 = vmatprep.mubr.msk.f32.mxu0 %vm3121_vm1, %v14762_v23  ;;  %v15138_v43 = vadd.f32 %v5634_v39, %v5370_v46  ;;  %v15142_v45 = vpop.f32.mrf.mxu1  ;;  %v15144_v3 = vpop.xlane.xlu1 %5076  ;;  %v18459_v56 = vld [vmem:[#allocation52_spill] sm:$0xff]  ;;  %v11847_v23 = vld [vmem:[%s18148_s11 + $0x370] sm:$0xff] }
 0x597   :  { %18453 = vst [vmem:[#allocation50_spill] sm:$0xff] %v15133_v54  ;;  %v11496_v31 = vpop.eup %11495  ;;  %18458 = vst [vmem:[#allocation38_spill] sm:$0xff] %v15142_v45  ;;  %v3652_v38 = vpop.f32.mrf.mxu0  ;;  %v5633_v5 = vmul.f32 0.0, %v11494_v47  ;;  %v18460_v46 = vld [vmem:[#allocation40_spill] sm:$0xff] }
 0x598   :  { %18455 = vst [vmem:[#allocation35_spill] sm:$0xff] %v15138_v43  ;;  %v15146_v28 = vpop.xlane.xlu0 %5070  ;;  %11509 = vpow2.f32 %v4367_v10  ;;  %v4373_v59 = vmul.f32 1.442695, %v4228_v40  ;;  %v4227_v29 = vmul.f32 %v3652_v38, %v18459_v56  ;;  %9424 = vmatmul.mubr.msk.f32.gmra.mxu1 %vm96_vm0, %v11847_v23  ;;  %v18461_v39 = vld [vmem:[#allocation80_spill] sm:$0xff]  ;;  %v15155_v53 = vpop.f32.mrf.mxu1  ;;  %v5668_v40 = vmul.f32 %v11496_v31, %v15049_v62 }
 0x599   :  { %v5372_v41 = vmul.f32 %v18461_v39, %v18460_v46  ;;  %v10951_v47 = vpop.f32.mrf.mxu0  ;;  %2183 = vmatprep.mubr.f32.mxu1 %v18324_v1  ;;  %11094 = vmatmul.mubr.msk.f32.gmra.mxu0 %vm3121_vm1, %v14783_v21  ;;  %v15160_v10 = vadd.f32 %v5633_v5, %v5369_v58  ;;  %v18463_v38 = vld [vmem:[#allocation56_spill] sm:$0xff]  ;;  %v18464_v46 = vld [vmem:[#allocation39_spill] sm:$0xff] }
 0x59a   :  { %v11498_v35 = vpop.eup %11497  ;;  %11511 = vpow2.f32 %v4373_v59  ;;  %v4371_v49 = vmul.f32 1.442695, %v4227_v29  ;;  %v4230_v56 = vmul.f32 %v10951_v47, %v18463_v38  ;;  %11096 = vmatprep.mubr.msk.f32.mxu0 %vm3121_vm1, %v14809_v19  ;;  %v18465_v39 = vld [vmem:[#allocation108_spill] sm:$0xff]  ;;  %v15168_v45 = vpop.f32.mrf.mxu1  ;;  %v18468_v5 = vld [vmem:[#allocation55_spill] sm:$0xff] }
 0x59b   :  { %18462 = vst [vmem:[#allocation48_spill] sm:$0xff] %v15160_v10  ;;  %v11500_v23 = vpop.eup %11499  ;;  %v5371_v4 = vmul.f32 %v18465_v39, %v18464_v46  ;;  %18466 = vst [vmem:[#allocation54_spill] sm:$0xff] %v15168_v45  ;;  %v3662_v57 = vpop.f32.mrf.mxu0  ;;  %v15170_v21 = vadd.f32 %v5668_v40, %v5372_v41  ;;  %v5667_v58 = vmul.f32 %v11498_v35, %v15080_v0  ;;  %v11848_v29 = vld [vmem:[%s18148_s11 + $0x378] sm:$0xff]  ;;  %v18470_v38 = vld [vmem:[#allocation112_spill] sm:$0xff] }
 0x59c   :  { %11513 = vpow2.f32 %v4371_v49  ;;  %v4377_v31 = vmul.f32 1.442695, %v4230_v56  ;;  %v4229_v59 = vmul.f32 %v3662_v57, %v18468_v5  ;;  %9425 = vmatmul.mubr.msk.f32.gmra.mxu1 %vm96_vm0, %v11848_v29  ;;  %v18469_v47 = vld [vmem:[#allocation43_spill] sm:$0xff]  ;;  %v15180_v39 = vpop.f32.mrf.mxu1  ;;  %v5670_v57 = vmul.f32 %v11500_v23, %v15091_v48  ;;  %v15188_v35 = vpop.xlane.xlu1 %5085  ;;  %v18472_v5 = vld [vmem:[#allocation60_spill] sm:$0xff]  ;;  %v18473_v0 = vld [vmem:[#allocation42_spill] sm:$0xff] }
 0x59d   :  { %18467 = vst [vmem:[#allocation37_spill] sm:$0xff] %v15170_v21  ;;  %v11502_v19 = vpop.eup %11501  ;;  %v5374_v46 = vmul.f32 %v18470_v38, %v18469_v47  ;;  %v10954_v41 = vpop.f32.mrf.mxu0  ;;  %2189 = vmatprep.mubr.f32.mxu1 %v18324_v1  ;;  %11097 = vmatmul.mubr.msk.f32.gmra.mxu0 %vm3121_vm1, %v14788_v12  ;;  %v15186_v40 = vadd.f32 %v5667_v58, %v5371_v4  ;;  %v18474_v12 = vld [vmem:[#allocation116_spill] sm:$0xff] }
 0x59e   :  { %v15190_v49 = vpop.xlane.xlu0 %5082  ;;  %11515 = vpow2.f32 %v4377_v31  ;;  %v4375_v56 = vmul.f32 1.442695, %v4229_v59  ;;  %v4232_v29 = vmul.f32 %v10954_v41, %v18472_v5  ;;  %11099 = vmatprep.mubr.msk.f32.mxu0 %vm3121_vm1, %v14852_v7  ;;  %v5669_v47 = vmul.f32 %v11502_v19, %v15105_v32  ;;  %v15198_v23 = vpop.f32.mrf.mxu1  ;;  %v18477_v31 = vld [vmem:[#allocation58_spill] sm:$0xff]  ;;  %v11849_v41 = vld [vmem:[%s18148_s11 + $0x380] sm:$0xff]  ;;  %v18478_v7 = vld [vmem:[#allocation47_spill] sm:$0xff] }
 0x59f   :  { %18471 = vst [vmem:[#allocation76_spill] sm:$0xff] %v15186_v40  ;;  %v11504_v38 = vpop.eup %11503  ;;  %v5373_v62 = vmul.f32 %v18474_v12, %v18473_v0  ;;  %18475 = vst [vmem:[#allocation52_spill] sm:$0xff] %v15198_v23  ;;  %v3672_v4 = vpop.f32.mrf.mxu0  ;;  %v15200_v58 = vadd.f32 %v5670_v57, %v5374_v46  ;;  %v5376_v19 = vmul.f32 %v14734_v52, %v18478_v7  ;;  %v18480_v12 = vld [vmem:[#allocation63_spill] sm:$0xff] }
 0x5a0   :  { %11517 = vpow2.f32 %v4375_v56  ;;  %v4381_v48 = vmul.f32 1.442695, %v4232_v29  ;;  %v4231_v59 = vmul.f32 %v3672_v4, %v18477_v31  ;;  %9426 = vmatmul.mubr.msk.f32.gmra.mxu1 %vm96_vm0, %v11849_v41  ;;  %v15209_v5 = vpop.f32.mrf.mxu1  ;;  %v5672_v57 = vmul.f32 %v11504_v38, %v15115_v30  ;;  %v18481_v31 = vld [vmem:[#allocation45_spill] sm:$0xff]  ;;  %v18482_v41 = vld [vmem:[#allocation83_spill] sm:$0xff] }
 0x5a1   :  { %18476 = vst [vmem:[#allocation40_spill] sm:$0xff] %v15200_v58  ;;  %v10957_v0 = vpop.f32.mrf.mxu0  ;;  %2195 = vmatprep.mubr.f32.mxu1 %v18324_v1  ;;  %11100 = vmatmul.mubr.msk.f32.gmra.mxu0 %vm3121_vm1, %v14877_v42  ;;  %v15214_v46 = vadd.f32 %v5669_v47, %v5373_v62  ;;  %v11506_v56 = vpop.eup %11505  ;;  %v5375_v7 = vmul.f32 %v18482_v41, %v18481_v31  ;;  %v18486_v31 = vld [vmem:[#allocation51_spill] sm:$0xff] }
 0x5a2   :  { %11519 = vpow2.f32 %v4381_v48  ;;  %v4379_v29 = vmul.f32 1.442695, %v4231_v59  ;;  %v4234_v4 = vmul.f32 %v10957_v0, %v18480_v12  ;;  %11102 = vmatprep.mubr.msk.f32.mxu0 %vm3121_vm1, %v14903_v33  ;;  %v15222_v32 = vpop.f32.mrf.mxu1  ;;  %v15224_v42 = vadd.f32 %v5672_v57, %v5376_v19  ;;  %v15227_v47 = vpop.xlane.xlu1 %5091  ;;  %v18485_v59 = vld [vmem:[#allocation61_spill] sm:$0xff]  ;;  %v18488_v41 = vld [vmem:[#allocation67_spill] sm:$0xff] }
 0x5a3   :  { %18479 = vst [vmem:[#allocation80_spill] sm:$0xff] %v15214_v46  ;;  %v11508_v52 = vpop.eup %11507  ;;  %18483 = vst [vmem:[#allocation56_spill] sm:$0xff] %v15222_v32  ;;  %v3682_v45 = vpop.f32.mrf.mxu0  ;;  %v5671_v62 = vmul.f32 %v11506_v56, %v15133_v54  ;;  %v11850_v33 = vld [vmem:[%s18148_s11 + $0x388] sm:$0xff]  ;;  %v5378_v19 = vmul.f32 %v14769_v15, %v18486_v31  ;;  %v18515_v23 = vld [vmem:[#allocation95_spill] sm:$0xff] }
 0x5a4   :  { %18484 = vst [vmem:[#allocation39_spill] sm:$0xff] %v15224_v42  ;;  %v15229_v48 = vpop.xlane.xlu0 %5094  ;;  %11521 = vpow2.f32 %v4379_v29  ;;  %v4385_v38 = vmul.f32 1.442695, %v4234_v4  ;;  %v4233_v0 = vmul.f32 %v3682_v45, %v18485_v59  ;;  %9427 = vmatmul.mubr.msk.f32.gmra.mxu1 %vm96_vm0, %v11850_v33  ;;  %v15238_v57 = vpop.f32.mrf.mxu1  ;;  %v5674_v45 = vmul.f32 %v11508_v52, %v15138_v43  ;;  %v18489_v31 = vld [vmem:[#allocation49_spill] sm:$0xff] }
 0x5a5   :  { %v11510_v12 = vpop.eup %11509  ;;  %v10960_v56 = vpop.f32.mrf.mxu0  ;;  %2201 = vmatprep.mubr.f32.mxu1 %v18324_v1  ;;  %11103 = vmatmul.mubr.msk.f32.gmra.mxu0 %vm3121_vm1, %v14922_v50  ;;  %v15244_v29 = vadd.f32 %v5671_v62, %v5375_v7  ;;  %v5377_v54 = vmul.f32 %v14818_v63, %v18489_v31  ;;  %v18492_v7 = vld [vmem:[#allocation65_spill] sm:$0xff] }
 0x5a6   :  { %11523 = vpow2.f32 %v4385_v38  ;;  %v4383_v4 = vmul.f32 1.442695, %v4233_v0  ;;  %v4236_v59 = vmul.f32 %v10960_v56, %v18488_v41  ;;  %11105 = vmatprep.mubr.msk.f32.mxu0 %vm3121_vm1, %v14954_v18  ;;  %v5673_v15 = vmul.f32 %v11510_v12, %v15160_v10  ;;  %v15252_v30 = vpop.f32.mrf.mxu1  ;;  %v11851_v38 = vld [vmem:[%s18148_s11 + $0x390] sm:$0xff]  ;;  %v15269_v56 = vpop.xlane.xlu1 %5088  ;;  %v18494_v41 = vld [vmem:[#allocation72_spill] sm:$0xff] }
 0x5a7   :  { %18487 = vst [vmem:[#allocation108_spill] sm:$0xff] %v15244_v29  ;;  %v11512_v33 = vpop.eup %11511  ;;  %18490 = vst [vmem:[#allocation55_spill] sm:$0xff] %v15252_v30  ;;  %v3692_v50 = vpop.f32.mrf.mxu0  ;;  %v15254_v32 = vadd.f32 %v5674_v45, %v5378_v19 }
 0x5a8   :  { %11525 = vpow2.f32 %v4383_v4  ;;  %v4389_v52 = vmul.f32 1.442695, %v4236_v59  ;;  %v4235_v62 = vmul.f32 %v3692_v50, %v18492_v7  ;;  %9428 = vmatmul.mubr.msk.f32.gmra.mxu1 %vm96_vm0, %v11851_v38  ;;  %v15261_v0 = vpop.f32.mrf.mxu1  ;;  %v5708_v63 = vmul.f32 %v11512_v33, %v15170_v21  ;;  %v15271_v45 = vpop.xlane.xlu0 %5100  ;;  %v18495_v7 = vld [vmem:[#allocation53_spill] sm:$0xff] }
 0x5a9   :  { %18491 = vst [vmem:[#allocation43_spill] sm:$0xff] %v15254_v32  ;;  %v11514_v18 = vpop.eup %11513  ;;  %v10963_v12 = vpop.f32.mrf.mxu0  ;;  %2207 = vmatprep.mubr.f32.mxu1 %v18324_v1  ;;  %11106 = vmatmul.mubr.msk.f32.gmra.mxu0 %vm3121_vm1, %v14941_v36  ;;  %v15267_v19 = vadd.f32 %v5673_v15, %v5377_v54  ;;  %v18496_v36 = vld [vmem:[#allocation89_spill] sm:$0xff]  ;;  %v18498_v15 = vld [vmem:[#allocation86_spill] sm:$0xff] }
 0x5aa   :  { %11527 = vpow2.f32 %v4389_v52  ;;  %v4387_v4 = vmul.f32 1.442695, %v4235_v62  ;;  %v4238_v59 = vmul.f32 %v10963_v12, %v18494_v41  ;;  %11108 = vmatprep.mubr.msk.f32.mxu0 %vm3121_vm1, %v15003_v25  ;;  %v5707_v31 = vmul.f32 %v11514_v18, %v15186_v40  ;;  %v15279_v33 = vpop.f32.mrf.mxu1  ;;  %v18500_v62 = vld [vmem:[#allocation70_spill] sm:$0xff]  ;;  %v11852_v25 = vld [vmem:[%s18148_s11 + $0x398] sm:$0xff]  ;;  %v18501_v12 = vld [vmem:[#allocation57_spill] sm:$0xff] }
 0x5ab   :  { %18493 = vst [vmem:[#allocation112_spill] sm:$0xff] %v15267_v19  ;;  %v11516_v50 = vpop.eup %11515  ;;  %v5379_v38 = vmul.f32 %v18496_v36, %v18495_v7  ;;  %18497 = vst [vmem:[#allocation60_spill] sm:$0xff] %v15279_v33  ;;  %v3702_v54 = vpop.f32.mrf.mxu0  ;;  %v15282_v10 = vadd.f32 %v5708_v63, %v18498_v15  ;;  %v18502_v41 = vld [vmem:[#allocation131_spill] sm:$0xff] }
 0x5ac   :  { %11529 = vpow2.f32 %v4387_v4  ;;  %v4393_v52 = vmul.f32 1.442695, %v4238_v59  ;;  %v4237_v43 = vmul.f32 %v3702_v54, %v18500_v62  ;;  %9429 = vmatmul.mubr.msk.f32.gmra.mxu1 %vm96_vm0, %v11852_v25  ;;  %v5382_v7 = vmul.f32 %v18502_v41, %v18501_v12  ;;  %v15291_v36 = vpop.f32.mrf.mxu1  ;;  %v18504_v54 = vld [vmem:[#allocation77_spill] sm:$0xff] }
 0x5ad   :  { %18499 = vst [vmem:[#allocation42_spill] sm:$0xff] %v15282_v10  ;;  %v11518_v18 = vpop.eup %11517  ;;  %v10966_v40 = vpop.f32.mrf.mxu0  ;;  %2213 = vmatprep.mubr.f32.mxu1 %v18324_v1  ;;  %11109 = vmatmul.mubr.msk.f32.gmra.mxu0 %vm3121_vm1, %v15026_v34  ;;  %v15296_v63 = vadd.f32 %v5707_v31, %v5379_v38  ;;  %v5710_v4 = vmul.f32 %v11516_v50, %v15200_v58  ;;  %v18513_v58 = vld [vmem:[#allocation137_spill] sm:$0xff] }
 0x5ae   :  { %11531 = vpow2.f32 %v4393_v52  ;;  %v4391_v59 = vmul.f32 1.442695, %v4237_v43  ;;  %v4240_v15 = vmul.f32 %v10966_v40, %v18504_v54  ;;  %11111 = vmatprep.mubr.msk.f32.mxu0 %vm3121_vm1, %v15064_v51  ;;  %v5709_v62 = vmul.f32 %v11518_v18, %v15214_v46  ;;  %v15303_v12 = vpop.f32.mrf.mxu1  ;;  %v15307_v34 = vpop.xlane.xlu1 %5097  ;;  %v18507_v43 = vld [vmem:[#allocation74_spill] sm:$0xff]  ;;  %v11853_v51 = vld [vmem:[%s18148_s11 + $0x3a0] sm:$0xff]  ;;  %v18512_v46 = vld [vmem:[#allocation59_spill] sm:$0xff] }
 0x5af   :  { %18503 = vst [vmem:[#allocation116_spill] sm:$0xff] %v15296_v63  ;;  %v11520_v25 = vpop.eup %11519  ;;  %18505 = vst [vmem:[#allocation58_spill] sm:$0xff] %v15303_v12  ;;  %v3712_v41 = vpop.f32.mrf.mxu0  ;;  %v15305_v21 = vadd.f32 %v5710_v4, %v5382_v7  ;;  %v18509_v7 = vld [vmem:[#allocation92_spill] sm:$0xff]  ;;  %v5383_v33 = vmul.f32 %v18513_v58, %v18512_v46 }
 0x5b0   :  { %v15309_v31 = vpop.xlane.xlu0 %5109  ;;  %11533 = vpow2.f32 %v4391_v59  ;;  %v4397_v50 = vmul.f32 1.442695, %v4240_v15  ;;  %v4239_v38 = vmul.f32 %v3712_v41, %v18507_v43  ;;  %9430 = vmatmul.mubr.msk.f32.gmra.mxu1 %vm96_vm0, %v11853_v51  ;;  %v15316_v52 = vpop.f32.mrf.mxu1  ;;  %v15322_v4 = vadd.f32 %v5709_v62, %v18509_v7  ;;  %v18511_v15 = vld [vmem:[#allocation82_spill] sm:$0xff]  ;;  %v18517_v7 = vld [vmem:[#allocation79_spill] sm:$0xff] }
 0x5b1   :  { %18506 = vst [vmem:[#allocation47_spill] sm:$0xff] %v15305_v21  ;;  %v11522_v40 = vpop.eup %11521  ;;  %18508 = vst [vmem:[#allocation63_spill] sm:$0xff] %v15316_v52  ;;  %v10969_v18 = vpop.f32.mrf.mxu0  ;;  %2219 = vmatprep.mubr.f32.mxu1 %v18324_v1  ;;  %11112 = vmatmul.mubr.msk.f32.gmra.mxu0 %vm3121_vm1, %v15043_v26  ;;  %v5712_v59 = vmul.f32 %v11520_v25, %v15224_v42 }
 0x5b2   :  { %18510 = vst [vmem:[#allocation45_spill] sm:$0xff] %v15322_v4  ;;  %11535 = vpow2.f32 %v4397_v50  ;;  %v4395_v54 = vmul.f32 1.442695, %v4239_v38  ;;  %v4242_v41 = vmul.f32 %v10969_v18, %v18511_v15  ;;  %v5711_v43 = vmul.f32 %v11522_v40, %v15244_v29  ;;  %v15329_v12 = vpop.f32.mrf.mxu1  ;;  %v11854_v50 = vld [vmem:[%s18148_s11 + $0x3a8] sm:$0xff]  ;;  %v18518_v40 = vld [vmem:[#allocation64_spill] sm:$0xff]  ;;  %v18522_v29 = vld [vmem:[#allocation135_spill] sm:$0xff] }
 0x5b3   :  { %v11524_v51 = vpop.eup %11523  ;;  %18514 = vst [vmem:[#allocation83_spill] sm:$0xff] %v15329_v12  ;;  %v3722_v30 = vpop.f32.mrf.mxu0  ;;  %v15332_v26 = vadd.f32 %v5712_v59, %v18515_v23  ;;  %v5386_v58 = vmul.f32 %v14968_v17, %v18518_v40  ;;  %v18521_v40 = vld [vmem:[#allocation62_spill] sm:$0xff] }
 0x5b4   :  { %11537 = vpow2.f32 %v4395_v54  ;;  %v4401_v62 = vmul.f32 1.442695, %v4242_v41  ;;  %v4241_v25 = vmul.f32 %v3722_v30, %v18517_v7  ;;  %9431 = vmatmul.mubr.msk.f32.gmra.mxu1 %vm96_vm0, %v11854_v50  ;;  %v15341_v46 = vpop.f32.mrf.mxu1  ;;  %v15344_v23 = vadd.f32 %v5711_v43, %v5383_v33  ;;  %v15347_v30 = vpop.xlane.xlu1 %5103  ;;  %v18520_v41 = vld [vmem:[#allocation88_spill] sm:$0xff] }
 0x5b5   :  { %18516 = vst [vmem:[#allocation61_spill] sm:$0xff] %v15332_v26  ;;  %v11526_v38 = vpop.eup %11525  ;;  %v10972_v18 = vpop.f32.mrf.mxu0  ;;  %2225 = vmatprep.mubr.f32.mxu1 %v18324_v1  ;;  %v5714_v59 = vmul.f32 %v11524_v51, %v15254_v32  ;;  %v5385_v42 = vmul.f32 %v18522_v29, %v18521_v40  ;;  %v18525_v32 = vld [vmem:[#allocation85_spill] sm:$0xff] }
 0x5b6   :  { %18519 = vst [vmem:[#allocation51_spill] sm:$0xff] %v15344_v23  ;;  %v15349_v54 = vpop.xlane.xlu0 %5106  ;;  %11539 = vpow2.f32 %v4401_v62  ;;  %v4399_v15 = vmul.f32 1.442695, %v4241_v25  ;;  %v4244_v7 = vmul.f32 %v10972_v18, %v18520_v41  ;;  %v5713_v50 = vmul.f32 %v11526_v38, %v15267_v19  ;;  %v15355_v12 = vpop.f32.mrf.mxu1  ;;  %v11855_v62 = vld [vmem:[%s18148_s11 + $0x3b0] sm:$0xff]  ;;  %v18526_v38 = vld [vmem:[#allocation69_spill] sm:$0xff] }
 0x5b7   :  { %v11528_v17 = vpop.eup %11527  ;;  %18523 = vst [vmem:[#allocation67_spill] sm:$0xff] %v15355_v12  ;;  %v3732_v33 = vpop.f32.mrf.mxu0  ;;  %v15357_v43 = vadd.f32 %v5714_v59, %v5386_v58  ;;  %v5388_v18 = vmul.f32 %v15010_v27, %v18526_v38 }
 0x5b8   :  { %11541 = vpow2.f32 %v4399_v15  ;;  %v4405_v51 = vmul.f32 1.442695, %v4244_v7  ;;  %v4243_v52 = vmul.f32 %v3732_v33, %v18525_v32  ;;  %9432 = vmatmul.mubr.msk.f32.gmra.mxu1 %vm96_vm0, %v11855_v62  ;;  %v15366_v29 = vpop.f32.mrf.mxu1  ;;  %v15369_v58 = vadd.f32 %v5713_v50, %v5385_v42  ;;  %v18529_v15 = vld [vmem:[#allocation94_spill] sm:$0xff] }
 0x5b9   :  { %18524 = vst [vmem:[#allocation49_spill] sm:$0xff] %v15357_v43  ;;  %v11530_v25 = vpop.eup %11529  ;;  %18527 = vst [vmem:[#allocation65_spill] sm:$0xff] %v15366_v29  ;;  %v10975_v41 = vpop.f32.mrf.mxu0  ;;  %2231 = vmatprep.mubr.f32.mxu1 %v18324_v1  ;;  %v5748_v59 = vmul.f32 %v11528_v17, %v15282_v10  ;;  %v18530_v62 = vld [vmem:[#allocation66_spill] sm:$0xff] }
 0x5ba   :  { %18528 = vst [vmem:[#allocation72_spill] sm:$0xff] %v15369_v58  ;;  %11543 = vpow2.f32 %v4405_v51  ;;  %v4403_v32 = vmul.f32 1.442695, %v4243_v52  ;;  %v4246_v7 = vmul.f32 %v10975_v41, %v18529_v15  ;;  %v5747_v40 = vmul.f32 %v11530_v25, %v15296_v63  ;;  %v15376_v27 = vpop.f32.mrf.mxu1  ;;  %v15380_v29 = vpop.xlane.xlu1 %5112  ;;  %v18533_v52 = vld [vmem:[#allocation91_spill] sm:$0xff]  ;;  %v18534_v25 = vld [vmem:[#allocation73_spill] sm:$0xff] }
 0x5bb   :  { %v11532_v33 = vpop.eup %11531  ;;  %v5387_v19 = vmul.f32 %v14936_v22, %v18530_v62  ;;  %18531 = vst [vmem:[#allocation53_spill] sm:$0xff] %v15376_v27  ;;  %v3742_v38 = vpop.f32.mrf.mxu0  ;;  %v15378_v12 = vadd.f32 %v5748_v59, %v5388_v18  ;;  %v11856_v51 = vld [vmem:[%s18148_s11 + $0x3b8] sm:$0xff]  ;;  %v5390_v41 = vmul.f32 %v14977_v2, %v18534_v25 }
 0x5bc   :  { %v15382_v42 = vpop.xlane.xlu0 %5115  ;;  %11545 = vpow2.f32 %v4403_v32  ;;  %v4409_v50 = vmul.f32 1.442695, %v4246_v7  ;;  %v4245_v17 = vmul.f32 %v3742_v38, %v18533_v52  ;;  %9433 = vmatmul.mubr.msk.f32.gmra.mxu1 %vm96_vm0, %v11856_v51  ;;  %v15391_v18 = vpop.f32.mrf.mxu1  ;;  %v5750_v32 = vmul.f32 %v11532_v33, %v15305_v21  ;;  %v18537_v62 = vld [vmem:[#allocation99_spill] sm:$0xff]  ;;  %v18541_v33 = vld [vmem:[#allocation97_spill] sm:$0xff] }
 0x5bd   :  { %18532 = vst [vmem:[#allocation89_spill] sm:$0xff] %v15378_v12  ;;  %v11534_v22 = vpop.eup %11533  ;;  %18535 = vst [vmem:[#allocation86_spill] sm:$0xff] %v15391_v18  ;;  %v10978_v59 = vpop.f32.mrf.mxu0  ;;  %2237 = vmatprep.mubr.f32.mxu1 %v18324_v1  ;;  %v15395_v15 = vadd.f32 %v5747_v40, %v5387_v19  ;;  %v18538_v63 = vld [vmem:[#allocation71_spill] sm:$0xff]  ;;  %v11857_v40 = vld [vmem:[%s18148_s11 + $0x3c0] sm:$0xff] }
 0x5be   :  { %11547 = vpow2.f32 %v4409_v50  ;;  %v4407_v7 = vmul.f32 1.442695, %v4245_v17  ;;  %v4248_v38 = vmul.f32 %v10978_v59, %v18537_v62  ;;  %v5749_v52 = vmul.f32 %v11534_v22, %v15322_v4  ;;  %v15401_v2 = vpop.f32.mrf.mxu1  ;;  %v18542_v17 = vld [vmem:[#allocation78_spill] sm:$0xff]  ;;  %v18548_v21 = vld [vmem:[#allocation101_spill] sm:$0xff] }
 0x5bf   :  { %18536 = vst [vmem:[#allocation70_spill] sm:$0xff] %v15395_v15  ;;  %v11536_v51 = vpop.eup %11535  ;;  %v5389_v10 = vmul.f32 %v15012_v8, %v18538_v63  ;;  %18539 = vst [vmem:[#allocation57_spill] sm:$0xff] %v15401_v2  ;;  %v3752_v25 = vpop.f32.mrf.mxu0  ;;  %v15403_v27 = vadd.f32 %v5750_v32, %v5390_v41  ;;  %v5392_v22 = vmul.f32 %v15057_v14, %v18542_v17 }
 0x5c0   :  { %11549 = vpow2.f32 %v4407_v7  ;;  %v4413_v18 = vmul.f32 1.442695, %v4248_v38  ;;  %v4247_v19 = vmul.f32 %v3752_v25, %v18541_v33  ;;  %9434 = vmatmul.mubr.msk.f32.gmra.mxu1 %vm96_vm0, %v11857_v40  ;;  %v15412_v8 = vpop.f32.mrf.mxu1  ;;  %v5752_v59 = vmul.f32 %v11536_v51, %v15332_v26  ;;  %v15418_v32 = vpop.xlane.xlu1 %5127  ;;  %v18544_v38 = vld [vmem:[#allocation103_spill] sm:$0xff] }
 0x5c1   :  { %18540 = vst [vmem:[#allocation131_spill] sm:$0xff] %v15403_v27  ;;  %v11538_v50 = vpop.eup %11537  ;;  %v10981_v63 = vpop.f32.mrf.mxu0  ;;  %2243 = vmatprep.mubr.f32.mxu1 %v18324_v1  ;;  %v15415_v41 = vadd.f32 %v5749_v52, %v5389_v10  ;;  %v18545_v40 = vld [vmem:[#allocation75_spill] sm:$0xff] }
 0x5c2   :  { %v15420_v7 = vpop.xlane.xlu0 %5121  ;;  %11551 = vpow2.f32 %v4413_v18  ;;  %v4411_v62 = vmul.f32 1.442695, %v4247_v19  ;;  %v4250_v25 = vmul.f32 %v10981_v63, %v18544_v38  ;;  %v5751_v33 = vmul.f32 %v11538_v50, %v15344_v23  ;;  %v15426_v4 = vpop.f32.mrf.mxu1  ;;  %v11858_v18 = vld [vmem:[%s18148_s11 + $0x3c8] sm:$0xff]  ;;  %v18549_v50 = vld [vmem:[#allocation84_spill] sm:$0xff] }
 0x5c3   :  { %18543 = vst [vmem:[#allocation77_spill] sm:$0xff] %v15415_v41  ;;  %v11540_v14 = vpop.eup %11539  ;;  %v5391_v17 = vmul.f32 %v15059_v60, %v18545_v40  ;;  %18546 = vst [vmem:[#allocation74_spill] sm:$0xff] %v15426_v4  ;;  %v3762_v10 = vpop.f32.mrf.mxu0  ;;  %v15428_v52 = vadd.f32 %v5752_v59, %v5392_v22  ;;  %v5394_v63 = vmul.f32 %v15109_v37, %v18549_v50 }
 0x5c4   :  { %11553 = vpow2.f32 %v4411_v62  ;;  %v4417_v51 = vmul.f32 1.442695, %v4250_v25  ;;  %v4249_v26 = vmul.f32 %v3762_v10, %v18548_v21  ;;  %9435 = vmatmul.mubr.msk.f32.gmra.mxu1 %vm96_vm0, %v11858_v18  ;;  %v15437_v60 = vpop.f32.mrf.mxu1  ;;  %v5754_v22 = vmul.f32 %v11540_v14, %v15357_v43  ;;  %v18551_v62 = vld [vmem:[#allocation107_spill] sm:$0xff]  ;;  %v18552_v18 = vld [vmem:[#allocation81_spill] sm:$0xff]  ;;  %v15451_v2 = vpop.xlane.xlu1 %5124 }
 0x5c5   :  { %18547 = vst [vmem:[#allocation92_spill] sm:$0xff] %v15428_v52  ;;  %v11542_v19 = vpop.eup %11541  ;;  %v10984_v38 = vpop.f32.mrf.mxu0  ;;  %2249 = vmatprep.mubr.f32.mxu1 %v18324_v1  ;;  %v15441_v59 = vadd.f32 %v5751_v33, %v5391_v17  ;;  %v5393_v23 = vmul.f32 %v15146_v28, %v18552_v18  ;;  %v18559_v18 = vld [vmem:[#allocation113_spill] sm:$0xff] }
 0x5c6   :  { %11555 = vpow2.f32 %v4417_v51  ;;  %v4415_v21 = vmul.f32 1.442695, %v4249_v26  ;;  %v4252_v25 = vmul.f32 %v10984_v38, %v18551_v62  ;;  %v5753_v40 = vmul.f32 %v11542_v19, %v15369_v58  ;;  %v15447_v37 = vpop.f32.mrf.mxu1  ;;  %v15453_v14 = vpop.xlane.xlu0 %5118  ;;  %v18555_v26 = vld [vmem:[#allocation105_spill] sm:$0xff]  ;;  %v11859_v51 = vld [vmem:[%s18148_s11 + $0x3d0] sm:$0xff]  ;;  %v18560_v58 = vld [vmem:[#allocation87_spill] sm:$0xff] }
 0x5c7   :  { %18550 = vst [vmem:[#allocation82_spill] sm:$0xff] %v15441_v59  ;;  %v11544_v10 = vpop.eup %11543  ;;  %18553 = vst [vmem:[#allocation59_spill] sm:$0xff] %v15447_v37  ;;  %v3772_v50 = vpop.f32.mrf.mxu0  ;;  %v15449_v4 = vadd.f32 %v5754_v22, %v5394_v63  ;;  %v18556_v19 = vld [vmem:[#allocation90_spill] sm:$0xff]  ;;  %v5395_v43 = vmul.f32 %v15144_v3, %v18560_v58 }
 0x5c8   :  { %11557 = vpow2.f32 %v4415_v21  ;;  %v4421_v33 = vmul.f32 1.442695, %v4252_v25  ;;  %v4251_v17 = vmul.f32 %v3772_v50, %v18555_v26  ;;  %9436 = vmatmul.mubr.msk.f32.gmra.mxu1 %vm96_vm0, %v11859_v51  ;;  %v5396_v38 = vmul.f32 %v15107_v24, %v18556_v19  ;;  %v15462_v63 = vpop.f32.mrf.mxu1 }
 0x5c9   :  { %18554 = vst [vmem:[#allocation137_spill] sm:$0xff] %v15449_v4  ;;  %v11546_v28 = vpop.eup %11545  ;;  %18557 = vst [vmem:[#allocation95_spill] sm:$0xff] %v15462_v63  ;;  %v10987_v22 = vpop.f32.mrf.mxu0  ;;  %2255 = vmatprep.mubr.f32.mxu1 %v18324_v1  ;;  %v5788_v21 = vmul.f32 %v11544_v10, %v15378_v12  ;;  %v15466_v62 = vadd.f32 %v5753_v40, %v5393_v23  ;;  %v18563_v40 = vld [vmem:[#allocation110_spill] sm:$0xff] }
 0x5ca   :  { %11559 = vpow2.f32 %v4421_v33  ;;  %v4419_v25 = vmul.f32 1.442695, %v4251_v17  ;;  %v4254_v50 = vmul.f32 %v10987_v22, %v18559_v18  ;;  %v5787_v26 = vmul.f32 %v11546_v28, %v15395_v15  ;;  %v15472_v24 = vpop.f32.mrf.mxu1  ;;  %v15476_v63 = vpop.xlane.xlu0 %5133  ;;  %v11860_v33 = vld [vmem:[%s18148_s11 + $0x3d8] sm:$0xff]  ;;  %v18564_v28 = vld [vmem:[#allocation96_spill] sm:$0xff]  ;;  %v18567_v15 = vld [vmem:[#allocation93_spill] sm:$0xff] }
 0x5cb   :  { %18558 = vst [vmem:[#allocation79_spill] sm:$0xff] %v15466_v62  ;;  %v11548_v51 = vpop.eup %11547  ;;  %18561 = vst [vmem:[#allocation64_spill] sm:$0xff] %v15472_v24  ;;  %v3782_v19 = vpop.f32.mrf.mxu0  ;;  %v15474_v37 = vadd.f32 %v5788_v21, %v5396_v38  ;;  %v5398_v3 = vmul.f32 %v15188_v35, %v18564_v28  ;;  %v5397_v35 = vmul.f32 %v15190_v49, %v18567_v15 }
 0x5cc   :  { %11561 = vpow2.f32 %v4419_v25  ;;  %v4425_v23 = vmul.f32 1.442695, %v4254_v50  ;;  %v4253_v10 = vmul.f32 %v3782_v19, %v18563_v40  ;;  %9437 = vmatmul.mubr.msk.f32.gmra.mxu1 %vm96_vm0, %v11860_v33  ;;  %v15485_v58 = vpop.f32.mrf.mxu1  ;;  %v15488_v22 = vadd.f32 %v5787_v26, %v5395_v43  ;;  %v15491_v25 = vpop.xlane.xlu1 %5130  ;;  %v18566_v50 = vld [vmem:[#allocation118_spill] sm:$0xff] }
 0x5cd   :  { %18562 = vst [vmem:[#allocation88_spill] sm:$0xff] %v15474_v37  ;;  %v11550_v17 = vpop.eup %11549  ;;  %v10990_v38 = vpop.f32.mrf.mxu0  ;;  %2261 = vmatprep.mubr.f32.mxu1 %v18324_v1  ;;  %v5790_v21 = vmul.f32 %v11548_v51, %v15403_v27  ;;  %v18570_v51 = vld [vmem:[#allocation115_spill] sm:$0xff] }
 0x5ce   :  { %18565 = vst [vmem:[#allocation62_spill] sm:$0xff] %v15488_v22  ;;  %11563 = vpow2.f32 %v4425_v23  ;;  %v4423_v18 = vmul.f32 1.442695, %v4253_v10  ;;  %v4256_v19 = vmul.f32 %v10990_v38, %v18566_v50  ;;  %v5789_v40 = vmul.f32 %v11550_v17, %v15415_v41  ;;  %v15497_v28 = vpop.f32.mrf.mxu1  ;;  %v15501_v43 = vpop.xlane.xlu0 %5142  ;;  %v11861_v10 = vld [vmem:[%s18148_s11 + $0x3e0] sm:$0xff]  ;;  %v18574_v50 = vld [vmem:[#allocation122_spill] sm:$0xff] }
 0x5cf   :  { %v11552_v33 = vpop.eup %11551  ;;  %18568 = vst [vmem:[#allocation135_spill] sm:$0xff] %v15497_v28  ;;  %v3792_v12 = vpop.f32.mrf.mxu0  ;;  %v15499_v24 = vadd.f32 %v5790_v21, %v5398_v3  ;;  %v18571_v38 = vld [vmem:[#allocation100_spill] sm:$0xff]  ;;  %v18575_v41 = vld [vmem:[#allocation98_spill] sm:$0xff] }
 0x5d0   :  { %11565 = vpow2.f32 %v4423_v18  ;;  %v4429_v26 = vmul.f32 1.442695, %v4256_v19  ;;  %v4255_v23 = vmul.f32 %v3792_v12, %v18570_v51  ;;  %9438 = vmatmul.mubr.msk.f32.gmra.mxu1 %vm96_vm0, %v11861_v10  ;;  %v5400_v49 = vmul.f32 %v15227_v47, %v18571_v38  ;;  %v15510_v15 = vpop.f32.mrf.mxu1 }
 0x5d1   :  { %18569 = vst [vmem:[#allocation85_spill] sm:$0xff] %v15499_v24  ;;  %v11554_v17 = vpop.eup %11553  ;;  %18572 = vst [vmem:[#allocation69_spill] sm:$0xff] %v15510_v15  ;;  %v10993_v3 = vpop.f32.mrf.mxu0  ;;  %2267 = vmatprep.mubr.f32.mxu1 %v18324_v1  ;;  %v15513_v21 = vadd.f32 %v5789_v40, %v5397_v35  ;;  %v5792_v18 = vmul.f32 %v11552_v33, %v15428_v52  ;;  %v5399_v27 = vmul.f32 %v15269_v56, %v18575_v41  ;;  %v18578_v35 = vld [vmem:[#allocation120_spill] sm:$0xff] }
 0x5d2   :  { %11567 = vpow2.f32 %v4429_v26  ;;  %v4427_v12 = vmul.f32 1.442695, %v4255_v23  ;;  %v4258_v19 = vmul.f32 %v10993_v3, %v18574_v50  ;;  %v5791_v51 = vmul.f32 %v11554_v17, %v15441_v59  ;;  %v15520_v47 = vpop.f32.mrf.mxu1  ;;  %v15524_v15 = vpop.xlane.xlu1 %5139  ;;  %v11862_v23 = vld [vmem:[%s18148_s11 + $0x3e8] sm:$0xff]  ;;  %v18579_v41 = vld [vmem:[#allocation104_spill] sm:$0xff]  ;;  %v18583_v59 = vld [vmem:[#allocation102_spill] sm:$0xff] }
 0x5d3   :  { %18573 = vst [vmem:[#allocation94_spill] sm:$0xff] %v15513_v21  ;;  %v11556_v10 = vpop.eup %11555  ;;  %18576 = vst [vmem:[#allocation66_spill] sm:$0xff] %v15520_v47  ;;  %v3802_v38 = vpop.f32.mrf.mxu0  ;;  %v15522_v28 = vadd.f32 %v5792_v18, %v5400_v49  ;;  %v5402_v17 = vmul.f32 %v15307_v34, %v18579_v41  ;;  %v5401_v52 = vmul.f32 %v15229_v48, %v18583_v59 }
 0x5d4   :  { %v15526_v40 = vpop.xlane.xlu0 %5148  ;;  %11569 = vpow2.f32 %v4427_v12  ;;  %v4433_v33 = vmul.f32 1.442695, %v4258_v19  ;;  %v4257_v26 = vmul.f32 %v3802_v38, %v18578_v35  ;;  %9439 = vmatmul.mubr.msk.f32.gmra.mxu1 %vm96_vm0, %v11862_v23  ;;  %v15535_v49 = vpop.f32.mrf.mxu1  ;;  %v15538_v18 = vadd.f32 %v5791_v51, %v5399_v27  ;;  %v18582_v19 = vld [vmem:[#allocation126_spill] sm:$0xff]  ;;  %v18585_v51 = vld [vmem:[#allocation124_spill] sm:$0xff] }
 0x5d5   :  { %18577 = vst [vmem:[#allocation91_spill] sm:$0xff] %v15522_v28  ;;  %v11558_v56 = vpop.eup %11557  ;;  %18580 = vst [vmem:[#allocation73_spill] sm:$0xff] %v15535_v49  ;;  %v10996_v3 = vpop.f32.mrf.mxu0  ;;  %2273 = vmatprep.mubr.f32.mxu1 %v18324_v1  ;;  %v5794_v12 = vmul.f32 %v11556_v10, %v15449_v4  ;;  %v11863_v10 = vld [vmem:[%s18148_s11 + $0x3f0] sm:$0xff] }
 0x5d6   :  { %18581 = vst [vmem:[#allocation99_spill] sm:$0xff] %v15538_v18  ;;  %11571 = vpow2.f32 %v4433_v33  ;;  %v4431_v50 = vmul.f32 1.442695, %v4257_v26  ;;  %v4260_v38 = vmul.f32 %v10996_v3, %v18582_v19  ;;  %v5793_v35 = vmul.f32 %v11558_v56, %v15466_v62  ;;  %v15545_v34 = vpop.f32.mrf.mxu1  ;;  %v18586_v26 = vld [vmem:[#allocation109_spill] sm:$0xff] }
 0x5d7   :  { %v11560_v23 = vpop.eup %11559  ;;  %v3812_v41 = vpop.f32.mrf.mxu0  ;;  %v15547_v47 = vadd.f32 %v5794_v12, %v5402_v17  ;;  %v5404_v56 = vmul.f32 %v15347_v30, %v18586_v26  ;;  %v6259_v30 = vld [vmem:[%s18148_s11] sm:$0xff] }
 0x5d8   :  { %11573 = vpow2.f32 %v4431_v50  ;;  %v4437_v27 = vmul.f32 1.442695, %v4260_v38  ;;  %v4259_v49 = vmul.f32 %v3812_v41, %v18585_v51  ;;  %9440 = vmatmul.mubr.msk.f32.gmra.mxu1 %vm96_vm0, %v11863_v10  ;;  %v15556_v48 = vpop.f32.mrf.mxu1  ;;  %v15559_v17 = vadd.f32 %v5793_v35, %v5401_v52  ;;  %v15562_v12 = vpop.xlane.xlu1 %5136  ;;  %v18588_v38 = vld [vmem:[#allocation130_spill] sm:$0xff] }
 0x5d9   :  { %18584 = vst [vmem:[#allocation71_spill] sm:$0xff] %v15547_v47  ;;  %v11562_v33 = vpop.eup %11561  ;;  %v10999_v59 = vpop.f32.mrf.mxu0  ;;  %2279 = vmatprep.mubr.f32.mxu1 %v18324_v1  ;;  %v5828_v3 = vmul.f32 %v11560_v23, %v15474_v37  ;;  %v18589_v1 = vld [vmem:[#allocation106_spill] sm:$0xff]  ;;  %v18596_v37 = vld [vmem:[#allocation111_spill] sm:$0xff] }
 0x5da   :  { %18587 = vst [vmem:[#allocation97_spill] sm:$0xff] %v15559_v17  ;;  %v15564_v50 = vpop.xlane.xlu0 %5157  ;;  %11575 = vpow2.f32 %v4437_v27  ;;  %v4435_v19 = vmul.f32 1.442695, %v4259_v49  ;;  %v4262_v41 = vmul.f32 %v10999_v59, %v18588_v38  ;;  %v5827_v51 = vmul.f32 %v11562_v33, %v15488_v22  ;;  %v15573_v35 = vpop.f32.mrf.mxu1  ;;  %v18592_v49 = vld [vmem:[#allocation128_spill] sm:$0xff]  ;;  %v11864_v59 = vld [vmem:[%s18148_s11 + $0x3f8] sm:$0xff]  ;;  %v18593_v38 = vld [vmem:[#allocation114_spill] sm:$0xff] }
 0x5db   :  { %v11564_v10 = vpop.eup %11563  ;;  %v5403_v52 = vmul.f32 %v15271_v45, %v18589_v1  ;;  %18590 = vst [vmem:[#allocation78_spill] sm:$0xff] %v15573_v35  ;;  %v3822_v23 = vpop.f32.mrf.mxu0  ;;  %v15575_v26 = vadd.f32 %v5828_v3, %v5404_v56  ;;  %v5406_v22 = vmul.f32 %v15309_v31, %v18593_v38  ;;  %v6260_v56 = vld [vmem:[%s18148_s11 + $0x8] sm:$0xff]  ;;  %v6261_v31 = vld [vmem:[%s18148_s11 + $0x10] sm:$0xff]  ;;  %v5405_v4 = vmul.f32 %v15349_v54, %v18596_v37  ;;  %v6262_v37 = vld [vmem:[%s18148_s11 + $0x18] sm:$0xff] }
 0x5dc   :  { %11577 = vpow2.f32 %v4435_v19  ;;  %v4441_v27 = vmul.f32 1.442695, %v4262_v41  ;;  %v4261_v62 = vmul.f32 %v3822_v23, %v18592_v49  ;;  %9441 = vmatmul.mubr.msk.f32.gmra.mxu1 %vm96_vm0, %v11864_v59  ;;  %v15584_v45 = vpop.f32.mrf.mxu1  ;;  %v5830_v3 = vmul.f32 %v11564_v10, %v15499_v24  ;;  %v15593_v41 = vpop.xlane.xlu1 %5145  ;;  %v18595_v49 = vld [vmem:[#allocation136_spill] sm:$0xff]  ;;  %v18599_v24 = vld [vmem:[#allocation119_spill] sm:$0xff] }
 0x5dd   :  { %18591 = vst [vmem:[#allocation103_spill] sm:$0xff] %v15575_v26  ;;  %v11566_v33 = vpop.eup %11565  ;;  %v11002_v1 = vpop.f32.mrf.mxu0  ;;  %11130 = vmatprep.mubr.msk.f32.mxu1 %vm96_vm0, %v6259_v30  ;;  %v15591_v19 = vadd.f32 %v5827_v51, %v5403_v52 }
 0x5de   :  { %11579 = vpow2.f32 %v4441_v27  ;;  %v4439_v23 = vmul.f32 1.442695, %v4261_v62  ;;  %v4264_v59 = vmul.f32 %v11002_v1, %v18595_v49  ;;  %v5829_v30 = vmul.f32 %v11566_v33, %v15513_v21  ;;  %v15602_v35 = vpop.f32.mrf.mxu1  ;;  %v15606_v52 = vpop.xlane.xlu0 %5154  ;;  %v18598_v27 = vld [vmem:[#allocation133_spill] sm:$0xff] }
 0x5df   :  { %18594 = vst [vmem:[#allocation75_spill] sm:$0xff] %v15591_v19  ;;  %v11568_v38 = vpop.eup %11567  ;;  %v3832_v51 = vpop.f32.mrf.mxu0  ;;  %v15604_v10 = vadd.f32 %v5830_v3, %v5406_v22  ;;  %v5408_v33 = vmul.f32 %v15382_v42, %v18599_v24  ;;  %v6263_v42 = vld [vmem:[%s18148_s11 + $0x20] sm:$0xff] }
 0x5e0   :  { %11581 = vpow2.f32 %v4439_v23  ;;  %v4445_v62 = vmul.f32 1.442695, %v4264_v59  ;;  %v4263_v1 = vmul.f32 %v3832_v51, %v18598_v27  ;;  %11131 = vmatmul.mubr.msk.f32.vlgmr.msra.gmra.mxu1 %vm96_vm0, %v6260_v56  ;;  %v15612_v21 = vpop.f32.mrf.mxu1  ;;  %v15618_v22 = vadd.f32 %v5829_v30, %v5405_v4  ;;  %v15621_v23 = vpop.xlane.xlu1 %5151  ;;  %v18601_v51 = vld [vmem:[#allocation117_spill] sm:$0xff] }
 0x5e1   :  { %18597 = vst [vmem:[#allocation101_spill] sm:$0xff] %v15604_v10  ;;  %v11570_v49 = vpop.eup %11569  ;;  %v11005_v54 = vpop.f32.mrf.mxu0  ;;  %11133 = vmatprep.mubr.msk.f32.mxu1 %vm96_vm0, %v6261_v31  ;;  %v5832_v3 = vmul.f32 %v11568_v38, %v15522_v28  ;;  %v5407_v27 = vmul.f32 %v15380_v29, %v18601_v51 }
 0x5e2   :  { %18600 = vst [vmem:[#allocation84_spill] sm:$0xff] %v15618_v22  ;;  %11583 = vpow2.f32 %v4445_v62  ;;  %v4443_v56 = vmul.f32 1.442695, %v4263_v1  ;;  %v4266_v59 = vmul.f32 %v11005_v54, %v14963_v11  ;;  %v5831_v24 = vmul.f32 %v11570_v49, %v15538_v18  ;;  %v15630_v4 = vpop.f32.mrf.mxu1  ;;  %v15634_v28 = vpop.xlane.xlu0 %5160  ;;  %v18604_v54 = vld [vmem:[#allocation123_spill] sm:$0xff] }
 0x5e3   :  { %v11572_v31 = vpop.eup %11571  ;;  %18602 = vst [vmem:[#allocation107_spill] sm:$0xff] %v15630_v4  ;;  %v3842_v30 = vpop.f32.mrf.mxu0  ;;  %v15632_v38 = vadd.f32 %v5832_v3, %v5408_v33  ;;  %v5410_v49 = vmul.f32 %v15420_v7, %v18604_v54  ;;  %v6264_v33 = vld [vmem:[%s18148_s11 + $0x28] sm:$0xff]  ;;  %v6265_v7 = vld [vmem:[%s18148_s11 + $0x30] sm:$0xff] }
 0x5e4   :  { %11585 = vpow2.f32 %v4443_v56  ;;  %v4449_v62 = vmul.f32 1.442695, %v4266_v59  ;;  %v4265_v11 = vmul.f32 %v3842_v30, %v14931_v20  ;;  %11134 = vmatmul.mubr.msk.f32.gmra.mxu1 %vm96_vm0, %v6262_v37  ;;  %v15640_v18 = vpop.f32.mrf.mxu1  ;;  %v5834_v3 = vmul.f32 %v11572_v31, %v15547_v47  ;;  %v15649_v20 = vpop.xlane.xlu1 %5163  ;;  %v18606_v30 = vld [vmem:[#allocation121_spill] sm:$0xff] }
 0x5e5   :  { %18603 = vst [vmem:[#allocation81_spill] sm:$0xff] %v15632_v38  ;;  %v11574_v1 = vpop.eup %11573  ;;  %v11008_v29 = vpop.f32.mrf.mxu0  ;;  %11136 = vmatprep.mubr.msk.f32.mxu1 %vm96_vm0, %v6263_v42  ;;  %v15647_v56 = vadd.f32 %v5831_v24, %v5407_v27  ;;  %v5409_v54 = vmul.f32 %v15453_v14, %v18606_v30  ;;  %v6266_v14 = vld [vmem:[%s18148_s11 + $0x38] sm:$0xff] }
 0x5e6   :  { %11587 = vpow2.f32 %v4449_v62  ;;  %v4447_v37 = vmul.f32 1.442695, %v4265_v11  ;;  %v4268_v59 = vmul.f32 %v11008_v29, %v15005_v6  ;;  %v5833_v42 = vmul.f32 %v11574_v1, %v15559_v17  ;;  %v15658_v4 = vpop.f32.mrf.mxu1  ;;  %v18608_v11 = vld [vmem:[#allocation127_spill] sm:$0xff] }
 0x5e7   :  { %18605 = vst [vmem:[#allocation105_spill] sm:$0xff] %v15647_v56  ;;  %v11576_v51 = vpop.eup %11575  ;;  %v3852_v24 = vpop.f32.mrf.mxu0  ;;  %v15660_v31 = vadd.f32 %v5834_v3, %v5410_v49  ;;  %v5412_v29 = vmul.f32 %v15418_v32, %v18608_v11 }
 0x5e8   :  { %11589 = vpow2.f32 %v4447_v37  ;;  %v4453_v27 = vmul.f32 1.442695, %v4268_v59  ;;  %v4267_v62 = vmul.f32 %v3852_v24, %v14984_v61  ;;  %11137 = vmatmul.mubr.msk.f32.gmra.mxu1 %vm96_vm0, %v6264_v33  ;;  %v15666_v1 = vpop.f32.mrf.mxu1  ;;  %v5868_v49 = vmul.f32 %v11576_v51, %v15575_v26  ;;  %v15675_v61 = vpop.xlane.xlu0 %5169  ;;  %v6267_v59 = vld [vmem:[%s18148_s11 + $0x40] sm:$0xff]  ;;  %v18610_v24 = vld [vmem:[#allocation125_spill] sm:$0xff] }
 0x5e9   :  { %18607 = vst [vmem:[#allocation90_spill] sm:$0xff] %v15660_v31  ;;  %v11578_v6 = vpop.eup %11577  ;;  %v11011_v17 = vpop.f32.mrf.mxu0  ;;  %11139 = vmatprep.mubr.msk.f32.mxu1 %vm96_vm0, %v6265_v7  ;;  %v15673_v3 = vadd.f32 %v5833_v42, %v5409_v54  ;;  %v5411_v51 = vmul.f32 %v15451_v2, %v18610_v24  ;;  %v6268_v2 = vld [vmem:[%s18148_s11 + $0x48] sm:$0xff] }
 0x5ea   :  { %v15677_v33 = vpop.xlane.xlu1 %5175  ;;  %11591 = vpow2.f32 %v4453_v27  ;;  %v4451_v37 = vmul.f32 1.442695, %v4267_v62  ;;  %v4270_v32 = vmul.f32 %v11011_v17, %v15075_v9  ;;  %v5867_v7 = vmul.f32 %v11578_v6, %v15591_v19  ;;  %v15686_v42 = vpop.f32.mrf.mxu1  ;;  %v18612_v17 = vld [vmem:[#allocation132_spill] sm:$0xff] }
 0x5eb   :  { %18609 = vst [vmem:[#allocation113_spill] sm:$0xff] %v15673_v3  ;;  %v11580_v30 = vpop.eup %11579  ;;  %v3862_v54 = vpop.f32.mrf.mxu0  ;;  %v15688_v11 = vadd.f32 %v5868_v49, %v5412_v29  ;;  %v5414_v26 = vmul.f32 %v15476_v63, %v18612_v17  ;;  %v6269_v63 = vld [vmem:[%s18148_s11 + $0x50] sm:$0xff] }
 0x5ec   :  { %11593 = vpow2.f32 %v4451_v37  ;;  %v4457_v27 = vmul.f32 1.442695, %v4270_v32  ;;  %v4269_v62 = vmul.f32 %v3862_v54, %v15035_v44  ;;  %11140 = vmatmul.mubr.msk.f32.gmra.mxu1 %vm96_vm0, %v6266_v14  ;;  %v15694_v6 = vpop.f32.mrf.mxu1  ;;  %v15700_v29 = vadd.f32 %v5867_v7, %v5411_v51 }
 0x5ed   :  { %18611 = vst [vmem:[#allocation87_spill] sm:$0xff] %v15688_v11  ;;  %v11582_v9 = vpop.eup %11581  ;;  %v11014_v19 = vpop.f32.mrf.mxu0  ;;  %11142 = vmatprep.mubr.msk.f32.mxu1 %vm96_vm0, %v6267_v59  ;;  %v5870_v49 = vmul.f32 %v11580_v30, %v15604_v10  ;;  %v18614_v59 = vld [vmem:[#allocation129_spill] sm:$0xff] }
 0x5ee   :  { %18613 = vst [vmem:[#allocation110_spill] sm:$0xff] %v15700_v29  ;;  %11595 = vpow2.f32 %v4457_v27  ;;  %v4455_v44 = vmul.f32 1.442695, %v4269_v62  ;;  %v4272_v14 = vmul.f32 %v11014_v19, %v15128_v16  ;;  %v5869_v37 = vmul.f32 %v11582_v9, %v15618_v22  ;;  %v15710_v54 = vpop.f32.mrf.mxu1  ;;  %v15714_v30 = vpop.xlane.xlu0 %5166  ;;  %v18616_v9 = vld [vmem:[#allocation138_spill] sm:$0xff] }
 0x5ef   :  { %v11584_v32 = vpop.eup %11583  ;;  %v5413_v24 = vmul.f32 %v15491_v25, %v18614_v59  ;;  %v3872_v7 = vpop.f32.mrf.mxu0  ;;  %v15712_v51 = vadd.f32 %v5870_v49, %v5414_v26  ;;  %v5416_v17 = vmul.f32 %v15524_v15, %v18616_v9  ;;  %v6270_v26 = vld [vmem:[%s18148_s11 + $0x58] sm:$0xff]  ;;  %v6271_v15 = vld [vmem:[%s18148_s11 + $0x60] sm:$0xff] }
 0x5f0   :  { %v15716_v27 = vpop.xlane.xlu1 %5172  ;;  %11597 = vpow2.f32 %v4455_v44  ;;  %v4461_v16 = vmul.f32 1.442695, %v4272_v14  ;;  %v4271_v19 = vmul.f32 %v3872_v7, %v15100_v13  ;;  %11143 = vmatmul.mubr.msk.f32.gmra.mxu1 %vm96_vm0, %v6268_v2  ;;  %v15722_v25 = vpop.f32.mrf.mxu1  ;;  %v5872_v44 = vmul.f32 %v11584_v32, %v15632_v38 }
 0x5f1   :  { %18615 = vst [vmem:[#allocation96_spill] sm:$0xff] %v15712_v51  ;;  %v11586_v62 = vpop.eup %11585  ;;  %v11017_v59 = vpop.f32.mrf.mxu0  ;;  %11145 = vmatprep.mubr.msk.f32.mxu1 %vm96_vm0, %v6269_v63  ;;  %v15728_v49 = vadd.f32 %v5869_v37, %v5413_v24  ;;  %v18618_v63 = vld [vmem:[#allocation134_spill] sm:$0xff] }
 0x5f2   :  { %11599 = vpow2.f32 %v4461_v16  ;;  %v4459_v13 = vmul.f32 1.442695, %v4271_v19  ;;  %v4274_v2 = vmul.f32 %v11017_v59, %v15180_v39  ;;  %v5871_v14 = vmul.f32 %v11586_v62, %v15647_v56  ;;  %v15738_v22 = vpop.f32.mrf.mxu1  ;;  %v15744_v16 = vpop.xlane.xlu0 %5178 }
 0x5f3   :  { %18617 = vst [vmem:[#allocation118_spill] sm:$0xff] %v15728_v49  ;;  %v11588_v7 = vpop.eup %11587  ;;  %v5415_v9 = vmul.f32 %v15562_v12, %v18618_v63  ;;  %v3882_v37 = vpop.f32.mrf.mxu0  ;;  %v15740_v24 = vadd.f32 %v5872_v44, %v5416_v17  ;;  %v5418_v59 = vmul.f32 %v15593_v41, %v14974_v55  ;;  %v6272_v17 = vld [vmem:[%s18148_s11 + $0x68] sm:$0xff]  ;;  %v6273_v55 = vld [vmem:[%s18148_s11 + $0x70] sm:$0xff] }
 0x5f4   :  { %v15742_v32 = vpop.xlane.xlu1 %5181  ;;  %11601 = vpow2.f32 %v4459_v13  ;;  %v4465_v39 = vmul.f32 1.442695, %v4274_v2  ;;  %v4273_v19 = vmul.f32 %v3882_v37, %v15155_v53  ;;  %11146 = vmatmul.mubr.msk.f32.gmra.mxu1 %vm96_vm0, %v6270_v26  ;;  %v15750_v12 = vpop.f32.mrf.mxu1  ;;  %v5874_v13 = vmul.f32 %v11588_v7, %v15660_v31 }
 0x5f5   :  { %18619 = vst [vmem:[#allocation93_spill] sm:$0xff] %v15740_v24  ;;  %v11590_v62 = vpop.eup %11589  ;;  %v11020_v63 = vpop.f32.mrf.mxu0  ;;  %11148 = vmatprep.mubr.msk.f32.mxu1 %vm96_vm0, %v6271_v15  ;;  %v15756_v44 = vadd.f32 %v5871_v14, %v5415_v9  ;;  %v18621_v15 = vld [vmem:[#allocation139_spill] sm:$0xff] }
 0x5f6   :  { %11603 = vpow2.f32 %v4465_v39  ;;  %v4463_v53 = vmul.f32 1.442695, %v4273_v19  ;;  %v4276_v26 = vmul.f32 %v11020_v63, %v15238_v57  ;;  %v5873_v41 = vmul.f32 %v11590_v62, %v15673_v3  ;;  %v15766_v10 = vpop.f32.mrf.mxu1  ;;  %v15770_v7 = vpop.xlane.xlu0 %5190  ;;  %v18623_v63 = vld [vmem:[#allocation141_spill] sm:$0xff] }
 0x5f7   :  { %18620 = vst [vmem:[#allocation115_spill] sm:$0xff] %v15756_v44  ;;  %v11592_v2 = vpop.eup %11591  ;;  %v5417_v37 = vmul.f32 %v15501_v43, %v18621_v15  ;;  %v3892_v14 = vpop.f32.mrf.mxu0  ;;  %v15768_v9 = vadd.f32 %v5874_v13, %v5418_v59  ;;  %v5420_v62 = vmul.f32 %v15621_v23, %v18623_v63  ;;  %v6274_v59 = vld [vmem:[%s18148_s11 + $0x78] sm:$0xff]  ;;  %v6275_v23 = vld [vmem:[%s18148_s11 + $0x80] sm:$0xff] }
 0x5f8   :  { %11605 = vpow2.f32 %v4463_v53  ;;  %v4469_v39 = vmul.f32 1.442695, %v4276_v26  ;;  %v4275_v57 = vmul.f32 %v3892_v14, %v15209_v5  ;;  %11149 = vmatmul.mubr.msk.f32.gmra.mxu1 %vm96_vm0, %v6272_v17  ;;  %v15776_v56 = vpop.f32.mrf.mxu1  ;;  %v5908_v53 = vmul.f32 %v11592_v2, %v15688_v11  ;;  %v15785_v5 = vpop.xlane.xlu1 %5187  ;;  %v18625_v14 = vld [vmem:[#allocation140_spill] sm:$0xff] }
 0x5f9   :  { %18622 = vst [vmem:[#allocation100_spill] sm:$0xff] %v15768_v9  ;;  %v11594_v19 = vpop.eup %11593  ;;  %v11023_v43 = vpop.f32.mrf.mxu0  ;;  %11151 = vmatprep.mubr.msk.f32.mxu1 %vm96_vm0, %v6273_v55  ;;  %v15782_v13 = vadd.f32 %v5873_v41, %v5417_v37  ;;  %v5419_v63 = vmul.f32 %v15526_v40, %v18625_v14 }
 0x5fa   :  { %11607 = vpow2.f32 %v4469_v39  ;;  %v4467_v17 = vmul.f32 1.442695, %v4275_v57  ;;  %v4278_v26 = vmul.f32 %v11023_v43, %v15291_v36  ;;  %v5907_v55 = vmul.f32 %v11594_v19, %v15700_v29  ;;  %v15794_v41 = vpop.f32.mrf.mxu1  ;;  %v15798_v38 = vpop.xlane.xlu0 %5196  ;;  %v18627_v43 = vld [vmem:[#allocation34_spill] sm:$0xff]  ;;  %v18638_v29 = vld [vmem:[#allocation52_spill] sm:$0xff] }
 0x5fb   :  { %18624 = vst [vmem:[#allocation122_spill] sm:$0xff] %v15782_v13  ;;  %v11596_v15 = vpop.eup %11595  ;;  %v3902_v37 = vpop.f32.mrf.mxu0  ;;  %v15796_v2 = vadd.f32 %v5908_v53, %v5420_v62  ;;  %v5422_v19 = vmul.f32 %v15564_v50, %v18627_v43  ;;  %v6276_v62 = vld [vmem:[%s18148_s11 + $0x88] sm:$0xff]  ;;  %v6277_v50 = vld [vmem:[%s18148_s11 + $0x90] sm:$0xff] }
 0x5fc   :  { %11609 = vpow2.f32 %v4467_v17  ;;  %v4473_v39 = vmul.f32 1.442695, %v4278_v26  ;;  %v4277_v36 = vmul.f32 %v3902_v37, %v15261_v0  ;;  %11152 = vmatmul.mubr.msk.f32.gmra.mxu1 %vm96_vm0, %v6274_v59  ;;  %v15804_v3 = vpop.f32.mrf.mxu1  ;;  %v5910_v53 = vmul.f32 %v11596_v15, %v15712_v51 }
 0x5fd   :  { %18626 = vst [vmem:[#allocation98_spill] sm:$0xff] %v15796_v2  ;;  %v11598_v57 = vpop.eup %11597  ;;  %v11026_v40 = vpop.f32.mrf.mxu0  ;;  %11154 = vmatprep.mubr.msk.f32.mxu1 %vm96_vm0, %v6275_v23  ;;  %v15811_v17 = vadd.f32 %v5907_v55, %v5419_v63  ;;  %v18629_v23 = vld [vmem:[#allocation68_spill] sm:$0xff] }
 0x5fe   :  { %11611 = vpow2.f32 %v4473_v39  ;;  %v4471_v0 = vmul.f32 1.442695, %v4277_v36  ;;  %v4280_v59 = vmul.f32 %v11026_v40, %v15341_v46  ;;  %v5909_v26 = vmul.f32 %v11598_v57, %v15728_v49  ;;  %v15820_v43 = vpop.f32.mrf.mxu1  ;;  %v15824_v55 = vpop.xlane.xlu1 %5184  ;;  %v18631_v46 = vld [vmem:[#allocation63_spill] sm:$0xff]  ;;  %v18632_v40 = vld [vmem:[#allocation38_spill] sm:$0xff] }
 0x5ff   :  { %18628 = vst [vmem:[#allocation120_spill] sm:$0xff] %v15811_v17  ;;  %v11600_v14 = vpop.eup %11599  ;;  %v5421_v37 = vmul.f32 %v15606_v52, %v18629_v23  ;;  %v3912_v31 = vpop.f32.mrf.mxu0  ;;  %v15822_v15 = vadd.f32 %v5910_v53, %v5422_v19  ;;  %v5424_v57 = vmul.f32 %v15649_v20, %v18632_v40  ;;  %v6278_v19 = vld [vmem:[%s18148_s11 + $0x98] sm:$0xff]  ;;  %v6279_v20 = vld [vmem:[%s18148_s11 + $0xa0] sm:$0xff] }
 0x600   :  { %11613 = vpow2.f32 %v4471_v0  ;;  %v4477_v63 = vmul.f32 1.442695, %v4280_v59  ;;  %v4279_v39 = vmul.f32 %v3912_v31, %v18631_v46  ;;  %11155 = vmatmul.mubr.msk.f32.gmra.mxu1 %vm96_vm0, %v6276_v62  ;;  %v15830_v49 = vpop.f32.mrf.mxu1  ;;  %v5912_v0 = vmul.f32 %v11600_v14, %v15740_v24  ;;  %v15839_v31 = vpop.xlane.xlu0 %5205  ;;  %v18634_v59 = vld [vmem:[#allocation86_spill] sm:$0xff]  ;;  %v18635_v40 = vld [vmem:[#allocation44_spill] sm:$0xff] }
 0x601   :  { %18630 = vst [vmem:[#allocation104_spill] sm:$0xff] %v15822_v15  ;;  %v11602_v36 = vpop.eup %11601  ;;  %v11029_v52 = vpop.f32.mrf.mxu0  ;;  %11157 = vmatprep.mubr.msk.f32.mxu1 %vm96_vm0, %v6277_v50  ;;  %v15836_v53 = vadd.f32 %v5909_v26, %v5421_v37  ;;  %v5423_v51 = vmul.f32 %v15634_v28, %v18635_v40 }
 0x602   :  { %11615 = vpow2.f32 %v4477_v63  ;;  %v4475_v62 = vmul.f32 1.442695, %v4279_v39  ;;  %v4282_v23 = vmul.f32 %v11029_v52, %v18634_v59  ;;  %v5911_v50 = vmul.f32 %v11602_v36, %v15756_v44  ;;  %v15848_v26 = vpop.f32.mrf.mxu1  ;;  %v15852_v24 = vpop.xlane.xlu1 %5193  ;;  %v18637_v39 = vld [vmem:[#allocation65_spill] sm:$0xff] }
 0x603   :  { %18633 = vst [vmem:[#allocation126_spill] sm:$0xff] %v15836_v53  ;;  %v11604_v46 = vpop.eup %11603  ;;  %v3922_v37 = vpop.f32.mrf.mxu0  ;;  %v15850_v14 = vadd.f32 %v5912_v0, %v5424_v57  ;;  %v5426_v36 = vmul.f32 %v15675_v61, %v18638_v29  ;;  %v6280_v57 = vld [vmem:[%s18148_s11 + $0xa8] sm:$0xff]  ;;  %v6281_v61 = vld [vmem:[%s18148_s11 + $0xb0] sm:$0xff] }
 0x604   :  { %11617 = vpow2.f32 %v4475_v62  ;;  %v4481_v63 = vmul.f32 1.442695, %v4282_v23  ;;  %v4281_v52 = vmul.f32 %v3922_v37, %v18637_v39  ;;  %11158 = vmatmul.mubr.msk.f32.gmra.mxu1 %vm96_vm0, %v6278_v19  ;;  %v15858_v44 = vpop.f32.mrf.mxu1  ;;  %v5914_v0 = vmul.f32 %v11604_v46, %v15768_v9 }
 0x605   :  { %18636 = vst [vmem:[#allocation102_spill] sm:$0xff] %v15850_v14  ;;  %v11606_v59 = vpop.eup %11605  ;;  %v11032_v28 = vpop.f32.mrf.mxu0  ;;  %11160 = vmatprep.mubr.msk.f32.mxu1 %vm96_vm0, %v6279_v20  ;;  %v15865_v62 = vadd.f32 %v5911_v50, %v5423_v51  ;;  %v18640_v20 = vld [vmem:[#allocation54_spill] sm:$0xff] }
 0x606   :  { %11619 = vpow2.f32 %v4481_v63  ;;  %v4479_v23 = vmul.f32 1.442695, %v4281_v52  ;;  %v4284_v19 = vmul.f32 %v11032_v28, %v15437_v60  ;;  %v5913_v29 = vmul.f32 %v11606_v59, %v15782_v13  ;;  %v15874_v39 = vpop.f32.mrf.mxu1  ;;  %v15878_v51 = vpop.xlane.xlu1 %5199  ;;  %v18642_v59 = vld [vmem:[#allocation55_spill] sm:$0xff] }
 0x607   :  { %18639 = vst [vmem:[#allocation124_spill] sm:$0xff] %v15865_v62  ;;  %v11608_v40 = vpop.eup %11607  ;;  %v5425_v37 = vmul.f32 %v15714_v30, %v18640_v20  ;;  %v3932_v11 = vpop.f32.mrf.mxu0  ;;  %v15876_v46 = vadd.f32 %v5914_v0, %v5426_v36  ;;  %v5428_v28 = vmul.f32 %v15677_v33, %v18642_v59  ;;  %v6282_v36 = vld [vmem:[%s18148_s11 + $0xb8] sm:$0xff]  ;;  %v6283_v33 = vld [vmem:[%s18148_s11 + $0xc0] sm:$0xff] }
 0x608   :  { %v15880_v50 = vpop.xlane.xlu0 %5202  ;;  %11621 = vpow2.f32 %v4479_v23  ;;  %v4485_v60 = vmul.f32 1.442695, %v4284_v19  ;;  %v4283_v63 = vmul.f32 %v3932_v11, %v15412_v8  ;;  %11161 = vmatmul.mubr.msk.f32.gmra.mxu1 %vm96_vm0, %v6280_v57  ;;  %v15886_v30 = vpop.f32.mrf.mxu1  ;;  %v5948_v0 = vmul.f32 %v11608_v40, %v15796_v2 }
 0x609   :  { %18641 = vst [vmem:[#allocation109_spill] sm:$0xff] %v15876_v46  ;;  %v11610_v52 = vpop.eup %11609  ;;  %v11035_v20 = vpop.f32.mrf.mxu0  ;;  %11163 = vmatprep.mubr.msk.f32.mxu1 %vm96_vm0, %v6281_v61  ;;  %v15893_v23 = vadd.f32 %v5913_v29, %v5425_v37  ;;  %v18644_v61 = vld [vmem:[#allocation56_spill] sm:$0xff] }
 0x60a   :  { %11623 = vpow2.f32 %v4485_v60  ;;  %v4483_v8 = vmul.f32 1.442695, %v4283_v63  ;;  %v4286_v11 = vmul.f32 %v11035_v20, %v15485_v58  ;;  %v5947_v57 = vmul.f32 %v11610_v52, %v15811_v17  ;;  %v15902_v13 = vpop.f32.mrf.mxu1  ;;  %v15908_v37 = vpop.xlane.xlu1 %5208  ;;  %v18646_v60 = vld [vmem:[#allocation95_spill] sm:$0xff]  ;;  %v18647_v20 = vld [vmem:[#allocation58_spill] sm:$0xff] }
 0x60b   :  { %18643 = vst [vmem:[#allocation130_spill] sm:$0xff] %v15893_v23  ;;  %v11612_v19 = vpop.eup %11611  ;;  %v5427_v59 = vmul.f32 %v15716_v27, %v18644_v61  ;;  %v3942_v9 = vpop.f32.mrf.mxu0  ;;  %v15904_v40 = vadd.f32 %v5948_v0, %v5428_v28  ;;  %v5430_v17 = vmul.f32 %v15742_v32, %v18647_v20  ;;  %v6284_v28 = vld [vmem:[%s18148_s11 + $0xc8] sm:$0xff]  ;;  %v6285_v32 = vld [vmem:[%s18148_s11 + $0xd0] sm:$0xff] }
 0x60c   :  { %v15906_v29 = vpop.xlane.xlu0 %5211  ;;  %11625 = vpow2.f32 %v4483_v8  ;;  %v4489_v58 = vmul.f32 1.442695, %v4286_v11  ;;  %v4285_v63 = vmul.f32 %v3942_v9, %v18646_v60  ;;  %11164 = vmatmul.mubr.msk.f32.gmra.mxu1 %vm96_vm0, %v6282_v36  ;;  %v15914_v27 = vpop.f32.mrf.mxu1  ;;  %v5950_v8 = vmul.f32 %v11612_v19, %v15822_v15  ;;  %v18649_v36 = vld [vmem:[#allocation73_spill] sm:$0xff]  ;;  %v18652_v15 = vld [vmem:[#allocation67_spill] sm:$0xff] }
 0x60d   :  { %18645 = vst [vmem:[#allocation106_spill] sm:$0xff] %v15904_v40  ;;  %v11614_v52 = vpop.eup %11613  ;;  %v11038_v61 = vpop.f32.mrf.mxu0  ;;  %11166 = vmatprep.mubr.msk.f32.mxu1 %vm96_vm0, %v6283_v33  ;;  %v15920_v0 = vadd.f32 %v5947_v57, %v5427_v59  ;;  %v18650_v33 = vld [vmem:[#allocation60_spill] sm:$0xff] }
 0x60e   :  { %11627 = vpow2.f32 %v4489_v58  ;;  %v4487_v9 = vmul.f32 1.442695, %v4285_v63  ;;  %v4288_v11 = vmul.f32 %v11038_v61, %v18649_v36  ;;  %v5949_v60 = vmul.f32 %v11614_v52, %v15836_v53  ;;  %v15930_v47 = vpop.f32.mrf.mxu1  ;;  %v15934_v19 = vpop.xlane.xlu1 %5223  ;;  %v18651_v63 = vld [vmem:[#allocation69_spill] sm:$0xff] }
 0x60f   :  { %18648 = vst [vmem:[#allocation128_spill] sm:$0xff] %v15920_v0  ;;  %v11616_v20 = vpop.eup %11615  ;;  %v5429_v2 = vmul.f32 %v15744_v16, %v18650_v33  ;;  %v3952_v57 = vpop.f32.mrf.mxu0  ;;  %v15932_v59 = vadd.f32 %v5950_v8, %v5430_v17  ;;  %v5432_v52 = vmul.f32 %v15785_v5, %v18652_v15  ;;  %v6286_v17 = vld [vmem:[%s18148_s11 + $0xd8] sm:$0xff]  ;;  %v6287_v5 = vld [vmem:[%s18148_s11 + $0xe0] sm:$0xff] }
 0x610   :  { %11629 = vpow2.f32 %v4487_v9  ;;  %v4493_v58 = vmul.f32 1.442695, %v4288_v11  ;;  %v4287_v61 = vmul.f32 %v3952_v57, %v18651_v63  ;;  %11167 = vmatmul.mubr.msk.f32.gmra.mxu1 %vm96_vm0, %v6284_v28  ;;  %v15940_v53 = vpop.f32.mrf.mxu1  ;;  %v5952_v9 = vmul.f32 %v11616_v20, %v15850_v14  ;;  %v15949_v11 = vpop.xlane.xlu0 %5217  ;;  %v18653_v57 = vld [vmem:[#allocation83_spill] sm:$0xff] }
 0x611   :  { %v11618_v36 = vpop.eup %11617  ;;  %v11041_v16 = vpop.f32.mrf.mxu0  ;;  %11169 = vmatprep.mubr.msk.f32.mxu1 %vm96_vm0, %v6285_v32  ;;  %v15946_v8 = vadd.f32 %v5949_v60, %v5429_v2  ;;  %v5431_v63 = vmul.f32 %v15824_v55, %v18653_v57  ;;  %v6288_v55 = vld [vmem:[%s18148_s11 + $0xe8] sm:$0xff] }
 0x612   :  { %11631 = vpow2.f32 %v4493_v58  ;;  %v4491_v28 = vmul.f32 1.442695, %v4287_v61  ;;  %v4290_v33 = vmul.f32 %v11041_v16, %v15584_v45  ;;  %v5951_v15 = vmul.f32 %v11618_v36, %v15865_v62  ;;  %v15958_v2 = vpop.f32.mrf.mxu1  ;;  %v18654_v16 = vld [vmem:[#allocation57_spill] sm:$0xff] }
 0x613   :  { %v11620_v32 = vpop.eup %11619  ;;  %v3962_v60 = vpop.f32.mrf.mxu0  ;;  %v15960_v20 = vadd.f32 %v5952_v9, %v5432_v52  ;;  %v5434_v14 = vmul.f32 %v15852_v24, %v18654_v16  ;;  %v6289_v24 = vld [vmem:[%s18148_s11 + $0xf0] sm:$0xff]  ;;  %v18656_v57 = vld [vmem:[#allocation53_spill] sm:$0xff] }
 0x614   :  { %11633 = vpow2.f32 %v4491_v28  ;;  %v4497_v58 = vmul.f32 1.442695, %v4290_v33  ;;  %v4289_v61 = vmul.f32 %v3962_v60, %v15556_v48  ;;  %11170 = vmatmul.mubr.msk.f32.gmra.mxu1 %vm96_vm0, %v6286_v17  ;;  %v15966_v36 = vpop.f32.mrf.mxu1  ;;  %v15972_v52 = vadd.f32 %v5951_v15, %v5431_v63  ;;  %v15975_v48 = vpop.xlane.xlu1 %5220 }
 0x615   :  { %v11622_v45 = vpop.eup %11621  ;;  %v11044_v62 = vpop.f32.mrf.mxu0  ;;  %11172 = vmatprep.mubr.msk.f32.mxu1 %vm96_vm0, %v6287_v5  ;;  %v5954_v9 = vmul.f32 %v11620_v32, %v15876_v46  ;;  %v5433_v60 = vmul.f32 %v15770_v7, %v18656_v57 }
 0x616   :  { %18655 = vst [vmem:[#allocation114_spill] sm:$0xff] %v15972_v52  ;;  %11635 = vpow2.f32 %v4497_v58  ;;  %v4495_v17 = vmul.f32 1.442695, %v4289_v61  ;;  %v4292_v28 = vmul.f32 %v11044_v62, %v15640_v18  ;;  %v5953_v33 = vmul.f32 %v11622_v45, %v15893_v23  ;;  %v15984_v15 = vpop.f32.mrf.mxu1  ;;  %v15988_v16 = vpop.xlane.xlu0 %5214  ;;  %v18657_v61 = vld [vmem:[#allocation59_spill] sm:$0xff] }
 0x617   :  { %v11624_v5 = vpop.eup %11623  ;;  %v3972_v63 = vpop.f32.mrf.mxu0  ;;  %v15986_v32 = vadd.f32 %v5954_v9, %v5434_v14  ;;  %v5436_v45 = vmul.f32 %v15878_v51, %v18657_v61  ;;  %v6290_v14 = vld [vmem:[%s18148_s11 + $0xf8] sm:$0xff]  ;;  %v6291_v51 = vld [vmem:[%s18148_s11 + $0x100] sm:$0xff] }
 0x618   :  { %11637 = vpow2.f32 %v4495_v17  ;;  %v4501_v58 = vmul.f32 1.442695, %v4292_v28  ;;  %v4291_v18 = vmul.f32 %v3972_v63, %v15612_v21  ;;  %11173 = vmatmul.mubr.msk.f32.gmra.mxu1 %vm96_vm0, %v6288_v55  ;;  %v15994_v23 = vpop.f32.mrf.mxu1  ;;  %v16000_v9 = vadd.f32 %v5953_v33, %v5433_v60  ;;  %v16003_v21 = vpop.xlane.xlu1 %5226  ;;  %v18658_v63 = vld [vmem:[#allocation74_spill] sm:$0xff] }
 0x619   :  { %v11626_v62 = vpop.eup %11625  ;;  %v11047_v7 = vpop.f32.mrf.mxu0  ;;  %11175 = vmatprep.mubr.msk.f32.mxu1 %vm96_vm0, %v6289_v24  ;;  %v5988_v17 = vmul.f32 %v11624_v5, %v15904_v40  ;;  %v5435_v61 = vmul.f32 %v15798_v38, %v18658_v63 }
 0x61a   :  { %11639 = vpow2.f32 %v4501_v58  ;;  %v4499_v55 = vmul.f32 1.442695, %v4291_v18  ;;  %v4294_v28 = vmul.f32 %v11047_v7, %v15694_v6  ;;  %v5987_v24 = vmul.f32 %v11626_v62, %v15920_v0  ;;  %v16012_v33 = vpop.f32.mrf.mxu1  ;;  %v16016_v40 = vpop.xlane.xlu0 %5229  ;;  %v18660_v7 = vld [vmem:[#allocation135_spill] sm:$0xff] }
 0x61b   :  { %v11628_v57 = vpop.eup %11627  ;;  %v3982_v60 = vpop.f32.mrf.mxu0  ;;  %v16014_v5 = vadd.f32 %v5988_v17, %v5436_v45  ;;  %v5438_v62 = vmul.f32 %v15839_v31, %v18660_v7  ;;  %v6292_v45 = vld [vmem:[%s18148_s11 + $0x108] sm:$0xff]  ;;  %v6293_v31 = vld [vmem:[%s18148_s11 + $0x110] sm:$0xff] }
 0x61c   :  { %11641 = vpow2.f32 %v4499_v55  ;;  %v4505_v58 = vmul.f32 1.442695, %v4294_v28  ;;  %v4293_v6 = vmul.f32 %v3982_v60, %v15666_v1  ;;  %11176 = vmatmul.mubr.msk.f32.gmra.mxu1 %vm96_vm0, %v6290_v14  ;;  %v16022_v0 = vpop.f32.mrf.mxu1  ;;  %v5990_v17 = vmul.f32 %v11628_v57, %v15932_v59 }
 0x61d   :  { %18659 = vst [vmem:[#allocation136_spill] sm:$0xff] %v16014_v5  ;;  %v11630_v18 = vpop.eup %11629  ;;  %v11050_v38 = vpop.f32.mrf.mxu0  ;;  %11178 = vmatprep.mubr.msk.f32.mxu1 %vm96_vm0, %v6291_v51  ;;  %v16029_v55 = vadd.f32 %v5987_v24, %v5435_v61  ;;  %v18662_v51 = vld [vmem:[#allocation64_spill] sm:$0xff] }
 0x61e   :  { %11643 = vpow2.f32 %v4505_v58  ;;  %v4503_v1 = vmul.f32 1.442695, %v4293_v6  ;;  %v4296_v14 = vmul.f32 %v11050_v38, %v15750_v12  ;;  %v5989_v28 = vmul.f32 %v11630_v18, %v15946_v8  ;;  %v16038_v7 = vpop.f32.mrf.mxu1  ;;  %v16042_v24 = vpop.xlane.xlu1 %5235 }
 0x61f   :  { %18661 = vst [vmem:[#allocation111_spill] sm:$0xff] %v16029_v55  ;;  %v11632_v63 = vpop.eup %11631  ;;  %v5437_v60 = vmul.f32 %v15880_v50, %v18662_v51  ;;  %v3992_v46 = vpop.f32.mrf.mxu0  ;;  %v16040_v57 = vadd.f32 %v5990_v17, %v5438_v62  ;;  %v5440_v18 = vmul.f32 %v15906_v29, %v15545_v34  ;;  %v6294_v62 = vld [vmem:[%s18148_s11 + $0x118] sm:$0xff]  ;;  %v6295_v34 = vld [vmem:[%s18148_s11 + $0x120] sm:$0xff] }
 0x620   :  { %v16044_v61 = vpop.xlane.xlu0 %5238  ;;  %11645 = vpow2.f32 %v4503_v1  ;;  %v4509_v12 = vmul.f32 1.442695, %v4296_v14  ;;  %v4295_v58 = vmul.f32 %v3992_v46, %v15722_v25  ;;  %11179 = vmatmul.mubr.msk.f32.gmra.mxu1 %vm96_vm0, %v6292_v45  ;;  %v16050_v50 = vpop.f32.mrf.mxu1  ;;  %v5992_v1 = vmul.f32 %v11632_v63, %v15960_v20  ;;  %v18665_v14 = vld [vmem:[#allocation66_spill] sm:$0xff] }
 0x621   :  { %18663 = vst [vmem:[#allocation133_spill] sm:$0xff] %v16040_v57  ;;  %v11634_v6 = vpop.eup %11633  ;;  %v11053_v38 = vpop.f32.mrf.mxu0  ;;  %11181 = vmatprep.mubr.msk.f32.mxu1 %vm96_vm0, %v6293_v31  ;;  %v16056_v17 = vadd.f32 %v5989_v28, %v5437_v60  ;;  %v5439_v31 = vmul.f32 %v15908_v37, %v18665_v14  ;;  %v18668_v14 = vld [vmem:[#allocation78_spill] sm:$0xff] }
 0x622   :  { %11647 = vpow2.f32 %v4509_v12  ;;  %v4507_v25 = vmul.f32 1.442695, %v4295_v58  ;;  %v4298_v46 = vmul.f32 %v11053_v38, %v15804_v3  ;;  %v5991_v29 = vmul.f32 %v11634_v6, %v15972_v52  ;;  %v16066_v51 = vpop.f32.mrf.mxu1 }
 0x623   :  { %18664 = vst [vmem:[#allocation119_spill] sm:$0xff] %v16056_v17  ;;  %v11636_v45 = vpop.eup %11635  ;;  %v4002_v28 = vpop.f32.mrf.mxu0  ;;  %v16068_v60 = vadd.f32 %v5992_v1, %v5440_v18  ;;  %v5442_v6 = vmul.f32 %v15949_v11, %v15602_v35  ;;  %v6296_v18 = vld [vmem:[%s18148_s11 + $0x128] sm:$0xff]  ;;  %v6297_v35 = vld [vmem:[%s18148_s11 + $0x130] sm:$0xff] }
 0x624   :  { %v16070_v63 = vpop.xlane.xlu0 %5244  ;;  %11649 = vpow2.f32 %v4507_v25  ;;  %v4513_v12 = vmul.f32 1.442695, %v4298_v46  ;;  %v4297_v3 = vmul.f32 %v4002_v28, %v15776_v56  ;;  %11182 = vmatmul.mubr.msk.f32.gmra.mxu1 %vm96_vm0, %v6294_v62  ;;  %v16076_v38 = vpop.f32.mrf.mxu1  ;;  %v5994_v1 = vmul.f32 %v11636_v45, %v15986_v32 }
 0x625   :  { %18666 = vst [vmem:[#allocation117_spill] sm:$0xff] %v16068_v60  ;;  %v11638_v58 = vpop.eup %11637  ;;  %v11056_v37 = vpop.f32.mrf.mxu0  ;;  %11184 = vmatprep.mubr.msk.f32.mxu1 %vm96_vm0, %v6295_v34  ;;  %v16083_v25 = vadd.f32 %v5991_v29, %v5439_v31  ;;  %v5441_v28 = vmul.f32 %v15988_v16, %v18668_v14  ;;  %v6298_v16 = vld [vmem:[%s18148_s11 + $0x138] sm:$0xff] }
 0x626   :  { %v16085_v56 = vpop.xlane.xlu1 %5232  ;;  %11651 = vpow2.f32 %v4513_v12  ;;  %v4511_v62 = vmul.f32 1.442695, %v4297_v3  ;;  %v4300_v46 = vmul.f32 %v11056_v37, %v15858_v44  ;;  %v5993_v11 = vmul.f32 %v11638_v58, %v16000_v9  ;;  %v16094_v52 = vpop.f32.mrf.mxu1  ;;  %v18671_v14 = vld [vmem:[#allocation107_spill] sm:$0xff] }
 0x627   :  { %18667 = vst [vmem:[#allocation123_spill] sm:$0xff] %v16083_v25  ;;  %v11640_v34 = vpop.eup %11639  ;;  %v4012_v29 = vpop.f32.mrf.mxu0  ;;  %v16096_v45 = vadd.f32 %v5994_v1, %v5442_v6  ;;  %v5444_v3 = vmul.f32 %v15934_v19, %v15658_v4  ;;  %v6299_v19 = vld [vmem:[%s18148_s11 + $0x140] sm:$0xff] }
 0x628   :  { %11653 = vpow2.f32 %v4511_v62  ;;  %v4517_v31 = vmul.f32 1.442695, %v4300_v46  ;;  %v4299_v12 = vmul.f32 %v4012_v29, %v15830_v49  ;;  %11185 = vmatmul.mubr.msk.f32.gmra.mxu1 %vm96_vm0, %v6296_v18  ;;  %v16102_v58 = vpop.f32.mrf.mxu1  ;;  %v6028_v6 = vmul.f32 %v11640_v34, %v16014_v5  ;;  %v16113_v18 = vpop.xlane.xlu0 %5253  ;;  %v18720_v5 = vld [vmem:[#allocation43_spill] sm:$0xff] }
 0x629   :  { %18669 = vst [vmem:[#allocation121_spill] sm:$0xff] %v16096_v45  ;;  %v11642_v44 = vpop.eup %11641  ;;  %v11059_v37 = vpop.f32.mrf.mxu0  ;;  %11187 = vmatprep.mubr.msk.f32.mxu1 %vm96_vm0, %v6297_v35  ;;  %v16109_v1 = vadd.f32 %v5993_v11, %v5441_v28  ;;  %v5443_v34 = vmul.f32 %v15975_v48, %v18671_v14  ;;  %v6300_v48 = vld [vmem:[%s18148_s11 + $0x148] sm:$0xff] }
 0x62a   :  { %v16111_v49 = vpop.xlane.xlu1 %5241  ;;  %11655 = vpow2.f32 %v4517_v31  ;;  %v4515_v62 = vmul.f32 1.442695, %v4299_v12  ;;  %v4302_v4 = vmul.f32 %v11059_v37, %v15914_v27  ;;  %v6027_v46 = vmul.f32 %v11642_v44, %v16029_v55  ;;  %v16122_v11 = vpop.f32.mrf.mxu1 }
 0x62b   :  { %18670 = vst [vmem:[#allocation127_spill] sm:$0xff] %v16109_v1  ;;  %v11644_v35 = vpop.eup %11643  ;;  %v4022_v28 = vpop.f32.mrf.mxu0  ;;  %v16124_v29 = vadd.f32 %v6028_v6, %v5444_v3  ;;  %v5446_v37 = vmul.f32 %v16016_v40, %v15710_v54  ;;  %v6301_v54 = vld [vmem:[%s18148_s11 + $0x150] sm:$0xff] }
 0x62c   :  { %11657 = vpow2.f32 %v4515_v62  ;;  %v4521_v31 = vmul.f32 1.442695, %v4302_v4  ;;  %v4301_v12 = vmul.f32 %v4022_v28, %v15886_v30  ;;  %11188 = vmatmul.mubr.msk.f32.gmra.mxu1 %vm96_vm0, %v6298_v16  ;;  %v16130_v44 = vpop.f32.mrf.mxu1  ;;  %v16136_v3 = vadd.f32 %v6027_v46, %v5443_v34  ;;  %v16152_v34 = vpop.xlane.xlu0 %5250 }
 0x62d   :  { %v11646_v27 = vpop.eup %11645  ;;  %v11062_v55 = vpop.f32.mrf.mxu0  ;;  %11190 = vmatprep.mubr.msk.f32.mxu1 %vm96_vm0, %v6299_v19  ;;  %v6030_v6 = vmul.f32 %v11644_v35, %v16040_v57  ;;  %v5445_v19 = vmul.f32 %v16003_v21, %v15686_v42  ;;  %v6302_v21 = vld [vmem:[%s18148_s11 + $0x158] sm:$0xff] }
 0x62e   :  { %18672 = vst [vmem:[#allocation125_spill] sm:$0xff] %v16136_v3  ;;  %v16139_v30 = vpop.xlane.xlu1 %5247  ;;  %11659 = vpow2.f32 %v4521_v31  ;;  %v4519_v16 = vmul.f32 1.442695, %v4301_v12  ;;  %v4304_v62 = vmul.f32 %v11062_v55, %v15966_v36  ;;  %v6029_v40 = vmul.f32 %v11646_v27, %v16056_v17  ;;  %v16148_v46 = vpop.f32.mrf.mxu1 }
 0x62f   :  { %v11648_v4 = vpop.eup %11647  ;;  %v4032_v14 = vpop.f32.mrf.mxu0  ;;  %v16150_v35 = vadd.f32 %v6030_v6, %v5446_v37  ;;  %v5448_v31 = vmul.f32 %v16042_v24, %v15766_v10  ;;  %v6303_v10 = vld [vmem:[%s18148_s11 + $0x160] sm:$0xff] }
 0x630   :  { %11661 = vpow2.f32 %v4519_v16  ;;  %v4525_v28 = vmul.f32 1.442695, %v4304_v62  ;;  %v4303_v36 = vmul.f32 %v4032_v14, %v15940_v53  ;;  %11191 = vmatmul.mubr.msk.f32.gmra.mxu1 %vm96_vm0, %v6300_v48  ;;  %v16158_v12 = vpop.f32.mrf.mxu1  ;;  %v16164_v27 = vadd.f32 %v6029_v40, %v5445_v19  ;;  %v16180_v19 = vpop.xlane.xlu0 %5256 }
 0x631   :  { %18673 = vst [vmem:[#allocation132_spill] sm:$0xff] %v16150_v35  ;;  %v11650_v55 = vpop.eup %11649  ;;  %v11065_v42 = vpop.f32.mrf.mxu0  ;;  %11193 = vmatprep.mubr.msk.f32.mxu1 %vm96_vm0, %v6301_v54  ;;  %v6032_v37 = vmul.f32 %v11648_v4, %v16068_v60  ;;  %v5447_v62 = vmul.f32 %v16085_v56, %v15738_v22  ;;  %v6304_v22 = vld [vmem:[%s18148_s11 + $0x168] sm:$0xff]  ;;  %v18725_v60 = vld [vmem:[#allocation94_spill] sm:$0xff] }
 0x632   :  { %18674 = vst [vmem:[#allocation129_spill] sm:$0xff] %v16164_v27  ;;  %v16167_v53 = vpop.xlane.xlu1 %5259  ;;  %11663 = vpow2.f32 %v4525_v28  ;;  %v4523_v48 = vmul.f32 1.442695, %v4303_v36  ;;  %v4306_v6 = vmul.f32 %v11065_v42, %v16022_v0  ;;  %v6031_v24 = vmul.f32 %v11650_v55, %v16083_v25  ;;  %v16176_v54 = vpop.f32.mrf.mxu1  ;;  %v7614_v25 = vld [vmem:[%s18149_s12 + $0x350] sm:$0xff] }
 0x633   :  { %v11652_v16 = vpop.eup %11651  ;;  %v4042_v40 = vpop.f32.mrf.mxu0  ;;  %v16178_v4 = vadd.f32 %v6032_v37, %v5448_v31  ;;  %v5450_v36 = vmul.f32 %v16111_v49, %v15820_v43  ;;  %v6305_v43 = vld [vmem:[%s18148_s11 + $0x170] sm:$0xff] }
 0x634   :  { %11665 = vpow2.f32 %v4523_v48  ;;  %v4529_v14 = vmul.f32 1.442695, %v4306_v6  ;;  %v4305_v0 = vmul.f32 %v4042_v40, %v15994_v23  ;;  %11194 = vmatmul.mubr.msk.f32.gmra.mxu1 %vm96_vm0, %v6302_v21  ;;  %v2125_v55 = vpop.f32.mrf.mxu1  ;;  %v16190_v56 = vadd.f32 %v6031_v24, %v5447_v62 }
 0x635   :  { %18675 = vst [vmem:[#allocation138_spill] sm:$0xff] %v16178_v4  ;;  %v11654_v28 = vpop.eup %11653  ;;  %v11068_v42 = vpop.f32.mrf.mxu0  ;;  %11196 = vmatprep.mubr.msk.f32.mxu1 %vm96_vm0, %v6303_v10  ;;  %v6034_v31 = vmul.f32 %v11652_v16, %v16096_v45  ;;  %v5449_v6 = vmul.f32 %v16044_v61, %v15794_v41  ;;  %v6306_v41 = vld [vmem:[%s18148_s11 + $0x178] sm:$0xff] }
 0x636   :  { %18676 = vst [vmem:[#allocation134_spill] sm:$0xff] %v16190_v56  ;;  %v16193_v37 = vpop.xlane.xlu1 %5271  ;;  %11667 = vpow2.f32 %v4529_v14  ;;  %v4527_v23 = vmul.f32 1.442695, %v4305_v0  ;;  %v4308_v21 = vmul.f32 %v11068_v42, %v16076_v38  ;;  %v6033_v49 = vmul.f32 %v11654_v28, %v16109_v1  ;;  %v16202_v10 = vpop.f32.mrf.mxu1  ;;  %v18728_v45 = vld [vmem:[#allocation91_spill] sm:$0xff] }
 0x637   :  { %v11656_v48 = vpop.eup %11655  ;;  %v4052_v24 = vpop.f32.mrf.mxu0  ;;  %v16204_v16 = vadd.f32 %v6034_v31, %v5450_v36  ;;  %v5452_v14 = vmul.f32 %v16139_v30, %v15874_v39  ;;  %v6307_v39 = vld [vmem:[%s18148_s11 + $0x180] sm:$0xff] }
 0x638   :  { %11669 = vpow2.f32 %v4527_v23  ;;  %v4533_v62 = vmul.f32 1.442695, %v4308_v21  ;;  %v4307_v40 = vmul.f32 %v4052_v24, %v16050_v50  ;;  %11197 = vmatmul.mubr.msk.f32.gmra.mxu1 %vm96_vm0, %v6304_v22  ;;  %v16210_v0 = vpop.f32.mrf.mxu1  ;;  %v16216_v61 = vadd.f32 %v6033_v49, %v5449_v6  ;;  %v16219_v50 = vpop.xlane.xlu0 %5265 }
 0x639   :  { %18677 = vst [vmem:[#allocation139_spill] sm:$0xff] %v16204_v16  ;;  %v11658_v38 = vpop.eup %11657  ;;  %v11071_v28 = vpop.f32.mrf.mxu0  ;;  %11199 = vmatprep.mubr.msk.f32.mxu1 %vm96_vm0, %v6305_v43  ;;  %v6068_v36 = vmul.f32 %v11656_v48, %v16124_v29  ;;  %v5451_v23 = vmul.f32 %v16070_v63, %v15848_v26  ;;  %v6308_v26 = vld [vmem:[%s18148_s11 + $0x188] sm:$0xff] }
 0x63a   :  { %18678 = vst [vmem:[#allocation141_spill] sm:$0xff] %v16216_v61  ;;  %11671 = vpow2.f32 %v4533_v62  ;;  %v4531_v42 = vmul.f32 1.442695, %v4307_v40  ;;  %v4310_v22 = vmul.f32 %v11071_v28, %v16130_v44  ;;  %v6067_v30 = vmul.f32 %v11658_v38, %v16136_v3  ;;  %v16228_v21 = vpop.f32.mrf.mxu1  ;;  %v16232_v48 = vpop.xlane.xlu1 %5268 }
 0x63b   :  { %v11660_v31 = vpop.eup %11659  ;;  %v4062_v43 = vpop.f32.mrf.mxu0  ;;  %v16230_v49 = vadd.f32 %v6068_v36, %v5452_v14  ;;  %v5454_v62 = vmul.f32 %v16113_v18, %v15930_v47  ;;  %v5453_v36 = vmul.f32 %v16152_v34, %v15902_v13  ;;  %v6310_v34 = vld [vmem:[%s18148_s11 + $0x198] sm:$0xff] }
 0x63c   :  { %11673 = vpow2.f32 %v4531_v42  ;;  %v4537_v6 = vmul.f32 1.442695, %v4310_v22  ;;  %v4309_v44 = vmul.f32 %v4062_v43, %v16102_v58  ;;  %11200 = vmatmul.mubr.msk.f32.gmra.mxu1 %vm96_vm0, %v6306_v41  ;;  %v2137_v40 = vpop.f32.mrf.mxu1  ;;  %v6070_v63 = vmul.f32 %v11660_v31, %v16150_v35  ;;  %v6309_v41 = vld [vmem:[%s18148_s11 + $0x190] sm:$0xff] }
 0x63d   :  { %18679 = vst [vmem:[#allocation140_spill] sm:$0xff] %v16230_v49  ;;  %v11662_v24 = vpop.eup %11661  ;;  %v11074_v38 = vpop.f32.mrf.mxu0  ;;  %11202 = vmatprep.mubr.msk.f32.mxu1 %vm96_vm0, %v6307_v39  ;;  %v16243_v14 = vadd.f32 %v6067_v30, %v5451_v23 }
 0x63e   :  { %11675 = vpow2.f32 %v4537_v6  ;;  %v4535_v58 = vmul.f32 1.442695, %v4309_v44  ;;  %v4312_v28 = vmul.f32 %v11074_v38, %v2125_v55  ;;  %v6069_v47 = vmul.f32 %v11662_v24, %v16164_v27  ;;  %v16251_v42 = vpop.f32.mrf.mxu1  ;;  %v5263_v30 = vpop.xlane.xlu0 %5262 }
 0x63f   :  { %18680 = vst [vmem:[#allocation34_spill] sm:$0xff] %v16243_v14  ;;  %v11664_v18 = vpop.eup %11663  ;;  %v4072_v22 = vpop.f32.mrf.mxu0  ;;  %v16253_v39 = vadd.f32 %v6070_v63, %v5454_v62  ;;  %v5456_v6 = vmul.f32 %v16167_v53, %v15984_v15  ;;  %v5455_v63 = vmul.f32 %v16180_v19, %v15958_v2  ;;  %v6312_v2 = vld [vmem:[%s18148_s11 + $0x1a8] sm:$0xff] }
 0x640   :  { %v16255_v31 = vpop.xlane.xlu1 %5277  ;;  %11677 = vpow2.f32 %v4535_v58  ;;  %v4541_v55 = vmul.f32 1.442695, %v4312_v28  ;;  %v4311_v23 = vmul.f32 %v4072_v22, %v16158_v12  ;;  %11203 = vmatmul.mubr.msk.f32.gmra.mxu1 %vm96_vm0, %v6308_v26  ;;  %v2143_v44 = vpop.f32.mrf.mxu1  ;;  %v16265_v24 = vadd.f32 %v6069_v47, %v5453_v36  ;;  %v6311_v26 = vld [vmem:[%s18148_s11 + $0x1a0] sm:$0xff] }
 0x641   :  { %18681 = vst [vmem:[#allocation68_spill] sm:$0xff] %v16253_v39  ;;  %v11666_v43 = vpop.eup %11665  ;;  %v11077_v13 = vpop.f32.mrf.mxu0  ;;  %11205 = vmatprep.mubr.msk.f32.mxu1 %vm96_vm0, %v6309_v41  ;;  %v6072_v62 = vmul.f32 %v11664_v18, %v16178_v4  ;;  %v5458_v22 = vmul.f32 %v16219_v50, %v16038_v7  ;;  %v6313_v7 = vld [vmem:[%s18148_s11 + $0x1b0] sm:$0xff] }
 0x642   :  { %18682 = vst [vmem:[#allocation63_spill] sm:$0xff] %v16265_v24  ;;  %11679 = vpow2.f32 %v4541_v55  ;;  %v4539_v12 = vmul.f32 1.442695, %v4311_v23  ;;  %v4314_v38 = vmul.f32 %v11077_v13, %v2137_v40  ;;  %v6071_v15 = vmul.f32 %v11666_v43, %v16190_v56  ;;  %v16274_v58 = vpop.f32.mrf.mxu1  ;;  %v16278_v47 = vpop.xlane.xlu0 %5274 }
 0x643   :  { %v11668_v53 = vpop.eup %11667  ;;  %v4082_v28 = vpop.f32.mrf.mxu0  ;;  %v16276_v41 = vadd.f32 %v6072_v62, %v5456_v6  ;;  %v5457_v62 = vmul.f32 %v5263_v30, %v16012_v33  ;;  %v6314_v33 = vld [vmem:[%s18148_s11 + $0x1b8] sm:$0xff] }
 0x644   :  { %11681 = vpow2.f32 %v4539_v12  ;;  %v4545_v18 = vmul.f32 1.442695, %v4314_v38  ;;  %v4313_v40 = vmul.f32 %v4082_v28, %v16210_v0  ;;  %11206 = vmatmul.mubr.msk.f32.gmra.mxu1 %vm96_vm0, %v6310_v34  ;;  %v2149_v55 = vpop.f32.mrf.mxu1  ;;  %v6074_v19 = vmul.f32 %v11668_v53, %v16204_v16  ;;  %v5284_v6 = vpop.xlane.xlu1 %5283 }
 0x645   :  { %18683 = vst [vmem:[#allocation38_spill] sm:$0xff] %v16276_v41  ;;  %v11670_v36 = vpop.eup %11669  ;;  %v11080_v23 = vpop.f32.mrf.mxu0  ;;  %11208 = vmatprep.mubr.msk.f32.mxu1 %vm96_vm0, %v6311_v26  ;;  %v16289_v43 = vadd.f32 %v6071_v15, %v5455_v63 }
 0x646   :  { %11683 = vpow2.f32 %v4545_v18  ;;  %v4543_v0 = vmul.f32 1.442695, %v4313_v40  ;;  %v4316_v13 = vmul.f32 %v11080_v23, %v2149_v55  ;;  %v6073_v50 = vmul.f32 %v11670_v36, %v16216_v61  ;;  %v16296_v12 = vpop.f32.mrf.mxu1  ;;  %v16300_v15 = vpop.xlane.xlu0 %5286  ;;  %v6315_v55 = vld [vmem:[%s18148_s11 + $0x1c0] sm:$0xff]  ;;  %v18719_v61 = vld [vmem:[#allocation137_spill] sm:$0xff] }
 0x647   :  { %18684 = vst [vmem:[#allocation86_spill] sm:$0xff] %v16289_v43  ;;  %v11672_v34 = vpop.eup %11671  ;;  %v4092_v38 = vpop.f32.mrf.mxu0  ;;  %v16298_v26 = vadd.f32 %v6074_v19, %v5458_v22  ;;  %v5460_v18 = vmul.f32 %v16193_v37, %v16094_v52  ;;  %v5459_v23 = vmul.f32 %v16232_v48, %v16066_v51  ;;  %v6316_v48 = vld [vmem:[%s18148_s11 + $0x1c8] sm:$0xff] }
 0x648   :  { %11685 = vpow2.f32 %v4543_v0  ;;  %v4549_v53 = vmul.f32 1.442695, %v4316_v13  ;;  %v4315_v63 = vmul.f32 %v4092_v38, %v2143_v44  ;;  %11209 = vmatmul.mubr.msk.f32.gmra.mxu1 %vm96_vm0, %v6312_v2  ;;  %v2155_v40 = vpop.f32.mrf.mxu1  ;;  %v6108_v30 = vmul.f32 %v11672_v34, %v16230_v49 }
 0x649   :  { %18685 = vst [vmem:[#allocation44_spill] sm:$0xff] %v16298_v26  ;;  %v11674_v28 = vpop.eup %11673  ;;  %v11083_v36 = vpop.f32.mrf.mxu0  ;;  %11211 = vmatprep.mubr.msk.f32.mxu1 %vm96_vm0, %v6313_v7  ;;  %v16310_v22 = vadd.f32 %v6073_v50, %v5457_v62  ;;  %v5462_v13 = vmul.f32 %v16255_v31, %v16148_v46 }
 0x64a   :  { %11687 = vpow2.f32 %v4549_v53  ;;  %v4547_v44 = vmul.f32 1.442695, %v4315_v63  ;;  %v6107_v52 = vmul.f32 %v11674_v28, %v16243_v14  ;;  %v16318_v2 = vpop.f32.mrf.mxu1  ;;  %v16320_v0 = vadd.f32 %v6108_v30, %v5460_v18  ;;  %v5281_v7 = vpop.xlane.xlu1 %5280  ;;  %v6317_v28 = vld [vmem:[%s18148_s11 + $0x1d0] sm:$0xff] }
 0x64b   :  { %18686 = vst [vmem:[#allocation65_spill] sm:$0xff] %v16310_v22  ;;  %v11676_v37 = vpop.eup %11675  ;;  %v4102_v19 = vpop.f32.mrf.mxu0  ;;  %v5461_v30 = vmul.f32 %v16278_v47, %v16122_v11  ;;  %v6318_v11 = vld [vmem:[%s18148_s11 + $0x1d8] sm:$0xff] }
 0x64c   :  { %18687 = vst [vmem:[#allocation52_spill] sm:$0xff] %v16320_v0  ;;  %v16324_v50 = vpop.xlane.xlu0 %5292  ;;  %11689 = vpow2.f32 %v4547_v44  ;;  %v4317_v34 = vmul.f32 %v4102_v19, %v2155_v40  ;;  %11212 = vmatmul.mubr.msk.f32.gmra.mxu1 %vm96_vm0, %v6314_v33  ;;  %v6110_v62 = vmul.f32 %v11676_v37, %v16253_v39  ;;  %v2161_v53 = vpop.f32.mrf.mxu1  ;;  %v16332_v63 = vadd.f32 %v6107_v52, %v5459_v23 }
 0x64d   :  { %v11678_v38 = vpop.eup %11677  ;;  %v11086_v51 = vpop.f32.mrf.mxu0  ;;  %11214 = vmatprep.mubr.msk.f32.mxu1 %vm96_vm0, %v6315_v55  ;;  %v4318_v31 = vmul.f32 %v11083_v36, %v2161_v53  ;;  %v5464_v52 = vmul.f32 %v5284_v6, %v16202_v10  ;;  %v5463_v19 = vmul.f32 %v5281_v7, %v16176_v54 }
 0x64e   :  { %18688 = vst [vmem:[#allocation54_spill] sm:$0xff] %v16332_v63  ;;  %v4551_v46 = vmul.f32 1.442695, %v4317_v34  ;;  %v6109_v18 = vmul.f32 %v11678_v38, %v16265_v24  ;;  %v16338_v40 = vadd.f32 %v6110_v62, %v5462_v13  ;;  %v16342_v44 = vpop.f32.mrf.mxu1  ;;  %v5290_v13 = vpop.xlane.xlu1 %5289  ;;  %v6319_v62 = vld [vmem:[%s18148_s11 + $0x1e0] sm:$0xff] }
 0x64f   :  { %v11680_v33 = vpop.eup %11679  ;;  %v4112_v55 = vpop.f32.mrf.mxu0  ;;  %v4553_v37 = vmul.f32 1.442695, %v4318_v31  ;;  %v18721_v24 = vld [vmem:[#allocation88_spill] sm:$0xff] }
 0x650   :  { %18689 = vst [vmem:[#allocation55_spill] sm:$0xff] %v16338_v40  ;;  %11691 = vpow2.f32 %v4551_v46  ;;  %11215 = vmatmul.mubr.msk.f32.gmra.mxu1 %vm96_vm0, %v6316_v48  ;;  %v6112_v36 = vmul.f32 %v11680_v33, %v16276_v41  ;;  %v2167_v34 = vpop.f32.mrf.mxu1  ;;  %v16352_v47 = vadd.f32 %v6109_v18, %v5461_v30  ;;  %v5302_v10 = vpop.xlane.xlu0 %5301  ;;  %v5466_v46 = vmul.f32 %v5290_v13, %v16251_v42 }
 0x651   :  { %v11682_v23 = vpop.eup %11681  ;;  %11217 = vmatprep.mubr.msk.f32.mxu1 %vm96_vm0, %v6317_v28  ;;  %11693 = vpow2.f32 %v4553_v37  ;;  %v4319_v6 = vmul.f32 %v4112_v55, %v2167_v34  ;;  %v11089_v48 = vpop.f32.mrf.mxu0  ;;  %v5465_v30 = vmul.f32 %v16300_v15, %v16228_v21  ;;  %v6320_v37 = vld [vmem:[%s18148_s11 + $0x1e8] sm:$0xff] }
 0x652   :  { %18690 = vst [vmem:[#allocation56_spill] sm:$0xff] %v16352_v47  ;;  %v6111_v38 = vmul.f32 %v11682_v23, %v16289_v43  ;;  %v16358_v54 = vadd.f32 %v6112_v36, %v5464_v52  ;;  %v16360_v53 = vpop.f32.mrf.mxu1  ;;  %v5296_v55 = vpop.xlane.xlu1 %5295  ;;  %v6321_v36 = vld [vmem:[%s18148_s11 + $0x1f0] sm:$0xff] }
 0x653   :  { %v11684_v7 = vpop.eup %11683  ;;  %v4555_v31 = vmul.f32 1.442695, %v4319_v6  ;;  %v4122_v15 = vpop.f32.mrf.mxu0  ;;  %v5468_v34 = vmul.f32 %v5296_v55, %v16296_v12 }
 0x654   :  { %18691 = vst [vmem:[#allocation95_spill] sm:$0xff] %v16358_v54  ;;  %11218 = vmatmul.mubr.msk.f32.gmra.mxu1 %vm96_vm0, %v6318_v11  ;;  %v6114_v28 = vmul.f32 %v11684_v7, %v16298_v26  ;;  %v16365_v18 = vadd.f32 %v6111_v38, %v5463_v19  ;;  %v2173_v52 = vpop.f32.mrf.mxu1  ;;  %v5299_v11 = vpop.xlane.xlu0 %5298  ;;  %v5467_v7 = vmul.f32 %v16324_v50, %v16274_v58 }
 0x655   :  { %v11686_v33 = vpop.eup %11685  ;;  %11220 = vmatprep.mubr.msk.f32.mxu1 %vm96_vm0, %v6319_v62  ;;  %11695 = vpow2.f32 %v4555_v31  ;;  %v4320_v42 = vmul.f32 %v11086_v51, %v2173_v52  ;;  %v6322_v31 = vld [vmem:[%s18148_s11 + $0x1f8] sm:$0xff]  ;;  %v11092_v58 = vpop.f32.mrf.mxu0 }
 0x656   :  { %18692 = vst [vmem:[#allocation58_spill] sm:$0xff] %v16365_v18  ;;  %v6113_v23 = vmul.f32 %v11686_v33, %v16310_v22  ;;  %v16377_v19 = vadd.f32 %v6114_v28, %v5466_v46  ;;  %v16379_v21 = vpop.f32.mrf.mxu1  ;;  %v6323_v28 = vld [vmem:[%s18148_s11 + $0x200] sm:$0xff] }
 0x657   :  { %v11688_v13 = vpop.eup %11687  ;;  %v4557_v6 = vmul.f32 1.442695, %v4320_v42 }
 0x658   :  { %18693 = vst [vmem:[#allocation73_spill] sm:$0xff] %v16377_v19  ;;  %11221 = vmatmul.mubr.msk.f32.gmra.mxu1 %vm96_vm0, %v6320_v37  ;;  %v6148_v51 = vmul.f32 %v11688_v13, %v16320_v0  ;;  %v16384_v62 = vadd.f32 %v6113_v23, %v5465_v30  ;;  %v2179_v46 = vpop.f32.mrf.mxu1  ;;  %v5308_v50 = vpop.xlane.xlu0 %5307  ;;  %v6324_v23 = vld [vmem:[%s18148_s11 + $0x208] sm:$0xff]  ;;  %v5469_v13 = vmul.f32 %v5299_v11, %v16318_v2 }
 0x659   :  { %v11690_v38 = vpop.eup %11689  ;;  %11223 = vmatprep.mubr.msk.f32.mxu1 %vm96_vm0, %v6321_v36  ;;  %11697 = vpow2.f32 %v4557_v6  ;;  %v4321_v12 = vmul.f32 %v4122_v15, %v2179_v46  ;;  %v5470_v46 = vmul.f32 %v5302_v10, %v16342_v44  ;;  %v6327_v44 = vld [vmem:[%s18148_s11 + $0x220] sm:$0xff] }
 0x65a   :  { %18694 = vst [vmem:[#allocation60_spill] sm:$0xff] %v16384_v62  ;;  %v16395_v33 = vadd.f32 %v6148_v51, %v5468_v34  ;;  %v6147_v30 = vmul.f32 %v11690_v38, %v16332_v63  ;;  %v16398_v55 = vpop.f32.mrf.mxu1  ;;  %v6325_v34 = vld [vmem:[%s18148_s11 + $0x210] sm:$0xff] }
 0x65b   :  { %v4559_v52 = vmul.f32 1.442695, %v4321_v12 }
 0x65c   :  { %18695 = vst [vmem:[#allocation69_spill] sm:$0xff] %v16395_v33  ;;  %11224 = vmatmul.mubr.msk.f32.gmra.mxu1 %vm96_vm0, %v6322_v31  ;;  %v16401_v37 = vadd.f32 %v6147_v30, %v5467_v7  ;;  %v2185_v36 = vpop.f32.mrf.mxu1  ;;  %v4132_v7 = vpop.f32.mrf.mxu0 }
 0x65d   :  { %v11692_v42 = vpop.eup %11691  ;;  %11226 = vmatprep.mubr.msk.f32.mxu1 %vm96_vm0, %v6323_v28  ;;  %11699 = vpow2.f32 %v4559_v52  ;;  %v4322_v15 = vmul.f32 %v11089_v48, %v2185_v36  ;;  %v5305_v48 = vpop.xlane.xlu1 %5304  ;;  %v6326_v28 = vld [vmem:[%s18148_s11 + $0x218] sm:$0xff] }
 0x65e   :  { %18696 = vst [vmem:[#allocation67_spill] sm:$0xff] %v16401_v37  ;;  %v6149_v6 = vmul.f32 %v11692_v42, %v16352_v47  ;;  %v11694_v51 = vpop.eup %11693  ;;  %v16412_v38 = vpop.f32.mrf.mxu1 }
 0x65f   :  { %v4561_v31 = vmul.f32 1.442695, %v4322_v15  ;;  %v6150_v12 = vmul.f32 %v11694_v51, %v16338_v40  ;;  %v5314_v30 = vpop.xlane.xlu0 %5313  ;;  %v6328_v51 = vld [vmem:[%s18148_s11 + $0x228] sm:$0xff] }
 0x660   :  { %11227 = vmatmul.mubr.msk.f32.gmra.mxu1 %vm96_vm0, %v6324_v23  ;;  %v16417_v2 = vadd.f32 %v6149_v6, %v5469_v13  ;;  %v2191_v11 = vpop.f32.mrf.mxu1  ;;  %v11095_v23 = vpop.f32.mrf.mxu0  ;;  %v5471_v13 = vmul.f32 %v5305_v48, %v16360_v53 }
 0x661   :  { %11229 = vmatprep.mubr.msk.f32.mxu1 %vm96_vm0, %v6325_v34  ;;  %11701 = vpow2.f32 %v4561_v31  ;;  %v4323_v52 = vmul.f32 %v4132_v7, %v2191_v11  ;;  %v16426_v10 = vadd.f32 %v6150_v12, %v5470_v46  ;;  %v6329_v46 = vld [vmem:[%s18148_s11 + $0x230] sm:$0xff]  ;;  %v5472_v11 = vmul.f32 %v5308_v50, %v16379_v21  ;;  %v6331_v21 = vld [vmem:[%s18148_s11 + $0x240] sm:$0xff] }
 0x662   :  { %18697 = vst [vmem:[#allocation83_spill] sm:$0xff] %v16417_v2  ;;  %v11696_v42 = vpop.eup %11695  ;;  %v2193_v36 = vpop.f32.mrf.mxu1 }
 0x663   :  { %18698 = vst [vmem:[#allocation57_spill] sm:$0xff] %v16426_v10  ;;  %v4563_v15 = vmul.f32 1.442695, %v4323_v52  ;;  %v6151_v34 = vmul.f32 %v11696_v42, %v16365_v18  ;;  %v4142_v48 = vpop.f32.mrf.mxu0 }
 0x664   :  { %11230 = vmatmul.mubr.msk.f32.gmra.mxu1 %vm96_vm0, %v6326_v28  ;;  %v2197_v6 = vpop.f32.mrf.mxu1 }
 0x665   :  { %11232 = vmatprep.mubr.msk.f32.mxu1 %vm96_vm0, %v6327_v44  ;;  %11703 = vpow2.f32 %v4563_v15  ;;  %v4324_v7 = vmul.f32 %v11092_v58, %v2197_v6  ;;  %v16438_v31 = vadd.f32 %v6151_v34, %v5471_v13  ;;  %v5311_v44 = vpop.xlane.xlu0 %5310  ;;  %v6330_v58 = vld [vmem:[%s18148_s11 + $0x238] sm:$0xff]  ;;  %v5320_v13 = vpop.xlane.xlu1 %5319 }
 0x666   :  { %v11698_v53 = vpop.eup %11697  ;;  %v2199_v12 = vpop.f32.mrf.mxu1 }
 0x667   :  { %18699 = vst [vmem:[#allocation53_spill] sm:$0xff] %v16438_v31  ;;  %v4565_v28 = vmul.f32 1.442695, %v4324_v7  ;;  %v6152_v52 = vmul.f32 %v11698_v53, %v16358_v54  ;;  %v5473_v7 = vmul.f32 %v5311_v44, %v16398_v55 }
 0x668   :  { %11233 = vmatmul.mubr.msk.f32.gmra.mxu1 %vm96_vm0, %v6328_v51  ;;  %v2203_v42 = vpop.f32.mrf.mxu1  ;;  %v11098_v51 = vpop.f32.mrf.mxu0 }
 0x669   :  { %11235 = vmatprep.mubr.msk.f32.mxu1 %vm96_vm0, %v6329_v46  ;;  %11705 = vpow2.f32 %v4565_v28  ;;  %v4325_v15 = vmul.f32 %v4142_v48, %v2203_v42  ;;  %v16450_v50 = vadd.f32 %v6152_v52, %v5472_v11  ;;  %v6332_v48 = vld [vmem:[%s18148_s11 + $0x248] sm:$0xff]  ;;  %v6333_v28 = vld [vmem:[%s18148_s11 + $0x250] sm:$0xff]  ;;  %v5326_v40 = vpop.xlane.xlu0 %5325 }
 0x66a   :  { %v11700_v34 = vpop.eup %11699  ;;  %v2205_v6 = vpop.f32.mrf.mxu1 }
 0x66b   :  { %18700 = vst [vmem:[#allocation59_spill] sm:$0xff] %v16450_v50  ;;  %v4567_v53 = vmul.f32 1.442695, %v4325_v15  ;;  %v6153_v46 = vmul.f32 %v11700_v34, %v16384_v62  ;;  %v4152_v42 = vpop.f32.mrf.mxu0  ;;  %v5317_v15 = vpop.xlane.xlu1 %5316 }
 0x66c   :  { %11236 = vmatmul.mubr.msk.f32.gmra.mxu1 %vm96_vm0, %v6330_v58  ;;  %v2209_v63 = vpop.f32.mrf.mxu1  ;;  %v5474_v58 = vmul.f32 %v5314_v30, %v16412_v38 }
 0x66d   :  { %11238 = vmatprep.mubr.msk.f32.mxu1 %vm96_vm0, %v6331_v21  ;;  %11707 = vpow2.f32 %v4567_v53  ;;  %v4326_v11 = vmul.f32 %v11095_v23, %v2209_v63  ;;  %v16462_v52 = vadd.f32 %v6153_v46, %v5473_v7  ;;  %v6334_v63 = vld [vmem:[%s18148_s11 + $0x258] sm:$0xff]  ;;  %v6335_v7 = vld [vmem:[%s18148_s11 + $0x260] sm:$0xff]  ;;  %v11101_v46 = vpop.f32.mrf.mxu0 }
 0x66e   :  { %v11702_v55 = vpop.eup %11701  ;;  %v2211_v44 = vpop.f32.mrf.mxu1 }
 0x66f   :  { %18701 = vst [vmem:[#allocation74_spill] sm:$0xff] %v16462_v52  ;;  %v4569_v34 = vmul.f32 1.442695, %v4326_v11  ;;  %v6154_v21 = vmul.f32 %v11702_v55, %v16377_v19  ;;  %v5323_v11 = vpop.xlane.xlu1 %5322 }
 0x670   :  { %11239 = vmatmul.mubr.msk.f32.gmra.mxu1 %vm96_vm0, %v6332_v48  ;;  %v2215_v0 = vpop.f32.mrf.mxu1  ;;  %v5475_v48 = vmul.f32 %v5317_v15, %v2193_v36 }
 0x671   :  { %11241 = vmatprep.mubr.msk.f32.mxu1 %vm96_vm0, %v6333_v28  ;;  %11709 = vpow2.f32 %v4569_v34  ;;  %v4327_v23 = vmul.f32 %v4152_v42, %v2215_v0  ;;  %v16474_v38 = vadd.f32 %v6154_v21, %v5474_v58  ;;  %v6336_v0 = vld [vmem:[%s18148_s11 + $0x268] sm:$0xff]  ;;  %v6337_v58 = vld [vmem:[%s18148_s11 + $0x270] sm:$0xff]  ;;  %v4162_v21 = vpop.f32.mrf.mxu0 }
 0x672   :  { %v11704_v30 = vpop.eup %11703  ;;  %v2217_v53 = vpop.f32.mrf.mxu1 }
 0x673   :  { %18702 = vst [vmem:[#allocation135_spill] sm:$0xff] %v16474_v38  ;;  %v4571_v55 = vmul.f32 1.442695, %v4327_v23  ;;  %v6187_v28 = vmul.f32 %v11704_v30, %v16401_v37 }
 0x674   :  { %11242 = vmatmul.mubr.msk.f32.gmra.mxu1 %vm96_vm0, %v6334_v63  ;;  %v2221_v47 = vpop.f32.mrf.mxu1  ;;  %v5476_v63 = vmul.f32 %v5320_v13, %v2199_v12 }
 0x675   :  { %11244 = vmatprep.mubr.msk.f32.mxu1 %vm96_vm0, %v6335_v7  ;;  %11711 = vpow2.f32 %v4571_v55  ;;  %v4328_v42 = vmul.f32 %v11098_v51, %v2221_v47  ;;  %v16485_v36 = vadd.f32 %v6187_v28, %v5475_v48  ;;  %v6338_v47 = vld [vmem:[%s18148_s11 + $0x278] sm:$0xff]  ;;  %v5332_v51 = vpop.xlane.xlu1 %5331  ;;  %v6339_v55 = vld [vmem:[%s18148_s11 + $0x280] sm:$0xff] }
 0x676   :  { %v11706_v15 = vpop.eup %11705  ;;  %v2223_v34 = vpop.f32.mrf.mxu1 }
 0x677   :  { %18703 = vst [vmem:[#allocation64_spill] sm:$0xff] %v16485_v36  ;;  %v4573_v23 = vmul.f32 1.442695, %v4328_v42  ;;  %v6188_v7 = vmul.f32 %v11706_v15, %v16395_v33  ;;  %v5477_v42 = vmul.f32 %v5323_v11, %v2205_v6 }
 0x678   :  { %11245 = vmatmul.mubr.msk.f32.gmra.mxu1 %vm96_vm0, %v6336_v0  ;;  %v2227_v30 = vpop.f32.mrf.mxu1  ;;  %v11104_v0 = vpop.f32.mrf.mxu0 }
 0x679   :  { %11247 = vmatprep.mubr.msk.f32.mxu1 %vm96_vm0, %v6337_v58  ;;  %11713 = vpow2.f32 %v4573_v23  ;;  %v4329_v48 = vmul.f32 %v4162_v21, %v2227_v30  ;;  %v16496_v12 = vadd.f32 %v6188_v7, %v5476_v63  ;;  %v6340_v21 = vld [vmem:[%s18148_s11 + $0x288] sm:$0xff]  ;;  %v6341_v23 = vld [vmem:[%s18148_s11 + $0x290] sm:$0xff] }
 0x67a   :  { %v11708_v13 = vpop.eup %11707  ;;  %v2229_v28 = vpop.f32.mrf.mxu1 }
 0x67b   :  { %18704 = vst [vmem:[#allocation66_spill] sm:$0xff] %v16496_v12  ;;  %v4575_v15 = vmul.f32 1.442695, %v4329_v48  ;;  %v6189_v58 = vmul.f32 %v11708_v13, %v16417_v2  ;;  %v4172_v30 = vpop.f32.mrf.mxu0  ;;  %v5329_v13 = vpop.xlane.xlu1 %5328 }
 0x67c   :  { %11248 = vmatmul.mubr.msk.f32.gmra.mxu1 %vm96_vm0, %v6338_v47  ;;  %v2233_v18 = vpop.f32.mrf.mxu1  ;;  %v5478_v47 = vmul.f32 %v5326_v40, %v2211_v44 }
 0x67d   :  { %11250 = vmatprep.mubr.msk.f32.mxu1 %vm96_vm0, %v6339_v55  ;;  %11715 = vpow2.f32 %v4575_v15  ;;  %v4330_v63 = vmul.f32 %v11101_v46, %v2233_v18  ;;  %v16507_v6 = vadd.f32 %v6189_v58, %v5477_v42  ;;  %v6342_v18 = vld [vmem:[%s18148_s11 + $0x298] sm:$0xff]  ;;  %v6343_v42 = vld [vmem:[%s18148_s11 + $0x2a0] sm:$0xff]  ;;  %v11107_v58 = vpop.f32.mrf.mxu0 }
 0x67e   :  { %v11710_v11 = vpop.eup %11709  ;;  %v2235_v7 = vpop.f32.mrf.mxu1 }
 0x67f   :  { %18705 = vst [vmem:[#allocation78_spill] sm:$0xff] %v16507_v6  ;;  %v4577_v48 = vmul.f32 1.442695, %v4330_v63  ;;  %v6190_v55 = vmul.f32 %v11710_v11, %v16426_v10  ;;  %v5338_v19 = vpop.xlane.xlu1 %5337 }
 0x680   :  { %11251 = vmatmul.mubr.msk.f32.gmra.mxu1 %vm96_vm0, %v6340_v21  ;;  %v2239_v54 = vpop.f32.mrf.mxu1  ;;  %v5479_v21 = vmul.f32 %v5329_v13, %v2217_v53  ;;  %v4182_v13 = vpop.f32.mrf.mxu0 }
 0x681   :  { %11253 = vmatprep.mubr.msk.f32.mxu1 %vm96_vm0, %v6341_v23  ;;  %11717 = vpow2.f32 %v4577_v48  ;;  %v4331_v46 = vmul.f32 %v4172_v30, %v2239_v54  ;;  %v16518_v40 = vadd.f32 %v6190_v55, %v5478_v47  ;;  %v6344_v54 = vld [vmem:[%s18148_s11 + $0x2a8] sm:$0xff]  ;;  %v6345_v47 = vld [vmem:[%s18148_s11 + $0x2b0] sm:$0xff] }
 0x682   :  { %v11712_v44 = vpop.eup %11711  ;;  %v2241_v15 = vpop.f32.mrf.mxu1 }
 0x683   :  { %18706 = vst [vmem:[#allocation107_spill] sm:$0xff] %v16518_v40  ;;  %v4579_v63 = vmul.f32 1.442695, %v4331_v46  ;;  %v6191_v23 = vmul.f32 %v11712_v44, %v16438_v31  ;;  %v5335_v46 = vpop.xlane.xlu0 %5334  ;;  %v5344_v33 = vpop.xlane.xlu1 %5343 }
 0x684   :  { %11254 = vmatmul.mubr.msk.f32.gmra.mxu1 %vm96_vm0, %v6342_v18  ;;  %v2245_v11 = vpop.f32.mrf.mxu1  ;;  %v5480_v18 = vmul.f32 %v5332_v51, %v2223_v34 }
 0x685   :  { %11256 = vmatprep.mubr.msk.f32.mxu1 %vm96_vm0, %v6343_v42  ;;  %11719 = vpow2.f32 %v4579_v63  ;;  %v4332_v30 = vmul.f32 %v11104_v0, %v2245_v11  ;;  %v16529_v48 = vadd.f32 %v6191_v23, %v5479_v21  ;;  %v6346_v0 = vld [vmem:[%s18148_s11 + $0x2b8] sm:$0xff]  ;;  %v6347_v63 = vld [vmem:[%s18148_s11 + $0x2c0] sm:$0xff]  ;;  %v11110_v11 = vpop.f32.mrf.mxu0 }
 0x686   :  { %v11714_v53 = vpop.eup %11713  ;;  %v16531_v55 = vpop.f32.mrf.mxu1 }
 0x687   :  { %18707 = vst [vmem:[#allocation143_spill] sm:$0xff] %v16529_v48  ;;  %v4581_v44 = vmul.f32 1.442695, %v4332_v30  ;;  %v6192_v42 = vmul.f32 %v11714_v53, %v16450_v50  ;;  %v5341_v30 = vpop.xlane.xlu0 %5340 }
 0x688   :  { %11257 = vmatmul.mubr.msk.f32.gmra.mxu1 %vm96_vm0, %v6344_v54  ;;  %v2251_v62 = vpop.f32.mrf.mxu1  ;;  %v5481_v54 = vmul.f32 %v5335_v46, %v2229_v28  ;;  %v6349_v28 = vld [vmem:[%s18148_s11 + $0x2d0] sm:$0xff] }
 0x689   :  { %11259 = vmatprep.mubr.msk.f32.mxu1 %vm96_vm0, %v6345_v47  ;;  %11721 = vpow2.f32 %v4581_v44  ;;  %v4333_v21 = vmul.f32 %v4182_v13, %v2251_v62  ;;  %v16542_v34 = vadd.f32 %v6192_v42, %v5480_v18  ;;  %v6348_v62 = vld [vmem:[%s18148_s11 + $0x2c8] sm:$0xff]  ;;  %v4192_v42 = vpop.f32.mrf.mxu0 }
 0x68a   :  { %v11716_v51 = vpop.eup %11715  ;;  %v2253_v23 = vpop.f32.mrf.mxu1 }
 0x68b   :  { %18708 = vst [vmem:[#allocation144_spill] sm:$0xff] %v16542_v34  ;;  %v4583_v53 = vmul.f32 1.442695, %v4333_v21  ;;  %v6193_v47 = vmul.f32 %v11716_v51, %v16462_v52 }
 0x68c   :  { %11260 = vmatmul.mubr.msk.f32.gmra.mxu1 %vm96_vm0, %v6346_v0  ;;  %v2257_v37 = vpop.f32.mrf.mxu1  ;;  %v5482_v0 = vmul.f32 %v5338_v19, %v2235_v7 }
 0x68d   :  { %11262 = vmatprep.mubr.msk.f32.mxu1 %vm96_vm0, %v6347_v63  ;;  %11723 = vpow2.f32 %v4583_v53  ;;  %v4334_v13 = vmul.f32 %v11107_v58, %v2257_v37  ;;  %v16553_v18 = vadd.f32 %v6193_v47, %v5481_v54  ;;  %v6350_v37 = vld [vmem:[%s18148_s11 + $0x2d8] sm:$0xff]  ;;  %v5350_v58 = vpop.xlane.xlu0 %5349  ;;  %v6351_v53 = vld [vmem:[%s18148_s11 + $0x2e0] sm:$0xff] }
 0x68e   :  { %v11718_v46 = vpop.eup %11717  ;;  %v2259_v44 = vpop.f32.mrf.mxu1 }
 0x68f   :  { %18709 = vst [vmem:[#allocation145_spill] sm:$0xff] %v16553_v18  ;;  %v4585_v21 = vmul.f32 1.442695, %v4334_v13  ;;  %v6194_v63 = vmul.f32 %v11718_v46, %v16474_v38  ;;  %v5483_v13 = vmul.f32 %v5341_v30, %v2241_v15 }
 0x690   :  { %11263 = vmatmul.mubr.msk.f32.gmra.mxu1 %vm96_vm0, %v6348_v62  ;;  %v2263_v51 = vpop.f32.mrf.mxu1  ;;  %v11113_v62 = vpop.f32.mrf.mxu0 }
 0x691   :  { %11265 = vmatprep.mubr.msk.f32.mxu1 %vm96_vm0, %v6349_v28  ;;  %11725 = vpow2.f32 %v4585_v21  ;;  %v4335_v54 = vmul.f32 %v4192_v42, %v2263_v51  ;;  %v16564_v19 = vadd.f32 %v6194_v63, %v5482_v0  ;;  %v6352_v42 = vld [vmem:[%s18148_s11 + $0x2e8] sm:$0xff]  ;;  %v6353_v21 = vld [vmem:[%s18148_s11 + $0x2f0] sm:$0xff] }
 0x692   :  { %v11720_v7 = vpop.eup %11719  ;;  %v2265_v47 = vpop.f32.mrf.mxu1 }
 0x693   :  { %18710 = vst [vmem:[#allocation146_spill] sm:$0xff] %v16564_v19  ;;  %v4587_v46 = vmul.f32 1.442695, %v4335_v54  ;;  %v6227_v28 = vmul.f32 %v11720_v7, %v16485_v36  ;;  %v4202_v51 = vpop.f32.mrf.mxu0  ;;  %v5347_v7 = vpop.xlane.xlu0 %5346 }
 0x694   :  { %11266 = vmatmul.mubr.msk.f32.gmra.mxu1 %vm96_vm0, %v6350_v37  ;;  %v2269_v2 = vpop.f32.mrf.mxu1  ;;  %v5484_v37 = vmul.f32 %v5344_v33, %v16531_v55 }
 0x695   :  { %11268 = vmatprep.mubr.msk.f32.mxu1 %vm96_vm0, %v6351_v53  ;;  %11727 = vpow2.f32 %v4587_v46  ;;  %v4336_v0 = vmul.f32 %v11110_v11, %v2269_v2  ;;  %v16575_v15 = vadd.f32 %v6227_v28, %v5483_v13  ;;  %v6354_v2 = vld [vmem:[%s18148_s11 + $0x2f8] sm:$0xff]  ;;  %v6355_v13 = vld [vmem:[%s18148_s11 + $0x300] sm:$0xff]  ;;  %v5485_v28 = vmul.f32 %v5347_v7, %v2253_v23  ;;  %v7509_v7 = vld [vmem:[%s18149_s12 + $0x8] sm:$0xff] }
 0x696   :  { %v11722_v30 = vpop.eup %11721  ;;  %v2271_v63 = vpop.f32.mrf.mxu1 }
 0x697   :  { %18711 = vst [vmem:[#allocation147_spill] sm:$0xff] %v16575_v15  ;;  %v4589_v54 = vmul.f32 1.442695, %v4336_v0  ;;  %v6228_v53 = vmul.f32 %v11722_v30, %v16496_v12 }
 0x698   :  { %11269 = vmatmul.mubr.msk.f32.gmra.mxu1 %vm96_vm0, %v6352_v42  ;;  %v2275_v36 = vpop.f32.mrf.mxu1 }
 0x699   :  { %11271 = vmatprep.mubr.msk.f32.mxu1 %vm96_vm0, %v6353_v21  ;;  %11729 = vpow2.f32 %v4589_v54  ;;  %v4337_v11 = vmul.f32 %v4202_v51, %v2275_v36  ;;  %v16587_v33 = vadd.f32 %v6228_v53, %v5484_v37  ;;  %v5353_v21 = vpop.xlane.xlu0 %5352  ;;  %v6356_v36 = vld [vmem:[%s18148_s11 + $0x308] sm:$0xff]  ;;  %v6357_v37 = vld [vmem:[%s18148_s11 + $0x310] sm:$0xff] }
 0x69a   :  { %v11724_v55 = vpop.eup %11723  ;;  %v16589_v46 = vpop.f32.mrf.mxu1 }
 0x69b   :  { %18712 = vst [vmem:[#allocation148_spill] sm:$0xff] %v16587_v33  ;;  %v4591_v42 = vmul.f32 1.442695, %v4337_v11  ;;  %v6229_v0 = vmul.f32 %v11724_v55, %v16507_v6  ;;  %v7508_v55 = vld [vmem:[%s18149_s12] sm:$0xff] }
 0x69c   :  { %11272 = vmatmul.mubr.msk.f32.gmra.mxu1 %vm96_vm0, %v6354_v2  ;;  %v2281_v30 = vpop.f32.mrf.mxu1  ;;  %v5486_v2 = vmul.f32 %v5350_v58, %v2259_v44  ;;  %v6359_v44 = vld [vmem:[%s18148_s11 + $0x320] sm:$0xff] }
 0x69d   :  { %11274 = vmatprep.mubr.msk.f32.mxu1 %vm96_vm0, %v6355_v13  ;;  %11731 = vpow2.f32 %v4591_v42  ;;  %v4338_v51 = vmul.f32 %v11113_v62, %v2281_v30  ;;  %v16600_v23 = vadd.f32 %v6229_v0, %v5485_v28  ;;  %v6358_v28 = vld [vmem:[%s18148_s11 + $0x318] sm:$0xff]  ;;  %v5362_v30 = vpop.xlane.xlu0 %5361 }
 0x69e   :  { %v11726_v54 = vpop.eup %11725  ;;  %v16602_v53 = vpop.f32.mrf.mxu1 }
 0x69f   :  { %18713 = vst [vmem:[#allocation149_spill] sm:$0xff] %v16600_v23  ;;  %v4593_v11 = vmul.f32 1.442695, %v4338_v51  ;;  %v6230_v13 = vmul.f32 %v11726_v54, %v16518_v40  ;;  %v7511_v51 = vld [vmem:[%s18149_s12 + $0x18] sm:$0xff]  ;;  %v5356_v54 = vpop.xlane.xlu1 %5355 }
 0x6a0   :  { %11275 = vmatmul.mubr.msk.f32.gmra.mxu1 %vm96_vm0, %v6356_v36  ;;  %v11132_v62 = vpop.f32.mrf.mxu1 }
 0x6a1   :  { %11277 = vmatprep.mubr.msk.f32.mxu1 %vm96_vm0, %v6357_v37  ;;  %11733 = vpow2.f32 %v4593_v11  ;;  %v7637_v42 = vmul.f32 %v11132_v62, %v7509_v7  ;;  %v16619_v58 = vadd.f32 %v6230_v13, %v5486_v2  ;;  %v5487_v37 = vmul.f32 %v5353_v21, %v2265_v47  ;;  %v7510_v2 = vld [vmem:[%s18149_s12 + $0x10] sm:$0xff]  ;;  %v6360_v47 = vld [vmem:[%s18148_s11 + $0x328] sm:$0xff]  ;;  %v5359_v40 = vpop.xlane.xlu0 %5358 }
 0x6a2   :  { %v11728_v0 = vpop.eup %11727  ;;  %v6869_v36 = vpop.f32.mrf.mxu1 }
 0x6a3   :  { %18714 = vst [vmem:[#allocation150_spill] sm:$0xff] %v16619_v58  ;;  %v7636_v12 = vmul.f32 %v7508_v55, %v6869_v36  ;;  %v7767_v7 = vsel %vm3121_vm1, %v7637_v42, 0.0  ;;  %v6231_v11 = vmul.f32 %v11728_v0, %v16529_v48  ;;  %v6361_v0 = vld [vmem:[%s18148_s11 + $0x330] sm:$0xff]  ;;  %v7587_v48 = vld [vmem:[%s18149_s12 + $0x278] sm:$0xff] }
 0x6a4   :  { %11278 = vmatmul.mubr.msk.f32.gmra.mxu1 %vm96_vm0, %v6358_v28  ;;  %7768 = vadd.xlane.f32.xlu0 %v7767_v7  ;;  %v11135_v62 = vpop.f32.mrf.mxu1  ;;  %v5488_v28 = vmul.f32 %v5356_v54, %v2271_v63  ;;  %v7513_v63 = vld [vmem:[%s18149_s12 + $0x28] sm:$0xff] }
 0x6a5   :  { %11280 = vmatprep.mubr.msk.f32.mxu1 %vm96_vm0, %v6359_v44  ;;  %v7639_v21 = vmul.f32 %v11135_v62, %v7511_v51  ;;  %v16634_v13 = vadd.f32 %v6231_v11, %v5487_v37  ;;  %v7764_v7 = vsel %vm3121_vm1, %v7636_v12, 0.0  ;;  %v6362_v37 = vld [vmem:[%s18148_s11 + $0x338] sm:$0xff]  ;;  %v6363_v12 = vld [vmem:[%s18148_s11 + $0x340] sm:$0xff] }
 0x6a6   :  { %v11730_v55 = vpop.eup %11729  ;;  %v6879_v42 = vpop.f32.mrf.mxu1 }
 0x6a7   :  { %18715 = vst [vmem:[#allocation151_spill] sm:$0xff] %v16634_v13  ;;  %v7638_v36 = vmul.f32 %v7510_v2, %v6879_v42  ;;  %v7773_v44 = vsel %vm3121_vm1, %v7639_v21, 0.0  ;;  %v6232_v6 = vmul.f32 %v11730_v55, %v16542_v34  ;;  %v7515_v2 = vld [vmem:[%s18149_s12 + $0x38] sm:$0xff] }
 0x6a8   :  { %11281 = vmatmul.mubr.msk.f32.gmra.mxu1 %vm96_vm0, %v6360_v47  ;;  %7765 = vadd.xlane.f32.xlu0 %v7764_v7  ;;  %v11138_v51 = vpop.f32.mrf.mxu1  ;;  %v5489_v47 = vmul.f32 %v5359_v40, %v16589_v46 }
 0x6a9   :  { %7774 = vadd.xlane.f32.xlu1 %v7773_v44  ;;  %11283 = vmatprep.mubr.msk.f32.mxu1 %vm96_vm0, %v6361_v0  ;;  %v16653_v54 = vadd.f32 %v6232_v6, %v5488_v28  ;;  %v7641_v21 = vmul.f32 %v11138_v51, %v7513_v63  ;;  %v7770_v55 = vsel %vm3121_vm1, %v7638_v36, 0.0  ;;  %v7512_v6 = vld [vmem:[%s18149_s12 + $0x20] sm:$0xff]  ;;  %v6364_v0 = vld [vmem:[%s18148_s11 + $0x348] sm:$0xff]  ;;  %v5490_v36 = vmul.f32 %v5362_v30, %v16602_v53  ;;  %v6365_v51 = vld [vmem:[%s18148_s11 + $0x350] sm:$0xff] }
 0x6aa   :  { %v11732_v11 = vpop.eup %11731  ;;  %v6889_v62 = vpop.f32.mrf.mxu1  ;;  %v6366_v30 = vld [vmem:[%s18148_s11 + $0x358] sm:$0xff] }
 0x6ab   :  { %18716 = vst [vmem:[#allocation152_spill] sm:$0xff] %v16653_v54  ;;  %v6233_v42 = vmul.f32 %v11732_v11, %v16553_v18  ;;  %v7640_v63 = vmul.f32 %v7512_v6, %v6889_v62  ;;  %v6367_v62 = vld [vmem:[%s18148_s11 + $0x360] sm:$0xff] }
 0x6ac   :  { %11284 = vmatmul.mubr.msk.f32.gmra.mxu1 %vm96_vm0, %v6362_v37  ;;  %7771 = vadd.xlane.f32.xlu0 %v7770_v55  ;;  %v11141_v28 = vpop.f32.mrf.mxu1  ;;  %v7779_v37 = vsel %vm3121_vm1, %v7641_v21, 0.0  ;;  %v7519_v55 = vld [vmem:[%s18149_s12 + $0x58] sm:$0xff] }
 0x6ad   :  { %11286 = vmatprep.mubr.msk.f32.mxu1 %vm96_vm0, %v6363_v12  ;;  %v7643_v40 = vmul.f32 %v11141_v28, %v7515_v2  ;;  %v16669_v46 = vadd.f32 %v6233_v42, %v5489_v47  ;;  %v7514_v2 = vld [vmem:[%s18149_s12 + $0x30] sm:$0xff]  ;;  %v7776_v6 = vsel %vm3121_vm1, %v7640_v63, 0.0  ;;  %v7517_v28 = vld [vmem:[%s18149_s12 + $0x48] sm:$0xff] }
 0x6ae   :  { %v11734_v7 = vpop.eup %11733  ;;  %v6899_v44 = vpop.f32.mrf.mxu1 }
 0x6af   :  { %18717 = vst [vmem:[#allocation153_spill] sm:$0xff] %v16669_v46  ;;  %v7785_v12 = vsel %vm3121_vm1, %v7643_v40, 0.0  ;;  %v6234_v11 = vmul.f32 %v11734_v7, %v16564_v19  ;;  %v7642_v42 = vmul.f32 %v7514_v2, %v6899_v44  ;;  %v6368_v40 = vld [vmem:[%s18148_s11 + $0x368] sm:$0xff]  ;;  %v6369_v44 = vld [vmem:[%s18148_s11 + $0x370] sm:$0xff]  ;;  %v6370_v2 = vld [vmem:[%s18148_s11 + $0x378] sm:$0xff] }
 0x6b0   :  { %11287 = vmatmul.mubr.msk.f32.gmra.mxu1 %vm96_vm0, %v6364_v0  ;;  %7780 = vadd.xlane.f32.xlu0 %v7779_v37  ;;  %v11144_v53 = vpop.f32.mrf.mxu1 }
 0x6b1   :  { %7786 = vadd.xlane.f32.xlu1 %v7785_v12  ;;  %11289 = vmatprep.mubr.msk.f32.mxu1 %vm96_vm0, %v6365_v51  ;;  %v16689_v47 = vadd.f32 %v6234_v11, %v5490_v36  ;;  %v7645_v51 = vmul.f32 %v11144_v53, %v7517_v28  ;;  %v7782_v63 = vsel %vm3121_vm1, %v7642_v42, 0.0  ;;  %v7516_v12 = vld [vmem:[%s18149_s12 + $0x40] sm:$0xff] }
 0x6b2   :  { %v6909_v21 = vpop.f32.mrf.mxu1  ;;  %v6371_v53 = vld [vmem:[%s18148_s11 + $0x380] sm:$0xff] }
 0x6b3   :  { %18718 = vst [vmem:[#allocation154_spill] sm:$0xff] %v16689_v47  ;;  %v7791_v42 = vsel %vm3121_vm1, %v7645_v51, 0.0 }
 0x6b4   :  { %11290 = vmatmul.mubr.msk.f32.gmra.mxu1 %vm96_vm0, %v6366_v30  ;;  %7777 = vadd.xlane.f32.xlu0 %v7776_v6  ;;  %v11147_v0 = vpop.f32.mrf.mxu1  ;;  %v7518_v6 = vld [vmem:[%s18149_s12 + $0x50] sm:$0xff] }
 0x6b5   :  { %11292 = vmatprep.mubr.msk.f32.mxu1 %vm96_vm0, %v6367_v62  ;;  %v7647_v7 = vmul.f32 %v11147_v0, %v7519_v55  ;;  %v7523_v62 = vld [vmem:[%s18149_s12 + $0x78] sm:$0xff]  ;;  %v7644_v55 = vmul.f32 %v7516_v12, %v6909_v21  ;;  %v6372_v0 = vld [vmem:[%s18148_s11 + $0x388] sm:$0xff] }
 0x6b6   :  { %v6919_v36 = vpop.f32.mrf.mxu1  ;;  %v7525_v21 = vld [vmem:[%s18149_s12 + $0x88] sm:$0xff] }
 0x6b7   :  { %v7797_v37 = vsel %vm3121_vm1, %v7647_v7, 0.0  ;;  %v7646_v51 = vmul.f32 %v7518_v6, %v6919_v36  ;;  %v7521_v12 = vld [vmem:[%s18149_s12 + $0x68] sm:$0xff]  ;;  %v6374_v36 = vld [vmem:[%s18148_s11 + $0x398] sm:$0xff] }
 0x6b8   :  { %11293 = vmatmul.mubr.msk.f32.gmra.mxu1 %vm96_vm0, %v6368_v40  ;;  %7783 = vadd.xlane.f32.xlu0 %v7782_v63  ;;  %v11150_v11 = vpop.f32.mrf.mxu1  ;;  %v7788_v63 = vsel %vm3121_vm1, %v7644_v55, 0.0 }
 0x6b9   :  { %7798 = vadd.xlane.f32.xlu1 %v7797_v37  ;;  %11295 = vmatprep.mubr.msk.f32.mxu1 %vm96_vm0, %v6369_v44  ;;  %v6373_v44 = vld [vmem:[%s18148_s11 + $0x390] sm:$0xff]  ;;  %v7649_v6 = vmul.f32 %v11150_v11, %v7521_v12  ;;  %v6376_v11 = vld [vmem:[%s18148_s11 + $0x3a8] sm:$0xff] }
 0x6ba   :  { %v6929_v30 = vpop.f32.mrf.mxu1 }
 0x6bc   :  { %11296 = vmatmul.mubr.msk.f32.gmra.mxu1 %vm96_vm0, %v6370_v2  ;;  %7792 = vadd.xlane.f32.xlu0 %v7791_v42  ;;  %v11153_v28 = vpop.f32.mrf.mxu1  ;;  %v6375_v42 = vld [vmem:[%s18148_s11 + $0x3a0] sm:$0xff] }
 0x6bd   :  { %11298 = vmatprep.mubr.msk.f32.mxu1 %vm96_vm0, %v6371_v53  ;;  %v7651_v40 = vmul.f32 %v11153_v28, %v7523_v62  ;;  %v7524_v53 = vld [vmem:[%s18149_s12 + $0x80] sm:$0xff] }
 0x6be   :  { %v6939_v7 = vpop.f32.mrf.mxu1 }
 0x6bf   :  { %v7809_v37 = vsel %vm3121_vm1, %v7651_v40, 0.0 }
 0x6c0   :  { %11299 = vmatmul.mubr.msk.f32.gmra.mxu1 %vm96_vm0, %v6372_v0  ;;  %7789 = vadd.xlane.f32.xlu0 %v7788_v63  ;;  %v11156_v2 = vpop.f32.mrf.mxu1  ;;  %v7794_v0 = vsel %vm3121_vm1, %v7646_v51, 0.0  ;;  %v7520_v63 = vld [vmem:[%s18149_s12 + $0x60] sm:$0xff] }
 0x6c1   :  { %7810 = vadd.xlane.f32.xlu1 %v7809_v37  ;;  %v7653_v62 = vmul.f32 %v11156_v2, %v7525_v21  ;;  %11301 = vmatprep.mubr.msk.f32.mxu1 %vm96_vm0, %v6373_v44  ;;  %v7526_v44 = vld [vmem:[%s18149_s12 + $0x90] sm:$0xff]  ;;  %v7648_v12 = vmul.f32 %v7520_v63, %v6929_v30  ;;  %v6378_v30 = vld [vmem:[%s18148_s11 + $0x3b8] sm:$0xff] }
 0x6c2   :  { %v6949_v55 = vpop.f32.mrf.mxu1  ;;  %v6377_v37 = vld [vmem:[%s18148_s11 + $0x3b0] sm:$0xff] }
 0x6c3   :  { %v7652_v28 = vmul.f32 %v7524_v53, %v6949_v55  ;;  %v7815_v40 = vsel %vm3121_vm1, %v7653_v62, 0.0  ;;  %v7803_v53 = vsel %vm3121_vm1, %v7649_v6, 0.0  ;;  %v7522_v62 = vld [vmem:[%s18149_s12 + $0x70] sm:$0xff]  ;;  %v7800_v63 = vsel %vm3121_vm1, %v7648_v12, 0.0 }
 0x6c4   :  { %11302 = vmatmul.mubr.msk.f32.gmra.mxu1 %vm96_vm0, %v6374_v36  ;;  %7795 = vadd.xlane.f32.xlu0 %v7794_v0  ;;  %v11159_v21 = vpop.f32.mrf.mxu1  ;;  %v7650_v0 = vmul.f32 %v7522_v62, %v6939_v7  ;;  %v6380_v7 = vld [vmem:[%s18148_s11 + $0x3c8] sm:$0xff] }
 0x6c5   :  { %7816 = vadd.xlane.f32.xlu1 %v7815_v40  ;;  %11304 = vmatprep.mubr.msk.f32.mxu1 %vm96_vm0, %v6375_v42  ;;  %v7812_v36 = vsel %vm3121_vm1, %v7652_v28, 0.0  ;;  %v7529_v42 = vld [vmem:[%s18149_s12 + $0xa8] sm:$0xff]  ;;  %v6379_v28 = vld [vmem:[%s18148_s11 + $0x3c0] sm:$0xff] }
 0x6c6   :  { %v6959_v51 = vpop.f32.mrf.mxu1  ;;  %v7806_v62 = vsel %vm3121_vm1, %v7650_v0, 0.0  ;;  %v6383_v0 = vld [vmem:[%s18148_s11 + $0x3e0] sm:$0xff] }
 0x6c7   :  { %v7654_v2 = vmul.f32 %v7526_v44, %v6959_v51  ;;  %v7528_v51 = vld [vmem:[%s18149_s12 + $0xa0] sm:$0xff] }
 0x6c8   :  { %11305 = vmatmul.mubr.msk.f32.gmra.mxu1 %vm96_vm0, %v6376_v11  ;;  %7804 = vadd.xlane.f32.xlu0 %v7803_v53  ;;  %v11162_v55 = vpop.f32.mrf.mxu1  ;;  %v7527_v11 = vld [vmem:[%s18149_s12 + $0x98] sm:$0xff] }
 0x6c9   :  { %7813 = vadd.xlane.f32.xlu1 %v7812_v36  ;;  %11307 = vmatprep.mubr.msk.f32.mxu1 %vm96_vm0, %v6377_v37  ;;  %v7657_v40 = vmul.f32 %v11162_v55, %v7529_v42  ;;  %v7818_v44 = vsel %vm3121_vm1, %v7654_v2, 0.0  ;;  %v6381_v2 = vld [vmem:[%s18148_s11 + $0x3d0] sm:$0xff]  ;;  %v7655_v53 = vmul.f32 %v11159_v21, %v7527_v11  ;;  %v7531_v42 = vld [vmem:[%s18149_s12 + $0xb8] sm:$0xff] }
 0x6ca   :  { %v6969_v6 = vpop.f32.mrf.mxu1  ;;  %v6382_v21 = vld [vmem:[%s18148_s11 + $0x3d8] sm:$0xff] }
 0x6cb   :  { %v7656_v36 = vmul.f32 %v7528_v51, %v6969_v6  ;;  %v7827_v55 = vsel %vm3121_vm1, %v7657_v40, 0.0  ;;  %v7533_v51 = vld [vmem:[%s18149_s12 + $0xc8] sm:$0xff] }
 0x6cc   :  { %11308 = vmatmul.mubr.msk.f32.gmra.mxu1 %vm96_vm0, %v6378_v30  ;;  %7801 = vadd.xlane.f32.xlu0 %v7800_v63  ;;  %v11165_v37 = vpop.f32.mrf.mxu1  ;;  %v7530_v30 = vld [vmem:[%s18149_s12 + $0xb0] sm:$0xff] }
 0x6cd   :  { %7819 = vadd.xlane.f32.xlu1 %v7818_v44  ;;  %11310 = vmatprep.mubr.msk.f32.mxu1 %vm96_vm0, %v6379_v28  ;;  %v7659_v40 = vmul.f32 %v11165_v37, %v7531_v42  ;;  %v7821_v44 = vsel %vm3121_vm1, %v7655_v53, 0.0  ;;  %v7824_v11 = vsel %vm3121_vm1, %v7656_v36, 0.0  ;;  %v6384_v37 = vld [vmem:[%s18148_s11 + $0x3e8] sm:$0xff]  ;;  %v6385_v53 = vld [vmem:[%s18148_s11 + $0x3f0] sm:$0xff] }
 0x6ce   :  { %v6979_v12 = vpop.f32.mrf.mxu1 }
 0x6cf   :  { %v7658_v63 = vmul.f32 %v7530_v30, %v6979_v12  ;;  %v7532_v30 = vld [vmem:[%s18149_s12 + $0xc0] sm:$0xff] }
 0x6d0   :  { %11311 = vmatmul.mubr.msk.f32.gmra.mxu1 %vm96_vm0, %v6380_v7  ;;  %7807 = vadd.xlane.f32.xlu0 %v7806_v62  ;;  %v11168_v28 = vpop.f32.mrf.mxu1 }
 0x6d1   :  { %7828 = vadd.xlane.f32.xlu1 %v7827_v55  ;;  %11313 = vmatprep.mubr.msk.f32.mxu1 %vm96_vm0, %v6381_v2  ;;  %v7535_v2 = vld [vmem:[%s18149_s12 + $0xd8] sm:$0xff]  ;;  %v7661_v36 = vmul.f32 %v11168_v28, %v7533_v51  ;;  %v7833_v55 = vsel %vm3121_vm1, %v7659_v40, 0.0  ;;  %v7830_v42 = vsel %vm3121_vm1, %v7658_v63, 0.0  ;;  %v7534_v51 = vld [vmem:[%s18149_s12 + $0xd0] sm:$0xff] }
 0x6d2   :  { %v6989_v6 = vpop.f32.mrf.mxu1  ;;  %v7539_v40 = vld [vmem:[%s18149_s12 + $0xf8] sm:$0xff] }
 0x6d3   :  { %v7839_v63 = vsel %vm3121_vm1, %v7661_v36, 0.0 }
 0x6d4   :  { %11314 = vmatmul.mubr.msk.f32.gmra.mxu1 %vm96_vm0, %v6382_v21  ;;  %7822 = vadd.xlane.f32.xlu0 %v7821_v44  ;;  %v11171_v7 = vpop.f32.mrf.mxu1  ;;  %v7660_v44 = vmul.f32 %v7532_v30, %v6989_v6  ;;  %v7540_v30 = vld [vmem:[%s18149_s12 + $0x100] sm:$0xff] }
 0x6d5   :  { %7825 = vadd.xlane.f32.xlu1 %v7824_v11  ;;  %11316 = vmatprep.mubr.msk.f32.mxu1 %vm96_vm0, %v6383_v0  ;;  %v7663_v62 = vmul.f32 %v11171_v7, %v7535_v2  ;;  %v6386_v0 = vld [vmem:[%s18148_s11 + $0x3f8] sm:$0xff] }
 0x6d6   :  { %v6999_v12 = vpop.f32.mrf.mxu1 }
 0x6d7   :  { %v7845_v11 = vsel %vm3121_vm1, %v7663_v62, 0.0  ;;  %v7662_v6 = vmul.f32 %v7534_v51, %v6999_v12  ;;  %v7537_v62 = vld [vmem:[%s18149_s12 + $0xe8] sm:$0xff]  ;;  %v7536_v51 = vld [vmem:[%s18149_s12 + $0xe0] sm:$0xff] }
 0x6d8   :  { %11317 = vmatmul.mubr.msk.f32.gmra.mxu1 %vm96_vm0, %v6384_v37  ;;  %7834 = vadd.xlane.f32.xlu0 %v7833_v55  ;;  %v11174_v21 = vpop.f32.mrf.mxu1  ;;  %v7836_v55 = vsel %vm3121_vm1, %v7660_v44, 0.0 }
 0x6d9   :  { %7831 = vadd.xlane.f32.xlu1 %v7830_v42  ;;  %11319 = vmatprep.mubr.msk.f32.mxu1 %vm96_vm0, %v6385_v53  ;;  %v7541_v53 = vld [vmem:[%s18149_s12 + $0x108] sm:$0xff]  ;;  %v7842_v12 = vsel %vm3121_vm1, %v7662_v6, 0.0 }
 0x6da   :  { %v7009_v28 = vpop.f32.mrf.mxu1 }
 0x6dc   :  { %11320 = vmatmul.mubr.msk.f32.gmra.mxu1 %vm96_vm0, %v6386_v0  ;;  %7846 = vadd.xlane.f32.xlu0 %v7845_v11  ;;  %v11177_v7 = vpop.f32.mrf.mxu1 }
 0x6dd   :  { %7840 = vadd.xlane.f32.xlu1 %v7839_v63  ;;  %v7667_v2 = vmul.f32 %v11177_v7, %v7539_v40  ;;  %v7665_v63 = vmul.f32 %v11174_v21, %v7537_v62  ;;  %v7538_v62 = vld [vmem:[%s18149_s12 + $0xf0] sm:$0xff] }
 0x6de   :  { %v7019_v37 = vpop.f32.mrf.mxu1 }
 0x6df   :  { %v7857_v36 = vsel %vm3121_vm1, %v7667_v2, 0.0  ;;  %v7542_v2 = vld [vmem:[%s18149_s12 + $0x110] sm:$0xff]  ;;  %v7851_v21 = vsel %vm3121_vm1, %v7665_v63, 0.0 }
 0x6e0   :  { %7858 = vadd.xlane.f32.xlu0 %v7857_v36  ;;  %v11180_v42 = vpop.f32.mrf.mxu1 }
 0x6e1   :  { %7837 = vadd.xlane.f32.xlu1 %v7836_v55  ;;  %v7669_v0 = vmul.f32 %v11180_v42, %v7541_v53  ;;  %v7664_v53 = vmul.f32 %v7536_v51, %v7009_v28 }
 0x6e2   :  { %v7029_v40 = vpop.f32.mrf.mxu1 }
 0x6e3   :  { %v7668_v11 = vmul.f32 %v7540_v30, %v7029_v40  ;;  %v7863_v44 = vsel %vm3121_vm1, %v7669_v0, 0.0  ;;  %v7545_v30 = vld [vmem:[%s18149_s12 + $0x128] sm:$0xff]  ;;  %v7666_v40 = vmul.f32 %v7538_v62, %v7019_v37  ;;  %v7848_v28 = vsel %vm3121_vm1, %v7664_v53, 0.0 }
 0x6e4   :  { %7864 = vadd.xlane.f32.xlu0 %v7863_v44  ;;  %v11183_v7 = vpop.f32.mrf.mxu1  ;;  %v7544_v44 = vld [vmem:[%s18149_s12 + $0x120] sm:$0xff] }
 0x6e5   :  { %7843 = vadd.xlane.f32.xlu1 %v7842_v12  ;;  %v7860_v6 = vsel %vm3121_vm1, %v7668_v11, 0.0  ;;  %v7543_v11 = vld [vmem:[%s18149_s12 + $0x118] sm:$0xff]  ;;  %v7854_v37 = vsel %vm3121_vm1, %v7666_v40, 0.0  ;;  %v7549_v40 = vld [vmem:[%s18149_s12 + $0x148] sm:$0xff] }
 0x6e6   :  { %v7039_v55 = vpop.f32.mrf.mxu1 }
 0x6e7   :  { %v7670_v36 = vmul.f32 %v7542_v2, %v7039_v55  ;;  %v7671_v55 = vmul.f32 %v11183_v7, %v7543_v11 }
 0x6e8   :  { %7861 = vadd.xlane.f32.xlu0 %v7860_v6  ;;  %v11186_v42 = vpop.f32.mrf.mxu1  ;;  %v7546_v6 = vld [vmem:[%s18149_s12 + $0x130] sm:$0xff] }
 0x6e9   :  { %7852 = vadd.xlane.f32.xlu1 %v7851_v21  ;;  %v7673_v12 = vmul.f32 %v11186_v42, %v7545_v30  ;;  %v7866_v63 = vsel %vm3121_vm1, %v7670_v36, 0.0  ;;  %v7547_v36 = vld [vmem:[%s18149_s12 + $0x138] sm:$0xff]  ;;  %v7869_v7 = vsel %vm3121_vm1, %v7671_v55, 0.0  ;;  %v7548_v55 = vld [vmem:[%s18149_s12 + $0x140] sm:$0xff] }
 0x6ea   :  { %v7049_v0 = vpop.f32.mrf.mxu1 }
 0x6eb   :  { %v7672_v21 = vmul.f32 %v7544_v44, %v7049_v0  ;;  %v7875_v53 = vsel %vm3121_vm1, %v7673_v12, 0.0 }
 0x6ec   :  { %7867 = vadd.xlane.f32.xlu0 %v7866_v63  ;;  %v11189_v51 = vpop.f32.mrf.mxu1  ;;  %v7551_v63 = vld [vmem:[%s18149_s12 + $0x158] sm:$0xff] }
 0x6ed   :  { %7849 = vadd.xlane.f32.xlu1 %v7848_v28  ;;  %v7675_v30 = vmul.f32 %v11189_v51, %v7547_v36  ;;  %v7872_v0 = vsel %vm3121_vm1, %v7672_v21, 0.0  ;;  %v7555_v36 = vld [vmem:[%s18149_s12 + $0x178] sm:$0xff] }
 0x6ee   :  { %v7059_v2 = vpop.f32.mrf.mxu1 }
 0x6ef   :  { %v7674_v28 = vmul.f32 %v7546_v6, %v7059_v2  ;;  %v7881_v51 = vsel %vm3121_vm1, %v7675_v30, 0.0  ;;  %v7550_v30 = vld [vmem:[%s18149_s12 + $0x150] sm:$0xff] }
 0x6f0   :  { %7876 = vadd.xlane.f32.xlu0 %v7875_v53  ;;  %v11192_v62 = vpop.f32.mrf.mxu1 }
 0x6f1   :  { %7855 = vadd.xlane.f32.xlu1 %v7854_v37  ;;  %v7677_v44 = vmul.f32 %v11192_v62, %v7549_v40  ;;  %v7878_v2 = vsel %vm3121_vm1, %v7674_v28, 0.0 }
 0x6f2   :  { %v7069_v42 = vpop.f32.mrf.mxu1 }
 0x6f3   :  { %v7676_v6 = vmul.f32 %v7548_v55, %v7069_v42  ;;  %v7887_v62 = vsel %vm3121_vm1, %v7677_v44, 0.0 }
 0x6f4   :  { %7873 = vadd.xlane.f32.xlu0 %v7872_v0  ;;  %v11195_v12 = vpop.f32.mrf.mxu1 }
 0x6f5   :  { %7870 = vadd.xlane.f32.xlu1 %v7869_v7  ;;  %v7679_v37 = vmul.f32 %v11195_v12, %v7551_v63  ;;  %v7557_v12 = vld [vmem:[%s18149_s12 + $0x188] sm:$0xff]  ;;  %v7884_v42 = vsel %vm3121_vm1, %v7676_v6, 0.0 }
 0x6f6   :  { %v7079_v11 = vpop.f32.mrf.mxu1 }
 0x6f7   :  { %v7893_v7 = vsel %vm3121_vm1, %v7679_v37, 0.0  ;;  %v7678_v63 = vmul.f32 %v7550_v30, %v7079_v11  ;;  %v7553_v37 = vld [vmem:[%s18149_s12 + $0x168] sm:$0xff]  ;;  %v7552_v30 = vld [vmem:[%s18149_s12 + $0x160] sm:$0xff] }
 0x6f8   :  { %7879 = vadd.xlane.f32.xlu0 %v7878_v2  ;;  %v11198_v21 = vpop.f32.mrf.mxu1  ;;  %v7556_v2 = vld [vmem:[%s18149_s12 + $0x180] sm:$0xff] }
 0x6f9   :  { %7882 = vadd.xlane.f32.xlu1 %v7881_v51  ;;  %v7890_v11 = vsel %vm3121_vm1, %v7678_v63, 0.0 }
 0x6fa   :  { %v7089_v53 = vpop.f32.mrf.mxu1 }
 0x6fc   :  { %7888 = vadd.xlane.f32.xlu0 %v7887_v62  ;;  %v11201_v28 = vpop.f32.mrf.mxu1  ;;  %v7681_v62 = vmul.f32 %v11198_v21, %v7553_v37  ;;  %v7554_v37 = vld [vmem:[%s18149_s12 + $0x170] sm:$0xff] }
 0x6fd   :  { %7894 = vadd.xlane.f32.xlu1 %v7893_v7  ;;  %v7683_v0 = vmul.f32 %v11201_v28, %v7555_v36 }
 0x6fe   :  { %v7099_v40 = vpop.f32.mrf.mxu1  ;;  %v7899_v21 = vsel %vm3121_vm1, %v7681_v62, 0.0 }
 0x6ff   :  { %v7905_v44 = vsel %vm3121_vm1, %v7683_v0, 0.0  ;;  %v7558_v0 = vld [vmem:[%s18149_s12 + $0x190] sm:$0xff] }
 0x700   :  { %7885 = vadd.xlane.f32.xlu0 %v7884_v42  ;;  %v11204_v51 = vpop.f32.mrf.mxu1 }
 0x701   :  { %7906 = vadd.xlane.f32.xlu1 %v7905_v44  ;;  %v7685_v55 = vmul.f32 %v11204_v51, %v7557_v12  ;;  %v7680_v12 = vmul.f32 %v7552_v30, %v7089_v53 }
 0x702   :  { %v7109_v36 = vpop.f32.mrf.mxu1 }
 0x703   :  { %v7684_v7 = vmul.f32 %v7556_v2, %v7109_v36  ;;  %v7911_v6 = vsel %vm3121_vm1, %v7685_v55, 0.0  ;;  %v7561_v2 = vld [vmem:[%s18149_s12 + $0x1a8] sm:$0xff]  ;;  %v7682_v36 = vmul.f32 %v7554_v37, %v7099_v40  ;;  %v7896_v53 = vsel %vm3121_vm1, %v7680_v12, 0.0 }
 0x704   :  { %7891 = vadd.xlane.f32.xlu0 %v7890_v11  ;;  %v11207_v28 = vpop.f32.mrf.mxu1 }
 0x705   :  { %7912 = vadd.xlane.f32.xlu1 %v7911_v6  ;;  %v7908_v63 = vsel %vm3121_vm1, %v7684_v7, 0.0  ;;  %v7559_v7 = vld [vmem:[%s18149_s12 + $0x198] sm:$0xff]  ;;  %v7560_v6 = vld [vmem:[%s18149_s12 + $0x1a0] sm:$0xff]  ;;  %v7902_v40 = vsel %vm3121_vm1, %v7682_v36, 0.0  ;;  %v7565_v36 = vld [vmem:[%s18149_s12 + $0x1c8] sm:$0xff] }
 0x706   :  { %v7119_v42 = vpop.f32.mrf.mxu1 }
 0x707   :  { %v7686_v44 = vmul.f32 %v7558_v0, %v7119_v42  ;;  %v7687_v42 = vmul.f32 %v11207_v28, %v7559_v7 }
 0x708   :  { %7900 = vadd.xlane.f32.xlu0 %v7899_v21  ;;  %v11210_v51 = vpop.f32.mrf.mxu1 }
 0x709   :  { %7909 = vadd.xlane.f32.xlu1 %v7908_v63  ;;  %v7689_v11 = vmul.f32 %v11210_v51, %v7561_v2  ;;  %v7914_v62 = vsel %vm3121_vm1, %v7686_v44, 0.0  ;;  %v7563_v44 = vld [vmem:[%s18149_s12 + $0x1b8] sm:$0xff]  ;;  %v7562_v63 = vld [vmem:[%s18149_s12 + $0x1b0] sm:$0xff]  ;;  %v7917_v28 = vsel %vm3121_vm1, %v7687_v42, 0.0  ;;  %v7564_v42 = vld [vmem:[%s18149_s12 + $0x1c0] sm:$0xff] }
 0x70a   :  { %v7129_v55 = vpop.f32.mrf.mxu1 }
 0x70b   :  { %v7688_v21 = vmul.f32 %v7560_v6, %v7129_v55  ;;  %v7923_v12 = vsel %vm3121_vm1, %v7689_v11, 0.0 }
 0x70c   :  { %7897 = vadd.xlane.f32.xlu0 %v7896_v53  ;;  %v11213_v30 = vpop.f32.mrf.mxu1 }
 0x70d   :  { %7915 = vadd.xlane.f32.xlu1 %v7914_v62  ;;  %v7691_v2 = vmul.f32 %v11213_v30, %v7563_v44  ;;  %v7920_v55 = vsel %vm3121_vm1, %v7688_v21, 0.0  ;;  %v7567_v62 = vld [vmem:[%s18149_s12 + $0x1d8] sm:$0xff] }
 0x70e   :  { %v7139_v0 = vpop.f32.mrf.mxu1 }
 0x70f   :  { %v7690_v53 = vmul.f32 %v7562_v63, %v7139_v0  ;;  %v7929_v30 = vsel %vm3121_vm1, %v7691_v2, 0.0  ;;  %v7571_v63 = vld [vmem:[%s18149_s12 + $0x1f8] sm:$0xff] }
 0x710   :  { %7903 = vadd.xlane.f32.xlu0 %v7902_v40  ;;  %v11216_v37 = vpop.f32.mrf.mxu1 }
 0x711   :  { %7924 = vadd.xlane.f32.xlu1 %v7923_v12  ;;  %v7693_v6 = vmul.f32 %v11216_v37, %v7565_v36  ;;  %v7926_v0 = vsel %vm3121_vm1, %v7690_v53, 0.0  ;;  %v8149_v12 = vld [vmem:[%s18150_s13 + $0x8] sm:$0xff] }
 0x712   :  { %v7149_v51 = vpop.f32.mrf.mxu1  ;;  %8547 = vmatprep.mubr.f32.mxu0 %v8149_v12 }
 0x713   :  { %v7692_v37 = vmul.f32 %v7564_v42, %v7149_v51  ;;  %v7935_v2 = vsel %vm3121_vm1, %v7693_v6, 0.0  ;;  %v7572_v42 = vld [vmem:[%s18149_s12 + $0x200] sm:$0xff] }
 0x714   :  { %7918 = vadd.xlane.f32.xlu0 %v7917_v28  ;;  %v11219_v11 = vpop.f32.mrf.mxu1  ;;  %v7566_v28 = vld [vmem:[%s18149_s12 + $0x1d0] sm:$0xff] }
 0x715   :  { %7921 = vadd.xlane.f32.xlu1 %v7920_v55  ;;  %v7695_v40 = vmul.f32 %v11219_v11, %v7567_v62  ;;  %v7573_v62 = vld [vmem:[%s18149_s12 + $0x208] sm:$0xff]  ;;  %v7932_v51 = vsel %vm3121_vm1, %v7692_v37, 0.0 }
 0x716   :  { %v7159_v7 = vpop.f32.mrf.mxu1 }
 0x717   :  { %v7941_v53 = vsel %vm3121_vm1, %v7695_v40, 0.0  ;;  %v7569_v40 = vld [vmem:[%s18149_s12 + $0x1e8] sm:$0xff] }
 0x718   :  { %7930 = vadd.xlane.f32.xlu0 %v7929_v30  ;;  %v11222_v21 = vpop.f32.mrf.mxu1  ;;  %v7694_v30 = vmul.f32 %v7566_v28, %v7159_v7  ;;  %v7568_v28 = vld [vmem:[%s18149_s12 + $0x1e0] sm:$0xff] }
 0x719   :  { %7927 = vadd.xlane.f32.xlu1 %v7926_v0 }
 0x71a   :  { %v7169_v44 = vpop.f32.mrf.mxu1  ;;  %v7938_v7 = vsel %vm3121_vm1, %v7694_v30, 0.0 }
 0x71c   :  { %7942 = vadd.xlane.f32.xlu0 %v7941_v53  ;;  %v11225_v55 = vpop.f32.mrf.mxu1 }
 0x71d   :  { %7936 = vadd.xlane.f32.xlu1 %v7935_v2  ;;  %v7699_v36 = vmul.f32 %v11225_v55, %v7571_v63  ;;  %v7697_v2 = vmul.f32 %v11222_v21, %v7569_v40  ;;  %v7570_v40 = vld [vmem:[%s18149_s12 + $0x1f0] sm:$0xff] }
 0x71e   :  { %v7179_v11 = vpop.f32.mrf.mxu1 }
 0x71f   :  { %v7953_v6 = vsel %vm3121_vm1, %v7699_v36, 0.0  ;;  %v7574_v36 = vld [vmem:[%s18149_s12 + $0x210] sm:$0xff]  ;;  %v7947_v21 = vsel %vm3121_vm1, %v7697_v2, 0.0 }
 0x720   :  { %7954 = vadd.xlane.f32.xlu0 %v7953_v6  ;;  %v11228_v0 = vpop.f32.mrf.mxu1 }
 0x721   :  { %7933 = vadd.xlane.f32.xlu1 %v7932_v51  ;;  %v7701_v12 = vmul.f32 %v11228_v0, %v7573_v62  ;;  %v7696_v62 = vmul.f32 %v7568_v28, %v7169_v44 }
 0x722   :  { %v7189_v63 = vpop.f32.mrf.mxu1 }
 0x723   :  { %v7700_v53 = vmul.f32 %v7572_v42, %v7189_v63  ;;  %v7959_v37 = vsel %vm3121_vm1, %v7701_v12, 0.0  ;;  %v7577_v42 = vld [vmem:[%s18149_s12 + $0x228] sm:$0xff]  ;;  %v7698_v63 = vmul.f32 %v7570_v40, %v7179_v11  ;;  %v7944_v44 = vsel %vm3121_vm1, %v7696_v62, 0.0  ;;  %v7578_v40 = vld [vmem:[%s18149_s12 + $0x230] sm:$0xff] }
 0x724   :  { %7960 = vadd.xlane.f32.xlu0 %v7959_v37  ;;  %v11231_v55 = vpop.f32.mrf.mxu1  ;;  %v7576_v37 = vld [vmem:[%s18149_s12 + $0x220] sm:$0xff] }
 0x725   :  { %7939 = vadd.xlane.f32.xlu1 %v7938_v7  ;;  %v7956_v30 = vsel %vm3121_vm1, %v7700_v53, 0.0  ;;  %v7575_v53 = vld [vmem:[%s18149_s12 + $0x218] sm:$0xff]  ;;  %v7950_v62 = vsel %vm3121_vm1, %v7698_v63, 0.0 }
 0x726   :  { %v7199_v51 = vpop.f32.mrf.mxu1  ;;  %v7703_v11 = vmul.f32 %v11231_v55, %v7575_v53 }
 0x727   :  { %v7702_v6 = vmul.f32 %v7574_v36, %v7199_v51 }
 0x728   :  { %7957 = vadd.xlane.f32.xlu0 %v7956_v30  ;;  %v11234_v0 = vpop.f32.mrf.mxu1  ;;  %v7579_v30 = vld [vmem:[%s18149_s12 + $0x238] sm:$0xff]  ;;  %v7965_v63 = vsel %vm3121_vm1, %v7703_v11, 0.0 }
 0x729   :  { %7948 = vadd.xlane.f32.xlu1 %v7947_v21  ;;  %v7705_v7 = vmul.f32 %v11234_v0, %v7577_v42  ;;  %v7962_v2 = vsel %vm3121_vm1, %v7702_v6, 0.0 }
 0x72a   :  { %v7209_v12 = vpop.f32.mrf.mxu1 }
 0x72b   :  { %v7704_v21 = vmul.f32 %v7576_v37, %v7209_v12  ;;  %v7971_v6 = vsel %vm3121_vm1, %v7705_v7, 0.0  ;;  %v7583_v37 = vld [vmem:[%s18149_s12 + $0x258] sm:$0xff] }
 0x72c   :  { %7963 = vadd.xlane.f32.xlu0 %v7962_v2  ;;  %v11237_v28 = vpop.f32.mrf.mxu1  ;;  %v7581_v2 = vld [vmem:[%s18149_s12 + $0x248] sm:$0xff] }
 0x72d   :  { %7945 = vadd.xlane.f32.xlu1 %v7944_v44  ;;  %v17018_v36 = vpop.xlane.xlu0 %7768  ;;  %v7707_v55 = vmul.f32 %v11237_v28, %v7579_v30  ;;  %v7968_v7 = vsel %vm3121_vm1, %v7704_v21, 0.0  ;;  %v7580_v30 = vld [vmem:[%s18149_s12 + $0x240] sm:$0xff] }
 0x72e   :  { %v7219_v51 = vpop.f32.mrf.mxu1 }
 0x72f   :  { %v7706_v12 = vmul.f32 %v7578_v40, %v7219_v51  ;;  %v7977_v11 = vsel %vm3121_vm1, %v7707_v55, 0.0 }
 0x730   :  { %7972 = vadd.xlane.f32.xlu0 %v7971_v6  ;;  %v11240_v0 = vpop.f32.mrf.mxu1 }
 0x731   :  { %7951 = vadd.xlane.f32.xlu1 %v7950_v62  ;;  %v17028_v42 = vpop.xlane.xlu0 %7765  ;;  %v7709_v28 = vmul.f32 %v11240_v0, %v7581_v2  ;;  %v7974_v21 = vsel %vm3121_vm1, %v7706_v12, 0.0  ;;  %v7582_v12 = vld [vmem:[%s18149_s12 + $0x250] sm:$0xff] }
 0x732   :  { %v7229_v44 = vpop.f32.mrf.mxu1 }
 0x733   :  { %v7708_v0 = vmul.f32 %v7580_v30, %v7229_v44  ;;  %v7983_v2 = vsel %vm3121_vm1, %v7709_v28, 0.0  ;;  %v7589_v44 = vld [vmem:[%s18149_s12 + $0x288] sm:$0xff] }
 0x734   :  { %7969 = vadd.xlane.f32.xlu0 %v7968_v7  ;;  %v11243_v53 = vpop.f32.mrf.mxu1 }
 0x735   :  { %7966 = vadd.xlane.f32.xlu1 %v7965_v63  ;;  %v17038_v62 = vpop.xlane.xlu0 %7771  ;;  %v7711_v51 = vmul.f32 %v11243_v53, %v7583_v37  ;;  %v17055_v37 = vpop.xlane.xlu1 %7774 }
 0x736   :  { %v7239_v6 = vpop.f32.mrf.mxu1 }
 0x737   :  { %v7989_v55 = vsel %vm3121_vm1, %v7711_v51, 0.0  ;;  %v7710_v28 = vmul.f32 %v7582_v12, %v7239_v6  ;;  %v7980_v51 = vsel %vm3121_vm1, %v7708_v0, 0.0 }
 0x738   :  { %7975 = vadd.xlane.f32.xlu0 %v7974_v21  ;;  %v11246_v40 = vpop.f32.mrf.mxu1 }
 0x739   :  { %7978 = vadd.xlane.f32.xlu1 %v7977_v11  ;;  %v17045_v63 = vpop.xlane.xlu0 %7780 }
 0x73a   :  { %v7249_v7 = vpop.f32.mrf.mxu1 }
 0x73c   :  { %7984 = vadd.xlane.f32.xlu0 %v7983_v2  ;;  %v11249_v53 = vpop.f32.mrf.mxu1  ;;  %v7585_v2 = vld [vmem:[%s18149_s12 + $0x268] sm:$0xff] }
 0x73d   :  { %7990 = vadd.xlane.f32.xlu1 %v7989_v55  ;;  %v7715_v11 = vmul.f32 %v11249_v53, %v7587_v48  ;;  %v17057_v21 = vpop.xlane.xlu0 %7777  ;;  %v7588_v48 = vld [vmem:[%s18149_s12 + $0x280] sm:$0xff]  ;;  %v17070_v53 = vpop.xlane.xlu1 %7786  ;;  %v7713_v0 = vmul.f32 %v11246_v40, %v7585_v2 }
 0x73e   :  { %v7259_v34 = vpop.f32.mrf.mxu1 }
 0x73f   :  { %v8001_v30 = vsel %vm3121_vm1, %v7715_v11, 0.0  ;;  %v7986_v11 = vsel %vm3121_vm1, %v7710_v28, 0.0 }
 0x740   :  { %7981 = vadd.xlane.f32.xlu0 %v7980_v51  ;;  %v11252_v55 = vpop.f32.mrf.mxu1  ;;  %v7584_v51 = vld [vmem:[%s18149_s12 + $0x260] sm:$0xff] }
 0x741   :  { %8002 = vadd.xlane.f32.xlu1 %v8001_v30  ;;  %v7717_v18 = vmul.f32 %v11252_v55, %v7589_v44  ;;  %v17072_v19 = vpop.xlane.xlu0 %7783  ;;  %v7590_v44 = vld [vmem:[%s18149_s12 + $0x290] sm:$0xff]  ;;  %v7712_v2 = vmul.f32 %v7584_v51, %v7249_v7 }
 0x742   :  { %v7269_v6 = vpop.f32.mrf.mxu1  ;;  %v17082_v55 = vpop.xlane.xlu1 %7798 }
 0x743   :  { %v7716_v12 = vmul.f32 %v7588_v48, %v7269_v6  ;;  %v8007_v15 = vsel %vm3121_vm1, %v7717_v18, 0.0  ;;  %v7995_v18 = vsel %vm3121_vm1, %v7713_v0, 0.0 }
 0x744   :  { %7987 = vadd.xlane.f32.xlu0 %v7986_v11  ;;  %v11255_v30 = vpop.f32.mrf.mxu1  ;;  %v7593_v11 = vld [vmem:[%s18149_s12 + $0x2a8] sm:$0xff] }
 0x745   :  { %8008 = vadd.xlane.f32.xlu1 %v8007_v15  ;;  %v17084_v33 = vpop.xlane.xlu0 %7792  ;;  %v8004_v48 = vsel %vm3121_vm1, %v7716_v12, 0.0  ;;  %v7586_v15 = vld [vmem:[%s18149_s12 + $0x270] sm:$0xff]  ;;  %v7992_v12 = vsel %vm3121_vm1, %v7712_v2, 0.0 }
 0x746   :  { %v7279_v40 = vpop.f32.mrf.mxu1  ;;  %v7714_v51 = vmul.f32 %v7586_v15, %v7259_v34 }
 0x747   :  { %v7718_v28 = vmul.f32 %v7590_v44, %v7279_v40  ;;  %v7591_v40 = vld [vmem:[%s18149_s12 + $0x298] sm:$0xff] }
 0x748   :  { %7996 = vadd.xlane.f32.xlu0 %v7995_v18  ;;  %v11258_v6 = vpop.f32.mrf.mxu1  ;;  %v7592_v18 = vld [vmem:[%s18149_s12 + $0x2a0] sm:$0xff]  ;;  %v7719_v15 = vmul.f32 %v11255_v30, %v7591_v40 }
 0x749   :  { %8005 = vadd.xlane.f32.xlu1 %v8004_v48  ;;  %v17094_v23 = vpop.xlane.xlu0 %7789  ;;  %v7721_v0 = vmul.f32 %v11258_v6, %v7593_v11  ;;  %v8010_v44 = vsel %vm3121_vm1, %v7718_v28, 0.0  ;;  %v7998_v28 = vsel %vm3121_vm1, %v7714_v51, 0.0  ;;  %v7595_v11 = vld [vmem:[%s18149_s12 + $0x2b8] sm:$0xff] }
 0x74a   :  { %v17096_v10 = vpop.xlane.xlu1 %7810  ;;  %v7289_v7 = vpop.f32.mrf.mxu1 }
 0x74b   :  { %v7720_v2 = vmul.f32 %v7592_v18, %v7289_v7  ;;  %v8019_v6 = vsel %vm3121_vm1, %v7721_v0, 0.0  ;;  %v8013_v0 = vsel %vm3121_vm1, %v7719_v15, 0.0  ;;  %v7597_v18 = vld [vmem:[%s18149_s12 + $0x2c8] sm:$0xff]  ;;  %v8355_v49 = vmul.f32 %v17096_v10, %v18720_v5 }
 0x74c   :  { %7993 = vadd.xlane.f32.xlu0 %v7992_v12  ;;  %v11261_v48 = vpop.f32.mrf.mxu1  ;;  %v7594_v12 = vld [vmem:[%s18149_s12 + $0x2b0] sm:$0xff]  ;;  %v7613_v5 = vld [vmem:[%s18149_s12 + $0x348] sm:$0xff] }
 0x74d   :  { %8011 = vadd.xlane.f32.xlu1 %v8010_v44  ;;  %v17106_v58 = vpop.xlane.xlu0 %7795  ;;  %v7723_v7 = vmul.f32 %v11261_v48, %v7595_v11  ;;  %v8016_v40 = vsel %vm3121_vm1, %v7720_v2, 0.0 }
 0x74e   :  { %v17108_v31 = vpop.xlane.xlu1 %7816  ;;  %v7299_v34 = vpop.f32.mrf.mxu1 }
 0x74f   :  { %v7722_v51 = vmul.f32 %v7594_v12, %v7299_v34  ;;  %v8025_v2 = vsel %vm3121_vm1, %v7723_v7, 0.0  ;;  %v7596_v12 = vld [vmem:[%s18149_s12 + $0x2c0] sm:$0xff] }
 0x750   :  { %7999 = vadd.xlane.f32.xlu0 %v7998_v28  ;;  %v11264_v44 = vpop.f32.mrf.mxu1 }
 0x751   :  { %8020 = vadd.xlane.f32.xlu1 %v8019_v6  ;;  %v17118_v13 = vpop.xlane.xlu0 %7804  ;;  %v7599_v6 = vld [vmem:[%s18149_s12 + $0x2d8] sm:$0xff]  ;;  %v7725_v34 = vmul.f32 %v11264_v44, %v7597_v18  ;;  %v8022_v11 = vsel %vm3121_vm1, %v7722_v51, 0.0 }
 0x752   :  { %v17120_v50 = vpop.xlane.xlu1 %7813  ;;  %v7309_v30 = vpop.f32.mrf.mxu1  ;;  %v7603_v44 = vld [vmem:[%s18149_s12 + $0x2f8] sm:$0xff] }
 0x753   :  { %v7724_v18 = vmul.f32 %v7596_v12, %v7309_v30  ;;  %v8031_v7 = vsel %vm3121_vm1, %v7725_v34, 0.0 }
 0x754   :  { %8014 = vadd.xlane.f32.xlu0 %v8013_v0  ;;  %v11267_v28 = vpop.f32.mrf.mxu1 }
 0x755   :  { %8017 = vadd.xlane.f32.xlu1 %v8016_v40  ;;  %v17130_v54 = vpop.xlane.xlu0 %7801  ;;  %v7727_v15 = vmul.f32 %v11267_v28, %v7599_v6  ;;  %v7598_v28 = vld [vmem:[%s18149_s12 + $0x2d0] sm:$0xff]  ;;  %v8028_v30 = vsel %vm3121_vm1, %v7724_v18, 0.0  ;;  %v7600_v18 = vld [vmem:[%s18149_s12 + $0x2e0] sm:$0xff] }
 0x756   :  { %v17132_v52 = vpop.xlane.xlu1 %7819  ;;  %v7319_v48 = vpop.f32.mrf.mxu1 }
 0x757   :  { %v8037_v51 = vsel %vm3121_vm1, %v7727_v15, 0.0  ;;  %v7726_v35 = vmul.f32 %v7598_v28, %v7319_v48  ;;  %v7601_v15 = vld [vmem:[%s18149_s12 + $0x2e8] sm:$0xff] }
 0x758   :  { %8026 = vadd.xlane.f32.xlu0 %v8025_v2  ;;  %v11270_v0 = vpop.f32.mrf.mxu1 }
 0x759   :  { %8023 = vadd.xlane.f32.xlu1 %v8022_v11  ;;  %v17139_v40 = vpop.xlane.xlu0 %7807  ;;  %v8034_v48 = vsel %vm3121_vm1, %v7726_v35, 0.0  ;;  %v7602_v35 = vld [vmem:[%s18149_s12 + $0x2f0] sm:$0xff] }
 0x75a   :  { %v17141_v46 = vpop.xlane.xlu1 %7828  ;;  %v7329_v38 = vpop.f32.mrf.mxu1 }
 0x75b   :  { %v7728_v56 = vmul.f32 %v7600_v18, %v7329_v38 }
 0x75c   :  { %8038 = vadd.xlane.f32.xlu0 %v8037_v51  ;;  %v11273_v6 = vpop.f32.mrf.mxu1 }
 0x75d   :  { %8032 = vadd.xlane.f32.xlu1 %v8031_v7  ;;  %v7731_v2 = vmul.f32 %v11273_v6, %v7603_v44  ;;  %v17151_v11 = vpop.xlane.xlu0 %7822  ;;  %v7729_v6 = vmul.f32 %v11270_v0, %v7601_v15 }
 0x75e   :  { %v17153_v47 = vpop.xlane.xlu1 %7825  ;;  %v7339_v27 = vpop.f32.mrf.mxu1 }
 0x75f   :  { %v8049_v34 = vsel %vm3121_vm1, %v7731_v2, 0.0  ;;  %v8043_v4 = vsel %vm3121_vm1, %v7729_v6, 0.0  ;;  %v7730_v38 = vmul.f32 %v7602_v35, %v7339_v27  ;;  %v8040_v6 = vsel %vm3121_vm1, %v7728_v56, 0.0 }
 0x760   :  { %8050 = vadd.xlane.f32.xlu0 %v8049_v34  ;;  %v17160_v12 = vpop.f32.mrf.mxu1 }
 0x761   :  { %8029 = vadd.xlane.f32.xlu1 %v8028_v30  ;;  %v17162_v7 = vpop.xlane.xlu0 %7834  ;;  %v8046_v27 = vsel %vm3121_vm1, %v7730_v38, 0.0 }
 0x762   :  { %v17164_v44 = vpop.xlane.xlu1 %7831  ;;  %v17166_v51 = vpop.f32.mrf.mxu1 }
 0x764   :  { %v17172_v28 = vpop.f32.mrf.mxu1 }
 0x765   :  { %8035 = vadd.xlane.f32.xlu1 %v8034_v48  ;;  %v17176_v30 = vpop.xlane.xlu0 %7846 }
 0x766   :  { %v17174_v2 = vpop.xlane.xlu1 %7840  ;;  %v17178_v34 = vpop.f32.mrf.mxu1 }
 0x768   :  { %v17184_v0 = vpop.f32.mrf.mxu1 }
 0x769   :  { %8044 = vadd.xlane.f32.xlu1 %v8043_v4  ;;  %v7859_v48 = vpop.xlane.xlu0 %7858 }
 0x76a   :  { %v17186_v15 = vpop.xlane.xlu1 %7837  ;;  %v8371_v16 = vmul.f32 %v7859_v48, %v18719_v61  ;;  %v17189_v14 = vpop.f32.mrf.mxu1  ;;  %v18723_v48 = vld [vmem:[#allocation62_spill] sm:$0xff] }
 0x76c   :  { %10350 = vmatprep.subr.mxu0 %v8371_v16  ;;  %v17194_v18 = vpop.f32.mrf.mxu1  ;;  %v7612_v16 = vld [vmem:[%s18149_s12 + $0x340] sm:$0xff] }
 0x76d   :  { %8041 = vadd.xlane.f32.xlu1 %v8040_v6  ;;  %10351 = vmatpush3.msra.mxu0 %v8355_v49  ;;  %v7865_v17 = vpop.xlane.xlu0 %7864  ;;  %v7615_v6 = vld [vmem:[%s18149_s12 + $0x358] sm:$0xff] }
 0x76e   :  { %v17196_v4 = vpop.xlane.xlu1 %7843  ;;  %v17199_v57 = vmul.f32 %v7865_v17, %v18721_v24  ;;  %v17201_v61 = vpop.f32.mrf.mxu1 }
 0x770   :  { %18722 = vst [vmem:[#allocation137_spill] sm:$0xff] %v17199_v57  ;;  %v11288_v56 = vpop.f32.mrf.mxu1 }
 0x771   :  { %8047 = vadd.xlane.f32.xlu1 %v8046_v27  ;;  %v7741_v10 = vmul.f32 %v11288_v56, %v7613_v5  ;;  %v7862_v35 = vpop.xlane.xlu0 %7861 }
 0x772   :  { %v7853_v49 = vpop.xlane.xlu1 %7852  ;;  %v17211_v17 = vmul.f32 %v7862_v35, %v18723_v48  ;;  %v7389_v24 = vpop.f32.mrf.mxu1 }
 0x773   :  { %v7740_v39 = vmul.f32 %v7612_v16, %v7389_v24  ;;  %v8079_v38 = vsel %vm3121_vm1, %v7741_v10, 0.0  ;;  %v7617_v24 = vld [vmem:[%s18149_s12 + $0x368] sm:$0xff] }
 0x774   :  { %18724 = vst [vmem:[#allocation43_spill] sm:$0xff] %v17211_v17  ;;  %8080 = vadd.xlane.f32.xlu0 %v8079_v38  ;;  %v11291_v27 = vpop.f32.mrf.mxu1 }
 0x775   :  { %v7743_v5 = vmul.f32 %v11291_v27, %v7615_v6  ;;  %v7868_v43 = vpop.xlane.xlu0 %7867  ;;  %v8076_v1 = vsel %vm3121_vm1, %v7740_v39, 0.0  ;;  %v18727_v27 = vld [vmem:[#allocation79_spill] sm:$0xff]  ;;  %v18729_v39 = vld [vmem:[#allocation112_spill] sm:$0xff] }
 0x776   :  { %v7850_v56 = vpop.xlane.xlu1 %7849  ;;  %v17221_v35 = vmul.f32 %v7868_v43, %v18725_v60  ;;  %v7399_v48 = vpop.f32.mrf.mxu1 }
 0x777   :  { %v7742_v41 = vmul.f32 %v7614_v25, %v7399_v48  ;;  %v8085_v16 = vsel %vm3121_vm1, %v7743_v5, 0.0  ;;  %v7619_v25 = vld [vmem:[%s18149_s12 + $0x378] sm:$0xff] }
 0x778   :  { %18726 = vst [vmem:[#allocation88_spill] sm:$0xff] %v17221_v35  ;;  %8077 = vadd.xlane.f32.xlu0 %v8076_v1  ;;  %8086 = vadd.xlane.f32.xlu1 %v8085_v16  ;;  %v11294_v10 = vpop.f32.mrf.mxu1  ;;  %v8354_v1 = vmul.f32 %v17139_v40, %v18729_v39  ;;  %v18730_v16 = vld [vmem:[#allocation92_spill] sm:$0xff]  ;;  %v18732_v40 = vld [vmem:[#allocation82_spill] sm:$0xff] }
 0x779   :  { %v7877_v6 = vpop.xlane.xlu0 %7876  ;;  %v7745_v5 = vmul.f32 %v11294_v10, %v7617_v24  ;;  %v8082_v48 = vsel %vm3121_vm1, %v7742_v41, 0.0  ;;  %v8369_v26 = vmul.f32 %v7853_v49, %v18730_v16  ;;  %v8368_v10 = vmul.f32 %v7850_v56, %v18732_v40  ;;  %v18733_v24 = vld [vmem:[#allocation85_spill] sm:$0xff]  ;;  %v18734_v49 = vld [vmem:[#allocation99_spill] sm:$0xff] }
 0x77a   :  { %v7856_v38 = vpop.xlane.xlu1 %7855  ;;  %v17230_v60 = vmul.f32 %v7877_v6, %v18728_v45  ;;  %v7409_v43 = vpop.f32.mrf.mxu1  ;;  %v18731_v6 = vld [vmem:[#allocation39_spill] sm:$0xff] }
 0x77b   :  { %v8370_v22 = vmul.f32 %v7856_v38, %v18727_v27  ;;  %v7616_v38 = vld [vmem:[%s18149_s12 + $0x360] sm:$0xff]  ;;  %v8353_v27 = vmul.f32 %v17118_v13, %v18731_v6  ;;  %v8091_v13 = vsel %vm3121_vm1, %v7745_v5, 0.0  ;;  %v18740_v6 = vld [vmem:[#allocation97_spill] sm:$0xff] }
 0x77c   :  { %8083 = vadd.xlane.f32.xlu0 %v8082_v48  ;;  %v11297_v45 = vpop.f32.mrf.mxu1  ;;  %v7744_v3 = vmul.f32 %v7616_v38, %v7409_v43  ;;  %v18738_v38 = vld [vmem:[#allocation77_spill] sm:$0xff] }
 0x77d   :  { %10352 = vmatprep.subr.mxu0 %v8370_v22  ;;  %v7747_v17 = vmul.f32 %v11297_v45, %v7619_v25  ;;  %v7874_v35 = vpop.xlane.xlu0 %7873  ;;  %v18735_v22 = vld [vmem:[#allocation108_spill] sm:$0xff]  ;;  %v18739_v45 = vld [vmem:[#allocation71_spill] sm:$0xff] }
 0x77e   :  { %10353 = vmatpush3.msra.mxu0 %v8354_v1  ;;  %v7871_v57 = vpop.xlane.xlu1 %7870  ;;  %v17249_v39 = vmul.f32 %v7874_v35, %v18734_v49  ;;  %v7419_v16 = vpop.f32.mrf.mxu1  ;;  %v8352_v48 = vmul.f32 %v17130_v54, %v18735_v22  ;;  %v18736_v1 = vld [vmem:[#allocation131_spill] sm:$0xff]  ;;  %v8088_v49 = vsel %vm3121_vm1, %v7744_v3, 0.0  ;;  %v18742_v22 = vld [vmem:[#allocation89_spill] sm:$0xff]  ;;  %v18745_v3 = vld [vmem:[#allocation76_spill] sm:$0xff] }
 0x77f   :  { %v17246_v41 = vmul.f32 %v7871_v57, %v18733_v24  ;;  %10354 = vmatprep.subr.mxu0 %v8369_v26  ;;  %v8097_v25 = vsel %vm3121_vm1, %v7747_v17, 0.0  ;;  %v8367_v56 = vmul.f32 %v17176_v30, %v18736_v1  ;;  %v7618_v57 = vld [vmem:[%s18149_s12 + $0x370] sm:$0xff]  ;;  %v18737_v26 = vld [vmem:[#allocation40_spill] sm:$0xff]  ;;  %v8366_v17 = vmul.f32 %v17196_v4, %v18738_v38 }
 0x780   :  { %10355 = vmatpush3.msra.mxu0 %v8353_v27  ;;  %8092 = vadd.xlane.f32.xlu0 %v8091_v13  ;;  %v17260_v35 = vpop.f32.mrf.mxu1  ;;  %v8351_v54 = vmul.f32 %v17082_v55, %v18737_v26  ;;  %v7746_v55 = vmul.f32 %v7618_v57, %v7419_v16  ;;  %v18743_v13 = vld [vmem:[#allocation37_spill] sm:$0xff] }
 0x781   :  { %10356 = vmatprep.subr.mxu0 %v8368_v10  ;;  %8098 = vadd.xlane.f32.xlu1 %v8097_v25  ;;  %v7880_v5 = vpop.xlane.xlu0 %7879  ;;  %v18741_v10 = vld [vmem:[#allocation80_spill] sm:$0xff]  ;;  %v8349_v25 = vmul.f32 %v17084_v33, %v18743_v13 }
 0x782   :  { %10357 = vmatpush3.msra.mxu0 %v8352_v48  ;;  %v7883_v43 = vpop.xlane.xlu1 %7882  ;;  %v17270_v27 = vmul.f32 %v7880_v5, %v18740_v6  ;;  %v17272_v40 = vpop.f32.mrf.mxu1  ;;  %v8350_v24 = vmul.f32 %v17106_v58, %v18741_v10  ;;  %v8365_v48 = vmul.f32 %v17174_v2, %v18742_v22  ;;  %v18744_v58 = vld [vmem:[#allocation70_spill] sm:$0xff]  ;;  %v8348_v2 = vmul.f32 %v17094_v23, %v18745_v3  ;;  %v18747_v5 = vld [vmem:[#allocation35_spill] sm:$0xff]  ;;  %v18749_v10 = vld [vmem:[#allocation48_spill] sm:$0xff] }
 0x783   :  { %v17267_v30 = vmul.f32 %v7883_v43, %v18739_v45  ;;  %10358 = vmatprep.subr.mxu0 %v8367_v56  ;;  %v8364_v16 = vmul.f32 %v17186_v15, %v18744_v58  ;;  %v8094_v26 = vsel %vm3121_vm1, %v7746_v55, 0.0  ;;  %v8347_v38 = vmul.f32 %v17070_v53, %v18747_v5  ;;  %v18748_v45 = vld [vmem:[#allocation72_spill] sm:$0xff]  ;;  %v18750_v53 = vld [vmem:[#allocation61_spill] sm:$0xff]  ;;  %v18752_v58 = vld [vmem:[#allocation51_spill] sm:$0xff] }
 0x784   :  { %10359 = vmatpush3.msra.mxu0 %v8351_v54  ;;  %8089 = vadd.xlane.f32.xlu0 %v8088_v49  ;;  %v17279_v4 = vpop.f32.mrf.mxu1  ;;  %v18746_v54 = vld [vmem:[#allocation49_spill] sm:$0xff]  ;;  %v8362_v23 = vmul.f32 %v17164_v44, %v18748_v45  ;;  %v8361_v55 = vmul.f32 %v17141_v46, %v18750_v53  ;;  %v18751_v22 = vld [vmem:[#allocation36_spill] sm:$0xff]  ;;  %v18753_v3 = vld [vmem:[#allocation87_spill] sm:$0xff] }
 0x785   :  { %10360 = vmatprep.subr.mxu0 %v8366_v17  ;;  %v17283_v1 = vpop.xlane.xlu0 %7888  ;;  %v8363_v33 = vmul.f32 %v17162_v7, %v18746_v54  ;;  %v7627_v7 = vld [vmem:[%s18149_s12 + $0x3b8] sm:$0xff]  ;;  %v7629_v46 = vld [vmem:[%s18149_s12 + $0x3c8] sm:$0xff]  ;;  %v18756_v45 = vld [vmem:[#allocation46_spill] sm:$0xff] }
 0x786   :  { %10361 = vmatpush3.msra.mxu0 %v8350_v24  ;;  %v17285_v56 = vpop.xlane.xlu1 %7894  ;;  %v17289_v57 = vpop.f32.mrf.mxu1  ;;  %v8346_v24 = vmul.f32 %v17072_v19, %v18749_v10 }
 0x787   :  { %10362 = vmatprep.subr.mxu0 %v8365_v48  ;;  %v8345_v48 = vmul.f32 %v17045_v63, %v18751_v22  ;;  %v7631_v22 = vld [vmem:[%s18149_s12 + $0x3d8] sm:$0xff] }
 0x788   :  { %10363 = vmatpush3.msra.mxu0 %v8349_v25  ;;  %8095 = vadd.xlane.f32.xlu0 %v8094_v26  ;;  %v17296_v43 = vpop.f32.mrf.mxu1  ;;  %v18754_v26 = vld [vmem:[#allocation50_spill] sm:$0xff] }
 0x789   :  { %10364 = vmatprep.subr.mxu0 %v8364_v16  ;;  %v17300_v15 = vpop.xlane.xlu0 %7885  ;;  %v8360_v16 = vmul.f32 %v17153_v47, %v18752_v58  ;;  %v8344_v63 = vmul.f32 %v17057_v21, %v18754_v26  ;;  %v18760_v58 = vld [vmem:[#allocation42_spill] sm:$0xff] }
 0x78a   :  { %10365 = vmatpush3.msra.mxu0 %v8348_v2  ;;  %v17302_v17 = vpop.xlane.xlu1 %7906  ;;  %v17306_v6 = vpop.f32.mrf.mxu1 }
 0x78b   :  { %10366 = vmatprep.subr.mxu0 %v8363_v33  ;;  %v18755_v33 = vld [vmem:[#allocation47_spill] sm:$0xff] }
 0x78c   :  { %10367 = vmatpush3.msra.mxu0 %v8347_v38  ;;  %v11309_v49 = vpop.f32.mrf.mxu1  ;;  %v8359_v5 = vmul.f32 %v17151_v11, %v18755_v33  ;;  %v7628_v38 = vld [vmem:[%s18149_s12 + $0x3c0] sm:$0xff] }
 0x78d   :  { %10368 = vmatprep.subr.mxu0 %v8362_v23  ;;  %v7755_v44 = vmul.f32 %v11309_v49, %v7627_v7  ;;  %v17317_v13 = vpop.xlane.xlu0 %7891  ;;  %v8343_v23 = vmul.f32 %v17055_v37, %v18756_v45  ;;  %v18762_v33 = vld [vmem:[#allocation116_spill] sm:$0xff] }
 0x78e   :  { %10369 = vmatpush3.msra.mxu0 %v8346_v24  ;;  %v7913_v25 = vpop.xlane.xlu1 %7912  ;;  %v17324_v19 = vpop.f32.mrf.mxu1  ;;  %v18757_v24 = vld [vmem:[#allocation45_spill] sm:$0xff] }
 0x78f   :  { %v17322_v2 = vmul.f32 %v7913_v25, %v18753_v3  ;;  %10370 = vmatprep.subr.mxu0 %v8361_v55  ;;  %v8121_v54 = vsel %vm3121_vm1, %v7755_v44, 0.0  ;;  %v8358_v53 = vmul.f32 %v17132_v52, %v18757_v24  ;;  %v18758_v55 = vld [vmem:[#allocation110_spill] sm:$0xff]  ;;  %v8157_v24 = vld [vmem:[%s18150_s13 + $0x48] sm:$0xff] }
 0x790   :  { %10371 = vmatpush3.msra.mxu0 %v8345_v48  ;;  %8122 = vadd.xlane.f32.xlu1 %v8121_v54  ;;  %v11312_v47 = vpop.f32.mrf.mxu1  ;;  %v18759_v48 = vld [vmem:[#allocation33_spill] sm:$0xff]  ;;  %v7630_v3 = vld [vmem:[%s18149_s12 + $0x3d0] sm:$0xff] }
 0x791   :  { %10372 = vmatprep.subr.mxu0 %v8360_v16  ;;  %v7757_v7 = vmul.f32 %v11312_v47, %v7629_v46  ;;  %v17339_v10 = vpop.xlane.xlu0 %7900  ;;  %v8342_v37 = vmul.f32 %v17038_v62, %v18759_v48  ;;  %v8357_v16 = vmul.f32 %v17108_v31, %v18760_v58  ;;  %v18761_v46 = vld [vmem:[#allocation142_spill] sm:$0xff]  ;;  %v7633_v47 = vld [vmem:[%s18149_s12 + $0x3e8] sm:$0xff] }
 0x792   :  { %10373 = vmatpush3.msra.mxu0 %v8344_v63  ;;  %v7910_v21 = vpop.xlane.xlu1 %7909  ;;  %v7469_v49 = vpop.f32.mrf.mxu1  ;;  %v8341_v26 = vmul.f32 %v17018_v36, %v18761_v46 }
 0x793   :  { %v17344_v11 = vmul.f32 %v7910_v21, %v18758_v55  ;;  %10374 = vmatprep.subr.mxu0 %v8359_v5  ;;  %v7756_v44 = vmul.f32 %v7628_v38, %v7469_v49  ;;  %v8127_v25 = vsel %vm3121_vm1, %v7757_v7, 0.0  ;;  %v8356_v5 = vmul.f32 %v17120_v50, %v18762_v33  ;;  %v18763_v38 = vld [vmem:[#allocation41_spill] sm:$0xff]  ;;  %v8148_v21 = vld [vmem:[%s18150_s13] sm:$0xff] }
 0x794   :  { %10375 = vmatpush3.msra.mxu0 %v8343_v23  ;;  %8128 = vadd.xlane.f32.xlu1 %v8127_v25  ;;  %v11315_v52 = vpop.f32.mrf.mxu1  ;;  %v8340_v45 = vmul.f32 %v17028_v42, %v18763_v38  ;;  %v7632_v25 = vld [vmem:[%s18149_s12 + $0x3e0] sm:$0xff] }
 0x795   :  { %10376 = vmatprep.subr.mxu0 %v8358_v53  ;;  %v7759_v63 = vmul.f32 %v11315_v52, %v7631_v22  ;;  %v17359_v62 = vpop.xlane.xlu0 %7897  ;;  %v8124_v36 = vsel %vm3121_vm1, %v7756_v44, 0.0  ;;  %v7635_v22 = vld [vmem:[%s18149_s12 + $0x3f8] sm:$0xff] }
 0x796   :  { %10377 = vmatpush3.msra.mxu0 %v8342_v37  ;;  %v17361_v54 = vpop.xlane.xlu1 %7915  ;;  %v7479_v31 = vpop.f32.mrf.mxu1  ;;  %v8156_v37 = vld [vmem:[%s18150_s13 + $0x40] sm:$0xff]  ;;  %v7611_v44 = vld [vmem:[%s18149_s12 + $0x338] sm:$0xff] }
 0x797   :  { %10378 = vmatprep.subr.mxu0 %v8357_v16  ;;  %v7758_v23 = vmul.f32 %v7630_v3, %v7479_v31  ;;  %v8133_v7 = vsel %vm3121_vm1, %v7759_v63, 0.0  ;;  %v8165_v16 = vld [vmem:[%s18150_s13 + $0x88] sm:$0xff]  ;;  %v7739_v63 = vmul.f32 %v17194_v18, %v7611_v44  ;;  %v8164_v31 = vld [vmem:[%s18150_s13 + $0x80] sm:$0xff] }
 0x798   :  { %10379 = vmatpush3.msra.mxu0 %v8341_v26  ;;  %8125 = vadd.xlane.f32.xlu1 %v8124_v36  ;;  %v11318_v50 = vpop.f32.mrf.mxu1  ;;  %v8173_v18 = vld [vmem:[%s18150_s13 + $0xc8] sm:$0xff] }
 0x799   :  { %10380 = vmatprep.subr.mxu0 %v8356_v5  ;;  %8134 = vadd.xlane.f32.xlu0 %v8133_v7  ;;  %v7761_v53 = vmul.f32 %v11318_v50, %v7633_v47  ;;  %v17378_v42 = vpop.xlane.xlu0 %7903  ;;  %v8130_v48 = vsel %vm3121_vm1, %v7758_v23, 0.0  ;;  %v7610_v47 = vld [vmem:[%s18149_s12 + $0x330] sm:$0xff]  ;;  %v8073_v50 = vsel %vm3121_vm1, %v7739_v63, 0.0  ;;  %v7625_v63 = vld [vmem:[%s18149_s12 + $0x3a8] sm:$0xff] }
 0x79a   :  { %10381 = vmatpush3.msra.mxu0 %v8340_v45  ;;  %v17380_v55 = vpop.xlane.xlu1 %7924  ;;  %v7489_v49 = vpop.f32.mrf.mxu1  ;;  %v7634_v45 = vld [vmem:[%s18149_s12 + $0x3f0] sm:$0xff]  ;;  %v7738_v7 = vmul.f32 %v7610_v47, %v17201_v61  ;;  %v8181_v61 = vld [vmem:[%s18150_s13 + $0x108] sm:$0xff] }
 0x79b   :  { %8548 = vmatmul.mubr.f32.vlgmr.msra.gmra.mxu0 %v8148_v21  ;;  %v8139_v26 = vsel %vm3121_vm1, %v7761_v53, 0.0  ;;  %v7760_v33 = vmul.f32 %v7632_v25, %v7489_v49  ;;  %v8172_v53 = vld [vmem:[%s18150_s13 + $0xc0] sm:$0xff]  ;;  %v7609_v49 = vld [vmem:[%s18149_s12 + $0x328] sm:$0xff] }
 0x79c   :  { %8552 = vmatprep.mubr.f32.mxu0 %v8157_v24  ;;  %8131 = vadd.xlane.f32.xlu1 %v8130_v48  ;;  %v11321_v58 = vpop.f32.mrf.mxu1  ;;  %v7737_v44 = vmul.f32 %v17184_v0, %v7609_v49  ;;  %v8070_v25 = vsel %vm3121_vm1, %v7738_v7, 0.0  ;;  %v8189_v0 = vld [vmem:[%s18150_s13 + $0x148] sm:$0xff]  ;;  %v8188_v7 = vld [vmem:[%s18150_s13 + $0x140] sm:$0xff] }
 0x79d   :  { %v7763_v52 = vmul.f32 %v11321_v58, %v7635_v22  ;;  %v17398_v3 = vpop.xlane.xlu0 %7918  ;;  %v8136_v21 = vsel %vm3121_vm1, %v7760_v33, 0.0  ;;  %v7626_v22 = vld [vmem:[%s18149_s12 + $0x3b0] sm:$0xff] }
 0x79e   :  { %v17400_v46 = vpop.xlane.xlu1 %7921  ;;  %v7499_v38 = vpop.f32.mrf.mxu1 }
 0x79f   :  { %8553 = vmatmul.mubr.f32.gmra.mxu0 %v8156_v37  ;;  %v8145_v5 = vsel %vm3121_vm1, %v7763_v52, 0.0  ;;  %v7762_v24 = vmul.f32 %v7634_v45, %v7499_v38  ;;  %v7608_v52 = vld [vmem:[%s18149_s12 + $0x320] sm:$0xff]  ;;  %v18765_v45 = vld [vmem:[#allocation90_spill] sm:$0xff] }
 0x7a0   :  { %8557 = vmatprep.mubr.f32.mxu0 %v8165_v16  ;;  %8140 = vadd.xlane.f32.xlu1 %v8139_v26  ;;  %v8180_v16 = vld [vmem:[%s18150_s13 + $0x100] sm:$0xff]  ;;  %v7754_v26 = vmul.f32 %v7626_v22, %v17324_v19  ;;  %v7736_v38 = vmul.f32 %v7608_v52, %v17189_v14  ;;  %v8387_v19 = vmul.f32 %v17302_v17, %v18765_v45  ;;  %v8197_v17 = vld [vmem:[%s18150_s13 + $0x188] sm:$0xff] }
 0x7a1   :  { %8146 = vadd.xlane.f32.xlu0 %v8145_v5  ;;  %v17417_v23 = vpop.xlane.xlu0 %7930  ;;  %v8142_v58 = vsel %vm3121_vm1, %v7762_v24, 0.0  ;;  %v7624_v24 = vld [vmem:[%s18149_s12 + $0x3a0] sm:$0xff]  ;;  %v7605_v45 = vld [vmem:[%s18149_s12 + $0x308] sm:$0xff] }
 0x7a2   :  { %v17419_v36 = vpop.xlane.xlu1 %7927  ;;  %v8118_v14 = vsel %vm3121_vm1, %v7754_v26, 0.0  ;;  %v7623_v26 = vld [vmem:[%s18149_s12 + $0x398] sm:$0xff] }
 0x7a3   :  { %8558 = vmatmul.mubr.f32.gmra.mxu0 %v8164_v31  ;;  %v18764_v31 = vld [vmem:[#allocation109_spill] sm:$0xff] }
 0x7a4   :  { %8562 = vmatprep.mubr.f32.mxu0 %v8173_v18  ;;  %8137 = vadd.xlane.f32.xlu1 %v8136_v21  ;;  %v8067_v18 = vsel %vm3121_vm1, %v7737_v44, 0.0  ;;  %v7607_v21 = vld [vmem:[%s18149_s12 + $0x318] sm:$0xff]  ;;  %v8064_v44 = vsel %vm3121_vm1, %v7736_v38, 0.0  ;;  %v8204_v38 = vld [vmem:[%s18150_s13 + $0x1c0] sm:$0xff] }
 0x7a5   :  { %8074 = vadd.xlane.f32.xlu0 %v8073_v50  ;;  %v17438_v37 = vpop.xlane.xlu0 %7942  ;;  %v7753_v50 = vmul.f32 %v17296_v43, %v7625_v63  ;;  %v7735_v43 = vmul.f32 %v17172_v28, %v7607_v21  ;;  %v8205_v28 = vld [vmem:[%s18150_s13 + $0x1c8] sm:$0xff] }
 0x7a6   :  { %v17436_v48 = vpop.xlane.xlu1 %7936 }
 0x7a7   :  { %8563 = vmatmul.mubr.f32.gmra.mxu0 %v8172_v53  ;;  %v8115_v52 = vsel %vm3121_vm1, %v7753_v50, 0.0 }
 0x7a8   :  { %8567 = vmatprep.mubr.f32.mxu0 %v8181_v61  ;;  %8143 = vadd.xlane.f32.xlu1 %v8142_v58  ;;  %v18766_v61 = vld [vmem:[#allocation106_spill] sm:$0xff] }
 0x7a9   :  { %8071 = vadd.xlane.f32.xlu0 %v8070_v25  ;;  %v7955_v5 = vpop.xlane.xlu0 %7954  ;;  %v8196_v25 = vld [vmem:[%s18150_s13 + $0x180] sm:$0xff]  ;;  %v7606_v58 = vld [vmem:[%s18149_s12 + $0x310] sm:$0xff] }
 0x7aa   :  { %v17456_v33 = vpop.xlane.xlu1 %7933  ;;  %v8403_v47 = vmul.f32 %v7955_v5, %v18764_v31  ;;  %v18767_v5 = vld [vmem:[#allocation128_spill] sm:$0xff] }
 0x7ab   :  { %8568 = vmatmul.mubr.f32.gmra.mxu0 %v8180_v16  ;;  %v7752_v16 = vmul.f32 %v7624_v24, %v17306_v6  ;;  %v7734_v6 = vmul.f32 %v7606_v58, %v17178_v34  ;;  %v8151_v34 = vld [vmem:[%s18150_s13 + $0x18] sm:$0xff]  ;;  %v7604_v24 = vld [vmem:[%s18149_s12 + $0x300] sm:$0xff] }
 0x7ac   :  { %8572 = vmatprep.mubr.f32.mxu0 %v8189_v0  ;;  %10406 = vmatprep.subr.mxu0 %v8403_v47  ;;  %v8061_v47 = vsel %vm3121_vm1, %v7735_v43, 0.0 }
 0x7ad   :  { %8068 = vadd.xlane.f32.xlu0 %v8067_v18  ;;  %8119 = vadd.xlane.f32.xlu1 %v8118_v14  ;;  %v7961_v49 = vpop.xlane.xlu0 %7960  ;;  %v8112_v18 = vsel %vm3121_vm1, %v7752_v16, 0.0  ;;  %v7732_v16 = vmul.f32 %v7604_v24, %v17166_v51 }
 0x7ae   :  { %v17477_v53 = vpop.xlane.xlu1 %7939  ;;  %10407 = vmatpush3.msra.mxu0 %v8387_v19  ;;  %v17480_v22 = vmul.f32 %v7961_v49, %v18766_v61  ;;  %v7751_v19 = vmul.f32 %v17279_v4, %v7623_v26  ;;  %v7733_v4 = vmul.f32 %v17160_v12, %v7605_v45  ;;  %v18768_v12 = vld [vmem:[#allocation130_spill] sm:$0xff]  ;;  %v18772_v45 = vld [vmem:[#allocation124_spill] sm:$0xff] }
 0x7af   :  { %8573 = vmatmul.mubr.f32.gmra.mxu0 %v8188_v7  ;;  %v7622_v7 = vld [vmem:[%s18149_s12 + $0x390] sm:$0xff] }
 0x7b0   :  { %8577 = vmatprep.mubr.f32.mxu0 %v8197_v17  ;;  %v8058_v17 = vsel %vm3121_vm1, %v7734_v6, 0.0  ;;  %v7750_v49 = vmul.f32 %v7622_v7, %v17289_v57  ;;  %v8109_v61 = vsel %vm3121_vm1, %v7751_v19, 0.0 }
 0x7b1   :  { %8065 = vadd.xlane.f32.xlu0 %v8064_v44  ;;  %8116 = vadd.xlane.f32.xlu1 %v8115_v52  ;;  %v7958_v63 = vpop.xlane.xlu0 %7957  ;;  %v18769_v52 = vld [vmem:[#allocation113_spill] sm:$0xff] }
 0x7b2   :  { %v7949_v0 = vpop.xlane.xlu1 %7948  ;;  %v17499_v31 = vmul.f32 %v7958_v63, %v18767_v5  ;;  %v8386_v57 = vmul.f32 %v17378_v42, %v18769_v52  ;;  %v18770_v63 = vld [vmem:[#allocation102_spill] sm:$0xff]  ;;  %v8106_v6 = vsel %vm3121_vm1, %v7750_v49, 0.0  ;;  %v18781_v52 = vld [vmem:[#allocation120_spill] sm:$0xff] }
 0x7b3   :  { %8578 = vmatmul.mubr.f32.gmra.mxu0 %v8196_v25  ;;  %v8401_v5 = vmul.f32 %v7949_v0, %v18770_v63  ;;  %v18773_v0 = vld [vmem:[#allocation114_spill] sm:$0xff] }
 0x7b4   :  { %8582 = vmatprep.mubr.f32.mxu0 %v8205_v28  ;;  %v8055_v28 = vsel %vm3121_vm1, %v7733_v4, 0.0  ;;  %v18775_v4 = vld [vmem:[#allocation104_spill] sm:$0xff] }
 0x7b5   :  { %8062 = vadd.xlane.f32.xlu0 %v8061_v47  ;;  %8113 = vadd.xlane.f32.xlu1 %v8112_v18  ;;  %v7964_v50 = vpop.xlane.xlu0 %7963  ;;  %v18771_v47 = vld [vmem:[#allocation81_spill] sm:$0xff] }
 0x7b6   :  { %v7946_v21 = vpop.xlane.xlu1 %7945  ;;  %v17518_v14 = vmul.f32 %v7964_v50, %v15946_v8  ;;  %v7621_v8 = vld [vmem:[%s18149_s12 + $0x388] sm:$0xff]  ;;  %v8385_v51 = vmul.f32 %v17339_v10, %v18771_v47  ;;  %v8052_v50 = vsel %vm3121_vm1, %v7732_v16, 0.0  ;;  %v18780_v16 = vld [vmem:[#allocation103_spill] sm:$0xff] }
 0x7b7   :  { %8583 = vmatmul.mubr.f32.gmra.mxu0 %v8204_v38  ;;  %v7749_v26 = vmul.f32 %v17260_v35, %v7621_v8  ;;  %v8400_v19 = vmul.f32 %v7946_v21, %v18772_v45  ;;  %v18776_v21 = vld [vmem:[#allocation101_spill] sm:$0xff]  ;;  %v18786_v47 = vld [vmem:[#allocation115_spill] sm:$0xff] }
 0x7b8   :  { %8652 = vmatprep.mubr.f32.mxu0 %v8151_v34  ;;  %v18774_v34 = vld [vmem:[#allocation105_spill] sm:$0xff]  ;;  %v8383_v24 = vmul.f32 %v17285_v56, %v18776_v21 }
 0x7b9   :  { %8059 = vadd.xlane.f32.xlu0 %v8058_v17  ;;  %8110 = vadd.xlane.f32.xlu1 %v8109_v61  ;;  %v7973_v44 = vpop.xlane.xlu0 %7972  ;;  %v8384_v7 = vmul.f32 %v17359_v62, %v18774_v34  ;;  %v8399_v17 = vmul.f32 %v17438_v37, %v18775_v4  ;;  %v18777_v62 = vld [vmem:[#allocation126_spill] sm:$0xff]  ;;  %v18778_v37 = vld [vmem:[#allocation84_spill] sm:$0xff] }
 0x7ba   :  { %v7952_v43 = vpop.xlane.xlu1 %7951  ;;  %v17532_v58 = vmul.f32 %v7973_v44, %v15960_v20  ;;  %v7620_v20 = vld [vmem:[%s18149_s12 + $0x380] sm:$0xff]  ;;  %v8398_v8 = vmul.f32 %v17477_v53, %v18777_v62  ;;  %v8382_v44 = vmul.f32 %v17317_v13, %v18778_v37  ;;  %v8381_v53 = vmul.f32 %v17283_v1, %v18780_v16  ;;  %v18782_v13 = vld [vmem:[#allocation75_spill] sm:$0xff]  ;;  %v8166_v4 = vld [vmem:[%s18150_s13 + $0x90] sm:$0xff] }
 0x7bb   :  { %v8402_v25 = vmul.f32 %v7952_v43, %v18768_v12  ;;  %v7748_v10 = vmul.f32 %v7620_v20, %v17272_v40  ;;  %v18779_v12 = vld [vmem:[#allocation98_spill] sm:$0xff]  ;;  %v8191_v37 = vld [vmem:[%s18150_s13 + $0x158] sm:$0xff]  ;;  %v18794_v16 = vld [vmem:[#allocation121_spill] sm:$0xff] }
 0x7bc   :  { %v8397_v56 = vmul.f32 %v17436_v48, %v18779_v12  ;;  %v18783_v48 = vld [vmem:[#allocation100_spill] sm:$0xff] }
 0x7bd   :  { %10408 = vmatprep.subr.mxu0 %v8402_v25  ;;  %8056 = vadd.xlane.f32.xlu0 %v8055_v28  ;;  %v7970_v38 = vpop.xlane.xlu0 %7969  ;;  %v8100_v25 = vsel %vm3121_vm1, %v7748_v10, 0.0  ;;  %v8380_v28 = vmul.f32 %v17300_v15, %v18782_v13 }
 0x7be   :  { %8107 = vadd.xlane.f32.xlu1 %v8106_v6  ;;  %10409 = vmatpush3.msra.mxu0 %v8386_v57  ;;  %v7967_v42 = vpop.xlane.xlu1 %7966  ;;  %v17551_v18 = vmul.f32 %v7970_v38, %v18773_v0  ;;  %v8396_v57 = vmul.f32 %v17456_v33, %v18781_v52  ;;  %v18785_v33 = vld [vmem:[#allocation93_spill] sm:$0xff]  ;;  %v18788_v38 = vld [vmem:[#allocation118_spill] sm:$0xff]  ;;  %v18792_v0 = vld [vmem:[#allocation43_spill] sm:$0xff] }
 0x7bf   :  { %v17548_v35 = vmul.f32 %v7967_v42, %v15932_v59  ;;  %10410 = vmatprep.subr.mxu0 %v8401_v5  ;;  %v8103_v59 = vsel %vm3121_vm1, %v7749_v26, 0.0  ;;  %v8395_v26 = vmul.f32 %v17417_v23, %v18783_v48  ;;  %v18784_v5 = vld [vmem:[#allocation122_spill] sm:$0xff]  ;;  %v8393_v20 = vmul.f32 %v17380_v55, %v18785_v33  ;;  %v8207_v48 = vld [vmem:[%s18150_s13 + $0x1d8] sm:$0xff] }
 0x7c0   :  { %10411 = vmatpush3.msra.mxu0 %v8385_v51  ;;  %v8394_v6 = vmul.f32 %v17419_v36, %v18784_v5  ;;  %v8392_v51 = vmul.f32 %v17400_v46, %v18786_v47  ;;  %v18787_v36 = vld [vmem:[#allocation96_spill] sm:$0xff]  ;;  %v8390_v45 = vmul.f32 %v17361_v54, %v18788_v38  ;;  %v8150_v54 = vld [vmem:[%s18150_s13 + $0x10] sm:$0xff]  ;;  %v8153_v5 = vld [vmem:[%s18150_s13 + $0x28] sm:$0xff] }
 0x7c1   :  { %10412 = vmatprep.subr.mxu0 %v8400_v19  ;;  %8053 = vadd.xlane.f32.xlu0 %v8052_v50  ;;  %v7976_v61 = vpop.xlane.xlu0 %7975  ;;  %v18789_v19 = vld [vmem:[#allocation125_spill] sm:$0xff]  ;;  %v8167_v50 = vld [vmem:[%s18150_s13 + $0x98] sm:$0xff]  ;;  %v8190_v52 = vld [vmem:[%s18150_s13 + $0x150] sm:$0xff] }
 0x7c2   :  { %8104 = vadd.xlane.f32.xlu1 %v8103_v59  ;;  %10413 = vmatpush3.msra.mxu0 %v8384_v7  ;;  %v7979_v49 = vpop.xlane.xlu1 %7978  ;;  %v17568_v40 = vmul.f32 %v7976_v61, %v16000_v9  ;;  %v18796_v47 = vld [vmem:[#allocation127_spill] sm:$0xff] }
 0x7c3   :  { %v17565_v43 = vmul.f32 %v7979_v49, %v15986_v32  ;;  %10414 = vmatprep.subr.mxu0 %v8399_v17  ;;  %v8175_v17 = vld [vmem:[%s18150_s13 + $0xd8] sm:$0xff] }
 0x7c4   :  { %10415 = vmatpush3.msra.mxu0 %v8383_v24  ;;  %v8174_v24 = vld [vmem:[%s18150_s13 + $0xd0] sm:$0xff]  ;;  %v8183_v49 = vld [vmem:[%s18150_s13 + $0x118] sm:$0xff] }
 0x7c5   :  { %10416 = vmatprep.subr.mxu0 %v8398_v8  ;;  %v17577_v32 = vpop.xlane.xlu0 %7984  ;;  %v8182_v8 = vld [vmem:[%s18150_s13 + $0x110] sm:$0xff] }
 0x7c6   :  { %8101 = vadd.xlane.f32.xlu1 %v8100_v25  ;;  %10417 = vmatpush3.msra.mxu0 %v8382_v44  ;;  %v17579_v9 = vpop.xlane.xlu1 %7990 }
 0x7c7   :  { %10418 = vmatprep.subr.mxu0 %v8397_v56  ;;  %v18793_v56 = vld [vmem:[#allocation44_spill] sm:$0xff] }
 0x7c8   :  { %10419 = vmatpush3.msra.mxu0 %v8381_v53 }
 0x7c9   :  { %10420 = vmatprep.subr.mxu0 %v8396_v57  ;;  %v17587_v1 = vpop.xlane.xlu0 %7981  ;;  %v8199_v57 = vld [vmem:[%s18150_s13 + $0x198] sm:$0xff] }
 0x7ca   :  { %10421 = vmatpush3.msra.mxu0 %v8380_v28  ;;  %v8003_v63 = vpop.xlane.xlu1 %8002  ;;  %v8198_v28 = vld [vmem:[%s18150_s13 + $0x190] sm:$0xff] }
 0x7cb   :  { %10422 = vmatprep.subr.mxu0 %v8395_v26  ;;  %v8419_v53 = vmul.f32 %v8003_v63, %v18794_v16  ;;  %v8206_v63 = vld [vmem:[%s18150_s13 + $0x1d0] sm:$0xff] }
 0x7cc   :  { %10423 = vmatpush3.msra.mxu0 %v17267_v30  ;;  %v8391_v30 = vmul.f32 %v17398_v3, %v18787_v36  ;;  %v18797_v36 = vld [vmem:[#allocation38_spill] sm:$0xff] }
 0x7cd   :  { %10424 = vmatprep.subr.mxu0 %v8394_v6  ;;  %v17595_v15 = vpop.xlane.xlu0 %7987 }
 0x7ce   :  { %10425 = vmatpush3.msra.mxu0 %v17270_v27  ;;  %v8009_v23 = vpop.xlane.xlu1 %8008 }
 0x7cf   :  { %v17600_v42 = vmul.f32 %v8009_v23, %v16124_v29  ;;  %10426 = vmatprep.subr.mxu0 %v8393_v20  ;;  %v18790_v29 = vld [vmem:[#allocation88_spill] sm:$0xff]  ;;  %v18795_v20 = vld [vmem:[#allocation65_spill] sm:$0xff] }
 0x7d0   :  { %10427 = vmatpush3.msra.mxu0 %v17230_v60 }
 0x7d1   :  { %10428 = vmatprep.subr.mxu0 %v8392_v51  ;;  %v17606_v55 = vpop.xlane.xlu0 %7996 }
 0x7d2   :  { %10429 = vmatpush3.msra.mxu0 %v17249_v39  ;;  %v8006_v27 = vpop.xlane.xlu1 %8005  ;;  %v18791_v39 = vld [vmem:[#allocation137_spill] sm:$0xff] }
 0x7d3   :  { %v17611_v46 = vmul.f32 %v8006_v27, %v18789_v19  ;;  %10430 = vmatprep.subr.mxu0 %v8391_v30  ;;  %v18798_v27 = vld [vmem:[#allocation117_spill] sm:$0xff] }
 0x7d4   :  { %10431 = vmatpush3.msra.mxu0 %v17246_v41  ;;  %v8159_v41 = vld [vmem:[%s18150_s13 + $0x58] sm:$0xff]  ;;  %v8417_v38 = vmul.f32 %v17606_v55, %v18798_v27  ;;  %v8201_v27 = vld [vmem:[%s18150_s13 + $0x1a8] sm:$0xff] }
 0x7d5   :  { %10432 = vmatprep.subr.mxu0 %v8390_v45  ;;  %v17615_v60 = vpop.xlane.xlu0 %7993  ;;  %v18799_v45 = vld [vmem:[#allocation86_spill] sm:$0xff] }
 0x7d6   :  { %10433 = vmatpush3.msra.mxu0 %v18790_v29  ;;  %v17617_v3 = vpop.xlane.xlu1 %8011  ;;  %v18800_v29 = vld [vmem:[#allocation123_spill] sm:$0xff] }
 0x7d7   :  { %10434 = vmatprep.subr.mxu0 %v17322_v2  ;;  %v8158_v2 = vld [vmem:[%s18150_s13 + $0x50] sm:$0xff] }
 0x7d8   :  { %10435 = vmatpush3.msra.mxu0 %v18791_v39  ;;  %v8416_v39 = vmul.f32 %v17615_v60, %v18800_v29  ;;  %v18806_v60 = vld [vmem:[#allocation136_spill] sm:$0xff]  ;;  %v8209_v29 = vld [vmem:[%s18150_s13 + $0x1e8] sm:$0xff] }
 0x7d9   :  { %10436 = vmatprep.subr.mxu0 %v17344_v11  ;;  %v8000_v34 = vpop.xlane.xlu0 %7999 }
 0x7da   :  { %10437 = vmatpush3.msra.mxu0 %v18792_v0  ;;  %v17629_v7 = vpop.xlane.xlu1 %8020  ;;  %v8418_v51 = vmul.f32 %v8000_v34, %v18796_v47  ;;  %v18802_v0 = vld [vmem:[#allocation133_spill] sm:$0xff] }
 0x7db   :  { %8653 = vmatmul.mubr.f32.vlgmr.msra.gmra.mxu0 %v8150_v54  ;;  %v18801_v54 = vld [vmem:[#allocation68_spill] sm:$0xff]  ;;  %v8415_v34 = vmul.f32 %v17579_v9, %v18802_v0  ;;  %v18808_v9 = vld [vmem:[#allocation111_spill] sm:$0xff] }
 0x7dc   :  { %8657 = vmatprep.mubr.f32.mxu0 %v8159_v41 }
 0x7dd   :  { %v17637_v11 = vpop.xlane.xlu0 %8014 }
 0x7de   :  { %v17639_v10 = vpop.xlane.xlu1 %8017 }
 0x7df   :  { %8658 = vmatmul.mubr.f32.gmra.mxu0 %v8158_v2  ;;  %v18803_v2 = vld [vmem:[#allocation63_spill] sm:$0xff] }
 0x7e0   :  { %8662 = vmatprep.mubr.f32.mxu0 %v8167_v50 }
 0x7e1   :  { %v17647_v59 = vpop.xlane.xlu0 %8026 }
 0x7e2   :  { %v17649_v21 = vpop.xlane.xlu1 %8023 }
 0x7e3   :  { %8663 = vmatmul.mubr.f32.gmra.mxu0 %v8166_v4  ;;  %v18804_v4 = vld [vmem:[#allocation119_spill] sm:$0xff] }
 0x7e4   :  { %8667 = vmatprep.mubr.f32.mxu0 %v8175_v17  ;;  %v8414_v55 = vmul.f32 %v17595_v15, %v18804_v4  ;;  %v18819_v4 = vld [vmem:[#allocation152_spill] sm:$0xff] }
 0x7e5   :  { %v8039_v62 = vpop.xlane.xlu0 %8038 }
 0x7e6   :  { %v8033_v61 = vpop.xlane.xlu1 %8032  ;;  %v8431_v41 = vmul.f32 %v8039_v62, %v18801_v54  ;;  %v8413_v62 = vmul.f32 %v17577_v32, %v18806_v60  ;;  %v18811_v32 = vld [vmem:[#allocation138_spill] sm:$0xff] }
 0x7e7   :  { %8668 = vmatmul.mubr.f32.gmra.mxu0 %v8174_v24  ;;  %v18805_v24 = vld [vmem:[#allocation140_spill] sm:$0xff] }
 0x7e8   :  { %8672 = vmatprep.mubr.f32.mxu0 %v8183_v49  ;;  %v8429_v49 = vmul.f32 %v8033_v61, %v18805_v24  ;;  %v18810_v61 = vld [vmem:[#allocation141_spill] sm:$0xff]  ;;  %v8155_v24 = vld [vmem:[%s18150_s13 + $0x38] sm:$0xff] }
 0x7e9   :  { %v8051_v12 = vpop.xlane.xlu0 %8050  ;;  %v8426_v16 = vmul.f32 %v17649_v21, %v18810_v61 }
 0x7ea   :  { %v8030_v44 = vpop.xlane.xlu1 %8029  ;;  %v8435_v25 = vmul.f32 %v8051_v12, %v18793_v56  ;;  %v8412_v12 = vmul.f32 %v17587_v1, %v18808_v9  ;;  %v18809_v56 = vld [vmem:[#allocation139_spill] sm:$0xff]  ;;  %v18812_v1 = vld [vmem:[#allocation134_spill] sm:$0xff] }
 0x7eb   :  { %8673 = vmatmul.mubr.f32.gmra.mxu0 %v8182_v8  ;;  %v18807_v8 = vld [vmem:[#allocation34_spill] sm:$0xff]  ;;  %v8427_v15 = vmul.f32 %v17647_v59, %v18809_v56 }
 0x7ec   :  { %8677 = vmatprep.mubr.f32.mxu0 %v8191_v37  ;;  %10462 = vmatprep.subr.mxu0 %v8435_v25  ;;  %v8428_v37 = vmul.f32 %v8030_v44, %v18807_v8  ;;  %v8425_v44 = vmul.f32 %v17629_v7, %v18811_v32  ;;  %v18821_v8 = vld [vmem:[#allocation151_spill] sm:$0xff] }
 0x7ed   :  { %10463 = vmatpush3.msra.mxu0 %v8419_v53  ;;  %v8424_v53 = vmul.f32 %v17639_v10, %v18812_v1  ;;  %v18825_v1 = vld [vmem:[#allocation149_spill] sm:$0xff] }
 0x7ee   :  { %v8036_v13 = vpop.xlane.xlu1 %8035 }
 0x7ef   :  { %8678 = vmatmul.mubr.f32.gmra.mxu0 %v8190_v52  ;;  %v8430_v50 = vmul.f32 %v8036_v13, %v18803_v2  ;;  %v18813_v52 = vld [vmem:[#allocation132_spill] sm:$0xff] }
 0x7f0   :  { %8682 = vmatprep.mubr.f32.mxu0 %v8199_v57  ;;  %v8423_v21 = vmul.f32 %v17637_v11, %v18813_v52 }
 0x7f2   :  { %v8045_v26 = vpop.xlane.xlu1 %8044 }
 0x7f3   :  { %8683 = vmatmul.mubr.f32.gmra.mxu0 %v8198_v28  ;;  %v8433_v30 = vmul.f32 %v8045_v26, %v18797_v36  ;;  %v8176_v28 = vld [vmem:[%s18150_s13 + $0xe0] sm:$0xff] }
 0x7f4   :  { %8687 = vmatprep.mubr.f32.mxu0 %v8207_v48  ;;  %v8185_v48 = vld [vmem:[%s18150_s13 + $0x128] sm:$0xff] }
 0x7f6   :  { %v8042_v6 = vpop.xlane.xlu1 %8041 }
 0x7f7   :  { %8688 = vmatmul.mubr.f32.gmra.mxu0 %v8206_v63  ;;  %v8432_v19 = vmul.f32 %v8042_v6, %v18799_v45  ;;  %v8193_v6 = vld [vmem:[%s18150_s13 + $0x168] sm:$0xff] }
 0x7f8   :  { %8757 = vmatprep.mubr.f32.mxu0 %v8153_v5  ;;  %v8184_v5 = vld [vmem:[%s18150_s13 + $0x120] sm:$0xff] }
 0x7fa   :  { %v8048_v33 = vpop.xlane.xlu1 %8047 }
 0x7fb   :  { %v8434_v23 = vmul.f32 %v8048_v33, %v18795_v20 }
 0x7fd   :  { %10464 = vmatprep.subr.mxu0 %v8434_v23  ;;  %v17697_v17 = vpop.xlane.xlu0 %8080  ;;  %v18815_v23 = vld [vmem:[#allocation154_spill] sm:$0xff] }
 0x7fe   :  { %10465 = vmatpush3.msra.mxu0 %v8418_v51  ;;  %v18816_v51 = vld [vmem:[#allocation135_spill] sm:$0xff] }
 0x7ff   :  { %10466 = vmatprep.subr.mxu0 %v8433_v30  ;;  %v8192_v30 = vld [vmem:[%s18150_s13 + $0x160] sm:$0xff] }
 0x800   :  { %10467 = vmatpush3.msra.mxu0 %v8417_v38 }
 0x801   :  { %10468 = vmatprep.subr.mxu0 %v8432_v19  ;;  %v17707_v25 = vpop.xlane.xlu0 %8077  ;;  %v17722_v57 = vpop.xlane.xlu1 %8086  ;;  %v8200_v19 = vld [vmem:[%s18150_s13 + $0x1a0] sm:$0xff] }
 0x802   :  { %10469 = vmatpush3.msra.mxu0 %v8416_v39 }
 0x803   :  { %10470 = vmatprep.subr.mxu0 %v8431_v41  ;;  %v18817_v41 = vld [vmem:[#allocation153_spill] sm:$0xff] }
 0x804   :  { %10471 = vmatpush3.msra.mxu0 %v8415_v34  ;;  %v18818_v34 = vld [vmem:[#allocation74_spill] sm:$0xff] }
 0x805   :  { %10472 = vmatprep.subr.mxu0 %v8430_v50  ;;  %v17717_v59 = vpop.xlane.xlu0 %8083  ;;  %v8208_v50 = vld [vmem:[%s18150_s13 + $0x1e0] sm:$0xff] }
 0x806   :  { %10473 = vmatpush3.msra.mxu0 %v8414_v55 }
 0x807   :  { %10474 = vmatprep.subr.mxu0 %v8429_v49  ;;  %v18820_v49 = vld [vmem:[#allocation59_spill] sm:$0xff] }
 0x808   :  { %10475 = vmatpush3.msra.mxu0 %v8413_v62 }
 0x809   :  { %10476 = vmatprep.subr.mxu0 %v8428_v37 }
 0x80a   :  { %10477 = vmatpush3.msra.mxu0 %v8412_v12  ;;  %v8099_v10 = vpop.xlane.xlu1 %8098  ;;  %v18822_v12 = vld [vmem:[#allocation53_spill] sm:$0xff] }
 0x80b   :  { %10478 = vmatprep.subr.mxu0 %v8427_v15  ;;  %v8451_v36 = vmul.f32 %v8099_v10, %v18816_v51  ;;  %v18823_v15 = vld [vmem:[#allocation150_spill] sm:$0xff]  ;;  %v18828_v10 = vld [vmem:[#allocation69_spill] sm:$0xff] }
 0x80c   :  { %10479 = vmatpush3.msra.mxu0 %v17565_v43  ;;  %v18814_v43 = vld [vmem:[#allocation129_spill] sm:$0xff] }
 0x80d   :  { %10480 = vmatprep.subr.mxu0 %v8426_v16  ;;  %v8422_v7 = vmul.f32 %v17617_v3, %v18814_v43  ;;  %v8177_v3 = vld [vmem:[%s18150_s13 + $0xe8] sm:$0xff] }
 0x80e   :  { %10481 = vmatpush3.msra.mxu0 %v17568_v40  ;;  %v8093_v40 = vpop.xlane.xlu0 %8092  ;;  %v18824_v16 = vld [vmem:[#allocation57_spill] sm:$0xff] }
 0x80f   :  { %10482 = vmatprep.subr.mxu0 %v8425_v44  ;;  %v8449_v60 = vmul.f32 %v8093_v40, %v18820_v49  ;;  %v8447_v32 = vmul.f32 %v17722_v57, %v18824_v16  ;;  %v18829_v57 = vld [vmem:[#allocation147_spill] sm:$0xff] }
 0x810   :  { %10483 = vmatpush3.msra.mxu0 %v17532_v58  ;;  %v8152_v58 = vld [vmem:[%s18150_s13 + $0x20] sm:$0xff] }
 0x811   :  { %10484 = vmatprep.subr.mxu0 %v8424_v53 }
 0x812   :  { %10485 = vmatpush3.msra.mxu0 %v17551_v18  ;;  %v8161_v18 = vld [vmem:[%s18150_s13 + $0x68] sm:$0xff] }
 0x813   :  { %10486 = vmatprep.subr.mxu0 %v8423_v21  ;;  %v18826_v21 = vld [vmem:[#allocation83_spill] sm:$0xff] }
 0x814   :  { %10487 = vmatpush3.msra.mxu0 %v17548_v35  ;;  %v8446_v43 = vmul.f32 %v17717_v59, %v18826_v21  ;;  %v8186_v21 = vld [vmem:[%s18150_s13 + $0x130] sm:$0xff] }
 0x815   :  { %10488 = vmatprep.subr.mxu0 %v8422_v7  ;;  %v18827_v7 = vld [vmem:[#allocation148_spill] sm:$0xff] }
 0x816   :  { %10489 = vmatpush3.msra.mxu0 %v17518_v14  ;;  %v8090_v14 = vpop.xlane.xlu0 %8089 }
 0x817   :  { %10490 = vmatprep.subr.mxu0 %v17600_v42  ;;  %v8169_v42 = vld [vmem:[%s18150_s13 + $0xa8] sm:$0xff]  ;;  %v8448_v56 = vmul.f32 %v8090_v14, %v18822_v12  ;;  %v8171_v12 = vld [vmem:[%s18150_s13 + $0xb8] sm:$0xff] }
 0x818   :  { %10491 = vmatpush3.msra.mxu0 %v17480_v22  ;;  %v8160_v22 = vld [vmem:[%s18150_s13 + $0x60] sm:$0xff] }
 0x819   :  { %10492 = vmatprep.subr.mxu0 %v17611_v46  ;;  %v17739_v35 = vpop.xlane.xlu1 %8122 }
 0x81a   :  { %10493 = vmatpush3.msra.mxu0 %v17499_v31  ;;  %v8168_v31 = vld [vmem:[%s18150_s13 + $0xa0] sm:$0xff]  ;;  %v8096_v11 = vpop.xlane.xlu0 %8095 }
 0x81b   :  { %8758 = vmatmul.mubr.f32.vlgmr.msra.gmra.mxu0 %v8152_v58  ;;  %v8450_v2 = vmul.f32 %v8096_v11, %v18818_v34  ;;  %v8445_v58 = vmul.f32 %v17697_v17, %v18828_v10  ;;  %v18832_v11 = vld [vmem:[#allocation73_spill] sm:$0xff] }
 0x81c   :  { %8762 = vmatprep.mubr.f32.mxu0 %v8161_v18 }
 0x81d   :  { %v17747_v46 = vpop.xlane.xlu1 %8128 }
 0x81e   :  { %v8461_v40 = vmul.f32 %v17747_v46, %v18827_v7  ;;  %v8195_v7 = vld [vmem:[%s18150_s13 + $0x178] sm:$0xff] }
 0x81f   :  { %8763 = vmatmul.mubr.f32.gmra.mxu0 %v8160_v22 }
 0x820   :  { %8767 = vmatprep.mubr.f32.mxu0 %v8169_v42  ;;  %v18830_v42 = vld [vmem:[#allocation67_spill] sm:$0xff] }
 0x821   :  { %v8126_v13 = vpop.xlane.xlu1 %8125 }
 0x822   :  { %v8135_v26 = vpop.xlane.xlu0 %8134  ;;  %v8460_v14 = vmul.f32 %v8126_v13, %v18829_v57  ;;  %v8203_v57 = vld [vmem:[%s18150_s13 + $0x1b8] sm:$0xff] }
 0x823   :  { %8768 = vmatmul.mubr.f32.gmra.mxu0 %v8168_v31  ;;  %v8463_v61 = vmul.f32 %v8135_v26, %v18823_v15  ;;  %v8444_v31 = vmul.f32 %v17707_v25, %v18830_v42  ;;  %v18836_v25 = vld [vmem:[#allocation95_spill] sm:$0xff]  ;;  %v8202_v42 = vld [vmem:[%s18150_s13 + $0x1b0] sm:$0xff] }
 0x824   :  { %8772 = vmatprep.mubr.f32.mxu0 %v8177_v3  ;;  %v18831_v3 = vld [vmem:[#allocation146_spill] sm:$0xff]  ;;  %v8179_v15 = vld [vmem:[%s18150_s13 + $0xf8] sm:$0xff] }
 0x825   :  { %v8132_v63 = vpop.xlane.xlu1 %8131  ;;  %v8459_v59 = vmul.f32 %v17739_v35, %v18831_v3  ;;  %v8211_v3 = vld [vmem:[%s18150_s13 + $0x1f8] sm:$0xff] }
 0x826   :  { %v8462_v53 = vmul.f32 %v8132_v63, %v18825_v1  ;;  %v18834_v63 = vld [vmem:[#allocation60_spill] sm:$0xff]  ;;  %v8187_v1 = vld [vmem:[%s18150_s13 + $0x138] sm:$0xff] }
 0x827   :  { %8773 = vmatmul.mubr.f32.gmra.mxu0 %v8176_v28 }
 0x828   :  { %8777 = vmatprep.mubr.f32.mxu0 %v8185_v48  ;;  %v18833_v48 = vld [vmem:[#allocation145_spill] sm:$0xff] }
 0x829   :  { %v8141_v33 = vpop.xlane.xlu1 %8140 }
 0x82a   :  { %v8147_v20 = vpop.xlane.xlu0 %8146  ;;  %v8465_v55 = vmul.f32 %v8141_v33, %v18819_v4 }
 0x82b   :  { %v8467_v47 = vmul.f32 %v8147_v20, %v18815_v23  ;;  %8778 = vmatmul.mubr.f32.gmra.mxu0 %v8184_v5  ;;  %v18835_v5 = vld [vmem:[#allocation144_spill] sm:$0xff]  ;;  %v18837_v20 = vld [vmem:[#allocation143_spill] sm:$0xff] }
 0x82c   :  { %8782 = vmatprep.mubr.f32.mxu0 %v8193_v6 }
 0x82d   :  { %10518 = vmatprep.subr.mxu0 %v8467_v47  ;;  %v8138_v38 = vpop.xlane.xlu1 %8137  ;;  %v18838_v47 = vld [vmem:[#allocation58_spill] sm:$0xff] }
 0x82e   :  { %v8075_v45 = vpop.xlane.xlu0 %8074  ;;  %10519 = vmatpush3.msra.mxu0 %v8451_v36  ;;  %v8464_v37 = vmul.f32 %v8138_v38, %v18821_v8  ;;  %v18840_v38 = vld [vmem:[#allocation55_spill] sm:$0xff]  ;;  %v8154_v8 = vld [vmem:[%s18150_s13 + $0x30] sm:$0xff] }
 0x82f   :  { %8783 = vmatmul.mubr.f32.gmra.mxu0 %v8192_v30  ;;  %v8443_v46 = vmul.f32 %v8075_v45, %v18832_v11  ;;  %v18839_v30 = vld [vmem:[#allocation107_spill] sm:$0xff] }
 0x830   :  { %8787 = vmatprep.mubr.f32.mxu0 %v8201_v27 }
 0x831   :  { %v8144_v54 = vpop.xlane.xlu1 %8143 }
 0x832   :  { %v8072_v39 = vpop.xlane.xlu0 %8071  ;;  %v8466_v0 = vmul.f32 %v8144_v54, %v18817_v41  ;;  %v18842_v54 = vld [vmem:[#allocation56_spill] sm:$0xff] }
 0x833   :  { %8788 = vmatmul.mubr.f32.gmra.mxu0 %v8200_v19  ;;  %v8442_v13 = vmul.f32 %v8072_v39, %v18834_v63  ;;  %v18841_v19 = vld [vmem:[#allocation78_spill] sm:$0xff] }
 0x834   :  { %8792 = vmatprep.mubr.f32.mxu0 %v8209_v29  ;;  %10520 = vmatprep.subr.mxu0 %v8466_v0  ;;  %v18843_v0 = vld [vmem:[#allocation66_spill] sm:$0xff] }
 0x835   :  { %10521 = vmatpush3.msra.mxu0 %v8450_v2  ;;  %v18844_v2 = vld [vmem:[#allocation52_spill] sm:$0xff] }
 0x836   :  { %v8069_v62 = vpop.xlane.xlu0 %8068  ;;  %v8120_v9 = vpop.xlane.xlu1 %8119  ;;  %10522 = vmatprep.subr.mxu0 %v8465_v55 }
 0x837   :  { %8793 = vmatmul.mubr.f32.gmra.mxu0 %v8208_v50  ;;  %v8458_v17 = vmul.f32 %v8120_v9, %v18833_v48  ;;  %v8441_v33 = vmul.f32 %v8069_v62, %v18836_v25  ;;  %v8162_v9 = vld [vmem:[%s18150_s13 + $0x70] sm:$0xff] }
 0x838   :  { %10523 = vmatpush3.msra.mxu0 %v8449_v60  ;;  %8862 = vmatprep.mubr.f32.mxu0 %v8155_v24  ;;  %v18845_v24 = vld [vmem:[#allocation64_spill] sm:$0xff]  ;;  %v18846_v60 = vld [vmem:[#allocation54_spill] sm:$0xff] }
 0x839   :  { %10524 = vmatprep.subr.mxu0 %v8464_v37  ;;  %v8163_v37 = vld [vmem:[%s18150_s13 + $0x78] sm:$0xff] }
 0x83a   :  { %v8066_v44 = vpop.xlane.xlu0 %8065  ;;  %10525 = vmatpush3.msra.mxu0 %v8448_v56  ;;  %v8117_v52 = vpop.xlane.xlu1 %8116  ;;  %v8170_v56 = vld [vmem:[%s18150_s13 + $0xb0] sm:$0xff] }
 0x83b   :  { %10526 = vmatprep.subr.mxu0 %v8463_v61  ;;  %v8457_v6 = vmul.f32 %v8117_v52, %v18835_v5  ;;  %v8440_v51 = vmul.f32 %v8066_v44, %v18838_v47  ;;  %v8979_v47 = vld [vmem:[%s18152_s15 + $0x60] sm:$0xff] }
 0x83c   :  { %10527 = vmatpush3.msra.mxu0 %v8447_v32  ;;  %v8178_v32 = vld [vmem:[%s18150_s13 + $0xf0] sm:$0xff] }
 0x83d   :  { %10528 = vmatprep.subr.mxu0 %v8462_v53 }
 0x83e   :  { %v8063_v18 = vpop.xlane.xlu0 %8062  ;;  %10529 = vmatpush3.msra.mxu0 %v8446_v43  ;;  %v8114_v22 = vpop.xlane.xlu1 %8113 }
 0x83f   :  { %10530 = vmatprep.subr.mxu0 %v8461_v40  ;;  %v8456_v35 = vmul.f32 %v8114_v22, %v18837_v20  ;;  %v8439_v45 = vmul.f32 %v8063_v18, %v18840_v38  ;;  %v8982_v20 = vld [vmem:[%s18152_s15 + $0x78] sm:$0xff] }
 0x840   :  { %10531 = vmatpush3.msra.mxu0 %v8445_v58  ;;  %v8194_v58 = vld [vmem:[%s18150_s13 + $0x170] sm:$0xff]  ;;  %v8974_v38 = vld [vmem:[%s18152_s15 + $0x38] sm:$0xff] }
 0x841   :  { %10532 = vmatprep.subr.mxu0 %v8460_v14 }
 0x842   :  { %v8060_v28 = vpop.xlane.xlu0 %8059  ;;  %10533 = vmatpush3.msra.mxu0 %v8444_v31  ;;  %v8111_v26 = vpop.xlane.xlu1 %8110 }
 0x843   :  { %10534 = vmatprep.subr.mxu0 %v8459_v59  ;;  %v8455_v27 = vmul.f32 %v8111_v26, %v18839_v30  ;;  %v8438_v41 = vmul.f32 %v8060_v28, %v18842_v54  ;;  %v8976_v30 = vld [vmem:[%s18152_s15 + $0x48] sm:$0xff]  ;;  %v8969_v54 = vld [vmem:[%s18152_s15 + $0x10] sm:$0xff] }
 0x844   :  { %10535 = vmatpush3.msra.mxu0 %v8443_v46  ;;  %v8210_v46 = vld [vmem:[%s18150_s13 + $0x1f0] sm:$0xff] }
 0x845   :  { %10536 = vmatprep.subr.mxu0 %v8458_v17 }
 0x846   :  { %10537 = vmatpush3.msra.mxu0 %v8442_v13  ;;  %v8057_v36 = vpop.xlane.xlu0 %8056 }
 0x847   :  { %v8108_v23 = vpop.xlane.xlu1 %8107  ;;  %10538 = vmatprep.subr.mxu0 %v8457_v6  ;;  %v8437_v50 = vmul.f32 %v8057_v36, %v18844_v2  ;;  %v8977_v36 = vld [vmem:[%s18152_s15 + $0x50] sm:$0xff] }
 0x848   :  { %10539 = vmatpush3.msra.mxu0 %v8441_v33  ;;  %v8454_v29 = vmul.f32 %v8108_v23, %v18841_v19  ;;  %v8980_v23 = vld [vmem:[%s18152_s15 + $0x68] sm:$0xff] }
 0x849   :  { %10540 = vmatprep.subr.mxu0 %v8456_v35  ;;  %v8981_v35 = vld [vmem:[%s18152_s15 + $0x70] sm:$0xff]  ;;  %v8972_v19 = vld [vmem:[%s18152_s15 + $0x28] sm:$0xff] }
 0x84a   :  { %10541 = vmatpush3.msra.mxu0 %v8440_v51  ;;  %v8054_v4 = vpop.xlane.xlu0 %8053  ;;  %v8978_v51 = vld [vmem:[%s18152_s15 + $0x58] sm:$0xff] }
 0x84b   :  { %v8105_v39 = vpop.xlane.xlu1 %8104  ;;  %10542 = vmatprep.subr.mxu0 %v8455_v27  ;;  %v8436_v62 = vmul.f32 %v8054_v4, %v18846_v60  ;;  %v8975_v27 = vld [vmem:[%s18152_s15 + $0x40] sm:$0xff] }
 0x84c   :  { %10543 = vmatpush3.msra.mxu0 %v8439_v45  ;;  %v8453_v34 = vmul.f32 %v8105_v39, %v18843_v0  ;;  %v8973_v45 = vld [vmem:[%s18152_s15 + $0x30] sm:$0xff]  ;;  %v8970_v39 = vld [vmem:[%s18152_s15 + $0x18] sm:$0xff] }
 0x84d   :  { %10544 = vmatprep.subr.mxu0 %v8454_v29  ;;  %v8971_v29 = vld [vmem:[%s18152_s15 + $0x20] sm:$0xff] }
 0x84e   :  { %10545 = vmatpush3.msra.mxu0 %v8438_v41  ;;  %v8968_v41 = vld [vmem:[%s18152_s15 + $0x8] sm:$0xff] }
 0x84f   :  { %v8102_v55 = vpop.xlane.xlu1 %8101  ;;  %10546 = vmatprep.subr.mxu0 %v8453_v34  ;;  %v8967_v34 = vld [vmem:[%s18152_s15] sm:$0xff] }
 0x850   :  { %v8452_v49 = vmul.f32 %v8102_v55, %v18845_v24  ;;  %10547 = vmatpush3.msra.mxu0 %v8437_v50 }
 0x852   :  { %10548 = vmatprep.subr.mxu0 %v8452_v49 }
 0x853   :  { %10549 = vmatpush3.msra.mxu0 %v8436_v62  ;;  %v17949_v62 = vld [vmem:[%s18153_s16 + $0x78] sm:$0xff] }
 0x854   :  { %8863 = vmatmul.mubr.f32.vlgmr.msra.gmra.mxu0 %v8154_v8  ;;  %11322 = vmatprep.subr.mxu0 %v8982_v20 }
 0x855   :  { %8867 = vmatprep.mubr.f32.mxu0 %v8163_v37  ;;  %11323 = vmatpush3.msra.mxu0 %v8982_v20  ;;  %v18852_v20 = vld [vmem:[#allocation22_spill] sm:$0xff] }
 0x856   :  { %11324 = vmatprep.subr.mxu0 %v8981_v35 }
 0x857   :  { %11325 = vmatpush3.msra.mxu0 %v8981_v35  ;;  %v9832_v35 = vmul.f32 -1.442695, %v18852_v20 }
 0x858   :  { %8868 = vmatmul.mubr.f32.gmra.mxu0 %v8162_v9  ;;  %11326 = vmatprep.subr.mxu0 %v8980_v23 }
 0x859   :  { %8872 = vmatprep.mubr.f32.mxu0 %v8171_v12  ;;  %11327 = vmatpush3.msra.mxu0 %v8980_v23 }
 0x85a   :  { %11328 = vmatprep.subr.mxu0 %v8979_v47 }
 0x85b   :  { %v10382_v61 = vpop.f32.mrf.mxu0  ;;  %11329 = vmatpush3.msra.mxu0 %v8979_v47 }
 0x85c   :  { %8873 = vmatmul.mubr.f32.gmra.mxu0 %v8170_v56  ;;  %11330 = vmatprep.subr.mxu0 %v8978_v51 }
 0x85d   :  { %v10383_v16 = vpop.f32.mrf.mxu0  ;;  %8877 = vmatprep.mubr.f32.mxu0 %v8179_v15  ;;  %11331 = vmatpush3.msra.mxu0 %v8978_v51 }
 0x85e   :  { %v17844_v44 = vadd.f32 %v10383_v16, %v10382_v61  ;;  %11332 = vmatprep.subr.mxu0 %v8977_v36 }
 0x85f   :  { %v10385_v53 = vpop.f32.mrf.mxu0  ;;  %11333 = vmatpush3.msra.mxu0 %v8977_v36  ;;  %v18853_v36 = vld [vmem:[#allocation23_spill] sm:$0xff] }
 0x860   :  { %8878 = vmatmul.mubr.f32.gmra.mxu0 %v8178_v32  ;;  %11334 = vmatprep.subr.mxu0 %v8976_v30 }
 0x861   :  { %v10386_v52 = vpop.f32.mrf.mxu0  ;;  %8882 = vmatprep.mubr.f32.mxu0 %v8187_v1  ;;  %11335 = vmatpush3.msra.mxu0 %v8976_v30  ;;  %v9833_v30 = vmul.f32 -1.442695, %v18853_v36 }
 0x862   :  { %v17852_v43 = vadd.f32 %v10386_v52, %v10385_v53  ;;  %11336 = vmatprep.subr.mxu0 %v8975_v27 }
 0x863   :  { %v10388_v40 = vpop.f32.mrf.mxu0  ;;  %11337 = vmatpush3.msra.mxu0 %v8975_v27 }
 0x864   :  { %8883 = vmatmul.mubr.f32.gmra.mxu0 %v8186_v21  ;;  %11338 = vmatprep.subr.mxu0 %v8974_v38 }
 0x865   :  { %v10389_v10 = vpop.f32.mrf.mxu0  ;;  %8887 = vmatprep.mubr.f32.mxu0 %v8195_v7  ;;  %11339 = vmatpush3.msra.mxu0 %v8974_v38 }
 0x866   :  { %v17860_v18 = vadd.f32 %v10389_v10, %v10388_v40  ;;  %11340 = vmatprep.subr.mxu0 %v8973_v45  ;;  %v18847_v10 = vld [vmem:[#allocation17_spill] sm:$0xff] }
 0x867   :  { %v10391_v14 = vpop.f32.mrf.mxu0  ;;  %11341 = vmatpush3.msra.mxu0 %v8973_v45 }
 0x868   :  { %8888 = vmatmul.mubr.f32.gmra.mxu0 %v8194_v58  ;;  %11342 = vmatprep.subr.mxu0 %v8972_v19  ;;  %v9827_v58 = vmul.f32 -1.442695, %v18847_v10 }
 0x869   :  { %v10392_v22 = vpop.f32.mrf.mxu0  ;;  %8892 = vmatprep.mubr.f32.mxu0 %v8203_v57  ;;  %11343 = vmatpush3.msra.mxu0 %v8972_v19 }
 0x86a   :  { %v17868_v31 = vadd.f32 %v10392_v22, %v10391_v14  ;;  %11344 = vmatprep.subr.mxu0 %v8971_v29  ;;  %11735 = vpow2.f32 %v9827_v58  ;;  %v18848_v14 = vld [vmem:[#allocation18_spill] sm:$0xff] }
 0x86b   :  { %v10394_v59 = vpop.f32.mrf.mxu0  ;;  %11345 = vmatpush3.msra.mxu0 %v8971_v29  ;;  %v9828_v22 = vmul.f32 -1.442695, %v18848_v14 }
 0x86c   :  { %8893 = vmatmul.mubr.f32.gmra.mxu0 %v8202_v42  ;;  %11346 = vmatprep.subr.mxu0 %v8970_v39 }
 0x86d   :  { %v10395_v11 = vpop.f32.mrf.mxu0  ;;  %8897 = vmatprep.mubr.f32.mxu0 %v8211_v3  ;;  %11347 = vmatpush3.msra.mxu0 %v8970_v39  ;;  %v18849_v3 = vld [vmem:[#allocation19_spill] sm:$0xff]  ;;  %11737 = vpow2.f32 %v9828_v22  ;;  %v18854_v39 = vld [vmem:[#allocation24_spill] sm:$0xff] }
 0x86e   :  { %v17876_v28 = vadd.f32 %v10395_v11, %v10394_v59  ;;  %11348 = vmatprep.subr.mxu0 %v8969_v54  ;;  %v9829_v59 = vmul.f32 -1.442695, %v18849_v3 }
 0x86f   :  { %v10397_v48 = vpop.f32.mrf.mxu0  ;;  %11349 = vmatpush3.msra.mxu0 %v8969_v54  ;;  %v9834_v54 = vmul.f32 -1.442695, %v18854_v39 }
 0x870   :  { %8898 = vmatmul.mubr.f32.gmra.mxu0 %v8210_v46  ;;  %11350 = vmatprep.subr.mxu0 %v8968_v41  ;;  %11739 = vpow2.f32 %v9829_v59  ;;  %v18850_v46 = vld [vmem:[#allocation20_spill] sm:$0xff]  ;;  %v18855_v59 = vld [vmem:[#allocation25_spill] sm:$0xff] }
 0x871   :  { %v10398_v17 = vpop.f32.mrf.mxu0  ;;  %11351 = vmatpush3.msra.mxu0 %v8968_v41  ;;  %v17999_v41 = vld [vmem:[%s18151_s14] ss:$0 sm:$0xff] }
 0x872   :  { %v17878_v26 = vadd.f32 %v10398_v17, %v10397_v48  ;;  %11352 = vmatprep.subr.mxu0 %v8967_v34  ;;  %v9830_v48 = vmul.f32 -1.442695, %v18850_v46 }
 0x873   :  { %v10400_v63 = vpop.f32.mrf.mxu0  ;;  %11353 = vmatpush3.msra.mxu0 %v8967_v34 }
 0x874   :  { %11366 = vmatprep.subr.mxu0 %v17949_v62  ;;  %11741 = vpow2.f32 %v9830_v48  ;;  %v8475_v48 = vmul.f32 %v17999_v41, %v18855_v59 }
 0x875   :  { %v10401_v13 = vpop.f32.mrf.mxu0 }
 0x876   :  { %v17880_v5 = vadd.f32 %v10401_v13, %v10400_v63  ;;  %v18851_v63 = vld [vmem:[#allocation21_spill] sm:$0xff] }
 0x877   :  { %v10403_v6 = vpop.f32.mrf.mxu0  ;;  %v9831_v13 = vmul.f32 -1.442695, %v18851_v63 }
 0x879   :  { %v10404_v25 = vpop.f32.mrf.mxu0  ;;  %11743 = vpow2.f32 %v9831_v13 }
 0x87a   :  { %v17882_v33 = vadd.f32 %v10404_v25, %v10403_v6  ;;  %v11736_v6 = vpop.eup %11735  ;;  %11745 = vpow2.f32 %v9832_v35  ;;  %v8550_v35 = vadd.f32 %v17844_v44, %v8475_v48 }
 0x87b   :  { %v8927_v23 = vadd.f32 1.0, %v11736_v6  ;;  %v11738_v47 = vpop.eup %11737 }
 0x87c   :  { %v8928_v38 = vadd.f32 1.0, %v11738_v47 }
 0x87d   :  { %v11740_v27 = vpop.eup %11739  ;;  %11747 = vrcp.f32 %v8927_v23 }
 0x87e   :  { %v8929_v19 = vadd.f32 1.0, %v11740_v27  ;;  %11749 = vpow2.f32 %v9833_v30 }
 0x87f   :  { %11751 = vrcp.f32 %v8928_v38  ;;  %v18857_v38 = vld [vmem:[#allocation26_spill] sm:$0xff] }
 0x880   :  { %11753 = vrcp.f32 %v8929_v19  ;;  %v8476_v19 = vmul.f32 %v17999_v41, %v18857_v38  ;;  %v18859_v38 = vld [vmem:[#allocation28_spill] sm:$0xff] }
 0x881   :  { %v11742_v29 = vpop.eup %11741  ;;  %11755 = vpow2.f32 %v9834_v54 }
 0x882   :  { %v8930_v58 = vadd.f32 1.0, %v11742_v29 }
 0x884   :  { %11757 = vrcp.f32 %v8930_v58 }
 0x886   :  { %v11744_v22 = vpop.eup %11743 }
 0x887   :  { %v8931_v47 = vadd.f32 1.0, %v11744_v22  ;;  %v11746_v27 = vpop.eup %11745 }
 0x888   :  { %v8932_v44 = vadd.f32 1.0, %v11746_v27 }
 0x889   :  { %11759 = vrcp.f32 %v8931_v47 }
 0x88a   :  { %v11748_v39 = vpop.eup %11747  ;;  %11761 = vrcp.f32 %v8932_v44 }
 0x88b   :  { %v11750_v22 = vpop.eup %11749  ;;  %v8951_v48 = vmul.f32 %v11748_v39, %v18847_v10  ;;  %v8478_v10 = vmul.f32 %v17999_v41, %v18859_v38 }
 0x88c   :  { %v8933_v27 = vadd.f32 1.0, %v11750_v22  ;;  %v9157_v22 = vld [vmem:[%s18153_s16 + $0x68] sm:$0xff] }
 0x88e   :  { %11763 = vrcp.f32 %v8933_v27 }
 0x89b   :  { %v17929_v0 = vpop.f32.mrf.mxu0 }
 0x89d   :  { %v10439_v2 = vpop.f32.mrf.mxu0 }
 0x89e   :  { %v10440_v13 = vadd.f32 %v10439_v2, %v17929_v0  ;;  %v8555_v0 = vadd.f32 %v17852_v43, %v8476_v19 }
 0x89f   :  { %v17934_v50 = vpop.f32.mrf.mxu0 }
 0x8a0   :  { %v8655_v29 = vadd.f32 %v10440_v13, %v8550_v35  ;;  %v11752_v35 = vpop.eup %11751 }
 0x8a1   :  { %v17936_v4 = vpop.f32.mrf.mxu0  ;;  %v11754_v19 = vpop.eup %11753 }
 0x8a2   :  { %v10443_v54 = vadd.f32 %v17936_v4, %v17934_v50 }
 0x8a3   :  { %v17938_v55 = vpop.f32.mrf.mxu0 }
 0x8a4   :  { %v8660_v13 = vadd.f32 %v10443_v54, %v8555_v0 }
 0x8a5   :  { %v17940_v24 = vpop.f32.mrf.mxu0 }
 0x8a6   :  { %v10446_v50 = vadd.f32 %v17940_v24, %v17938_v55  ;;  %v8952_v55 = vmul.f32 %v11752_v35, %v18848_v14  ;;  %v18860_v14 = vld [vmem:[#allocation29_spill] sm:$0xff] }
 0x8a7   :  { %v17942_v49 = vpop.f32.mrf.mxu0  ;;  %v8479_v44 = vmul.f32 %v17999_v41, %v18860_v14 }
 0x8a9   :  { %v17944_v60 = vpop.f32.mrf.mxu0 }
 0x8ab   :  { %v17952_v8 = vpop.f32.mrf.mxu0 }
 0x8ad   :  { %v17954_v37 = vpop.f32.mrf.mxu0 }
 0x8af   :  { %v17956_v9 = vpop.f32.mrf.mxu0 }
 0x8b1   :  { %v17958_v12 = vpop.f32.mrf.mxu0 }
 0x8b3   :  { %v17960_v56 = vpop.f32.mrf.mxu0 }
 0x8b5   :  { %v17962_v15 = vpop.f32.mrf.mxu0 }
 0x8b7   :  { %v17964_v61 = vpop.f32.mrf.mxu0 }
 0x8b9   :  { %v17966_v16 = vpop.f32.mrf.mxu0 }
 0x8db   :  { %v10494_v32 = vpop.f32.mrf.mxu0 }
 0x8dd   :  { %v10495_v1 = vpop.f32.mrf.mxu0 }
 0x8de   :  { %v10496_v23 = vadd.f32 %v10495_v1, %v10494_v32  ;;  %v18858_v32 = vld [vmem:[#allocation27_spill] sm:$0xff] }
 0x8df   :  { %v10497_v53 = vpop.f32.mrf.mxu0  ;;  %v8477_v1 = vmul.f32 %v17999_v41, %v18858_v32 }
 0x8e0   :  { %v8760_v2 = vadd.f32 %v10496_v23, %v8655_v29 }
 0x8e1   :  { %v10498_v52 = vpop.f32.mrf.mxu0  ;;  %v8560_v43 = vadd.f32 %v17860_v18, %v8477_v1  ;;  %v10449_v18 = vadd.f32 %v17944_v60, %v17942_v49  ;;  %v9158_v49 = vld [vmem:[%s18153_s16 + $0x70] sm:$0xff] }
 0x8e2   :  { %v10499_v36 = vadd.f32 %v10498_v52, %v10497_v53 }
 0x8e3   :  { %v17968_v21 = vpop.f32.mrf.mxu0  ;;  %v8665_v24 = vadd.f32 %v10446_v50, %v8560_v43 }
 0x8e4   :  { %v8765_v53 = vadd.f32 %v10499_v36, %v8660_v13  ;;  %v11756_v36 = vpop.eup %11755 }
 0x8e5   :  { %v17970_v7 = vpop.f32.mrf.mxu0  ;;  %v11758_v60 = vpop.eup %11757 }
 0x8e6   :  { %v10502_v52 = vadd.f32 %v17970_v7, %v17968_v21  ;;  %v8565_v21 = vadd.f32 %v17868_v31, %v8478_v10  ;;  %v8934_v31 = vadd.f32 1.0, %v11756_v36  ;;  %v11760_v43 = vpop.eup %11759 }
 0x8e7   :  { %v17972_v40 = vpop.f32.mrf.mxu0 }
 0x8e8   :  { %v8770_v29 = vadd.f32 %v10502_v52, %v8665_v24  ;;  %v8670_v1 = vadd.f32 %v10449_v18, %v8565_v21  ;;  %11765 = vrcp.f32 %v8934_v31  ;;  %v9155_v52 = vld [vmem:[%s18153_s16 + $0x58] sm:$0xff]  ;;  %v10458_v24 = vadd.f32 %v17962_v15, %v17960_v56  ;;  %v9153_v18 = vld [vmem:[%s18153_s16 + $0x48] sm:$0xff]  ;;  %v18863_v15 = vld [vmem:[#allocation32_spill] sm:$0xff] }
 0x8e9   :  { %v17975_v57 = vpop.f32.mrf.mxu0 }
 0x8ea   :  { %v10505_v54 = vadd.f32 %v17975_v57, %v17972_v40  ;;  %v8570_v57 = vadd.f32 %v17876_v28, %v8479_v44 }
 0x8eb   :  { %v17978_v42 = vpop.f32.mrf.mxu0 }
 0x8ed   :  { %v17981_v11 = vpop.f32.mrf.mxu0 }
 0x8ee   :  { %v10508_v13 = vadd.f32 %v17981_v11, %v17978_v42  ;;  %v10455_v42 = vadd.f32 %v17958_v12, %v17956_v9  ;;  %v8955_v9 = vmul.f32 %v11760_v43, %v18851_v63  ;;  %v18862_v12 = vld [vmem:[#allocation31_spill] sm:$0xff]  ;;  %v9144_v43 = vld [vmem:[%s18153_s16] sm:$0xff] }
 0x8ef   :  { %v17984_v17 = vpop.f32.mrf.mxu0  ;;  %v8481_v10 = vmul.f32 %v17999_v41, %v18862_v12 }
 0x8f1   :  { %v17987_v25 = vpop.f32.mrf.mxu0 }
 0x8f3   :  { %v17990_v51 = vpop.f32.mrf.mxu0 }
 0x8f5   :  { %v17993_v45 = vpop.f32.mrf.mxu0 }
 0x8f6   :  { %v10514_v36 = vadd.f32 %v17993_v45, %v17990_v51 }
 0x8f7   :  { %v18001_v34 = vpop.f32.mrf.mxu0 }
 0x8f9   :  { %v18006_v6 = vpop.f32.mrf.mxu0 }
 0x8fa   :  { %18856 = vst [vmem:[#allocation62_spill] sm:$0xff] %v18006_v6 }
 0x901   :  { %v18864_v44 = vld [vmem:[#allocation62_spill] sm:$0xff] }
 0x914   :  { %v10550_v30 = vpop.f32.mrf.mxu0 }
 0x916   :  { %v10551_v59 = vpop.f32.mrf.mxu0 }
 0x917   :  { %v10552_v6 = vadd.f32 %v10551_v59, %v10550_v30 }
 0x918   :  { %v10553_v58 = vpop.f32.mrf.mxu0 }
 0x919   :  { %v8865_v4 = vadd.f32 %v10552_v6, %v8760_v2  ;;  %v8953_v2 = vmul.f32 %v11754_v19, %v18849_v3  ;;  %v11762_v19 = vpop.eup %11761 }
 0x91a   :  { %v10554_v23 = vpop.f32.mrf.mxu0  ;;  %v8956_v56 = vmul.f32 %v11762_v19, %v18852_v20 }
 0x91b   :  { %v10555_v47 = vadd.f32 %v10554_v23, %v10553_v58  ;;  %v8959_v30 = vmul.f32 %v8951_v48, %v8865_v4  ;;  %v10452_v58 = vadd.f32 %v17954_v37, %v17952_v8  ;;  %v8775_v48 = vadd.f32 %v10505_v54, %v8670_v1  ;;  %v18861_v37 = vld [vmem:[#allocation30_spill] sm:$0xff] }
 0x91c   :  { %v10556_v39 = vpop.f32.mrf.mxu0  ;;  %v8954_v8 = vmul.f32 %v11758_v60, %v18850_v46  ;;  %v8480_v35 = vmul.f32 %v17999_v41, %v18861_v37  ;;  %v9147_v37 = vld [vmem:[%s18153_s16 + $0x18] sm:$0xff] }
 0x91d   :  { %v8870_v6 = vadd.f32 %v10555_v47, %v8765_v53  ;;  %11354 = vmatprep.mubr.f32.mxu0 %v8959_v30  ;;  %v8675_v23 = vadd.f32 %v10452_v58, %v8570_v57  ;;  %v10511_v30 = vadd.f32 %v17987_v25, %v17984_v17  ;;  %v8580_v25 = vadd.f32 %v17880_v5, %v8481_v10  ;;  %v9152_v5 = vld [vmem:[%s18153_s16 + $0x40] sm:$0xff] }
 0x91e   :  { %v10557_v7 = vpop.f32.mrf.mxu0  ;;  %v8575_v46 = vadd.f32 %v17878_v26, %v8480_v35  ;;  %v9154_v26 = vld [vmem:[%s18153_s16 + $0x50] sm:$0xff]  ;;  %v18872_v10 = vld [vmem:[#allocation12_spill] sm:$0xff] }
 0x91f   :  { %v8960_v59 = vmul.f32 %v8952_v55, %v8870_v6  ;;  %v10558_v0 = vadd.f32 %v10557_v7, %v10556_v39  ;;  %v8780_v47 = vadd.f32 %v10508_v13, %v8675_v23  ;;  %v9148_v13 = vld [vmem:[%s18153_s16 + $0x20] sm:$0xff] }
 0x920   :  { %v10559_v32 = vpop.f32.mrf.mxu0  ;;  %v8680_v55 = vadd.f32 %v10455_v42, %v8575_v46  ;;  %v11865_v23 = vld [vmem:[%s18299_s28] sm:$0x3] }
 0x921   :  { %v8875_v40 = vadd.f32 %v10558_v0, %v8770_v29  ;;  %11355 = vmatmul.mubr.f32.vlgmr.msra.gmra.mxu0 %v8960_v59  ;;  %v8482_v29 = vmul.f32 %v17999_v41, %v18863_v15  ;;  %v11764_v59 = vpop.eup %11763  ;;  %v8685_v0 = vadd.f32 %v10458_v24, %v8580_v25  ;;  %v9151_v41 = vld [vmem:[%s18153_s16 + $0x38] sm:$0xff]  ;;  %v18867_v42 = vld [vmem:[#allocation8_spill] sm:$0xff] }
 0x922   :  { %v10560_v3 = vpop.f32.mrf.mxu0  ;;  %11367 = vmatpush3.msra.mxu0 %v17949_v62  ;;  %v9156_v62 = vld [vmem:[%s18153_s16 + $0x60] sm:$0xff]  ;;  %v8785_v6 = vadd.f32 %v10511_v30, %v8680_v55  ;;  %v18873_v55 = vld [vmem:[#allocation13_spill] sm:$0xff] }
 0x923   :  { %v10561_v50 = vadd.f32 %v10560_v3, %v10559_v32  ;;  %v8961_v4 = vmul.f32 %v8953_v2, %v8875_v40  ;;  %11368 = vmatprep.subr.mxu0 %v9158_v49  ;;  %v10461_v2 = vadd.f32 %v17966_v16, %v17964_v61  ;;  %v8585_v45 = vadd.f32 %v17882_v33, %v8482_v29  ;;  %v9150_v61 = vld [vmem:[%s18153_s16 + $0x30] sm:$0xff]  ;;  %v18865_v33 = vld [vmem:[#allocation23_spill] sm:$0xff]  ;;  %v11766_v40 = vpop.eup %11765  ;;  %v18876_v29 = vld [vmem:[#allocation16_spill] sm:$0xff] }
 0x924   :  { %v10562_v28 = vpop.f32.mrf.mxu0  ;;  %11369 = vmatpush3.msra.mxu0 %v9158_v49  ;;  %v8790_v14 = vadd.f32 %v10514_v36, %v8685_v0  ;;  %v10517_v32 = vadd.f32 %v18864_v44, %v18001_v34  ;;  %v8957_v16 = vmul.f32 %v11764_v59, %v18865_v33  ;;  %v9149_v34 = vld [vmem:[%s18153_s16 + $0x28] sm:$0xff] }
 0x925   :  { %v8880_v11 = vadd.f32 %v10561_v50, %v8775_v48  ;;  %11357 = vmatprep.mubr.f32.mxu0 %v8961_v4  ;;  %11370 = vmatprep.subr.mxu0 %v9157_v22  ;;  %v8690_v1 = vadd.f32 %v10461_v2, %v8585_v45  ;;  %v18866_v50 = vld [vmem:[#allocation24_spill] sm:$0xff] }
 0x926   :  { %v10563_v53 = vpop.f32.mrf.mxu0  ;;  %11371 = vmatpush3.msra.mxu0 %v9157_v22  ;;  %v8958_v4 = vmul.f32 %v11766_v40, %v18866_v50 }
 0x927   :  { %v8962_v27 = vmul.f32 %v8954_v8, %v8880_v11  ;;  %v10564_v38 = vadd.f32 %v10563_v53, %v10562_v28  ;;  %11372 = vmatprep.subr.mxu0 %v9156_v62  ;;  %v8795_v3 = vadd.f32 %v10517_v32, %v8690_v1  ;;  %v9146_v28 = vld [vmem:[%s18153_s16 + $0x10] sm:$0xff]  ;;  %v18868_v11 = vsub.s32 1, %v18867_v42  ;;  %v18869_v53 = vld [vmem:[#allocation9_spill] sm:$0xff] }
 0x928   :  { %v10565_v39 = vpop.f32.mrf.mxu0  ;;  %11373 = vmatpush3.msra.mxu0 %v9156_v62  ;;  %v9145_v62 = vld [vmem:[%s18153_s16 + $0x8] sm:$0xff] }
 0x929   :  { %v8885_v17 = vadd.f32 %v10564_v38, %v8780_v47  ;;  %11358 = vmatmul.mubr.f32.gmra.mxu0 %v8962_v27  ;;  %11374 = vmatprep.subr.mxu0 %v9155_v52  ;;  %v93_v46 = vrot.slane %v11865_v23, %v18868_v11  ;;  %v18870_v47 = vld [vmem:[#allocation10_spill] sm:$0xff] }
 0x92a   :  { %v10566_v63 = vpop.f32.mrf.mxu0  ;;  %11375 = vmatpush3.msra.mxu0 %v9155_v52 }
 0x92b   :  { %v10567_v21 = vadd.f32 %v10566_v63, %v10565_v39  ;;  %v8963_v7 = vmul.f32 %v8955_v9, %v8885_v17  ;;  %11376 = vmatprep.subr.mxu0 %v9154_v26  ;;  %v190_v52 = vadd.f32 %v18869_v53, %v93_v46  ;;  %v196_v30 = vadd.f32 %v18870_v47, %v93_v46  ;;  %v18871_v9 = vld [vmem:[#allocation11_spill] sm:$0xff]  ;;  %v18874_v17 = vld [vmem:[#allocation14_spill] sm:$0xff]  ;;  %v9843_v53 = vld [vmem:[%s18154_s17] ss:$0 sm:$0xff]  ;;  %s11890_s17 = smov [#allocation5]  }
 0x92c   :  { %v10568_v54 = vpop.f32.mrf.mxu0  ;;  %11377 = vmatpush3.msra.mxu0 %v9154_v26  ;;  %v202_v12 = vadd.f32 %v18871_v9, %v93_v46  ;;  %v208_v39 = vadd.f32 %v18872_v10, %v93_v46  ;;  %v214_v24 = vadd.f32 %v18873_v55, %v93_v46  ;;  %v220_v25 = vadd.f32 %v18874_v17, %v93_v46  ;;  %s9285_s6 = sshll.u32 %s11890_s17, 4  ;;  %s9286_s6 = int_to_ptr.vmem [resolvable:$true] %s9285_s6 }
 0x92d   :  { %v8890_v51 = vadd.f32 %v10567_v21, %v8785_v6  ;;  %11360 = vmatprep.mubr.f32.mxu0 %v8963_v7  ;;  %11378 = vmatprep.subr.mxu0 %v9153_v18  ;;  %v9835_v27 = vmul.f32 -1.442695, %v190_v52  ;;  %v9836_v38 = vmul.f32 -1.442695, %v196_v30  ;;  %v18875_v7 = vld [vmem:[#allocation15_spill] sm:$0xff]  ;;  %s11866_s24 = scalar_lea.vmem %s9286_s6, 1024  ;;  %p11871_p1 = scmp.lt.s32.totalorder %s9286_s6, %s9286_s6 }
 0x92e   :  { %v10569_v20 = vpop.f32.mrf.mxu0  ;;  %11379 = vmatpush3.msra.mxu0 %v9153_v18  ;;  %v9837_v26 = vmul.f32 -1.442695, %v202_v12  ;;  %v9838_v19 = vmul.f32 -1.442695, %v208_v39  ;;  %v9839_v63 = vmul.f32 -1.442695, %v214_v24  ;;  %p11867_p0 = scmp.ne.s32.totalorder %s9286_s6, %s11866_s24  ;;  %p11872_p2 = scmp.lt.s32.totalorder %s11866_s24, %s11866_s24 }
 0x92f   :  { %v8964_v49 = vmul.f32 %v8956_v56, %v8890_v51  ;;  %v10570_v60 = vadd.f32 %v10569_v20, %v10568_v54  ;;  %11380 = vmatprep.subr.mxu0 %v9152_v5  ;;  %11767 = vpow2.f32 %v9835_v27  ;;  %v9840_v6 = vmul.f32 -1.442695, %v220_v25 }
 0x930   :  { %v10571_v31 = vpop.f32.mrf.mxu0  ;;  %11381 = vmatpush3.msra.mxu0 %v9152_v5  ;;  %11769 = vpow2.f32 %v9836_v38  ;;  %v226_v56 = vadd.f32 %v18875_v7, %v93_v46  ;;  %v232_v54 = vadd.f32 %v18876_v29, %v93_v46  ;;  %p11873_p3 = por %p11872_p2, %p11871_p1 }
 0x931   :  { %v8895_v58 = vadd.f32 %v10570_v60, %v8790_v14  ;;  %11361 = vmatmul.mubr.f32.gmra.mxu0 %v8964_v49  ;;  %11382 = vmatprep.subr.mxu0 %v9151_v41  ;;  %11771 = vpow2.f32 %v9837_v26 }
 0x932   :  { %v10572_v57 = vpop.f32.mrf.mxu0  ;;  %11383 = vmatpush3.msra.mxu0 %v9151_v41  ;;  %11773 = vpow2.f32 %v9838_v19  ;;  %v9841_v5 = vmul.f32 -1.442695, %v226_v56  ;;  %v9842_v0 = vmul.f32 -1.442695, %v232_v54  ;;  %p11874_p4 = pnand %p11873_p3, %p11867_p0 }
 0x933   :  { %v10573_v22 = vadd.f32 %v10572_v57, %v10571_v31  ;;  %v8965_v48 = vmul.f32 %v8957_v16, %v8895_v58  ;;  %11384 = vmatprep.subr.mxu0 %v9150_v61  ;;  %11775 = vpow2.f32 %v9839_v63 }
 0x934   :  { %11385 = vmatpush3.msra.mxu0 %v9150_v61  ;;  %11777 = vpow2.f32 %v9840_v6 }
 0x935   :  { %v8900_v8 = vadd.f32 %v10573_v22, %v8795_v3  ;;  %11363 = vmatprep.mubr.f32.mxu0 %v8965_v48  ;;  %11386 = vmatprep.subr.mxu0 %v9149_v34 }
 0x936   :  { %11387 = vmatpush3.msra.mxu0 %v9149_v34 }
 0x937   :  { %v8966_v35 = vmul.f32 %v8958_v4, %v8900_v8  ;;  %11388 = vmatprep.subr.mxu0 %v9148_v13 }
 0x938   :  { %11389 = vmatpush3.msra.mxu0 %v9148_v13 }
 0x939   :  { %11364 = vmatmul.mubr.f32.gmra.mxu0 %v8966_v35  ;;  %11390 = vmatprep.subr.mxu0 %v9147_v37 }
 0x93a   :  { %11391 = vmatpush3.msra.mxu0 %v9147_v37 }
 0x93b   :  { %11392 = vmatprep.subr.mxu0 %v9146_v28 }
 0x93c   :  { %11393 = vmatpush3.msra.mxu0 %v9146_v28  ;;  %v11768_v18 = vpop.eup %11767 }
 0x93d   :  { %11394 = vmatprep.subr.mxu0 %v9145_v62  ;;  %v11770_v36 = vpop.eup %11769  ;;  %v9112_v21 = vadd.f32 1.0, %v11768_v18 }
 0x93e   :  { %11395 = vmatpush3.msra.mxu0 %v9145_v62  ;;  %v9113_v15 = vadd.f32 1.0, %v11770_v36  ;;  %v11772_v59 = vpop.eup %11771 }
 0x93f   :  { %11396 = vmatprep.subr.mxu0 %v9144_v43  ;;  %11779 = vrcp.f32 %v9112_v21  ;;  %v11774_v2 = vpop.eup %11773  ;;  %v9114_v51 = vadd.f32 1.0, %v11772_v59 }
 0x940   :  { %11397 = vmatpush3.msra.mxu0 %v9144_v43  ;;  %11781 = vrcp.f32 %v9113_v15  ;;  %v9115_v45 = vadd.f32 1.0, %v11774_v2  ;;  %v11776_v20 = vpop.eup %11775 }
 0x941   :  { %11783 = vpow2.f32 %v9841_v5  ;;  %v11778_v41 = vpop.eup %11777  ;;  %v9116_v44 = vadd.f32 1.0, %v11776_v20 }
 0x942   :  { %11785 = vpow2.f32 %v9842_v0  ;;  %v9117_v49 = vadd.f32 1.0, %v11778_v41 }
 0x943   :  { %11787 = vrcp.f32 %v9114_v51 }
 0x944   :  { %11789 = vrcp.f32 %v9115_v45 }
 0x945   :  { %11791 = vrcp.f32 %v9116_v44 }
 0x946   :  { %11793 = vrcp.f32 %v9117_v49 }
 0x94c   :  { %v11780_v32 = vpop.eup %11779 }
 0x94d   :  { %v11782_v31 = vpop.eup %11781 }
 0x94e   :  { %v11784_v16 = vpop.eup %11783 }
 0x94f   :  { %v11786_v1 = vpop.eup %11785  ;;  %v9118_v40 = vadd.f32 1.0, %v11784_v16 }
 0x950   :  { %v11788_v57 = vpop.eup %11787  ;;  %v9119_v34 = vadd.f32 1.0, %v11786_v1 }
 0x951   :  { %v11790_v22 = vpop.eup %11789  ;;  %11795 = vrcp.f32 %v9118_v40 }
 0x952   :  { %11797 = vrcp.f32 %v9119_v34  ;;  %v11792_v4 = vpop.eup %11791 }
 0x953   :  { %v11794_v37 = vpop.eup %11793 }
 0x95e   :  { %v11796_v43 = vpop.eup %11795 }
 0x95f   :  { %v11798_v42 = vpop.eup %11797 }
 0x9e1   :  { %v11356_v14 = vpop.f32.mrf.mxu0 }
 0x9e2   :  { %v9137_v33 = vmul.f32 %v11782_v31, %v11356_v14 }
 0x9e3   :  { %v9049_v60 = vpop.f32.mrf.mxu0 }
 0x9e4   :  { %v9136_v61 = vmul.f32 %v11780_v32, %v9049_v60 }
 0x9e6   :  { %11398 = vmatprep.mubr.f32.mxu0 %v9136_v61 }
 0x9e7   :  { %11399 = vmatmul.mubr.f32.vlgmr.msra.gmra.mxu0 %v9137_v33 }
 0x9e9   :  { %v11359_v58 = vpop.f32.mrf.mxu0 }
 0x9ea   :  { %v9139_v13 = vmul.f32 %v11790_v22, %v11359_v58 }
 0x9eb   :  { %v9059_v3 = vpop.f32.mrf.mxu0 }
 0x9ec   :  { %v9138_v48 = vmul.f32 %v11788_v57, %v9059_v3 }
 0x9ee   :  { %11401 = vmatprep.mubr.f32.mxu0 %v9138_v48 }
 0x9ef   :  { %11402 = vmatmul.mubr.f32.gmra.mxu0 %v9139_v13 }
 0x9f1   :  { %v11362_v50 = vpop.f32.mrf.mxu0 }
 0x9f2   :  { %v9141_v28 = vmul.f32 %v11794_v37, %v11362_v50 }
 0x9f3   :  { %v9069_v8 = vpop.f32.mrf.mxu0 }
 0x9f4   :  { %v9140_v35 = vmul.f32 %v11792_v4, %v9069_v8 }
 0x9f6   :  { %11404 = vmatprep.mubr.f32.mxu0 %v9140_v35 }
 0x9f7   :  { %11405 = vmatmul.mubr.f32.gmra.mxu0 %v9141_v28 }
 0x9f9   :  { %v11365_v62 = vpop.f32.mrf.mxu0 }
 0x9fa   :  { %v9143_v46 = vmul.f32 %v11798_v42, %v11365_v62 }
 0x9fb   :  { %v9079_v23 = vpop.f32.mrf.mxu0 }
 0x9fc   :  { %v9142_v11 = vmul.f32 %v11796_v43, %v9079_v23 }
 0x9fe   :  { %11407 = vmatprep.mubr.f32.mxu0 %v9142_v11 }
 0x9ff   :  { %11408 = vmatmul.mubr.f32.gmra.mxu0 %v9143_v46 }
 0xaa7   :  { %v11400_v52 = vpop.f32.mrf.mxu0 }
 0xaa8   :  { %v9239_v47 = vadd.f32 %v11400_v52, %v9843_v53 }
 0xaa9   :  { %v9233_v30 = vpop.f32.mrf.mxu0 }
 0xaaa   :  { %9273 = vst.msk [vmem:[#allocation5 + $0x8] sm:$0xff] %vm96_vm0, %v9239_v47  ;;  %v9234_v27 = vadd.f32 %v9843_v53, %v9233_v30 }
 0xaac   :  { %9272 = vst.msk [vmem:[#allocation5] sm:$0xff] %vm96_vm0, %v9234_v27 }
 0xaaf   :  { %v11403_v38 = vpop.f32.mrf.mxu0 }
 0xab0   :  { %v9249_v9 = vadd.f32 %v11403_v38, %v9843_v53 }
 0xab1   :  { %v9243_v12 = vpop.f32.mrf.mxu0 }
 0xab2   :  { %9275 = vst.msk [vmem:[#allocation5 + $0x18] sm:$0xff] %vm96_vm0, %v9249_v9  ;;  %v9244_v10 = vadd.f32 %v9843_v53, %v9243_v12 }
 0xab4   :  { %9274 = vst.msk [vmem:[#allocation5 + $0x10] sm:$0xff] %vm96_vm0, %v9244_v10 }
 0xab7   :  { %v11406_v39 = vpop.f32.mrf.mxu0 }
 0xab8   :  { %v9259_v26 = vadd.f32 %v11406_v39, %v9843_v53 }
 0xab9   :  { %v9253_v19 = vpop.f32.mrf.mxu0 }
 0xaba   :  { %9277 = vst.msk [vmem:[#allocation5 + $0x28] sm:$0xff] %vm96_vm0, %v9259_v26  ;;  %v9254_v55 = vadd.f32 %v9843_v53, %v9253_v19 }
 0xabc   :  { %9276 = vst.msk [vmem:[#allocation5 + $0x20] sm:$0xff] %vm96_vm0, %v9254_v55 }
 0xabf   :  { %v11409_v24 = vpop.f32.mrf.mxu0 }
 0xac0   :  { %v9269_v17 = vadd.f32 %v11409_v24, %v9843_v53 }
 0xac1   :  { %v9263_v25 = vpop.f32.mrf.mxu0 }
 0xac2   :  { %9279 = vst.msk [vmem:[#allocation5 + $0x38] sm:$0xff] %vm96_vm0, %v9269_v17  ;;  %v9264_v63 = vadd.f32 %v9843_v53, %v9263_v25 }
 0xac4   :  { %9278 = vst.msk [vmem:[#allocation5 + $0x30] sm:$0xff] %vm96_vm0, %v9264_v63 }
 0xac5   :  { %11877 = shalt.err (!%p11874_p4)
}
 0xac6   :  { %s11891_s25 = smov 128   ;;  %s11892_s10 = smov 8  }
 0xac7   :  { %9291 = dma.vmem_to_hbm [thread:$0]  %s9286_s6, 1024, %s18155_s18, [#allocation6], %s11891_s25, %s11891_s25, %s11892_s10  }
 0xac8   :  { %11886 = dma.done.wait [#allocation6], 1024  }
 0xac9   :  { %11887 = vsyncadd [#allocation6], 4294966272 }
 0xaca   :  { %9295 = vsyncpa [#allocation6], 1 }

</bundles_post_ra>
